<compile_context>
chip_gen: v7x
topology: tpu7x:2x2x1
jax: 0.10.0
libtpu: 0.0.40
codegen_flags: <defaults>
</compile_context>

<pallas_src>
import math

import jax
import jax.numpy as jnp
from jax.experimental import pallas as pl
from jax.experimental.pallas import tpu as pltpu


def _rte_kernel(x_ref, t_ref, div_ref, we_ref, wo_ref, b_ref, o_ref):
    """One (tm, H) row tile: out = x + sin/cos(t*div) @ [We;Wo] + b  (f32 math)."""
    # phase[m, j] = t[m] * div_term[j]          (tm,1) * (1,H/2) -> (tm,H/2)
    phase = t_ref[...].astype(jnp.float32) * div_ref[...]
    s = jnp.sin(phase)                               # EUP; scale folded into We/Wo
    c = jnp.cos(phase)
    y = jnp.dot(s, we_ref[...], preferred_element_type=jnp.float32)
    y = y + jnp.dot(c, wo_ref[...], preferred_element_type=jnp.float32)
    o_ref[...] = (x_ref[...].astype(jnp.float32) + y + b_ref[...]).astype(o_ref.dtype)


def _default_vmem_limit_bytes():
    """Half of physical VMEM: 64 MiB on v5e/v6e (128 MiB), 32 MiB on v7x (64 MiB)."""
    try:
        cap = pltpu.get_tpu_info().vmem_capacity_bytes
    except Exception:
        cap = 64 * 1024 * 1024          # conservative (v7x per-TC) fallback
    return int(min(cap // 2, 96 * 1024 * 1024))


def _pick_tile_rows(n_rows, n_hid, itemsize, max_tile_rows, vmem_budget_bytes):
    """Largest row tile (multiple of 32) whose double-buffered streams fit VMEM."""
    half = n_hid // 2
    # Pallas allocates 2 buffers per BlockSpec even for constant index_maps.
    resident = 2 * (2 * half * n_hid + n_hid + half) * 4        # We^T, Wo^T, b, div (f32)
    per_row = 2 * (2 * n_hid * itemsize + 4)                    # x, out, t (x2 buffers)
    avail = max(vmem_budget_bytes - resident, per_row * 32)
    tm = min(int(avail // per_row), int(max_tile_rows))
    tm = max(32, (tm // 32) * 32)
    n_ceil = ((n_rows + 31) // 32) * 32
    return min(tm, max(n_ceil, 32))


def rel_temporal_encoding(x, t, w, b, *, tile_rows=None, max_tile_rows=2048,
                          vmem_limit_bytes=None):
    """x: [N, H] (f32 or bf16), t: [N] int32, w: [H, H] (out,in), b: [H]."""
    N, H = x.shape
    assert H % 2 == 0, "n_hid must be even (matches the PyTorch module)"
    itemsize = jnp.dtype(x.dtype).itemsize
    half = H // 2

    if vmem_limit_bytes is None:
        vmem_limit_bytes = _default_vmem_limit_bytes()
    budget = max(int(vmem_limit_bytes) - (4 << 20), 4 << 20)    # compiler headroom

    tm = tile_rows if tile_rows is not None else _pick_tile_rows(
        N, H, itemsize, max_tile_rows=max_tile_rows, vmem_budget_bytes=budget)
    tm = max(32, (int(tm) // 32) * 32)

    # No jnp.pad: cdiv grid; the partial trailing block's store is masked and the
    # garbage rows read into it never touch valid output (rowwise op).
    grid = (pl.cdiv(N, tm),)

    # One-time XLA prep (tiny; VMEM-resident thereafter): frozen sinusoid
    # frequencies, W split into even/odd input columns (kernel never interleaves
    # sin/cos lanes), pre-transposed to MXU-native (k, n) and pre-scaled by 1/sqrt(H).
    scale = 1.0 / math.sqrt(H)
    div_term = jnp.exp(jnp.arange(0, H, 2, dtype=jnp.float32)
                       * -(math.log(10000.0) / H)).reshape(1, half)
    w32 = w.astype(jnp.float32)
    we_t = (w32[:, 0::2] * scale).T            # [H/2, H], multiplies sin(phase)
    wo_t = (w32[:, 1::2] * scale).T            # [H/2, H], multiplies cos(phase)
    b2 = b.astype(jnp.float32).reshape(1, H)
    t2 = t.astype(jnp.int32).reshape(N, 1)

    return pl.pallas_call(
        _rte_kernel,
        out_shape=jax.ShapeDtypeStruct((N, H), x.dtype),
        grid_spec=pltpu.PrefetchScalarGridSpec(
            num_scalar_prefetch=0,
            grid=grid,
            in_specs=[
                pl.BlockSpec((tm, H), lambda i: (i, 0)),      # x     : streamed rows
                pl.BlockSpec((tm, 1), lambda i: (i, 0)),      # t     : streamed rows
                pl.BlockSpec((1, half), lambda i: (0, 0)),    # div   : VMEM-resident
                pl.BlockSpec((half, H), lambda i: (0, 0)),    # We^T  : VMEM-resident
                pl.BlockSpec((half, H), lambda i: (0, 0)),    # Wo^T  : VMEM-resident
                pl.BlockSpec((1, H), lambda i: (0, 0)),       # b     : VMEM-resident
            ],
            out_specs=pl.BlockSpec((tm, H), lambda i: (i, 0)),
        ),
        compiler_params=pltpu.CompilerParams(
            # Row tiles are independent -> shard across v7x's two TensorCores.
            dimension_semantics=("parallel",),
            vmem_limit_bytes=int(vmem_limit_bytes),
        ),
        cost_estimate=pl.CostEstimate(
            flops=2 * N * H * H,
            transcendentals=N * H,
            bytes_accessed=N * H * 2 * itemsize + N * 4 + (H * H + 2 * H) * 4,
        ),
    )(x, t2, div_term, we_t, wo_t, b2)


def make_sinusoid_table(max_len, n_hid, dtype=jnp.float32):
    """Reference-only: the frozen PyTorch embedding table."""
    position = jnp.arange(0.0, max_len, dtype=jnp.float32)[:, None]
    div_term = jnp.exp(jnp.arange(0, n_hid, 2, dtype=jnp.float32)
                       * -(math.log(10000.0) / n_hid))
    scale = 1.0 / math.sqrt(n_hid)
    table = jnp.zeros((max_len, n_hid), jnp.float32)
    table = table.at[:, 0::2].set(jnp.sin(position * div_term) * scale)
    table = table.at[:, 1::2].set(jnp.cos(position * div_term) * scale)
    return table.astype(dtype)


if __name__ == "__main__":
    key = jax.random.PRNGKey(0)
    k_x, k_w, k_b, k_t = jax.random.split(key, 4)

    # Small shapes; N deliberately not a tile multiple so the run exercises the
    # un-padded cdiv grid + masked partial trailing block. H=128 keeps loads and
    # stores lane-dense (production n_hid should be a multiple of 128).
    N = 777
    n_hid = 128
    max_len = 4020                      # module default

    x = jax.random.normal(k_x, (N, n_hid), dtype=jnp.float32)
    t = jax.random.randint(k_t, (N,), 0, max_len, dtype=jnp.int32)

    bound = 1.0 / math.sqrt(n_hid)
    w = jax.random.uniform(k_w, (n_hid, n_hid), jnp.float32, -bound, bound)
    b = jax.random.uniform(k_b, (n_hid,), jnp.float32, -bound, bound)

    # Multi-step pipelined grid (tm=256 -> 4 steps, last one partial).
    out = rel_temporal_encoding(x, t, w, b, tile_rows=256)
    jax.block_until_ready(out)

    # Pure-JAX reference mirroring the PyTorch module (table lookup + Linear).
    table = make_sinusoid_table(max_len, n_hid)
    e = jnp.take(table, t, axis=0)
    ref = x + (jnp.dot(e, w.T, precision=jax.lax.Precision.HIGHEST) + b)
    assert out.shape == (N, n_hid)
    assert jnp.allclose(out, ref, atol=1e-4, rtol=1e-4), "f32 mismatch vs reference"

    # bf16 storage path (halves the dominant HBM traffic; in-kernel math stays f32).
    out_bf16 = rel_temporal_encoding(x.astype(jnp.bfloat16), t, w, b)
    jax.block_until_ready(out_bf16)
    assert jnp.allclose(out_bf16.astype(jnp.float32), ref, atol=5e-2, rtol=5e-2), \
        "bf16 mismatch vs reference"

    print("KERNEL_OK")
</pallas_src>

<mosaic_0001>
module attributes {stable_mosaic.version = 11 : i64} {
  func.func @_rte_kernel(%arg0: i32, %arg1: memref<256x128xf32, #tpu.memory_space<vmem>>, %arg2: memref<256x1xi32, #tpu.memory_space<vmem>>, %arg3: memref<1x64xf32, #tpu.memory_space<vmem>>, %arg4: memref<64x128xf32, #tpu.memory_space<vmem>>, %arg5: memref<64x128xf32, #tpu.memory_space<vmem>>, %arg6: memref<1x128xf32, #tpu.memory_space<vmem>>, %arg7: memref<256x128xf32, #tpu.memory_space<vmem>>) attributes {dimension_semantics = [#tpu.dimension_semantics<parallel>], iteration_bounds = array<i64: 4>, scalar_prefetch = 0 : i64, scratch_operands = 0 : i64, tpu.core_type = #tpu.core_type<tc>, window_params = [{transform_indices = @transform_0, window_bounds = array<i64: 256, 128>}, {transform_indices = @transform_1, window_bounds = array<i64: 256, 1>}, {pipeline_mode = #tpu.pipeline_mode<synchronous>, transform_indices = @transform_2, window_bounds = array<i64: 1, 64>}, {pipeline_mode = #tpu.pipeline_mode<synchronous>, transform_indices = @transform_3, window_bounds = array<i64: 64, 128>}, {pipeline_mode = #tpu.pipeline_mode<synchronous>, transform_indices = @transform_4, window_bounds = array<i64: 64, 128>}, {pipeline_mode = #tpu.pipeline_mode<synchronous>, transform_indices = @transform_5, window_bounds = array<i64: 1, 128>}, {transform_indices = @transform_6, window_bounds = array<i64: 256, 128>}]} {
    %c0 = arith.constant 0 : index
    %c0_0 = arith.constant 0 : index
    %0 = vector.load %arg2[%c0, %c0_0] : memref<256x1xi32, #tpu.memory_space<vmem>>, vector<256x1xi32>
    %1 = arith.sitofp %0 : vector<256x1xi32> to vector<256x1xf32>
    %c0_1 = arith.constant 0 : index
    %c0_2 = arith.constant 0 : index
    %2 = vector.load %arg3[%c0_1, %c0_2] : memref<1x64xf32, #tpu.memory_space<vmem>>, vector<1x64xf32>
    %3 = vector.broadcast %1 : vector<256x1xf32> to vector<256x64xf32>
    %4 = vector.broadcast %2 : vector<1x64xf32> to vector<256x64xf32>
    %5 = arith.mulf %3, %4 : vector<256x64xf32>
    %6 = math.sin %5 : vector<256x64xf32>
    %7 = math.cos %5 : vector<256x64xf32>
    %c0_3 = arith.constant 0 : index
    %c0_4 = arith.constant 0 : index
    %8 = vector.load %arg4[%c0_3, %c0_4] : memref<64x128xf32, #tpu.memory_space<vmem>>, vector<64x128xf32>
    %cst = arith.constant dense<0.000000e+00> : vector<256x128xf32>
    %9 = tpu.matmul %6, %8, %cst {dimension_numbers = #tpu.dot_dimension_numbers<[1], [0], [0], [1], [0, 0, 1, 1], [], []>} : vector<256x64xf32>, vector<64x128xf32>, vector<256x128xf32> -> vector<256x128xf32>
    %c0_5 = arith.constant 0 : index
    %c0_6 = arith.constant 0 : index
    %10 = vector.load %arg5[%c0_5, %c0_6] : memref<64x128xf32, #tpu.memory_space<vmem>>, vector<64x128xf32>
    %cst_7 = arith.constant dense<0.000000e+00> : vector<256x128xf32>
    %11 = tpu.matmul %7, %10, %cst_7 {dimension_numbers = #tpu.dot_dimension_numbers<[1], [0], [0], [1], [0, 0, 1, 1], [], []>} : vector<256x64xf32>, vector<64x128xf32>, vector<256x128xf32> -> vector<256x128xf32>
    %12 = arith.addf %9, %11 : vector<256x128xf32>
    %c0_8 = arith.constant 0 : index
    %c0_9 = arith.constant 0 : index
    %13 = vector.load %arg1[%c0_8, %c0_9] : memref<256x128xf32, #tpu.memory_space<vmem>>, vector<256x128xf32>
    %14 = arith.addf %13, %12 : vector<256x128xf32>
    %c0_10 = arith.constant 0 : index
    %c0_11 = arith.constant 0 : index
    %15 = vector.load %arg6[%c0_10, %c0_11] : memref<1x128xf32, #tpu.memory_space<vmem>>, vector<1x128xf32>
    %16 = vector.broadcast %15 : vector<1x128xf32> to vector<256x128xf32>
    %17 = arith.addf %14, %16 : vector<256x128xf32>
    %c0_12 = arith.constant 0 : index
    %c0_13 = arith.constant 0 : index
    %18 = vector.load %arg7[%c0_12, %c0_13] : memref<256x128xf32, #tpu.memory_space<vmem>>, vector<256x128xf32>
    tpu.vector_store %arg7[%c0_12, %c0_13], %17 {strides = array<i32>} : memref<256x128xf32, #tpu.memory_space<vmem>>, vector<256x128xf32>,
    return
  }
  func.func @transform_0(%arg0: i32) -> (i32, i32) {
    %c0_i32 = arith.constant 0 : i32
    %c0_i32_0 = arith.constant 0 : i32
    return %arg0, %c0_i32 : i32, i32
  }
  func.func @transform_1(%arg0: i32) -> (i32, i32) {
    %c0_i32 = arith.constant 0 : i32
    %c0_i32_0 = arith.constant 0 : i32
    return %arg0, %c0_i32 : i32, i32
  }
  func.func @transform_2(%arg0: i32) -> (i32, i32) {
    %c0_i32 = arith.constant 0 : i32
    %c0_i32_0 = arith.constant 0 : i32
    %c0_i32_1 = arith.constant 0 : i32
    return %c0_i32, %c0_i32_0 : i32, i32
  }
  func.func @transform_3(%arg0: i32) -> (i32, i32) {
    %c0_i32 = arith.constant 0 : i32
    %c0_i32_0 = arith.constant 0 : i32
    %c0_i32_1 = arith.constant 0 : i32
    return %c0_i32, %c0_i32_0 : i32, i32
  }
  func.func @transform_4(%arg0: i32) -> (i32, i32) {
    %c0_i32 = arith.constant 0 : i32
    %c0_i32_0 = arith.constant 0 : i32
    %c0_i32_1 = arith.constant 0 : i32
    return %c0_i32, %c0_i32_0 : i32, i32
  }
  func.func @transform_5(%arg0: i32) -> (i32, i32) {
    %c0_i32 = arith.constant 0 : i32
    %c0_i32_0 = arith.constant 0 : i32
    %c0_i32_1 = arith.constant 0 : i32
    return %c0_i32, %c0_i32_0 : i32, i32
  }
  func.func @transform_6(%arg0: i32) -> (i32, i32) {
    %c0_i32 = arith.constant 0 : i32
    %c0_i32_0 = arith.constant 0 : i32
    return %arg0, %c0_i32 : i32, i32
  }
}

</mosaic_0001>

<bundles_post_ra>
// kernel: tpu_custom_call.1
= control target key start
LH: loop header
LB: loop body
LE: loop exit
PB: predicated region body
PF: predicated region fallthrough
CT: control target
= control target key end

     0   :  { %11 = vsyncpa [#allocation3], 0  ;;  %s12906_s0 = inlined_call_operand.vmem [shape: f32[777,128], index: 0, kind: input, shape index: {}]   ;;  %s12907_s1 = inlined_call_operand.vmem [shape: s32[777,1], index: 1, kind: input, shape index: {}]   ;;  %s12908_s2 = inlined_call_operand.vmem [shape: f32[1,64], index: 2, kind: input, shape index: {}]   ;;  %s12909_s3 = inlined_call_operand.hbm [shape: f32[64,128], index: 3, kind: input, shape index: {}]   ;;  %s12910_s4 = inlined_call_operand.hbm [shape: f32[64,128], index: 4, kind: input, shape index: {}]   ;;  %s12911_s5 = inlined_call_operand.vmem [shape: f32[1,128], index: 5, kind: input, shape index: {}]   ;;  %s12912_s6 = inlined_call_operand.hbm [shape: f32[777,128], index: 6, kind: output, shape index: {}]  }
   0x1   :  { %12 = vsyncpa [#allocation6], 0 }
   0x2   :  { %13 = vsyncpa [#allocation4], 0 }
   0x3   :  { %15 = vsyncpa [#allocation4 + $0x1], 0  ;;  %s9272_s21 = smov 0   ;;  %s9274_s22 = smov 0  }
   0x4   :  { %s9276_s23 = smov 0   ;;  %s9278_s24 = smov 0  }
   0x5 LB: > { %s9293_s25 = sadd.s32 4294967295, %s9221_s24   ;;  %s8146_s26 = sadd.s32 4294967294, %s9221_s24   ;;  %s9221_s24 = sphi %s9278_s24, %s13704_s24   ;;  %s9217_s23 = sphi %s9276_s23, %s13703_s23   ;;  %s9213_s22 = sphi %s9274_s22, %s13702_s22   ;;  %s9209_s21 = sphi %s9272_s21, %s13701_s21  }
   0x6   : > { %s9297_s27 = sadd.s32 1, %s9221_s24   ;;  %s164_s28 = sadd.s32 1, %s9217_s23 }
   0x7   : > { %s161_s29 = ssub.s32 %s9221_s24, %s9297_s27  ;;  %p174_p0 = scmp.ne.s32.totalorder %s9217_s23, %s9213_s22 }
   0x8   : > { %p162_p1 = scmp.eq.s32.totalorder %s161_s29, 0  ;;  %p175_p2 = scmp.eq.s32.totalorder %s9293_s25, 3 }
   0x9   : > { %p180_p3 = scmp.ne.s32.totalorder %s9213_s22, %s9209_s21  ;;  %p181_p4 = scmp.eq.s32.totalorder %s8146_s26, 3 }
   0xa   : > { %s9308_s30 = scalar_select %p162_p1, %s9217_s23, %s164_s28  }
   0xb   : > { %p9310_p5 = por %p175_p2, %p174_p0  ;;  %p9314_p6 = por %p181_p4, %p180_p3 }
   0xc   : > { %p8147_p7 = scmp.ge.s32.totalorder %s9221_s24, 1  ;;  %p188_p8 = scmp.lt.s32.totalorder %s9221_s24, 5 }
   0xd   : > { %s13170_s7 = scalar_select %p9310_p5, 1, 0 }
   0xe   : > { %s13171_s8 = scalar_select %p9314_p6, 1, 0 }
   0xf   : > { %p12913_p9 = scmp.eq.s32.totalorder %s9293_s25, 0  ;;  %p9321_p10 = pnand %p8147_p7, %p188_p8 }
  0x10   : > { %s9223_s10 = smov [#allocation2]   ;;  %s9224_s13 = smov [#allocation5]  }
  0x11   : > { %s13172_s9 = scalar_select %p9321_p10, 1, 0 }
  0x12   : > { %s203_s11 = sshll.u32 %s9223_s10, 4  ;;  %p8900_p11 = pneg %p9321_p10  ;;  %s204_s11 = int_to_ptr.vmem [resolvable:$true] %s203_s11 }
  0x13   : > { %s216_s14 = sshll.u32 %s9224_s13, 4  ;;  %s9095_s17 = scalar_lea.hbm %s12909_s3, 1024  ;;  %s9333_s14 = int_to_ptr.vmem [resolvable:$true] %s216_s14 }
  0x14   : > { %p9329_p12 = pnand %p12913_p9, %p8900_p11  ;;  %p9096_p13 = scmp.ne.s32.totalorder %s12909_s3, %s9095_s17 }
  0x15   : > { %p9102_p3 = scmp.lt.u32.totalorder %s9095_s17, %s12909_s3 }
  0x16   : > { %p9097_p0 = pneg %p9329_p12 }
  0x18   : > { %p9098_p1 = pnand %p9097_p0, %p9096_p13 }
  0x1a   : > { %p9099_p2 = pneg %p9098_p1 }
  0x1c   : > { %p9104_p4 = pnand %p9102_p3, %p9099_p2 }
  0x1e   : > { %9107 = shalt.err (!%p9104_p4)
}
  0x1f   : > { %s9108_s28 = scalar_lea.vmem %s204_s11, 1024  ;;  %p9116_p9 = scmp.lt.s32.totalorder %s204_s11, %s204_s11 }
  0x20   : > { %p9109_p7 = scmp.ne.s32.totalorder %s204_s11, %s9108_s28  ;;  %p9117_p6 = scmp.lt.s32.totalorder %s9108_s28, %s9108_s28 }
  0x22   : > { %p9111_p8 = pnand %p9109_p7, %p9097_p0  ;;  %p9118_p5 = por %p9117_p6, %p9116_p9 }
  0x24   : > { %p9112_p11 = pneg %p9111_p8 }
  0x26   : > { %p9119_p10 = pnand %p9118_p5, %p9112_p11 }
  0x28   : > { %9122 = shalt.err (!%p9119_p10)
}
  0x29   : > { %s9225_s29 = smov 128   ;;  %s9226_s10 = smov 8  }
  0x2a   : > { %8903 = dma.hbm_to_vmem [thread:$0]  (!%p9329_p12), %s12909_s3, 1024, %s204_s11, [#allocation3], %s9225_s29, %s9225_s29, %s9226_s10  }
  0x2b   : > { %s9123_s18 = scalar_lea.hbm %s12910_s4, 1024 }
  0x2c   : > { %p9124_p13 = scmp.ne.s32.totalorder %s12910_s4, %s9123_s18  ;;  %p9130_p9 = scmp.lt.u32.totalorder %s9123_s18, %s12910_s4 }
  0x2e   : > { %p9126_p5 = pnand %p9124_p13, %p9097_p0 }
  0x30   : > { %p9127_p6 = pneg %p9126_p5 }
  0x32   : > { %p9132_p10 = pnand %p9130_p9, %p9127_p6 }
  0x34   : > { %9135 = shalt.err (!%p9132_p10)
}
  0x35   : > { %s9136_s11 = scalar_lea.vmem %s9333_s14, 1024  ;;  %p9144_p4 = scmp.lt.s32.totalorder %s9333_s14, %s9333_s14 }
  0x36   : > { %p9137_p1 = scmp.ne.s32.totalorder %s9333_s14, %s9136_s11  ;;  %p9145_p7 = scmp.lt.s32.totalorder %s9136_s11, %s9136_s11 }
  0x38   : > { %p9139_p2 = pnand %p9137_p1, %p9097_p0  ;;  %p9146_p8 = por %p9145_p7, %p9144_p4 }
  0x3a   : > { %p9140_p3 = pneg %p9139_p2 }
  0x3c   : > { %p9147_p11 = pnand %p9146_p8, %p9140_p3 }
  0x3e   : > { %9150 = shalt.err (!%p9147_p11)
}
  0x3f   : > { %8906 = dma.hbm_to_vmem [thread:$0]  (!%p9329_p12), %s12910_s4, 1024, %s9333_s14, [#allocation6], %s9225_s29, %s9225_s29, %s9226_s10  }
  0x40   : > { %p13174_p13 = scmp.ne.s32.totalorder %s13172_s9, 0 }
  0x42   : > { %269 = sbr.rel (%p13174_p13) target bundleno = 1373 (0x55d), region = 44 }
  0x49   : > { %p13175_p5 = scmp.eq.s32.totalorder %s9293_s25, 0 }
  0x4b   : > { %9196 = dma.done.wait (%p13175_p5), [#allocation3], 1024   ;;  %p13176_p0 = pmov %p13175_p5 }
  0x4d   : > { %9198 = vsyncadd (%p13176_p0), [#allocation3], 4294966272  ;;  %p13177_p6 = pmov %p13176_p0 }
  0x4e   : > { %p13178_p9 = pmov %p13176_p0 }
  0x4f   : > { %9200 = dma.done.wait (%p13177_p6), [#allocation6], 1024  }
  0x50   : > { %9202 = vsyncadd (%p13178_p9), [#allocation6], 4294966272  ;;  %s9393_s12 = sshll.u32 %s9293_s25, 5  ;;  %v9227_v0 = vmov 0   ;;  %s313_s10 = sand.u32 1, %s9213_s22  }
  0x51   : > { %8962 = vset.pattern.permute.xlu1 %v9227_v0  ;;  %8961 = vset.pattern.permute.xlu0 %v9227_v0  ;;  %p321_p12 = scmp.lt.s32.totalorder %s9393_s12, 97  ;;  %s8154_s19 = sshll.u32 %s313_s10, 8 }
  0x52   : > { %s12845_s26 = scalar_lea.sflag [#allocation4], %s313_s10  ;;  %p13699_p10 = scmp.ne.s32.totalorder %s13170_s7, 0 }
  0x53   : > { %s9397_s9 = scalar_select %p321_p12, %s9393_s12, 97 }
  0x54   : > { %s8039_s28 = ssub.s32 (%p13699_p10), 98, %s9393_s12 }
  0x55   : > { %s8156_s14 = sshll.u32 %s9397_s9, 3  ;;  %p8040_p1 = scmp.lt.s32.totalorder (%p13699_p10), %s8039_s28, 32 }
  0x56   : > { %s9405_s16 = scalar_lea.vmem %s12907_s1, %s8156_s14  ;;  %s12736_s18 = scalar_lea.vmem %s12906_s0, %s8156_s14 }
  0x57   : > { %v351_v1 = vld [vmem:[%s9405_s16 + $0x10] sm:$0xff]  ;;  %v349_v2 = vld [vmem:[%s9405_s16] sm:$0xff]  ;;  %v352_v3 = vld [vmem:[%s9405_s16 + $0x18] sm:$0xff]  ;;  %s12751_s14 = scalar_lea.vmem [#allocation7], %s8154_s19 }
  0x58   : > { %v383_v4 = vcvt.s32.f32 %v351_v1  ;;  %v381_v5 = vcvt.s32.f32 %v349_v2  ;;  %v350_v6 = vld [vmem:[%s9405_s16 + $0x8] sm:$0xff]  ;;  %v384_v7 = vcvt.s32.f32 %v352_v3  ;;  %v353_v10 = vld [vmem:[%s9405_s16 + $0x20] sm:$0xff]  ;;  %v356_v13 = vld [vmem:[%s9405_s16 + $0x38] sm:$0xff] }
  0x59   : > { %v382_v8 = vcvt.s32.f32 %v350_v6  ;;  %v354_v9 = vld [vmem:[%s9405_s16 + $0x28] sm:$0xff]  ;;  %v385_v12 = vcvt.s32.f32 %v353_v10  ;;  %v355_v14 = vld [vmem:[%s9405_s16 + $0x30] sm:$0xff]  ;;  %v388_v15 = vcvt.s32.f32 %v356_v13  ;;  %v357_v18 = vld [vmem:[%s9405_s16 + $0x40] sm:$0xff] }
  0x5a   : > { %426 = vperm.xlu1 %8962, %v383_v4   ;;  %416 = vperm.xlu0 %8961, %v381_v5   ;;  %v386_v11 = vcvt.s32.f32 %v354_v9  ;;  %v387_v16 = vcvt.s32.f32 %v355_v14  ;;  %v358_v17 = vld [vmem:[%s9405_s16 + $0x48] sm:$0xff]  ;;  %v389_v20 = vcvt.s32.f32 %v357_v18  ;;  %v360_v21 = vld [vmem:[%s9405_s16 + $0x58] sm:$0xff]  ;;  %v359_v22 = vld [vmem:[%s9405_s16 + $0x50] sm:$0xff] }
  0x5b   : > { %v390_v19 = vcvt.s32.f32 %v358_v17  ;;  %v392_v23 = vcvt.s32.f32 %v360_v21  ;;  %v391_v24 = vcvt.s32.f32 %v359_v22  ;;  %v362_v25 = vld [vmem:[%s9405_s16 + $0x68] sm:$0xff]  ;;  %v361_v26 = vld [vmem:[%s9405_s16 + $0x60] sm:$0xff]  ;;  %v364_v29 = vld [vmem:[%s9405_s16 + $0x78] sm:$0xff] }
  0x5c   : > { %v394_v27 = vcvt.s32.f32 %v362_v25  ;;  %v393_v28 = vcvt.s32.f32 %v361_v26  ;;  %v363_v30 = vld [vmem:[%s9405_s16 + $0x70] sm:$0xff]  ;;  %v396_v31 = vcvt.s32.f32 %v364_v29  ;;  %v366_v33 = vld [vmem:[%s9405_s16 + $0x88] sm:$0xff]  ;;  %v365_v34 = vld [vmem:[%s9405_s16 + $0x80] sm:$0xff]  ;;  %v12924_v25 = vmov 2475754826  }
  0x5d   : > { %v395_v32 = vcvt.s32.f32 %v363_v30  ;;  %v398_v35 = vcvt.s32.f32 %v366_v33  ;;  %v397_v36 = vcvt.s32.f32 %v365_v34  ;;  %v368_v37 = vld [vmem:[%s9405_s16 + $0x98] sm:$0xff]  ;;  %v367_v38 = vld [vmem:[%s9405_s16 + $0x90] sm:$0xff]  ;;  %v370_v41 = vld [vmem:[%s9405_s16 + $0xa8] sm:$0xff]  ;;  %v12945_v30 = vmov 2102212464  }
  0x5e   : > { %431 = vperm.xlu1 %8962, %v384_v7   ;;  %421 = vperm.xlu0 %8961, %v382_v8   ;;  %v400_v39 = vcvt.s32.f32 %v368_v37  ;;  %v399_v40 = vcvt.s32.f32 %v367_v38  ;;  %v369_v42 = vld [vmem:[%s9405_s16 + $0xa0] sm:$0xff]  ;;  %v402_v43 = vcvt.s32.f32 %v370_v41  ;;  %v372_v45 = vld [vmem:[%s9405_s16 + $0xb8] sm:$0xff]  ;;  %v371_v46 = vld [vmem:[%s9405_s16 + $0xb0] sm:$0xff] }
  0x5f   : > { %v401_v44 = vcvt.s32.f32 %v369_v42  ;;  %v404_v47 = vcvt.s32.f32 %v372_v45  ;;  %v403_v48 = vcvt.s32.f32 %v371_v46  ;;  %v374_v49 = vld [vmem:[%s9405_s16 + $0xc8] sm:$0xff]  ;;  %v373_v50 = vld [vmem:[%s9405_s16 + $0xc0] sm:$0xff]  ;;  %v376_v53 = vld [vmem:[%s9405_s16 + $0xd8] sm:$0xff] }
  0x60   : > { %v406_v51 = vcvt.s32.f32 %v374_v49  ;;  %v405_v52 = vcvt.s32.f32 %v373_v50  ;;  %v375_v54 = vld [vmem:[%s9405_s16 + $0xd0] sm:$0xff]  ;;  %v408_v55 = vcvt.s32.f32 %v376_v53  ;;  %v378_v57 = vld [vmem:[%s9405_s16 + $0xe8] sm:$0xff]  ;;  %v377_v58 = vld [vmem:[%s9405_s16 + $0xe0] sm:$0xff] }
  0x61   : > { %v407_v56 = vcvt.s32.f32 %v375_v54  ;;  %v410_v59 = vcvt.s32.f32 %v378_v57  ;;  %v409_v60 = vcvt.s32.f32 %v377_v58  ;;  %v380_v61 = vld [vmem:[%s9405_s16 + $0xf8] sm:$0xff]  ;;  %v379_v62 = vld [vmem:[%s9405_s16 + $0xf0] sm:$0xff]  ;;  %v9442_v1 = vld [vmem:[%s12908_s2] ss:$0 sm:$0xff] }
  0x62   : > { %441 = vperm.xlu1 %8962, %v386_v11   ;;  %436 = vperm.xlu0 %8961, %v385_v12   ;;  %v412_v63 = vcvt.s32.f32 %v380_v61  ;;  %v411_v0 = vcvt.s32.f32 %v379_v62 }
  0x66   : > { %451 = vperm.xlu1 %8962, %v388_v15   ;;  %446 = vperm.xlu0 %8961, %v387_v16  }
  0x6a   : > { %461 = vperm.xlu1 %8962, %v390_v19   ;;  %456 = vperm.xlu0 %8961, %v389_v20  }
  0x6e   : > { %471 = vperm.xlu1 %8962, %v392_v23   ;;  %466 = vperm.xlu0 %8961, %v391_v24   ;;  %v12927_v23 = vmov 683565275  }
  0x72   : > { %481 = vperm.xlu1 %8962, %v394_v27   ;;  %476 = vperm.xlu0 %8961, %v393_v28   ;;  %v12922_v27 = vmov 2131351028  }
  0x76   : > { %491 = vperm.xlu1 %8962, %v396_v31   ;;  %486 = vperm.xlu0 %8961, %v395_v32   ;;  %v12951_v32 = vmov 920167782  }
  0x7a   : > { %501 = vperm.xlu1 %8962, %v398_v35   ;;  %496 = vperm.xlu0 %8961, %v397_v36  }
  0x7e   : > { %511 = vperm.xlu1 %8962, %v400_v39   ;;  %506 = vperm.xlu0 %8961, %v399_v40   ;;  %v12920_v40 = vmov 1326507024  }
  0x82   : > { %521 = vperm.xlu1 %8962, %v402_v43   ;;  %516 = vperm.xlu0 %8961, %v401_v44  }
  0x86   : > { %531 = vperm.xlu1 %8962, %v404_v47   ;;  %526 = vperm.xlu0 %8961, %v403_v48  }
  0x8a   : > { %541 = vperm.xlu1 %8962, %v406_v51   ;;  %536 = vperm.xlu0 %8961, %v405_v52  }
  0x8e   : > { %551 = vperm.xlu1 %8962, %v408_v55   ;;  %546 = vperm.xlu0 %8961, %v407_v56  }
  0x92   : > { %561 = vperm.xlu1 %8962, %v410_v59   ;;  %556 = vperm.xlu0 %8961, %v409_v60  }
  0x96   : > { %571 = vperm.xlu1 %8962, %v412_v63   ;;  %566 = vperm.xlu0 %8961, %v411_v0  }
  0xd9   : > { %v427_v2 = vpop.permute.xlu1 %426  ;;  %v9449_v6 = vpop.permute.xlu0 %416 }
  0xda   : > { %v9445_v3 = vmul.f32 %v9442_v1, %v427_v2 }
  0xdc   : > { %13179 = vst [vmem:[#allocation11_spill] sm:$0xff] %v9445_v3  ;;  %v823_v4 = vand.u32 2139095040, %v9445_v3  ;;  %v820_v5 = vand.u32 2147483647, %v9445_v3 }
  0xdd   : > { %v432_v7 = vpop.permute.xlu1 %431  ;;  %v422_v15 = vpop.permute.xlu0 %421 }
  0xde   : > { %v824_v8 = vshrl.u32 %v823_v4, 23  ;;  %v9452_v9 = vmul.f32 %v9442_v1, %v432_v7  ;;  %v827_v11 = vand.u32 8388607, %v820_v5  ;;  %v9458_v19 = vmul.f32 %v9442_v1, %v422_v15 }
  0xe0   : > { %13180 = vst [vmem:[#allocation12_spill] sm:$0xff] %v9452_v9  ;;  %v8168_v10 = vadd.s32 4294967169, %v824_v8  ;;  %v927_v12 = vand.u32 2139095040, %v9452_v9  ;;  %v828_v16 = vor.u32 8388608, %v827_v11  ;;  %13181 = vst [vmem:[#allocation13_spill] sm:$0xff] %v9458_v19  ;;  %v719_v38 = vand.u32 2139095040, %v9458_v19 }
  0xe1   : > { %v924_v20 = vand.u32 2147483647, %v9452_v9 }
  0xe2   : > { %v830_v13 = vadd.s32 1, %v8168_v10  ;;  %v928_v14 = vshrl.u32 %v927_v12, 23  ;;  %v868_v34 = vshll.u32 %v828_v16, 8  ;;  %v720_v53 = vshrl.u32 %v719_v38, 23 }
  0xe3   : > { %v931_v42 = vand.u32 8388607, %v924_v20 }
  0xe4   : > { %vm831_vm0 = vcmp.gt.s32.totalorder %v830_v13, 0  ;;  %v8172_v21 = vadd.s32 4294967169, %v928_v14  ;;  %v8164_v8 = vadd.s32 4294967169, %v720_v53 }
  0xe5   : > { %v832_v17 = vsel %vm831_vm0, %v830_v13, 0  ;;  %v932_v62 = vor.u32 8388608, %v931_v42 }
  0xe6   : > { %v834_v18 = vand.u32 31, %v832_v17  ;;  %v833_v29 = vshrl.u32 %v832_v17, 5  ;;  %v934_v43 = vadd.s32 1, %v8172_v21  ;;  %v726_v16 = vadd.s32 1, %v8164_v8 }
  0xe7   : > { %v9482_v13 = vshll.u32 %v932_v62, 8 }
  0xe8   : > { %v835_v22 = vsub.s32 32, %v834_v18  ;;  %v837_v24 = vshll.u32 %v12927_v23, %v834_v18  ;;  %v840_v26 = vshll.u32 %v12924_v25, %v834_v18  ;;  %v843_v28 = vshll.u32 %v12922_v27, %v834_v18 }
  0xe9   : > { %v846_v31 = vshll.u32 %v12945_v30, %v834_v18  ;;  %v849_v33 = vshll.u32 %v12951_v32, %v834_v18  ;;  %vm852_vm1 = vcmp.lt.s32.totalorder %v833_v29, 1  ;;  %vm855_vm2 = vcmp.lt.s32.totalorder %v833_v29, 4 }
  0xea   : > { %v838_v35 = vshrl.u32 %v12924_v25, %v835_v22  ;;  %v841_v36 = vshrl.u32 %v12922_v27, %v835_v22  ;;  %v844_v37 = vshrl.u32 %v12945_v30, %v835_v22  ;;  %v847_v39 = vshrl.u32 %v12951_v32, %v835_v22 }
  0xeb   : > { %v850_v41 = vshrl.u32 %v12920_v40, %v835_v22  ;;  %v836_v44 = vshrl.u32 %v12927_v23, %v835_v22  ;;  %vm853_vm3 = vcmp.lt.s32.totalorder %v833_v29, 2  ;;  %vm854_vm4 = vcmp.lt.s32.totalorder %v833_v29, 3 }
  0xec   : > { %v839_v45 = vor.u32 %v838_v35, %v837_v24  ;;  %v842_v46 = vor.u32 %v841_v36, %v840_v26  ;;  %v845_v47 = vor.u32 %v844_v37, %v843_v28  ;;  %v848_v48 = vor.u32 %v847_v39, %v846_v31 }
  0xed   : > { %v851_v49 = vor.u32 %v850_v41, %v849_v33  ;;  %vm935_vm5 = vcmp.gt.s32.totalorder %v934_v43, 0  ;;  %vm727_vm11 = vcmp.gt.s32.totalorder %v726_v16, 0 }
  0xee   : > { %v857_v50 = vsel %vm855_vm2, %v845_v47, 2102212464  ;;  %v860_v51 = vsel %vm852_vm1, %v839_v45, %v842_v46  ;;  %v864_v52 = vsel %vm852_vm1, %v842_v46, %v845_v47  ;;  %v861_v54 = vsel %vm855_vm2, %v848_v48, 920167782 }
  0xef   : > { %v865_v55 = vsel %vm855_vm2, %v851_v49, 1326507024  ;;  %v856_v56 = vsel %vm852_vm1, %v836_v44, %v839_v45  ;;  %v858_v57 = vsel %vm854_vm4, %v842_v46, %v857_v50  ;;  %v862_v58 = vsel %vm854_vm4, %v845_v47, %v861_v54 }
  0xf0   : > { %v866_v59 = vsel %vm854_vm4, %v848_v48, %v865_v55  ;;  %v863_v60 = vsel %vm853_vm3, %v860_v51, %v862_v58  ;;  %v859_v7 = vsel %vm853_vm3, %v856_v56, %v858_v57  ;;  %v936_v10 = vsel %vm935_vm5, %v934_v43, 0 }
  0xf1   : > { %v867_v61 = vsel %vm853_vm3, %v864_v52, %v866_v59  ;;  %v9478_v2 = vmul.u32.u64.low %v868_v34, %v863_v60  ;;  %v9479_v4 = vmul.u32.u64.high %v868_v34, %v863_v60, %v9478_v2  ;;  %v937_v11 = vshrl.u32 %v936_v10, 5 }
  0xf2   : > { %v9475_v63 = vmul.u32.u64.low %v868_v34, %v867_v61  ;;  %v9476_v0 = vmul.u32.u64.high %v868_v34, %v867_v61, %v9475_v63  ;;  %v938_v12 = vand.u32 31, %v936_v10  ;;  %v875_v14 = vmul.u32 %v868_v34, %v859_v7 }
  0xf3   : > { %v878_v15 = vadd.s32 1, %v9479_v4  ;;  %vm956_vm7 = vcmp.lt.s32.totalorder %v937_v11, 1  ;;  %vm957_vm8 = vcmp.lt.s32.totalorder %v937_v11, 2  ;;  %vm958_vm9 = vcmp.lt.s32.totalorder %v937_v11, 3  ;;  %v442_v63 = vpop.permute.xlu1 %441 }
  0xf4   : > { %vm877_vm6 = vc.u32 %v9476_v0, %v9478_v2  ;;  %v939_v17 = vsub.s32 32, %v938_v12  ;;  %v941_v18 = vshll.u32 %v12927_v23, %v938_v12  ;;  %v944_v21 = vshll.u32 %v12924_v25, %v938_v12 }
  0xf5   : > { %v947_v22 = vshll.u32 %v12922_v27, %v938_v12  ;;  %v879_v24 = vsel %vm877_vm6, %v878_v15, %v9479_v4  ;;  %v950_v26 = vshll.u32 %v12945_v30, %v938_v12  ;;  %v953_v28 = vshll.u32 %v12951_v32, %v938_v12 }
  0xf6   : > { %v880_v29 = vadd.s32 %v879_v24, %v875_v14  ;;  %v940_v31 = vshrl.u32 %v12927_v23, %v939_v17  ;;  %v942_v33 = vshrl.u32 %v12924_v25, %v939_v17  ;;  %v945_v34 = vshrl.u32 %v12922_v27, %v939_v17 }
  0xf7   : > { %v948_v35 = vshrl.u32 %v12945_v30, %v939_v17  ;;  %v951_v36 = vshrl.u32 %v12951_v32, %v939_v17  ;;  %v954_v37 = vshrl.u32 %v12920_v40, %v939_v17  ;;  %vm959_vm10 = vcmp.lt.s32.totalorder %v937_v11, 4 }
  0xf8   : > { %v881_v38 = vadd.s32 536870912, %v880_v29  ;;  %v943_v39 = vor.u32 %v942_v33, %v941_v18  ;;  %v946_v41 = vor.u32 %v945_v34, %v944_v21  ;;  %v12918_v58 = vand.u32 2147483647, %v9458_v19 }
  0xf9   : > { %v949_v42 = vor.u32 %v948_v35, %v947_v22  ;;  %v952_v43 = vor.u32 %v951_v36, %v950_v26  ;;  %v955_v44 = vor.u32 %v954_v37, %v953_v28  ;;  %v728_v59 = vsel %vm727_vm11, %v726_v16, 0 }
  0xfa   : > { %v9499_v45 = vshrl.u32 %v881_v38, 30  ;;  %v960_v46 = vsel %vm956_vm7, %v940_v31, %v943_v39  ;;  %v964_v47 = vsel %vm956_vm7, %v943_v39, %v946_v41  ;;  %v730_v10 = vand.u32 31, %v728_v59 }
  0xfb   : > { %v961_v48 = vsel %vm959_vm10, %v949_v42, 2102212464  ;;  %v965_v49 = vsel %vm959_vm10, %v952_v43, 920167782  ;;  %v968_v50 = vsel %vm956_vm7, %v946_v41, %v949_v42  ;;  %v969_v51 = vsel %vm959_vm10, %v955_v44, 1326507024 }
  0xfc   : > { %13182 = vst [vmem:[#allocation14_spill] sm:$0xff] %v9499_v45  ;;  %v883_v52 = vshll.u32 %v9499_v45, 30  ;;  %v962_v53 = vsel %vm958_vm9, %v946_v41, %v961_v48  ;;  %v966_v54 = vsel %vm958_vm9, %v949_v42, %v965_v49  ;;  %v970_v55 = vsel %vm958_vm9, %v952_v43, %v969_v51 }
  0xfd   : > { %v967_v56 = vsel %vm957_vm8, %v964_v47, %v966_v54  ;;  %v971_v57 = vsel %vm957_vm8, %v968_v50, %v970_v55  ;;  %v963_v4 = vsel %vm957_vm8, %v960_v46, %v962_v53  ;;  %v723_v14 = vand.u32 8388607, %v12918_v58 }
  0xfe   : > { %v9511_v60 = vsub.s32 %v880_v29, %v883_v52  ;;  %v9514_v61 = vmul.u32.u64.low %v9482_v13, %v971_v57  ;;  %v9515_v62 = vmul.u32.u64.high %v9482_v13, %v971_v57, %v9514_v61  ;;  %v731_v15 = vsub.s32 32, %v730_v10 }
  0xff   : > { %v9519_v7 = vmul.u32.u64.low %v9482_v13, %v967_v56  ;;  %v9520_v8 = vmul.u32.u64.high %v9482_v13, %v967_v56, %v9519_v7  ;;  %v9527_v16 = vmul.f32 %v9442_v1, %v442_v63  ;;  %v979_v17 = vmul.u32 %v9482_v13, %v963_v4 }
 0x100   : > { %v886_v12 = vsub.s32 0, %v9511_v60  ;;  %v729_v11 = vshrl.u32 %v728_v59, 5  ;;  %v733_v18 = vshll.u32 %v12927_v23, %v730_v10  ;;  %v734_v22 = vshrl.u32 %v12924_v25, %v731_v15 }
 0x101   : > { %13183 = vst [vmem:[#allocation15_spill] sm:$0xff] %v9527_v16  ;;  %vm981_vm12 = vc.u32 %v9515_v62, %v9519_v7  ;;  %v982_v21 = vadd.s32 1, %v9520_v8  ;;  %v736_v24 = vshll.u32 %v12924_v25, %v730_v10  ;;  %v737_v26 = vshrl.u32 %v12922_v27, %v731_v15 }
 0x102   : > { %v739_v28 = vshll.u32 %v12922_v27, %v730_v10  ;;  %v740_v29 = vshrl.u32 %v12945_v30, %v731_v15  ;;  %v742_v13 = vshll.u32 %v12945_v30, %v730_v10  ;;  %v743_v31 = vshrl.u32 %v12951_v32, %v731_v15 }
 0x103   : > { %v8169_v33 = vmin.u32 %v886_v12, %v9511_v60  ;;  %v983_v34 = vsel %vm981_vm12, %v982_v21, %v9520_v8  ;;  %v745_v35 = vshll.u32 %v12951_v32, %v730_v10  ;;  %v746_v36 = vshrl.u32 %v12920_v40, %v731_v15 }
 0x104   : > { %v984_v37 = vadd.s32 %v983_v34, %v979_v17  ;;  %v735_v38 = vor.u32 %v734_v22, %v733_v18  ;;  %v738_v39 = vor.u32 %v737_v26, %v736_v24  ;;  %v744_v41 = vor.u32 %v743_v31, %v742_v13 }
 0x105   : > { %v741_v42 = vor.u32 %v740_v29, %v739_v28  ;;  %v747_v43 = vor.u32 %v746_v36, %v745_v35  ;;  %v724_v46 = vor.u32 8388608, %v723_v14  ;;  %vm751_vm13 = vcmp.lt.s32.totalorder %v729_v11, 4 }
 0x106   : > { %v985_v44 = vadd.s32 536870912, %v984_v37  ;;  %v888_v47 = vclz %v8169_v33  ;;  %vm748_vm14 = vcmp.lt.s32.totalorder %v729_v11, 1  ;;  %v757_v48 = vsel %vm751_vm13, %v744_v41, 920167782 }
 0x107   : > { %v1135_v49 = vand.u32 2139095040, %v9527_v16  ;;  %vm750_vm15 = vcmp.lt.s32.totalorder %v729_v11, 3  ;;  %v756_v50 = vsel %vm748_vm14, %v735_v38, %v738_v39  ;;  %v753_v51 = vsel %vm751_vm13, %v741_v42, 2102212464 }
 0x108   : > { %v758_v52 = vsel %vm750_vm15, %v741_v42, %v757_v48  ;;  %v760_v53 = vsel %vm748_vm14, %v738_v39, %v741_v42  ;;  %v761_v54 = vsel %vm751_vm13, %v747_v43, 1326507024  ;;  %v9549_v55 = vshrl.u32 %v985_v44, 30 }
 0x109   : > { %v732_v56 = vshrl.u32 %v12927_v23, %v731_v15  ;;  %vm749_vm0 = vcmp.lt.s32.totalorder %v729_v11, 2  ;;  %v764_v57 = vshll.u32 %v724_v46, 8  ;;  %v8170_v59 = vadd.s32 4294967294, %v888_v47  ;;  %v437_v46 = vpop.permute.xlu0 %436 }
 0x10a   : > { %13184 = vst [vmem:[#allocation16_spill] sm:$0xff] %v9549_v55  ;;  %v759_v61 = vsel %vm749_vm0, %v756_v50, %v758_v52  ;;  %v762_v63 = vsel %vm750_vm15, %v744_v41, %v761_v54  ;;  %v1136_v4 = vshrl.u32 %v1135_v49, 23  ;;  %v9555_v8 = vmul.f32 %v9442_v1, %v9449_v6 }
 0x10b   : > { %v752_v10 = vsel %vm748_vm14, %v732_v56, %v735_v38  ;;  %v754_v12 = vsel %vm750_vm15, %v738_v39, %v753_v51  ;;  %v763_v14 = vsel %vm749_vm0, %v760_v53, %v762_v63  ;;  %v987_v22 = vshll.u32 %v9549_v55, 30 }
 0x10c   : > { %v9559_v17 = vmul.u32.u64.low %v764_v57, %v763_v14  ;;  %v9560_v18 = vmul.u32.u64.high %v764_v57, %v763_v14, %v9559_v17  ;;  %v9562_v15 = vmul.u32.u64.low %v764_v57, %v759_v61  ;;  %v9563_v21 = vmul.u32.u64.high %v764_v57, %v759_v61, %v9562_v15 }
 0x10d   : > { %v8180_v24 = vadd.s32 4294967169, %v1136_v4  ;;  %vm8171_vm1 = vcmp.lt.s32.totalorder %v8170_v59, 0  ;;  %v755_v26 = vsel %vm749_vm0, %v752_v10, %v754_v12  ;;  %v615_v6 = vand.u32 2139095040, %v9555_v8 }
 0x10e   : > { %vm773_vm2 = vc.u32 %v9560_v18, %v9562_v15  ;;  %v774_v11 = vadd.s32 1, %v9563_v21  ;;  %v9571_v29 = vsel %vm8171_vm1, 0, %v8170_v59  ;;  %v9573_v13 = vsub.s32 %v984_v37, %v987_v22 }
 0x10f   : > { %v1142_v28 = vadd.s32 1, %v8180_v24  ;;  %v771_v31 = vmul.u32 %v764_v57, %v755_v26  ;;  %v616_v35 = vshrl.u32 %v615_v6, 23  ;;  %v896_v38 = vsub.s32 4294967266, %v9571_v29 }
 0x110   : > { %v775_v33 = vsel %vm773_vm2, %v774_v11, %v9563_v21  ;;  %v12917_v39 = vand.u32 2147483647, %v9527_v16  ;;  %v990_v42 = vsub.s32 0, %v9573_v13  ;;  %v9588_v54 = vmul.f32 %v9442_v1, %v437_v46 }
 0x111   : > { %vm1143_vm3 = vcmp.gt.s32.totalorder %v1142_v28, 0  ;;  %v776_v36 = vadd.s32 %v775_v33, %v771_v31  ;;  %v8160_v47 = vadd.s32 4294967169, %v616_v35  ;;  %v897_v37 = vadd.s32 127, %v896_v38 }
 0x112   : > { %v1144_v34 = vsel %vm1143_vm3, %v1142_v28, 0  ;;  %v1139_v49 = vand.u32 8388607, %v12917_v39  ;;  %v8173_v51 = vmin.u32 %v990_v42, %v9573_v13  ;;  %13186 = vst [vmem:[#allocation18_spill] sm:$0xff] %v9588_v54  ;;  %v876_v63 = vadd.s32 %v9478_v2, %v9476_v0 }
 0x113   : > { %v1146_v41 = vand.u32 31, %v1144_v34  ;;  %v777_v43 = vadd.s32 536870912, %v776_v36  ;;  %v892_v4 = vsub.s32 32, %v9571_v29  ;;  %v1145_v10 = vshrl.u32 %v1144_v34, 5 }
 0x114   : > { %v898_v24 = vshll.u32 %v897_v37, 23  ;;  %v1140_v26 = vor.u32 8388608, %v1139_v49  ;;  %v992_v11 = vclz %v8173_v51  ;;  %v1031_v2 = vand.u32 2139095040, %v9588_v54 }
 0x115   : > { %v1147_v44 = vsub.s32 32, %v1146_v41  ;;  %v9579_v48 = vshrl.u32 %v777_v43, 30  ;;  %v1149_v52 = vshll.u32 %v12927_v23, %v1146_v41  ;;  %v1152_v57 = vshll.u32 %v12924_v25, %v1146_v41 }
 0x116   : > { %v1155_v59 = vshll.u32 %v12922_v27, %v1146_v41  ;;  %v1158_v21 = vshll.u32 %v12945_v30, %v1146_v41  ;;  %v1161_v6 = vshll.u32 %v12951_v32, %v1146_v41  ;;  %vm1164_vm4 = vcmp.lt.s32.totalorder %v1145_v10, 1 }
 0x117   : > { %13185 = vst [vmem:[#allocation17_spill] sm:$0xff] %v9579_v48  ;;  %v1150_v50 = vshrl.u32 %v12924_v25, %v1147_v44  ;;  %v1153_v53 = vshrl.u32 %v12922_v27, %v1147_v44  ;;  %v779_v56 = vshll.u32 %v9579_v48, 30  ;;  %v1156_v61 = vshrl.u32 %v12945_v30, %v1147_v44 }
 0x118   : > { %v1159_v22 = vshrl.u32 %v12951_v32, %v1147_v44  ;;  %v1162_v28 = vshrl.u32 %v12920_v40, %v1147_v44  ;;  %v1148_v33 = vshrl.u32 %v12927_v23, %v1147_v44  ;;  %vm1167_vm5 = vcmp.lt.s32.totalorder %v1145_v10, 4 }
 0x119   : > { %v1151_v12 = vor.u32 %v1150_v50, %v1149_v52  ;;  %v1154_v14 = vor.u32 %v1153_v53, %v1152_v57  ;;  %v1157_v17 = vor.u32 %v1156_v61, %v1155_v59  ;;  %v9601_v31 = vsub.s32 %v776_v36, %v779_v56 }
 0x11a   : > { %v1160_v0 = vor.u32 %v1159_v22, %v1158_v21  ;;  %v1163_v34 = vor.u32 %v1162_v28, %v1161_v6  ;;  %vm1166_vm6 = vcmp.lt.s32.totalorder %v1145_v10, 3  ;;  %vm1165_vm7 = vcmp.lt.s32.totalorder %v1145_v10, 2 }
 0x11b   : > { %v1169_v35 = vsel %vm1167_vm5, %v1157_v17, 2102212464  ;;  %v1172_v38 = vsel %vm1164_vm4, %v1151_v12, %v1154_v14  ;;  %v1176_v41 = vsel %vm1164_vm4, %v1154_v14, %v1157_v17  ;;  %v1180_v46 = vshll.u32 %v1140_v26, 8  ;;  %v452_v26 = vpop.permute.xlu1 %451 }
 0x11c   : > { %v1173_v42 = vsel %vm1167_vm5, %v1160_v0, 920167782  ;;  %v782_v37 = vsub.s32 0, %v9601_v31  ;;  %v1168_v36 = vsel %vm1164_vm4, %v1148_v33, %v1151_v12  ;;  %v1177_v50 = vsel %vm1167_vm5, %v1163_v34, 1326507024 }
 0x11d   : > { %v1174_v43 = vsel %vm1166_vm6, %v1157_v17, %v1173_v42  ;;  %v1170_v51 = vsel %vm1166_vm6, %v1154_v14, %v1169_v35  ;;  %v1178_v52 = vsel %vm1166_vm6, %v1160_v0, %v1177_v50  ;;  %v894_v56 = vshrl.u32 %v876_v63, %v892_v4 }
 0x11e   : > { %v1175_v49 = vsel %vm1165_vm7, %v1172_v38, %v1174_v43  ;;  %v622_v57 = vadd.s32 1, %v8160_v47  ;;  %v1179_v59 = vsel %vm1165_vm7, %v1176_v41, %v1178_v52  ;;  %v1032_v61 = vshrl.u32 %v1031_v2, 23 }
 0x11f   : > { %v9607_v44 = vmul.u32.u64.low %v1180_v46, %v1175_v49  ;;  %v9608_v53 = vmul.u32.u64.high %v1180_v46, %v1175_v49, %v9607_v44  ;;  %v8174_v21 = vadd.s32 4294967294, %v992_v11  ;;  %v893_v12 = vshll.u32 %v9511_v60, %v9571_v29 }
 0x120   : > { %v9612_v17 = vmul.u32.u64.low %v1180_v46, %v1179_v59  ;;  %v9613_v22 = vmul.u32.u64.high %v1180_v46, %v1179_v59, %v9612_v17  ;;  %v899_v6 = vor.u32 4788187, %v898_v24  ;;  %v1171_v14 = vsel %vm1165_vm7, %v1168_v36, %v1170_v51 }
 0x121   : > { %v8176_v28 = vadd.s32 4294967169, %v1032_v61  ;;  %v8165_v0 = vmin.u32 %v782_v37, %v9601_v31  ;;  %v1190_v63 = vadd.s32 1, %v9608_v53  ;;  %v895_v47 = vor.u32 %v894_v56, %v893_v12 }
 0x122   : > { %vm623_vm8 = vcmp.gt.s32.totalorder %v622_v57, 0  ;;  %v9621_v4 = vmul.f32 %v9442_v1, %v452_v26  ;;  %vm8175_vm9 = vcmp.lt.s32.totalorder %v8174_v21, 0  ;;  %v1187_v11 = vmul.u32 %v1180_v46, %v1171_v14 }
 0x123   : > { %vm1189_vm10 = vc.u32 %v9613_v22, %v9607_v44  ;;  %v1038_v2 = vadd.s32 1, %v8176_v28  ;;  %v900_v60 = vand.u32 2147483647, %v899_v6  ;;  %v12915_v10 = vand.u32 2147483647, %v9588_v54 }
 0x124   : > { %13187 = vst [vmem:[#allocation19_spill] sm:$0xff] %v9621_v4  ;;  %v1191_v29 = vsel %vm1189_vm10, %v1190_v63, %v9608_v53  ;;  %v9627_v24 = vsel %vm623_vm8, %v622_v57, 0  ;;  %v784_v33 = vclz %v8165_v0  ;;  %v902_v35 = vcvt.s32.f32 %v895_v47 }
 0x125   : > { %v1192_v34 = vadd.s32 %v1191_v29, %v1187_v11  ;;  %vm1039_vm11 = vcmp.gt.s32.totalorder %v1038_v2, 0  ;;  %v9629_v38 = vsel %vm8175_vm9, 0, %v8174_v21  ;;  %v1343_v43 = vand.u32 2139095040, %v9621_v4 }
 0x126   : > { %v1040_v42 = vsel %vm1039_vm11, %v1038_v2, 0  ;;  %v9632_v37 = vmul.f32 %v902_v35, %v900_v60  ;;  %v9635_v36 = vshrl.u32 %v9627_v24, 5  ;;  %v980_v49 = vadd.s32 %v9519_v7, %v9515_v62 }
 0x127   : > { %v1193_v41 = vadd.s32 536870912, %v1192_v34  ;;  %v1042_v46 = vand.u32 31, %v1040_v42  ;;  %v1035_v50 = vand.u32 8388607, %v12915_v10  ;;  %v1000_v51 = vsub.s32 4294967266, %v9629_v38 }
 0x128   : > { %v8166_v52 = vadd.s32 4294967294, %v784_v33  ;;  %v1041_v57 = vshrl.u32 %v1040_v42, 5  ;;  %v1344_v21 = vshrl.u32 %v1343_v43, 23  ;;  %v996_v2 = vsub.s32 32, %v9629_v38 }
 0x129   : > { %v9642_v53 = vshrl.u32 %v1193_v41, 30  ;;  %v1043_v56 = vsub.s32 32, %v1042_v46  ;;  %v1045_v59 = vshll.u32 %v12927_v23, %v1042_v46  ;;  %v1048_v61 = vshll.u32 %v12924_v25, %v1042_v46 }
 0x12a   : > { %v1051_v7 = vshll.u32 %v12922_v27, %v1042_v46  ;;  %v1054_v6 = vshll.u32 %v12945_v30, %v1042_v46  ;;  %v1057_v11 = vshll.u32 %v12951_v32, %v1042_v46  ;;  %v1036_v60 = vor.u32 8388608, %v1035_v50 }
 0x12b   : > { %13188 = vst [vmem:[#allocation20_spill] sm:$0xff] %v9642_v53  ;;  %v1195_v17 = vshll.u32 %v9642_v53, 30  ;;  %v1046_v26 = vshrl.u32 %v12924_v25, %v1043_v56  ;;  %v1049_v62 = vshrl.u32 %v12922_v27, %v1043_v56  ;;  %v1052_v12 = vshrl.u32 %v12945_v30, %v1043_v56 }
 0x12c   : > { %v1055_v14 = vshrl.u32 %v12951_v32, %v1043_v56  ;;  %v1058_v28 = vshrl.u32 %v12920_v40, %v1043_v56  ;;  %v1001_v35 = vadd.s32 127, %v1000_v51  ;;  %vm8167_vm12 = vcmp.lt.s32.totalorder %v8166_v52, 0 }
 0x12d   : > { %v9654_v0 = vsub.s32 %v1192_v34, %v1195_v17  ;;  %v1047_v63 = vor.u32 %v1046_v26, %v1045_v59  ;;  %v1050_v47 = vor.u32 %v1049_v62, %v1048_v61  ;;  %v1053_v29 = vor.u32 %v1052_v12, %v1051_v7 }
 0x12e   : > { %v1056_v33 = vor.u32 %v1055_v14, %v1054_v6  ;;  %v1059_v42 = vor.u32 %v1058_v28, %v1057_v11  ;;  %vm1060_vm13 = vcmp.lt.s32.totalorder %v1041_v57, 1  ;;  %v1044_v43 = vshrl.u32 %v12927_v23, %v1043_v56 }
 0x12f   : > { %vm1063_vm14 = vcmp.lt.s32.totalorder %v1041_v57, 4  ;;  %v1068_v41 = vsel %vm1060_vm13, %v1047_v63, %v1050_v47  ;;  %v8188_v10 = vadd.s32 4294967169, %v1344_v21  ;;  %vm12999_vm15 = vcmp.lt.s32.totalorder %v9445_v3, 0 }
 0x130   : > { %v1198_v34 = vsub.s32 0, %v9654_v0  ;;  %vm1062_vm0 = vcmp.lt.s32.totalorder %v1041_v57, 3  ;;  %v1065_v46 = vsel %vm1063_vm14, %v1053_v29, 2102212464  ;;  %v1069_v59 = vsel %vm1063_vm14, %v1056_v33, 920167782 }
 0x131   : > { %vm1061_vm1 = vcmp.lt.s32.totalorder %v1041_v57, 2  ;;  %v1070_v50 = vsel %vm1062_vm0, %v1053_v29, %v1069_v59  ;;  %v1072_v61 = vsel %vm1060_vm13, %v1050_v47, %v1053_v29  ;;  %v1076_v17 = vshll.u32 %v1036_v60, 8 }
 0x132   : > { %v1064_v51 = vsel %vm1060_vm13, %v1044_v43, %v1047_v63  ;;  %v1071_v26 = vsel %vm1061_vm1, %v1068_v41, %v1070_v50  ;;  %v1073_v62 = vsel %vm1063_vm14, %v1059_v42, 1326507024  ;;  %v12916_v56 = vand.u32 2147483647, %v9621_v4  ;;  %v447_v63 = vpop.permute.xlu0 %446 }
 0x133   : > { %v1066_v7 = vsel %vm1062_vm0, %v1050_v47, %v1065_v46  ;;  %v1074_v12 = vsel %vm1062_vm0, %v1056_v33, %v1073_v62  ;;  %v9663_v21 = vmul.u32.u64.low %v1076_v17, %v1071_v26  ;;  %v9664_v6 = vmul.u32.u64.high %v1076_v17, %v1071_v26, %v9663_v21 }
 0x134   : > { %v9668_v14 = vsel %vm8167_vm12, 0, %v8166_v52  ;;  %v8181_v28 = vmin.u32 %v1198_v34, %v9654_v0  ;;  %v1075_v11 = vsel %vm1061_vm1, %v1072_v61, %v1074_v12  ;;  %v1350_v60 = vadd.s32 1, %v8188_v10 }
 0x135   : > { %v904_v29 = vxor.u32 2147483648, %v9632_v37  ;;  %v9674_v42 = vand.u32 31, %v9627_v24  ;;  %v9676_v47 = vmul.u32.u64.low %v1076_v17, %v1075_v11  ;;  %v9677_v33 = vmul.u32.u64.high %v1076_v17, %v1075_v11, %v9676_v47 }
 0x136   : > { %v998_v43 = vshrl.u32 %v980_v49, %v996_v2  ;;  %v1002_v41 = vshll.u32 %v1001_v35, 23  ;;  %v1067_v46 = vsel %vm1061_vm1, %v1064_v51, %v1066_v7  ;;  %vm1351_vm2 = vcmp.gt.s32.totalorder %v1350_v60, 0 }
 0x137   : > { %v788_v52 = vsub.s32 32, %v9668_v14  ;;  %v1086_v34 = vadd.s32 1, %v9664_v6  ;;  %v1352_v59 = vsel %vm1351_vm2, %v1350_v60, 0  ;;  %v9683_v10 = vmul.f32 %v9442_v1, %v447_v63 }
 0x138   : > { %v997_v24 = vshll.u32 %v9573_v13, %v9629_v38  ;;  %v772_v50 = vadd.s32 %v9562_v15, %v9560_v18  ;;  %v1200_v61 = vclz %v8181_v28  ;;  %v1347_v49 = vand.u32 8388607, %v12916_v56 }
 0x139   : > { %13189 = vst [vmem:[#allocation21_spill] sm:$0xff] %v9683_v10  ;;  %v9694_v57 = vsel %vm12999_vm15, %v904_v29, %v9632_v37  ;;  %v1083_v2 = vmul.u32 %v1076_v17, %v1067_v46  ;;  %vm1085_vm3 = vc.u32 %v9677_v33, %v9663_v21  ;;  %v1354_v35 = vand.u32 31, %v1352_v59 }
 0x13a   : > { %v9698_v51 = vor.u32 %v998_v43, %v997_v24  ;;  %v9700_v13 = vor.u32 4788187, %v1002_v41  ;;  %v792_v18 = vsub.s32 4294967266, %v9668_v14  ;;  %v1087_v15 = vsel %vm1085_vm3, %v1086_v34, %v9664_v6 }
 0x13b   : > { %v790_v38 = vshrl.u32 %v772_v50, %v788_v52  ;;  %v1088_v26 = vadd.s32 %v1087_v15, %v1083_v2  ;;  %v1355_v62 = vsub.s32 32, %v1354_v35  ;;  %v1239_v7 = vand.u32 2139095040, %v9683_v10 }
 0x13c   : > { %v8182_v37 = vadd.s32 4294967294, %v1200_v61  ;;  %v1348_v12 = vor.u32 8388608, %v1347_v49  ;;  %v1353_v17 = vshrl.u32 %v1352_v59, 5  ;;  %v1357_v28 = vshll.u32 %v12927_v23, %v1354_v35 }
 0x13d   : > { %v1089_v11 = vadd.s32 536870912, %v1088_v26  ;;  %v1358_v60 = vshrl.u32 %v12924_v25, %v1355_v62  ;;  %v1360_v63 = vshll.u32 %v12924_v25, %v1354_v35  ;;  %v1361_v29 = vshrl.u32 %v12922_v27, %v1355_v62 }
 0x13e   : > { %v1363_v47 = vshll.u32 %v12922_v27, %v1354_v35  ;;  %v1364_v6 = vshrl.u32 %v12945_v30, %v1355_v62  ;;  %v1366_v43 = vshll.u32 %v12945_v30, %v1354_v35  ;;  %v1367_v41 = vshrl.u32 %v12951_v32, %v1355_v62 }
 0x13f   : > { %v9713_v46 = vshrl.u32 %v1089_v11, 30  ;;  %v1359_v52 = vor.u32 %v1358_v60, %v1357_v28  ;;  %v1362_v34 = vor.u32 %v1361_v29, %v1360_v63  ;;  %v1240_v59 = vshrl.u32 %v1239_v7, 23 }
 0x140   : > { %vm9717_vm4 = vcmp.le.f32.partialorder %v820_v5, 0.7853982  ;;  %v13191_v24 = vmov 0  ;;  %v1365_v50 = vor.u32 %v1364_v6, %v1363_v47  ;;  %v1368_v61 = vor.u32 %v1367_v41, %v1366_v43 }
 0x141   : > { %13190 = vst [vmem:[#allocation22_spill] sm:$0xff] %v9713_v46  ;;  %v13192_v24 = vsel %vm9717_vm4, 4294967295, %v13191_v24  ;;  %v1369_v49 = vshll.u32 %v12951_v32, %v1354_v35  ;;  %v1370_v2 = vshrl.u32 %v12920_v40, %v1355_v62  ;;  %v793_v15 = vadd.s32 127, %v792_v18 }
 0x142   : > { %13193 = vst [vmem:[#allocation23_spill] sm:$0xff] %v13192_v24  ;;  %vm8183_vm5 = vcmp.lt.s32.totalorder %v8182_v37, 0  ;;  %v1091_v11 = vshll.u32 %v9713_v46, 30  ;;  %v1388_v56 = vshll.u32 %v1348_v12, 8  ;;  %v1356_v28 = vshrl.u32 %v12927_v23, %v1355_v62 }
 0x143   : > { %v1371_v7 = vor.u32 %v1370_v2, %v1369_v49  ;;  %vm1372_vm6 = vcmp.lt.s32.totalorder %v1353_v17, 1  ;;  %vm1375_vm7 = vcmp.lt.s32.totalorder %v1353_v17, 4  ;;  %vm1374_vm8 = vcmp.lt.s32.totalorder %v1353_v17, 3 }
 0x144   : > { %v1377_v5 = vsel %vm1375_vm7, %v1365_v50, 2102212464  ;;  %v1380_v60 = vsel %vm1372_vm6, %v1359_v52, %v1362_v34  ;;  %v1381_v63 = vsel %vm1375_vm7, %v1368_v61, 920167782  ;;  %vm1373_vm9 = vcmp.lt.s32.totalorder %v1353_v17, 2 }
 0x145   : > { %v1382_v29 = vsel %vm1374_vm8, %v1365_v50, %v1381_v63  ;;  %v1384_v47 = vsel %vm1372_vm6, %v1362_v34, %v1365_v50  ;;  %v8184_v35 = vadd.s32 4294967169, %v1240_v59  ;;  %v9725_v6 = vsub.s32 %v1088_v26, %v1091_v11 }
 0x146   : > { %v1376_v18 = vsel %vm1372_vm6, %v1356_v28, %v1359_v52  ;;  %v1383_v43 = vsel %vm1373_vm9, %v1380_v60, %v1382_v29  ;;  %v1385_v41 = vsel %vm1375_vm7, %v1371_v7, 1326507024  ;;  %v1378_v12 = vsel %vm1374_vm8, %v1362_v34, %v1377_v5 }
 0x147   : > { %v1386_v39 = vsel %vm1374_vm8, %v1368_v61, %v1385_v41  ;;  %v9728_v62 = vmul.u32.u64.low %v1388_v56, %v1383_v43  ;;  %v9729_v49 = vmul.u32.u64.high %v1388_v56, %v1383_v43, %v9728_v62  ;;  %v789_v2 = vshll.u32 %v9601_v31, %v9668_v14 }
 0x148   : > { %v794_v58 = vshll.u32 %v793_v15, 23  ;;  %v1387_v63 = vsel %vm1373_vm9, %v1384_v47, %v1386_v39  ;;  %v12919_v59 = vand.u32 2147483647, %v9683_v10  ;;  %v9737_v26 = vsel %vm8183_vm5, 0, %v8182_v37  ;;  %v462_v15 = vpop.permute.xlu1 %461 }
 0x149   : > { %v9739_v52 = vmul.u32.u64.low %v1388_v56, %v1387_v63  ;;  %v9740_v50 = vmul.u32.u64.high %v1388_v56, %v1387_v63, %v9739_v52  ;;  %v1246_v34 = vadd.s32 1, %v8184_v35  ;;  %v9746_v61 = vsel %vm9717_vm4, %v9445_v3, %v9694_v57 }
 0x14a   : > { %v1004_v31 = vand.u32 2147483647, %v9700_v13  ;;  %v1094_v14 = vsub.s32 0, %v9725_v6  ;;  %v1379_v39 = vsel %vm1373_vm9, %v1376_v18, %v1378_v12  ;;  %v1006_v37 = vcvt.s32.f32 %v9698_v51 }
 0x14b   : > { %v791_v11 = vor.u32 %v790_v38, %v789_v2  ;;  %v1398_v28 = vadd.s32 1, %v9729_v49  ;;  %vm1247_vm10 = vcmp.gt.s32.totalorder %v1246_v34, 0  ;;  %v795_v7 = vor.u32 4788187, %v794_v58 }
 0x14c   : > { %v1208_v5 = vsub.s32 4294967266, %v9737_v26  ;;  %v1243_v57 = vand.u32 8388607, %v12919_v59  ;;  %v1248_v60 = vsel %vm1247_vm10, %v1246_v34, 0  ;;  %v1395_v29 = vmul.u32 %v1388_v56, %v1379_v39 }
 0x14d   : > { %vm1397_vm11 = vc.u32 %v9740_v50, %v9728_v62  ;;  %v1250_v13 = vand.u32 31, %v1248_v60  ;;  %v9759_v17 = vmul.f32 %v9442_v1, %v462_v15  ;;  %8963 = vcosq.f32 %v9746_v61 }
 0x14e   : > { %v9762_v51 = vmul.f32 %v1006_v37, %v1004_v31  ;;  %v8177_v58 = vmin.u32 %v1094_v14, %v9725_v6  ;;  %v1399_v38 = vsel %vm1397_vm11, %v1398_v28, %v9729_v49  ;;  %v798_v47 = vcvt.s32.f32 %v791_v11 }
 0x14f   : > { %13194 = vst [vmem:[#allocation24_spill] sm:$0xff] %v9759_v17  ;;  %v1188_v35 = vadd.s32 %v9607_v44, %v9613_v22  ;;  %v1400_v56 = vadd.s32 %v1399_v38, %v1395_v29  ;;  %v1251_v18 = vsub.s32 32, %v1250_v13  ;;  %v796_v43 = vand.u32 2147483647, %v795_v7 }
 0x150   : > { %v1204_v41 = vsub.s32 32, %v9737_v26  ;;  %v1209_v12 = vadd.s32 127, %v1208_v5  ;;  %v1244_v1 = vor.u32 8388608, %v1243_v57  ;;  %v1253_v63 = vshll.u32 %v12927_v23, %v1250_v13 }
 0x151   : > { %v1401_v2 = vadd.s32 536870912, %v1400_v56  ;;  %v1254_v52 = vshrl.u32 %v12924_v25, %v1251_v18  ;;  %v1257_v34 = vshrl.u32 %v12922_v27, %v1251_v18  ;;  %v1096_v31 = vclz %v8177_v58 }
 0x152   : > { %v1256_v49 = vshll.u32 %v12924_v25, %v1250_v13  ;;  %v1259_v14 = vshll.u32 %v12922_v27, %v1250_v13  ;;  %v1260_v44 = vshrl.u32 %v12945_v30, %v1251_v18  ;;  %v1249_v39 = vshrl.u32 %v1248_v60, 5  ;;  %v457_v27 = vpop.permute.xlu0 %456 }
 0x153   : > { %v9775_v22 = vshrl.u32 %v1401_v2, 30  ;;  %v1255_v15 = vor.u32 %v1254_v52, %v1253_v63  ;;  %v1551_v37 = vand.u32 2139095040, %v9759_v17  ;;  %v1262_v7 = vshll.u32 %v12945_v30, %v1250_v13 }
 0x154   : > { %v1258_v11 = vor.u32 %v1257_v34, %v1256_v49  ;;  %v1261_v28 = vor.u32 %v1260_v44, %v1259_v14  ;;  %v1263_v5 = vshrl.u32 %v12951_v32, %v1251_v18  ;;  %vm12998_vm12 = vcmp.lt.s32.totalorder %v9452_v9, 0 }
 0x155   : > { %13195 = vst [vmem:[#allocation25_spill] sm:$0xff] %v9775_v22  ;;  %v1008_v57 = vxor.u32 2147483648, %v9762_v51  ;;  %v799_v29 = vmul.f32 %v798_v47, %v796_v43  ;;  %v1265_v58 = vshll.u32 %v12951_v32, %v1250_v13  ;;  %v1266_v38 = vshrl.u32 %v12920_v40, %v1251_v18 }
 0x156   : > { %v1206_v2 = vshrl.u32 %v1188_v35, %v1204_v41  ;;  %v1210_v60 = vshll.u32 %v1209_v12, 23  ;;  %v8178_v63 = vadd.s32 4294967294, %v1096_v31  ;;  %v1264_v52 = vor.u32 %v1263_v5, %v1262_v7 }
 0x157   : > { %v1267_v59 = vor.u32 %v1266_v38, %v1265_v58  ;;  %vm1268_vm13 = vcmp.lt.s32.totalorder %v1249_v39, 1  ;;  %vm1271_vm14 = vcmp.lt.s32.totalorder %v1249_v39, 4  ;;  %v1284_v34 = vshll.u32 %v1244_v1, 8  ;;  %v9784_v49 = vpop.eup %8963 }
 0x158   : > { %13196 = vst [vmem:[#allocation26_spill] sm:$0xff] %v9784_v49  ;;  %v1403_v14 = vshll.u32 %v9775_v22, 30  ;;  %v1273_v44 = vsel %vm1271_vm14, %v1261_v28, 2102212464  ;;  %v1276_v47 = vsel %vm1268_vm13, %v1255_v15, %v1258_v11  ;;  %v1552_v43 = vshrl.u32 %v1551_v37, 23 }
 0x159   : > { %vm9791_vm0 = vcmp.le.f32.partialorder %v924_v20, 0.7853982  ;;  %v13197_v13 = vmov 0  ;;  %v1252_v35 = vshrl.u32 %v12927_v23, %v1251_v18  ;;  %vm1270_vm1 = vcmp.lt.s32.totalorder %v1249_v39, 3 }
 0x15a   : > { %v13198_v13 = vsel %vm9791_vm0, 4294967295, %v13197_v13  ;;  %v1277_v41 = vsel %vm1271_vm14, %v1264_v52, 920167782  ;;  %v1280_v12 = vsel %vm1268_vm13, %v1258_v11, %v1261_v28  ;;  %vm13012_vm2 = vcmp.lt.s32.totalorder %v9458_v19, 0 }
 0x15b   : > { %13199 = vst [vmem:[#allocation27_spill] sm:$0xff] %v13198_v13  ;;  %vm8179_vm3 = vcmp.lt.s32.totalorder %v8178_v63, 0  ;;  %vm1269_vm5 = vcmp.lt.s32.totalorder %v1249_v39, 2  ;;  %v1278_v1 = vsel %vm1270_vm1, %v1261_v28, %v1277_v41  ;;  %v1281_v31 = vsel %vm1271_vm14, %v1267_v59, 1326507024 }
 0x15c   : > { %v1272_v37 = vsel %vm1268_vm13, %v1252_v35, %v1255_v15  ;;  %v1274_v20 = vsel %vm1270_vm1, %v1258_v11, %v1273_v44  ;;  %v1279_v7 = vsel %vm1269_vm5, %v1276_v47, %v1278_v1  ;;  %v1282_v5 = vsel %vm1270_vm1, %v1264_v52, %v1281_v31 }
 0x15d   : > { %v9802_v58 = vsub.s32 %v1400_v56, %v1403_v14  ;;  %v1283_v18 = vsel %vm1269_vm5, %v1280_v12, %v1282_v5  ;;  %v9805_v38 = vmul.u32.u64.low %v1284_v34, %v1279_v7  ;;  %v9806_v40 = vmul.u32.u64.high %v1284_v34, %v1279_v7, %v9805_v38 }
 0x15e   : > { %v13200_v25 = vand.u32 2147483647, %v9458_v19  ;;  %v13201_v28 = vmov 0  ;;  %v9815_v59 = vsel %vm8179_vm3, 0, %v8178_v63  ;;  %v8196_v56 = vadd.s32 4294967169, %v1552_v43 }
 0x15f   : > { %v9817_v15 = vmul.u32.u64.low %v1284_v34, %v1283_v18  ;;  %v9818_v11 = vmul.u32.u64.high %v1284_v34, %v1283_v18, %v9817_v15  ;;  %v1009_v52 = vsel %vm12998_vm12, %v1008_v57, %v9762_v51  ;;  %v1205_v14 = vshll.u32 %v9654_v0, %v9737_v26  ;;  %v9830_v63 = vld [vmem:[%s12908_s2] ss:$0 sm:$0xff] }
 0x160   : > { %vm9811_vm6 = vcmp.le.f32.partialorder %v13200_v25, 0.7853982  ;;  %v1211_v44 = vor.u32 4788187, %v1210_v60  ;;  %v1275_v47 = vsel %vm1269_vm5, %v1272_v37, %v1274_v20  ;;  %v800_v25 = vxor.u32 2147483648, %v799_v29 }
 0x161   : > { %v13202_v28 = vsel %vm9811_vm6, 4294967295, %v13201_v28  ;;  %v12926_v35 = vand.u32 2147483647, %v9759_v17  ;;  %v1558_v41 = vadd.s32 1, %v8196_v56  ;;  %v9833_v43 = vmul.f32 %v9830_v63, %v457_v27 }
 0x162   : > { %13203 = vst [vmem:[#allocation28_spill] sm:$0xff] %v13202_v28  ;;  %v1207_v12 = vor.u32 %v1206_v2, %v1205_v14  ;;  %v1104_v51 = vsub.s32 4294967266, %v9815_v59  ;;  %v1406_v0 = vsub.s32 0, %v9802_v58  ;;  %v1294_v26 = vadd.s32 1, %v9806_v40 }
 0x163   : > { %13204 = vst [vmem:[#allocation29_spill] sm:$0xff] %v9833_v43  ;;  %8965 = vsinq.f32 %v9746_v61  ;;  %v9840_v39 = vsub.s32 32, %v9674_v42  ;;  %v1291_v57 = vmul.u32 %v1284_v34, %v1275_v47  ;;  %vm1293_vm7 = vc.u32 %v9818_v11, %v9805_v38 }
 0x164   : > { %v9847_v27 = vsel %vm9791_vm0, %v9452_v9, %v1009_v52  ;;  %v1212_v2 = vand.u32 2147483647, %v1211_v44  ;;  %v1295_v60 = vsel %vm1293_vm7, %v1294_v26, %v9806_v40  ;;  %vm1559_vm8 = vcmp.gt.s32.totalorder %v1558_v41, 0 }
 0x165   : > { %v801_v1 = vsel %vm13012_vm2, %v800_v25, %v799_v29  ;;  %v1296_v61 = vadd.s32 %v1295_v60, %v1291_v57  ;;  %v9854_v31 = vand.u32 8388607, %v12926_v35  ;;  %v1447_v34 = vand.u32 2139095040, %v9833_v43 }
 0x166   : > { %v1214_v37 = vcvt.s32.f32 %v1207_v12  ;;  %v1105_v20 = vadd.s32 127, %v1104_v51  ;;  %v8189_v7 = vmin.u32 %v1406_v0, %v9802_v58  ;;  %v1560_v5 = vsel %vm1559_vm8, %v1558_v41, 0 }
 0x167   : > { %v9860_v18 = vshll.u32 %v12945_v30, %v9674_v42  ;;  %v9864_v40 = vshll.u32 %v12951_v32, %v9674_v42  ;;  %8967 = vcosq.f32 %v9847_v27  ;;  %v1297_v29 = vadd.s32 536870912, %v1296_v61 }
 0x168   : > { %v9870_v15 = vsel %vm9811_vm6, %v9458_v19, %v801_v1  ;;  %v9872_v56 = vmul.f32 %v1214_v37, %v1212_v2  ;;  %v1084_v52 = vadd.s32 %v9663_v21, %v9677_v33  ;;  %v1562_v14 = vand.u32 31, %v1560_v5 }
 0x169   : > { %v1100_v44 = vsub.s32 32, %v9815_v59  ;;  %v9877_v47 = vshrl.u32 %v1297_v29, 30  ;;  %v1556_v25 = vor.u32 8388608, %v9854_v31  ;;  %v1448_v41 = vshrl.u32 %v1447_v34, 23 }
 0x16a   : > { %v1106_v51 = vshll.u32 %v1105_v20, 23  ;;  %v1408_v0 = vclz %v8189_v7  ;;  %v1563_v26 = vsub.s32 32, %v1562_v14  ;;  %v1561_v2 = vshrl.u32 %v1560_v5, 5 }
 0x16b   : > { %13205 = vst [vmem:[#allocation30_spill] sm:$0xff] %v9877_v47  ;;  %v1299_v57 = vshll.u32 %v9877_v47, 30  ;;  %v1565_v60 = vshll.u32 %v12927_v23, %v1562_v14  ;;  %v13206_v21 = vmov 2475754826   ;;  %v13207_v37 = vmov 2131351028  }
 0x16c   : > { %v1568_v33 = vshll.u32 %v13206_v21, %v1562_v14  ;;  %v1566_v1 = vshrl.u32 %v13206_v21, %v1563_v26  ;;  %v1569_v29 = vshrl.u32 %v13207_v37, %v1563_v26  ;;  %v1571_v31 = vshll.u32 %v13207_v37, %v1562_v14 }
 0x16d   : > { %v1572_v34 = vshrl.u32 %v12945_v30, %v1563_v26  ;;  %v9889_v35 = vpop.eup %8965  ;;  %v1574_v20 = vshll.u32 %v12945_v30, %v1562_v14  ;;  %v1575_v7 = vshrl.u32 %v12951_v32, %v1563_v26  ;;  %v1577_v5 = vshll.u32 %v12951_v32, %v1562_v14 }
 0x16e   : > { %13208 = vst [vmem:[#allocation31_spill] sm:$0xff] %v9889_v35  ;;  %v8192_v12 = vadd.s32 4294967169, %v1448_v41  ;;  %v1567_v23 = vor.u32 %v1566_v1, %v1565_v60  ;;  %v1570_v22 = vor.u32 %v1569_v29, %v1568_v33  ;;  %v13209_v53 = vmov 1326507024  }
 0x16f   : > { %v1573_v47 = vor.u32 %v1572_v34, %v1571_v31  ;;  %v1578_v46 = vshrl.u32 %v13209_v53, %v1563_v26  ;;  %v1102_v13 = vshrl.u32 %v1084_v52, %v1100_v44  ;;  %v9895_v9 = vor.u32 4788187, %v1106_v51 }
 0x170   : > { %v9897_v55 = vsub.s32 %v1296_v61, %v1299_v57  ;;  %v1576_v49 = vor.u32 %v1575_v7, %v1574_v20  ;;  %v8190_v24 = vadd.s32 4294967294, %v1408_v0  ;;  %vm1580_vm9 = vcmp.lt.s32.totalorder %v1561_v2, 1 }
 0x171   : > { %v1579_v35 = vor.u32 %v1578_v46, %v1577_v5  ;;  %v12949_v30 = vand.u32 2147483647, %v9833_v43  ;;  %v9900_v3 = vpop.eup %8967  ;;  %vm1582_vm10 = vcmp.lt.s32.totalorder %v1561_v2, 3  ;;  %vm1583_vm11 = vcmp.lt.s32.totalorder %v1561_v2, 4 }
 0x172   : > { %13210 = vst [vmem:[#allocation32_spill] sm:$0xff] %v9900_v3  ;;  %v1588_v14 = vsel %vm1580_vm9, %v1567_v23, %v1570_v22  ;;  %v1454_v41 = vadd.s32 1, %v8192_v12  ;;  %v1585_v60 = vsel %vm1583_vm11, %v1573_v47, 2102212464  ;;  %v1589_v33 = vsel %vm1583_vm11, %v1576_v49, 920167782 }
 0x173   : > { %v1592_v52 = vsel %vm1580_vm9, %v1570_v22, %v1573_v47  ;;  %v1593_v44 = vsel %vm1583_vm11, %v1579_v35, 1326507024  ;;  %v1302_v61 = vsub.s32 0, %v9897_v55  ;;  %v13211_v51 = vmov 683565275  }
 0x174   : > { %v1564_v0 = vshrl.u32 %v13211_v51, %v1563_v26  ;;  %vm1581_vm13 = vcmp.lt.s32.totalorder %v1561_v2, 2  ;;  %v1590_v46 = vsel %vm1582_vm10, %v1573_v47, %v1589_v33  ;;  %vm8191_vm14 = vcmp.lt.s32.totalorder %v8190_v24, 0 }
 0x175   : > { %v1591_v57 = vsel %vm1581_vm13, %v1588_v14, %v1590_v46  ;;  %v1594_v1 = vsel %vm1582_vm10, %v1576_v49, %v1593_v44  ;;  %v1596_v29 = vshll.u32 %v1556_v25, 8  ;;  %v1586_v31 = vsel %vm1582_vm10, %v1570_v22, %v1585_v60 }
 0x176   : > { %v1584_v12 = vsel %vm1580_vm9, %v1564_v0, %v1567_v23  ;;  %v1595_v34 = vsel %vm1581_vm13, %v1592_v52, %v1594_v1  ;;  %vm1455_vm1 = vcmp.gt.s32.totalorder %v1454_v41, 0  ;;  %v1451_v26 = vand.u32 8388607, %v12949_v30 }
 0x177   : > { %v9912_v35 = vmul.u32.u64.low %v1596_v29, %v1595_v34  ;;  %v9913_v20 = vmul.u32.u64.high %v1596_v29, %v1595_v34, %v9912_v35  ;;  %v1456_v47 = vsel %vm1455_vm1, %v1454_v41, 0  ;;  %v9917_v7 = vsel %vm8191_vm14, 0, %v8190_v24 }
 0x178   : > { %v8185_v5 = vmin.u32 %v1302_v61, %v9897_v55  ;;  %v9920_v49 = vmul.u32.u64.low %v1596_v29, %v1591_v57  ;;  %v9921_v25 = vmul.u32.u64.high %v1596_v29, %v1591_v57, %v9920_v49  ;;  %v9926_v23 = vshrl.u32 %v12951_v32, %v9840_v39 }
 0x179   : > { %8969 = vsinq.f32 %v9847_v27  ;;  %v1587_v22 = vsel %vm1581_vm13, %v1584_v12, %v1586_v31  ;;  %v1458_v14 = vand.u32 31, %v1456_v47  ;;  %v13212_v41 = vshll.u32 %v9725_v6, %v9815_v59  ;;  %v472_v6 = vpop.permute.xlu1 %471 }
 0x17a   : > { %8971 = vcosq.f32 %v9870_v15  ;;  %v9939_v33 = vadd.s32 %v9728_v62, %v9740_v50  ;;  %v1416_v27 = vsub.s32 4294967266, %v9917_v7  ;;  %vm1605_vm3 = vc.u32 %v9913_v20, %v9920_v49 }
 0x17b   : > { %v9935_v60 = vor.u32 %v1102_v13, %v13212_v41  ;;  %v1459_v2 = vsub.s32 32, %v1458_v14  ;;  %v1304_v44 = vclz %v8185_v5  ;;  %v1603_v61 = vmul.u32 %v1596_v29, %v1587_v22 }
 0x17c   : > { %v1606_v0 = vadd.s32 1, %v9921_v25  ;;  %v1452_v46 = vor.u32 8388608, %v1451_v26  ;;  %v1457_v13 = vshrl.u32 %v1456_v47, 5  ;;  %v1461_v59 = vshll.u32 %v13211_v51, %v1458_v14 }
 0x17d   : > { %v1462_v62 = vshrl.u32 %v13206_v21, %v1459_v2  ;;  %v1465_v50 = vshrl.u32 %v13207_v37, %v1459_v2  ;;  %v1464_v1 = vshll.u32 %v13206_v21, %v1458_v14  ;;  %v1467_v12 = vshll.u32 %v13207_v37, %v1458_v14 }
 0x17e   : > { %v1607_v57 = vsel %vm1605_vm3, %v1606_v0, %v9921_v25  ;;  %v13213_v31 = vmov 2102212464   ;;  %v1412_v29 = vsub.s32 32, %v9917_v7  ;;  %v9955_v47 = vmul.f32 %v9830_v63, %v472_v6 }
 0x17f   : > { %v1468_v34 = vshrl.u32 %v13213_v31, %v1459_v2  ;;  %v1608_v35 = vadd.s32 %v1607_v57, %v1603_v61  ;;  %v1463_v26 = vor.u32 %v1462_v62, %v1461_v59  ;;  %v1466_v5 = vor.u32 %v1465_v50, %v1464_v1 }
 0x180   : > { %13214 = vst [vmem:[#allocation33_spill] sm:$0xff] %v9955_v47  ;;  %v1470_v41 = vshll.u32 %v13213_v31, %v1458_v14  ;;  %v1471_v30 = vshrl.u32 %v12951_v32, %v1459_v2  ;;  %v1417_v25 = vadd.s32 127, %v1416_v27  ;;  %v1473_v24 = vshll.u32 %v12951_v32, %v1458_v14 }
 0x181   : > { %v1469_v22 = vor.u32 %v1468_v34, %v1467_v12  ;;  %v1609_v0 = vadd.s32 536870912, %v1608_v35  ;;  %v1474_v52 = vshrl.u32 %v13209_v53, %v1459_v2  ;;  %vm12980_vm5 = vcmp.lt.s32.totalorder %v9527_v16, 0 }
 0x182   : > { %v8186_v3 = vadd.s32 4294967294, %v1304_v44  ;;  %v1472_v61 = vor.u32 %v1471_v30, %v1470_v41  ;;  %vm1476_vm7 = vcmp.lt.s32.totalorder %v1457_v13, 1  ;;  %v1492_v59 = vshll.u32 %v1452_v46, 8 }
 0x183   : > { %v9962_v6 = vpop.eup %8969  ;;  %v9964_v62 = vshrl.u32 %v1609_v0, 30  ;;  %v1460_v50 = vshrl.u32 %v13211_v51, %v1459_v2  ;;  %v1475_v57 = vor.u32 %v1474_v52, %v1473_v24  ;;  %vm1479_vm8 = vcmp.lt.s32.totalorder %v1457_v13, 4 }
 0x184   : > { %13215 = vst [vmem:[#allocation34_spill] sm:$0xff] %v9962_v6  ;;  %v9967_v27 = vpop.eup %8971  ;;  %vm1478_vm9 = vcmp.lt.s32.totalorder %v1457_v13, 3  ;;  %v1481_v14 = vsel %vm1479_vm8, %v1469_v22, 2102212464  ;;  %v1484_v1 = vsel %vm1476_vm7, %v1463_v26, %v1466_v5  ;;  %v1485_v12 = vsel %vm1479_vm8, %v1472_v61, 920167782 }
 0x185   : > { %13216 = vst [vmem:[#allocation35_spill] sm:$0xff] %v9964_v62  ;;  %13217 = vst [vmem:[#allocation36_spill] sm:$0xff] %v9967_v27  ;;  %v13218_v44 = vand.u32 2147483647, %v9527_v16  ;;  %v13219_v30 = vmov 0  ;;  %v1611_v46 = vshll.u32 %v9964_v62, 30  ;;  %v1486_v34 = vsel %vm1478_vm9, %v1469_v22, %v1485_v12 }
 0x186   : > { %vm1477_vm11 = vcmp.lt.s32.totalorder %v1457_v13, 2  ;;  %v1488_v24 = vsel %vm1476_vm7, %v1466_v5, %v1469_v22  ;;  %v1418_v52 = vshll.u32 %v1417_v25, 23  ;;  %v1480_v2 = vsel %vm1476_vm7, %v1460_v50, %v1463_v26 }
 0x187   : > { %vm9972_vm10 = vcmp.le.f32.partialorder %v13218_v44, 0.7853982  ;;  %v1487_v41 = vsel %vm1477_vm11, %v1484_v1, %v1486_v34  ;;  %v1489_v0 = vsel %vm1479_vm8, %v1475_v57, 1326507024  ;;  %v1482_v32 = vsel %vm1478_vm9, %v1466_v5, %v1481_v14  ;;  %v467_v57 = vpop.permute.xlu0 %466 }
 0x188   : > { %v13220_v30 = vsel %vm9972_vm10, 4294967295, %v13219_v30  ;;  %v1490_v6 = vsel %vm1478_vm9, %v1472_v61, %v1489_v0  ;;  %v9980_v27 = vmul.u32.u64.low %v1492_v59, %v1487_v41  ;;  %v9981_v28 = vmul.u32.u64.high %v1492_v59, %v1487_v41, %v9980_v27 }
 0x189   : > { %13221 = vst [vmem:[#allocation37_spill] sm:$0xff] %v13220_v30  ;;  %v1110_v44 = vcvt.s32.f32 %v9935_v60  ;;  %v9985_v19 = vsub.s32 %v1608_v35, %v1611_v46  ;;  %v1491_v12 = vsel %vm1477_vm11, %v1488_v24, %v1490_v6  ;;  %v1759_v22 = vand.u32 2139095040, %v9955_v47 }
 0x18a   : > { %vm12981_vm13 = vcmp.lt.s32.totalorder %v9588_v54, 0  ;;  %v1414_v26 = vshrl.u32 %v9939_v33, %v1412_v29  ;;  %vm8187_vm14 = vcmp.lt.s32.totalorder %v8186_v3, 0  ;;  %8973 = vsinq.f32 %v9870_v15 }
 0x18b   : > { %v9991_v25 = vmul.u32.u64.low %v1492_v59, %v1491_v12  ;;  %v9992_v5 = vmul.u32.u64.high %v1492_v59, %v1491_v12, %v9991_v25  ;;  %v13222_v61 = vand.u32 2147483647, %v9895_v9  ;;  %v1483_v60 = vsel %vm1477_vm11, %v1480_v2, %v1482_v32 }
 0x18c   : > { %v1760_v35 = vshrl.u32 %v1759_v22, 23  ;;  %v13223_v6 = vxor.u32 2147483648, %v9872_v56  ;;  %v1413_v33 = vshll.u32 %v9802_v58, %v9917_v7  ;;  %v1419_v29 = vor.u32 4788187, %v1418_v52 }
 0x18d   : > { %v1111_v50 = vmul.f32 %v1110_v44, %v13222_v61  ;;  %v1502_v1 = vadd.s32 1, %v9981_v28  ;;  %v10006_v15 = vsel %vm8187_vm14, 0, %v8186_v3  ;;  %v1614_v9 = vsub.s32 0, %v9985_v19 }
 0x18e   : > { %v1217_v14 = vsel %vm12980_vm5, %v13223_v6, %v9872_v56  ;;  %v12958_v32 = vand.u32 2147483647, %v9955_v47  ;;  %v8204_v13 = vadd.s32 4294967169, %v1760_v35  ;;  %v1415_v46 = vor.u32 %v1414_v26, %v1413_v33 }
 0x18f   : > { %v1499_v34 = vmul.u32 %v1492_v59, %v1483_v60  ;;  %vm1501_vm1 = vc.u32 %v9992_v5, %v9980_v27  ;;  %v10013_v56 = vmul.f32 %v9830_v63, %v467_v57  ;;  %v10018_v58 = vsel %vm9972_vm10, %v9527_v16, %v1217_v14 }
 0x190   : > { %v1112_v3 = vxor.u32 2147483648, %v1111_v50  ;;  %v1503_v7 = vsel %vm1501_vm1, %v1502_v1, %v9981_v28  ;;  %v1766_v24 = vadd.s32 1, %v8204_v13  ;;  %v1420_v52 = vand.u32 2147483647, %v1419_v29 }
 0x191   : > { %13224 = vst [vmem:[#allocation38_spill] sm:$0xff] %v10013_v56  ;;  %v1292_v2 = vadd.s32 %v9805_v38, %v9818_v11  ;;  %v1308_v59 = vsub.s32 32, %v10006_v15  ;;  %v1504_v41 = vadd.s32 %v1503_v7, %v1499_v34  ;;  %v1312_v0 = vsub.s32 4294967266, %v10006_v15 }
 0x192   : > { %v8197_v44 = vmin.u32 %v1614_v9, %v9985_v19  ;;  %v1763_v12 = vand.u32 8388607, %v12958_v32  ;;  %vm1767_vm3 = vcmp.gt.s32.totalorder %v1766_v24, 0  ;;  %v1422_v22 = vcvt.s32.f32 %v1415_v46 }
 0x193   : > { %v1505_v26 = vadd.s32 536870912, %v1504_v41  ;;  %v1768_v25 = vsel %vm1767_vm3, %v1766_v24, 0  ;;  %v1655_v28 = vand.u32 2139095040, %v10013_v56  ;;  %v10031_v61 = vshrl.u32 %v13209_v53, %v9840_v39  ;;  %v482_v24 = vpop.permute.xlu1 %481 }
 0x194   : > { %8975 = vcosq.f32 %v10018_v58  ;;  %v10036_v38 = vsel %vm12981_vm13, %v1112_v3, %v1111_v50  ;;  %v1770_v11 = vand.u32 31, %v1768_v25  ;;  %v10038_v60 = vmul.f32 %v1422_v22, %v1420_v52  ;;  %v10044_v14 = vpop.eup %8973 }
 0x195   : > { %v1309_v35 = vshll.u32 %v9897_v55, %v10006_v15  ;;  %v1310_v57 = vshrl.u32 %v1292_v2, %v1308_v59  ;;  %v10042_v6 = vshrl.u32 %v1505_v26, 30  ;;  %13226 = vst [vmem:[#allocation40_spill] sm:$0xff] %v10044_v14  ;;  %v1313_v33 = vadd.s32 127, %v1312_v0 }
 0x196   : > { %v1616_v29 = vclz %v8197_v44  ;;  %v1764_v1 = vor.u32 8388608, %v1763_v12  ;;  %v1771_v9 = vsub.s32 32, %v1770_v11  ;;  %v1773_v50 = vshll.u32 %v13211_v51, %v1770_v11 }
 0x197   : > { %13225 = vst [vmem:[#allocation39_spill] sm:$0xff] %v10042_v6  ;;  %v1507_v13 = vshll.u32 %v10042_v6, 30  ;;  %v1776_v46 = vshll.u32 %v13206_v21, %v1770_v11  ;;  %v1656_v34 = vshrl.u32 %v1655_v28, 23  ;;  %v1779_v15 = vshll.u32 %v13207_v37, %v1770_v11 }
 0x198   : > { %v1774_v3 = vshrl.u32 %v13206_v21, %v1771_v9  ;;  %v1777_v55 = vshrl.u32 %v13207_v37, %v1771_v9  ;;  %v1780_v7 = vshrl.u32 %v13213_v31, %v1771_v9  ;;  %v1769_v2 = vshrl.u32 %v1768_v25, 5 }
 0x199   : > { %v10053_v52 = vsub.s32 %v1504_v41, %v1507_v13  ;;  %v1782_v59 = vshll.u32 %v13213_v31, %v1770_v11  ;;  %v13227_v0 = vmov 920167782   ;;  %v1314_v12 = vshll.u32 %v1313_v33, 23 }
 0x19a   : > { %v1783_v44 = vshrl.u32 %v13227_v0, %v1771_v9  ;;  %v1775_v22 = vor.u32 %v1774_v3, %v1773_v50  ;;  %v1778_v26 = vor.u32 %v1777_v55, %v1776_v46  ;;  %v1781_v28 = vor.u32 %v1780_v7, %v1779_v15 }
 0x19b   : > { %v1804_v62 = vshll.u32 %v1764_v1, 8  ;;  %v12968_v6 = vand.u32 2147483647, %v10013_v56  ;;  %v10059_v30 = vmul.f32 %v9830_v63, %v482_v24  ;;  %v13229_v16 = vand.u32 2147483647, %v9588_v54 }
 0x19c   : > { %v1784_v32 = vor.u32 %v1783_v44, %v1782_v59  ;;  %v13230_v41 = vmov 0  ;;  %v8198_v25 = vadd.s32 4294967294, %v1616_v29  ;;  %v1785_v13 = vshll.u32 %v13227_v0, %v1770_v11 }
 0x19d   : > { %13228 = vst [vmem:[#allocation41_spill] sm:$0xff] %v10059_v30  ;;  %vm10063_vm7 = vcmp.le.f32.partialorder %v13229_v16, 0.7853982  ;;  %v1786_v33 = vshrl.u32 %v13209_v53, %v1771_v9  ;;  %v8200_v50 = vadd.s32 4294967169, %v1656_v34  ;;  %v1510_v46 = vsub.s32 0, %v10053_v52 }
 0x19e   : > { %v13231_v41 = vsel %vm10063_vm7, 4294967295, %v13230_v41  ;;  %vm1788_vm8 = vcmp.lt.s32.totalorder %v1769_v2, 1  ;;  %vm1790_vm9 = vcmp.lt.s32.totalorder %v1769_v2, 3  ;;  %vm1791_vm11 = vcmp.lt.s32.totalorder %v1769_v2, 4  ;;  %v10070_v1 = vpop.eup %8975 }
 0x19f   : > { %13232 = vst [vmem:[#allocation42_spill] sm:$0xff] %v13231_v41  ;;  %13233 = vst [vmem:[#allocation43_spill] sm:$0xff] %v10070_v1  ;;  %vm12975_vm14 = vcmp.lt.s32.totalorder %v9621_v4, 0  ;;  %v1787_v3 = vor.u32 %v1786_v33, %v1785_v13  ;;  %v1793_v16 = vsel %vm1791_vm11, %v1781_v28, 2102212464  ;;  %v1796_v55 = vsel %vm1788_vm8, %v1775_v22, %v1778_v26 }
 0x1a0   : > { %v1797_v15 = vsel %vm1791_vm11, %v1784_v32, 920167782  ;;  %v1772_v29 = vshrl.u32 %v13211_v51, %v1771_v9  ;;  %vm1789_vm1 = vcmp.lt.s32.totalorder %v1769_v2, 2  ;;  %v1659_v34 = vand.u32 8388607, %v12968_v6 }
 0x1a1   : > { %v1798_v11 = vsel %vm1790_vm9, %v1781_v28, %v1797_v15  ;;  %vm8199_vm3 = vcmp.lt.s32.totalorder %v8198_v25, 0  ;;  %v1800_v24 = vsel %vm1788_vm8, %v1778_v26, %v1781_v28  ;;  %v1801_v59 = vsel %vm1791_vm11, %v1787_v3, 1326507024 }
 0x1a2   : > { %v1799_v7 = vsel %vm1789_vm1, %v1796_v55, %v1798_v11  ;;  %v8193_v44 = vmin.u32 %v1510_v46, %v10053_v52  ;;  %v1792_v13 = vsel %vm1788_vm8, %v1772_v29, %v1775_v22  ;;  %v1794_v33 = vsel %vm1790_vm9, %v1778_v26, %v1793_v16 }
 0x1a3   : > { %v1802_v9 = vsel %vm1790_vm9, %v1784_v32, %v1801_v59  ;;  %v10085_v15 = vmul.u32.u64.low %v1804_v62, %v1799_v7  ;;  %v10086_v14 = vmul.u32.u64.high %v1804_v62, %v1799_v7, %v10085_v15  ;;  %v1662_v6 = vadd.s32 1, %v8200_v50 }
 0x1a4   : > { %v1803_v1 = vsel %vm1789_vm1, %v1800_v24, %v1802_v9  ;;  %v1424_v55 = vxor.u32 2147483648, %v10038_v60  ;;  %v10090_v11 = vsel %vm8199_vm3, 0, %v8198_v25  ;;  %v10095_v46 = vor.u32 %v1310_v57, %v1309_v35 }
 0x1a5   : > { %v10092_v28 = vmul.u32.u64.low %v1804_v62, %v1803_v1  ;;  %v10093_v3 = vmul.u32.u64.high %v1804_v62, %v1803_v1, %v10092_v28  ;;  %v10097_v22 = vor.u32 4788187, %v1314_v12  ;;  %v1795_v32 = vsel %vm1789_vm1, %v1792_v13, %v1794_v33 }
 0x1a6   : > { %vm1663_vm8 = vcmp.gt.s32.totalorder %v1662_v6, 0  ;;  %8977 = vsinq.f32 %v10018_v58  ;;  %v10105_v26 = vsel %vm10063_vm7, %v9588_v54, %v10036_v38  ;;  %v1660_v25 = vor.u32 8388608, %v1659_v34 }
 0x1a7   : > { %v1967_v50 = vand.u32 2139095040, %v10059_v30  ;;  %v1624_v1 = vsub.s32 4294967266, %v10090_v11  ;;  %v1512_v35 = vclz %v8193_v44  ;;  %v1814_v57 = vadd.s32 1, %v10086_v14 }
 0x1a8   : > { %v1664_v12 = vsel %vm1663_vm8, %v1662_v6, 0  ;;  %v10113_v2 = vsel %vm12975_vm14, %v1424_v55, %v10038_v60  ;;  %v1604_v58 = vadd.s32 %v9920_v49, %v9913_v20  ;;  %v1811_v16 = vmul.u32 %v1804_v62, %v1795_v32 }
 0x1a9   : > { %vm1813_vm9 = vc.u32 %v10093_v3, %v10085_v15  ;;  %v1666_v7 = vand.u32 31, %v1664_v12  ;;  %v1620_v6 = vsub.s32 32, %v10090_v11  ;;  %v10123_v59 = vshll.u32 %v1660_v25, 8 }
 0x1aa   : > { %v1815_v34 = vsel %vm1813_vm9, %v1814_v57, %v10086_v14  ;;  %v1625_v44 = vadd.s32 127, %v1624_v1  ;;  %v8194_v20 = vadd.s32 4294967294, %v1512_v35  ;;  %v1968_v62 = vshrl.u32 %v1967_v50, 23 }
 0x1ab   : > { %v1816_v24 = vadd.s32 %v1815_v34, %v1811_v16  ;;  %v1667_v49 = vsub.s32 32, %v1666_v7  ;;  %v1665_v33 = vshrl.u32 %v1664_v12, 5  ;;  %v1669_v9 = vshll.u32 %v13211_v51, %v1666_v7 }
 0x1ac   : > { %v1672_v55 = vshll.u32 %v13206_v21, %v1666_v7  ;;  %v1675_v32 = vshll.u32 %v13207_v37, %v1666_v7  ;;  %v1678_v1 = vshll.u32 %v13213_v31, %v1666_v7  ;;  %v1681_v35 = vshll.u32 %v13227_v0, %v1666_v7 }
 0x1ad   : > { %v1817_v13 = vadd.s32 536870912, %v1816_v24  ;;  %v1670_v14 = vshrl.u32 %v13206_v21, %v1667_v49  ;;  %v1673_v28 = vshrl.u32 %v13207_v37, %v1667_v49  ;;  %v1676_v25 = vshrl.u32 %v13213_v31, %v1667_v49 }
 0x1ae   : > { %v1679_v50 = vshrl.u32 %v13227_v0, %v1667_v49  ;;  %v1682_v60 = vshrl.u32 %v13209_v53, %v1667_v49  ;;  %v13236_v38 = vand.u32 2147483647, %v9621_v4  ;;  %v13237_v41 = vmov 0 }
 0x1af   : > { %v10132_v57 = vshrl.u32 %v1817_v13, 30  ;;  %v1671_v12 = vor.u32 %v1670_v14, %v1669_v9  ;;  %v1674_v16 = vor.u32 %v1673_v28, %v1672_v55  ;;  %v1677_v34 = vor.u32 %v1676_v25, %v1675_v32 }
 0x1b0   : > { %v10138_v29 = vpop.eup %8977  ;;  %vm10142_vm11 = vcmp.le.f32.partialorder %v13236_v38, 0.7853982  ;;  %v1621_v13 = vshll.u32 %v9985_v19, %v10090_v11  ;;  %v1622_v54 = vshrl.u32 %v1604_v58, %v1620_v6  ;;  %v1680_v7 = vor.u32 %v1679_v50, %v1678_v1 }
 0x1b1   : > { %13234 = vst [vmem:[#allocation44_spill] sm:$0xff] %v10132_v57  ;;  %13235 = vst [vmem:[#allocation45_spill] sm:$0xff] %v10138_v29  ;;  %v13238_v41 = vsel %vm10142_vm11, 4294967295, %v13237_v41  ;;  %v1819_v45 = vshll.u32 %v10132_v57, 30  ;;  %v1626_v9 = vshll.u32 %v1625_v44, 23  ;;  %vm8195_vm1 = vcmp.lt.s32.totalorder %v8194_v20, 0 }
 0x1b2   : > { %13239 = vst [vmem:[#allocation46_spill] sm:$0xff] %v13238_v41  ;;  %v1683_v55 = vor.u32 %v1682_v60, %v1681_v35  ;;  %v8212_v14 = vadd.s32 4294967169, %v1968_v62  ;;  %v1668_v32 = vshrl.u32 %v13211_v51, %v1667_v49  ;;  %vm1684_vm3 = vcmp.lt.s32.totalorder %v1665_v33, 1 }
 0x1b3   : > { %v10149_v28 = vsub.s32 %v1816_v24, %v1819_v45  ;;  %vm1687_vm8 = vcmp.lt.s32.totalorder %v1665_v33, 4  ;;  %vm1686_vm9 = vcmp.lt.s32.totalorder %v1665_v33, 3  ;;  %v1692_v25 = vsel %vm1684_vm3, %v1671_v12, %v1674_v16 }
 0x1b4   : > { %v1689_v38 = vsel %vm1687_vm8, %v1677_v34, 2102212464  ;;  %v1693_v29 = vsel %vm1687_vm8, %v1680_v7, 920167782  ;;  %vm1685_vm14 = vcmp.lt.s32.totalorder %v1665_v33, 2  ;;  %v1696_v58 = vsel %vm1684_vm3, %v1674_v16, %v1677_v34 }
 0x1b5   : > { %v1822_v19 = vsub.s32 0, %v10149_v28  ;;  %v1694_v11 = vsel %vm1686_vm9, %v1677_v34, %v1693_v29  ;;  %v1623_v6 = vor.u32 %v1622_v54, %v1621_v13  ;;  %v1627_v44 = vor.u32 4788187, %v1626_v9 }
 0x1b6   : > { %v1695_v60 = vsel %vm1685_vm14, %v1692_v25, %v1694_v11  ;;  %v1697_v62 = vsel %vm1687_vm8, %v1683_v55, 1326507024  ;;  %v1688_v24 = vsel %vm1684_vm3, %v1668_v32, %v1671_v12  ;;  %v1690_v49 = vsel %vm1686_vm9, %v1674_v16, %v1689_v38 }
 0x1b7   : > { %v8205_v45 = vmin.u32 %v1822_v19, %v10149_v28  ;;  %v1698_v1 = vsel %vm1686_vm9, %v1680_v7, %v1697_v62  ;;  %v10156_v50 = vsel %vm8195_vm1, 0, %v8194_v20  ;;  %v1974_v13 = vadd.s32 1, %v8212_v14 }
 0x1b8   : > { %v1699_v35 = vsel %vm1685_vm14, %v1696_v58, %v1698_v1  ;;  %v10160_v57 = vmul.u32.u64.low %v10123_v59, %v1695_v60  ;;  %v10161_v48 = vmul.u32.u64.high %v10123_v59, %v1695_v60, %v10160_v57  ;;  %8979 = vcosq.f32 %v10105_v26 }
 0x1b9   : > { %v1824_v54 = vclz %v8205_v45  ;;  %v10165_v29 = vmul.u32.u64.low %v10123_v59, %v1699_v35  ;;  %v10166_v34 = vmul.u32.u64.high %v10123_v59, %v1699_v35, %v10165_v29  ;;  %v1428_v20 = vsel %vm10142_vm11, %v9621_v4, %v10113_v2 }
 0x1ba   : > { %v13240_v12 = vand.u32 2147483647, %v10097_v22  ;;  %v13241_v16 = vcvt.s32.f32 %v10095_v46  ;;  %v1691_v9 = vsel %vm1685_vm14, %v1688_v24, %v1690_v49  ;;  %8981 = vsinq.f32 %v10105_v26  ;;  %v477_v29 = vpop.permute.xlu0 %476 }
 0x1bb   : > { %v1628_v55 = vand.u32 2147483647, %v1627_v44  ;;  %v1520_v14 = vsub.s32 4294967266, %v10156_v50  ;;  %vm1975_vm1 = vcmp.gt.s32.totalorder %v1974_v13, 0  ;;  %v8206_v32 = vadd.s32 4294967294, %v1824_v54 }
 0x1bc   : > { %v10177_v7 = vmul.f32 %v13241_v16, %v13240_v12  ;;  %v1710_v38 = vadd.s32 1, %v10161_v48  ;;  %v13242_v25 = vand.u32 2147483647, %v10059_v30  ;;  %v1976_v19 = vsel %vm1975_vm1, %v1974_v13, 0 }
 0x1bd   : > { %8983 = vcosq.f32 %v1428_v20  ;;  %v1630_v22 = vcvt.s32.f32 %v1623_v6  ;;  %v1707_v46 = vmul.u32 %v10123_v59, %v1691_v9  ;;  %vm1709_vm14 = vc.u32 %v10166_v34, %v10160_v57 }
 0x1be   : > { %v1971_v2 = vand.u32 8388607, %v13242_v25  ;;  %8985 = vsinq.f32 %v1428_v20  ;;  %v1711_v33 = vsel %vm1709_vm14, %v1710_v38, %v10161_v48  ;;  %v1978_v11 = vand.u32 31, %v1976_v19 }
 0x1bf   : > { %v10190_v58 = vmul.f32 %v1630_v22, %v1628_v55  ;;  %v10194_v44 = vadd.s32 %v9980_v27, %v9992_v5  ;;  %v1516_v60 = vsub.s32 32, %v10156_v50  ;;  %v1712_v6 = vadd.s32 %v1711_v33, %v1707_v46 }
 0x1c0   : > { %v10197_v62 = vadd.s32 127, %v1520_v14  ;;  %vm8207_vm3 = vcmp.lt.s32.totalorder %v8206_v32, 0  ;;  %v1972_v59 = vor.u32 8388608, %v1971_v2  ;;  %v1979_v45 = vsub.s32 32, %v1978_v11 }
 0x1c1   : > { %v1713_v24 = vadd.s32 536870912, %v1712_v6  ;;  %v10199_v49 = vshrl.u32 %v1976_v19, 5  ;;  %v1981_v48 = vshll.u32 %v13211_v51, %v1978_v11  ;;  %v1984_v1 = vshll.u32 %v13206_v21, %v1978_v11 }
 0x1c2   : > { %v1982_v35 = vshrl.u32 %v13206_v21, %v1979_v45  ;;  %v1985_v27 = vshrl.u32 %v13207_v37, %v1979_v45  ;;  %v1987_v5 = vshll.u32 %v13207_v37, %v1978_v11  ;;  %v1988_v54 = vshrl.u32 %v13213_v31, %v1979_v45  ;;  %v10213_v9 = vpop.eup %8979 }
 0x1c3   : > { %v10207_v13 = vsel %vm8207_vm3, 0, %v8206_v32  ;;  %v10209_v20 = vshrl.u32 %v1713_v24, 30  ;;  %v1990_v12 = vshll.u32 %v13213_v31, %v1978_v11  ;;  %v1991_v16 = vshrl.u32 %v13227_v0, %v1979_v45 }
 0x1c4   : > { %v1522_v55 = vshll.u32 %v10197_v62, 23  ;;  %v1983_v14 = vor.u32 %v1982_v35, %v1981_v48  ;;  %v1986_v38 = vor.u32 %v1985_v27, %v1984_v1  ;;  %v1989_v25 = vor.u32 %v1988_v54, %v1987_v5  ;;  %v10216_v2 = vpop.eup %8981 }
 0x1c5   : > { %13243 = vst [vmem:[#allocation47_spill] sm:$0xff] %v10209_v20  ;;  %vm12994_vm8 = vcmp.lt.s32.totalorder %v9683_v10, 0  ;;  %v1715_v32 = vshll.u32 %v10209_v20, 30  ;;  %v1992_v19 = vor.u32 %v1991_v16, %v1990_v12  ;;  %v10220_v22 = vshll.u32 %v1972_v59, 8 }
 0x1c6   : > { %v10223_v46 = vmul.f32 %v9830_v63, %v477_v29  ;;  %v1828_v33 = vsub.s32 32, %v10207_v13  ;;  %v1832_v24 = vsub.s32 4294967266, %v10207_v13  ;;  %v1993_v62 = vshll.u32 %v13227_v0, %v1978_v11 }
 0x1c7   : > { %v1994_v48 = vshrl.u32 %v13209_v53, %v1979_v45  ;;  %v10229_v1 = vpop.eup %8983  ;;  %v10231_v35 = vsub.s32 %v1712_v6, %v1715_v32  ;;  %vm1996_vm9 = vcmp.lt.s32.totalorder %v10199_v49, 1  ;;  %vm1998_vm1 = vcmp.lt.s32.totalorder %v10199_v49, 3 }
 0x1c8   : > { %13244 = vst [vmem:[#allocation48_spill] sm:$0xff] %v10223_v46  ;;  %13245 = vst [vmem:[#allocation49_spill] sm:$0xff] %v10229_v1  ;;  %vm1999_vm14 = vcmp.lt.s32.totalorder %v10199_v49, 4  ;;  %v10236_v59 = vpop.eup %8985  ;;  %v2004_v54 = vsel %vm1996_vm9, %v1983_v14, %v1986_v38  ;;  %v13247_v29 = vand.u32 2147483647, %v9683_v10  ;;  %v13248_v12 = vmov 0 }
 0x1c9   : > { %13246 = vst [vmem:[#allocation50_spill] sm:$0xff] %v10236_v59  ;;  %v1995_v27 = vor.u32 %v1994_v48, %v1993_v62  ;;  %v2001_v5 = vsel %vm1999_vm14, %v1989_v25, 2102212464  ;;  %v2005_v11 = vsel %vm1999_vm14, %v1992_v19, 920167782  ;;  %vm12990_vm5 = vcmp.lt.s32.totalorder %v9759_v17, 0 }
 0x1ca   : > { %vm10242_vm3 = vcmp.le.f32.partialorder %v13247_v29, 0.7853982  ;;  %v1718_v6 = vsub.s32 0, %v10231_v35  ;;  %v1980_v16 = vshrl.u32 %v13211_v51, %v1979_v45  ;;  %vm1997_vm13 = vcmp.lt.s32.totalorder %v10199_v49, 2 }
 0x1cb   : > { %v13249_v12 = vsel %vm10242_vm3, 4294967295, %v13248_v12  ;;  %v2006_v32 = vsel %vm1998_vm1, %v1989_v25, %v2005_v11  ;;  %v1833_v62 = vadd.s32 127, %v1832_v24  ;;  %v2008_v29 = vsel %vm1996_vm9, %v1986_v38, %v1989_v25 }
 0x1cc   : > { %13250 = vst [vmem:[#allocation51_spill] sm:$0xff] %v13249_v12  ;;  %v2007_v48 = vsel %vm1997_vm13, %v2004_v54, %v2006_v32  ;;  %v2009_v26 = vsel %vm1999_vm14, %v1995_v27, 1326507024  ;;  %v8201_v20 = vmin.u32 %v1718_v6, %v10231_v35  ;;  %v2000_v1 = vsel %vm1996_vm9, %v1980_v16, %v1983_v14 }
 0x1cd   : > { %v2002_v45 = vsel %vm1998_vm1, %v1986_v38, %v2001_v5  ;;  %v2010_v59 = vsel %vm1998_vm1, %v1992_v19, %v2009_v26  ;;  %v10266_v54 = vmul.u32.u64.low %v10220_v22, %v2007_v48  ;;  %v10267_v11 = vmul.u32.u64.high %v10220_v22, %v2007_v48, %v10266_v54  ;;  %v492_v5 = vpop.permute.xlu1 %491 }
 0x1ce   : > { %v2011_v24 = vsel %vm1997_vm13, %v2008_v29, %v2010_v59  ;;  %v1863_v25 = vand.u32 2139095040, %v10223_v46  ;;  %v13251_v27 = vand.u32 2147483647, %v9759_v17  ;;  %v13252_v14 = vmov 0 }
 0x1cf   : > { %v1518_v38 = vshrl.u32 %v10194_v44, %v1516_v60  ;;  %v1812_v26 = vadd.s32 %v10085_v15, %v10093_v3  ;;  %v10281_v19 = vmul.u32.u64.low %v10220_v22, %v2011_v24  ;;  %v10282_v59 = vmul.u32.u64.high %v10220_v22, %v2011_v24, %v10281_v19 }
 0x1d0   : > { %vm10273_vm14 = vcmp.le.f32.partialorder %v13251_v27, 0.7853982  ;;  %v13255_v6 = vxor.u32 2147483648, %v10177_v7  ;;  %v1632_v32 = vxor.u32 2147483648, %v10190_v58  ;;  %v2003_v48 = vsel %vm1997_vm13, %v2000_v1, %v2002_v45 }
 0x1d1   : > { %v13253_v14 = vsel %vm10273_vm14, 4294967295, %v13252_v14  ;;  %v1864_v44 = vshrl.u32 %v1863_v25, 23  ;;  %v1517_v15 = vshll.u32 %v10053_v52, %v10156_v50  ;;  %v1523_v3 = vor.u32 4788187, %v1522_v55 }
 0x1d2   : > { %13254 = vst [vmem:[#allocation52_spill] sm:$0xff] %v13253_v14  ;;  %v1321_v16 = vsel %vm12994_vm8, %v13255_v6, %v10177_v7  ;;  %v1830_v60 = vshrl.u32 %v1812_v26, %v1828_v33  ;;  %v1834_v29 = vshll.u32 %v1833_v62, 23  ;;  %v1720_v24 = vclz %v8201_v20 }
 0x1d3   : > { %v2022_v27 = vadd.s32 1, %v10267_v11  ;;  %v8208_v19 = vadd.s32 4294967169, %v1864_v44  ;;  %v10296_v41 = vmul.f32 %v9830_v63, %v492_v5  ;;  %v1519_v7 = vor.u32 %v1518_v38, %v1517_v15 }
 0x1d4   : > { %v1829_v6 = vshll.u32 %v10149_v28, %v10207_v13  ;;  %v2019_v49 = vmul.u32 %v10220_v22, %v2003_v48  ;;  %vm2021_vm13 = vc.u32 %v10282_v59, %v10266_v54  ;;  %v1324_v52 = vsel %vm10242_vm3, %v9683_v10, %v1321_v16 }
 0x1d5   : > { %13256 = vst [vmem:[#allocation53_spill] sm:$0xff] %v10296_v41  ;;  %v1633_v50 = vsel %vm12990_vm5, %v1632_v32, %v10190_v58  ;;  %v2023_v63 = vsel %vm2021_vm13, %v2022_v27, %v10267_v11  ;;  %v1870_v20 = vadd.s32 1, %v8208_v19  ;;  %v1524_v55 = vand.u32 2147483647, %v1523_v3 }
 0x1d6   : > { %v1831_v33 = vor.u32 %v1830_v60, %v1829_v6  ;;  %v1835_v1 = vor.u32 4788187, %v1834_v29  ;;  %v2024_v28 = vadd.s32 %v2023_v63, %v2019_v49  ;;  %v8202_v13 = vadd.s32 4294967294, %v1720_v24 }
 0x1d7   : > { %v12987_v22 = vand.u32 2147483647, %v10223_v46  ;;  %vm1871_vm9 = vcmp.gt.s32.totalorder %v1870_v20, 0  ;;  %v2175_v62 = vand.u32 2139095040, %v10296_v41  ;;  %8987 = vcosq.f32 %v1324_v52 }
 0x1d8   : > { %v1526_v45 = vcvt.s32.f32 %v1519_v7  ;;  %v2025_v25 = vadd.s32 536870912, %v2024_v28  ;;  %v1872_v38 = vsel %vm1871_vm9, %v1870_v20, 0  ;;  %v10314_v58 = vor.u32 %v9926_v23, %v9860_v18 }
 0x1d9   : > { %8989 = vsinq.f32 %v1324_v52  ;;  %v10319_v11 = vsel %vm10273_vm14, %v9759_v17, %v1633_v50  ;;  %v1874_v26 = vand.u32 31, %v1872_v38  ;;  %v1836_v16 = vand.u32 2147483647, %v1835_v1 }
 0x1da   : > { %v10321_v5 = vmul.f32 %v1526_v45, %v1524_v55  ;;  %v1838_v32 = vcvt.s32.f32 %v1831_v33  ;;  %v10323_v48 = vshrl.u32 %v2025_v25, 30  ;;  %vm8203_vm1 = vcmp.lt.s32.totalorder %v8202_v13, 0 }
 0x1db   : > { %v1867_v44 = vand.u32 8388607, %v12987_v22  ;;  %v1875_v15 = vsub.s32 32, %v1874_v26  ;;  %v2176_v18 = vshrl.u32 %v2175_v62, 23  ;;  %v1873_v3 = vshrl.u32 %v1872_v38, 5 }
 0x1dc   : > { %13257 = vst [vmem:[#allocation54_spill] sm:$0xff] %v10323_v48  ;;  %v2027_v23 = vshll.u32 %v10323_v48, 30  ;;  %v1877_v60 = vshll.u32 %v13211_v51, %v1874_v26  ;;  %v1880_v29 = vshll.u32 %v13206_v21, %v1874_v26  ;;  %v1883_v19 = vshll.u32 %v13207_v37, %v1874_v26 }
 0x1dd   : > { %v1878_v24 = vshrl.u32 %v13206_v21, %v1875_v15  ;;  %v1881_v27 = vshrl.u32 %v13207_v37, %v1875_v15  ;;  %v1884_v7 = vshrl.u32 %v13213_v31, %v1875_v15  ;;  %v1886_v49 = vshll.u32 %v13213_v31, %v1874_v26 }
 0x1de   : > { %v10334_v6 = vsub.s32 %v2024_v28, %v2027_v23  ;;  %v1887_v52 = vshrl.u32 %v13227_v0, %v1875_v15  ;;  %v1889_v50 = vshll.u32 %v13227_v0, %v1874_v26  ;;  %v1890_v33 = vshrl.u32 %v13209_v53, %v1875_v15 }
 0x1df   : > { %v1879_v63 = vor.u32 %v1878_v24, %v1877_v60  ;;  %v1882_v20 = vor.u32 %v1881_v27, %v1880_v29  ;;  %v1885_v55 = vor.u32 %v1884_v7, %v1883_v19  ;;  %v10340_v1 = vmul.f32 %v1838_v32, %v1836_v16 }
 0x1e0   : > { %v2030_v62 = vsub.s32 0, %v10334_v6  ;;  %v1888_v45 = vor.u32 %v1887_v52, %v1886_v49  ;;  %v10345_v28 = vsel %vm8203_vm1, 0, %v8202_v13  ;;  %v1868_v38 = vor.u32 8388608, %v1867_v44 }
 0x1e1   : > { %v1891_v23 = vor.u32 %v1890_v33, %v1889_v50  ;;  %v8220_v22 = vadd.s32 4294967169, %v2176_v18  ;;  %v10347_v48 = vpop.eup %8987  ;;  %v1876_v60 = vshrl.u32 %v13211_v51, %v1875_v15  ;;  %vm1892_vm13 = vcmp.lt.s32.totalorder %v1873_v3, 1 }
 0x1e2   : > { %13258 = vst [vmem:[#allocation55_spill] sm:$0xff] %v10347_v48  ;;  %v8213_v26 = vmin.u32 %v2030_v62, %v10334_v6  ;;  %vm1895_vm9 = vcmp.lt.s32.totalorder %v1873_v3, 4  ;;  %vm1894_vm5 = vcmp.lt.s32.totalorder %v1873_v3, 3  ;;  %v1900_v29 = vsel %vm1892_vm13, %v1879_v63, %v1882_v20 }
 0x1e3   : > { %v10351_v16 = vpop.eup %8989  ;;  %v1897_v32 = vsel %vm1895_vm9, %v1885_v55, 2102212464  ;;  %v1901_v24 = vsel %vm1895_vm9, %v1888_v45, 920167782  ;;  %vm1893_vm1 = vcmp.lt.s32.totalorder %v1873_v3, 2  ;;  %v1904_v44 = vsel %vm1892_vm13, %v1882_v20, %v1885_v55 }
 0x1e4   : > { %13259 = vst [vmem:[#allocation56_spill] sm:$0xff] %v10351_v16  ;;  %v2032_v27 = vclz %v8213_v26  ;;  %v1902_v13 = vsel %vm1894_vm5, %v1885_v55, %v1901_v24  ;;  %v1896_v19 = vsel %vm1892_vm13, %v1876_v60, %v1879_v63  ;;  %v1905_v7 = vsel %vm1895_vm9, %v1891_v23, 1326507024  ;;  %v487_v26 = vpop.permute.xlu0 %486  ;;  %v502_v24 = vpop.permute.xlu1 %501 }
 0x1e5   : > { %v1903_v18 = vsel %vm1893_vm1, %v1900_v29, %v1902_v13  ;;  %v1908_v49 = vshll.u32 %v1868_v38, 8  ;;  %v1898_v50 = vsel %vm1894_vm5, %v1882_v20, %v1897_v32  ;;  %v1906_v15 = vsel %vm1894_vm5, %v1888_v45, %v1905_v7  ;;  %v10373_v29 = vld [vmem:[%s12908_s2] ss:$0 sm:$0xff] }
 0x1e6   : > { %v8214_v52 = vadd.s32 4294967294, %v2032_v27  ;;  %v2182_v33 = vadd.s32 1, %v8220_v22  ;;  %v1907_v25 = vsel %vm1893_vm1, %v1904_v44, %v1906_v15  ;;  %v1728_v38 = vsub.s32 4294967266, %v10345_v28 }
 0x1e7   : > { %v10356_v14 = vmul.u32.u64.low %v1908_v49, %v1903_v18  ;;  %v10357_v17 = vmul.u32.u64.high %v1908_v49, %v1903_v18, %v10356_v14  ;;  %v10360_v63 = vmul.u32.u64.low %v1908_v49, %v1907_v25  ;;  %v10361_v55 = vmul.u32.u64.high %v1908_v49, %v1907_v25, %v10360_v63 }
 0x1e8   : > { %vm8215_vm8 = vcmp.lt.s32.totalorder %v8214_v52, 0  ;;  %vm2183_vm13 = vcmp.gt.s32.totalorder %v2182_v33, 0  ;;  %v1899_v20 = vsel %vm1893_vm1, %v1896_v19, %v1898_v50  ;;  %v13260_v22 = vand.u32 2147483647, %v10296_v41 }
 0x1e9   : > { %v2184_v23 = vsel %vm2183_vm13, %v2182_v33, 0  ;;  %v1708_v32 = vadd.s32 %v10160_v57, %v10166_v34  ;;  %v10376_v25 = vmul.f32 %v10373_v29, %v487_v26  ;;  %v10379_v3 = vmul.f32 %v10373_v29, %v502_v24 }
 0x1ea   : > { %v2179_v45 = vand.u32 8388607, %v13260_v22  ;;  %v10383_v27 = vadd.s32 %v10266_v54, %v10282_v59  ;;  %v10385_v13 = vsel %vm8215_vm8, 0, %v8214_v52  ;;  %v1918_v44 = vadd.s32 1, %v10357_v17 }
 0x1eb   : > { %13261 = vst [vmem:[#allocation57_spill] sm:$0xff] %v10376_v25  ;;  %13262 = vst [vmem:[#allocation58_spill] sm:$0xff] %v10379_v3  ;;  %v2186_v57 = vand.u32 31, %v2184_v23  ;;  %v1724_v34 = vsub.s32 32, %v10345_v28  ;;  %v1725_v19 = vshll.u32 %v10231_v35, %v10345_v28  ;;  %v1915_v18 = vmul.u32 %v1908_v49, %v1899_v20 }
 0x1ec   : > { %vm1917_vm5 = vc.u32 %v10361_v55, %v10356_v14  ;;  %v1729_v7 = vadd.s32 127, %v1728_v38  ;;  %v2180_v15 = vor.u32 8388608, %v2179_v45  ;;  %v2040_v59 = vsub.s32 4294967266, %v10385_v13 }
 0x1ed   : > { %v1919_v50 = vsel %vm1917_vm5, %v1918_v44, %v10357_v17  ;;  %v2187_v54 = vsub.s32 32, %v2186_v57  ;;  %v2189_v33 = vshll.u32 %v13211_v51, %v2186_v57  ;;  %v2192_v26 = vshll.u32 %v13206_v21, %v2186_v57 }
 0x1ee   : > { %v1920_v52 = vadd.s32 %v1919_v50, %v1915_v18  ;;  %v2195_v28 = vshll.u32 %v13207_v37, %v2186_v57  ;;  %v1726_v63 = vshrl.u32 %v1708_v32, %v1724_v34  ;;  %v2185_v17 = vshrl.u32 %v2184_v23, 5 }
 0x1ef   : > { %v2190_v24 = vshrl.u32 %v13206_v21, %v2187_v54  ;;  %v2193_v35 = vshrl.u32 %v13207_v37, %v2187_v54  ;;  %v2196_v49 = vshrl.u32 %v13213_v31, %v2187_v54  ;;  %v2198_v20 = vshll.u32 %v13213_v31, %v2186_v57 }
 0x1f0   : > { %v1921_v38 = vadd.s32 536870912, %v1920_v52  ;;  %v2199_v18 = vshrl.u32 %v13227_v0, %v2187_v54  ;;  %v1730_v50 = vshll.u32 %v1729_v7, 23  ;;  %v2201_v62 = vshll.u32 %v13227_v0, %v2186_v57 }
 0x1f1   : > { %v2191_v22 = vor.u32 %v2190_v24, %v2189_v33  ;;  %v2194_v45 = vor.u32 %v2193_v35, %v2192_v26  ;;  %v2197_v44 = vor.u32 %v2196_v49, %v2195_v28  ;;  %v2202_v4 = vshrl.u32 %v13209_v53, %v2187_v54 }
 0x1f2   : > { %v10403_v60 = vshrl.u32 %v1921_v38, 30  ;;  %vm13011_vm8 = vcmp.lt.s32.totalorder %v9833_v43, 0  ;;  %v2036_v32 = vsub.s32 32, %v10385_v13  ;;  %v2041_v34 = vadd.s32 127, %v2040_v59 }
 0x1f3   : > { %v2200_v23 = vor.u32 %v2199_v18, %v2198_v20  ;;  %v2220_v48 = vshll.u32 %v2180_v15, 8  ;;  %vm13010_vm9 = vcmp.lt.s32.totalorder %v9955_v47, 0  ;;  %v2203_v26 = vor.u32 %v2202_v4, %v2201_v62 }
 0x1f4   : > { %13263 = vst [vmem:[#allocation59_spill] sm:$0xff] %v10403_v60  ;;  %v1923_v33 = vshll.u32 %v10403_v60, 30  ;;  %vm2204_vm1 = vcmp.lt.s32.totalorder %v2185_v17, 1  ;;  %vm2207_vm13 = vcmp.lt.s32.totalorder %v2185_v17, 4  ;;  %vm2206_vm5 = vcmp.lt.s32.totalorder %v2185_v17, 3 }
 0x1f5   : > { %v2209_v7 = vsel %vm2207_vm13, %v2197_v44, 2102212464  ;;  %v2212_v57 = vsel %vm2204_vm1, %v2191_v22, %v2194_v45  ;;  %v2213_v24 = vsel %vm2207_vm13, %v2200_v23, 920167782  ;;  %v2188_v28 = vshrl.u32 %v13211_v51, %v2187_v54 }
 0x1f6   : > { %v10412_v35 = vsub.s32 %v1920_v52, %v1923_v33  ;;  %vm2205_vm12 = vcmp.lt.s32.totalorder %v2185_v17, 2  ;;  %v2214_v59 = vsel %vm2206_vm5, %v2197_v44, %v2213_v24  ;;  %v13264_v15 = vand.u32 2147483647, %v9833_v43 }
 0x1f7   : > { %v13265_v49 = vmov 0  ;;  %v2215_v4 = vsel %vm2205_vm12, %v2212_v57, %v2214_v59  ;;  %v2216_v62 = vsel %vm2204_vm1, %v2194_v45, %v2197_v44  ;;  %v2217_v38 = vsel %vm2207_vm13, %v2203_v26, 1326507024 }
 0x1f8   : > { %vm10418_vm15 = vcmp.le.f32.partialorder %v13264_v15, 0.7853982  ;;  %v2071_v20 = vand.u32 2139095040, %v10376_v25  ;;  %v1926_v52 = vsub.s32 0, %v10412_v35  ;;  %v2208_v54 = vsel %vm2204_vm1, %v2188_v28, %v2191_v22 }
 0x1f9   : > { %v13266_v49 = vsel %vm10418_vm15, 4294967295, %v13265_v49  ;;  %v2210_v18 = vsel %vm2206_vm5, %v2194_v45, %v2209_v7  ;;  %v2218_v33 = vsel %vm2206_vm5, %v2200_v23, %v2217_v38  ;;  %v1731_v24 = vor.u32 4788187, %v1730_v50 }
 0x1fa   : > { %13267 = vst [vmem:[#allocation60_spill] sm:$0xff] %v13266_v49  ;;  %v2219_v15 = vsel %vm2205_vm12, %v2216_v62, %v2218_v33  ;;  %v10430_v60 = vmul.u32.u64.low %v2220_v48, %v2215_v4  ;;  %v10431_v16 = vmul.u32.u64.high %v2220_v48, %v2215_v4, %v10430_v60  ;;  %v2042_v57 = vshll.u32 %v2041_v34, 23 }
 0x1fb   : > { %v8209_v44 = vmin.u32 %v1926_v52, %v10412_v35  ;;  %v10435_v26 = vmul.u32.u64.low %v2220_v48, %v2219_v15  ;;  %v10436_v59 = vmul.u32.u64.high %v2220_v48, %v2219_v15, %v10435_v26  ;;  %8991 = vcosq.f32 %v10319_v11 }
 0x1fc   : > { %v1727_v22 = vor.u32 %v1726_v63, %v1725_v19  ;;  %v2211_v45 = vsel %vm2205_vm12, %v2208_v54, %v2210_v18  ;;  %v2072_v7 = vshrl.u32 %v2071_v20, 23  ;;  %v13268_v50 = vxor.u32 2147483648, %v10321_v5 }
 0x1fd   : > { %v2038_v28 = vshrl.u32 %v10383_v27, %v2036_v32  ;;  %v1928_v34 = vclz %v8209_v44  ;;  %v2383_v4 = vand.u32 2139095040, %v10379_v3  ;;  %v13269_v62 = vxor.u32 2147483648, %v10340_v1 }
 0x1fe   : > { %v1529_v23 = vsel %vm13011_vm8, %v13268_v50, %v10321_v5  ;;  %v1732_v63 = vand.u32 2147483647, %v1731_v24  ;;  %v2230_v17 = vadd.s32 1, %v10431_v16  ;;  %v8216_v38 = vadd.s32 4294967169, %v2072_v7 }
 0x1ff   : > { %v1841_v19 = vsel %vm13010_vm9, %v13269_v62, %v10340_v1  ;;  %v2037_v20 = vshll.u32 %v10334_v6, %v10385_v13  ;;  %v2043_v52 = vor.u32 4788187, %v2042_v57  ;;  %v2227_v5 = vmul.u32 %v2220_v48, %v2211_v45 }
 0x200   : > { %vm2229_vm12 = vc.u32 %v10436_v59, %v10430_v60  ;;  %v1734_v27 = vcvt.s32.f32 %v1727_v22  ;;  %v2078_v54 = vadd.s32 1, %v8216_v38  ;;  %v2384_v18 = vshrl.u32 %v2383_v4, 23  ;;  %v497_v22 = vpop.permute.xlu0 %496 }
 0x201   : > { %v2231_v32 = vsel %vm2229_vm12, %v2230_v17, %v10431_v16  ;;  %v1532_v1 = vsel %vm10418_vm15, %v9833_v43, %v1529_v23  ;;  %v2039_v33 = vor.u32 %v2038_v28, %v2037_v20  ;;  %v8210_v24 = vadd.s32 4294967294, %v1928_v34 }
 0x202   : > { %v2232_v15 = vadd.s32 %v2231_v32, %v2227_v5  ;;  %8993 = vsinq.f32 %v10319_v11  ;;  %v13270_v6 = vand.u32 2147483647, %v9955_v47  ;;  %v13271_v48 = vmov 0 }
 0x203   : > { %v10468_v13 = vmul.f32 %v1734_v27, %v1732_v63  ;;  %vm2079_vm13 = vcmp.gt.s32.totalorder %v2078_v54, 0  ;;  %v2044_v57 = vand.u32 2147483647, %v2043_v52  ;;  %v13003_v26 = vand.u32 2147483647, %v10376_v25 }
 0x204   : > { %vm10464_vm1 = vcmp.le.f32.partialorder %v13270_v6, 0.7853982  ;;  %v2233_v44 = vadd.s32 536870912, %v2232_v15  ;;  %8995 = vcosq.f32 %v1532_v1  ;;  %v2080_v45 = vsel %vm2079_vm13, %v2078_v54, 0 }
 0x205   : > { %v13272_v48 = vsel %vm10464_vm1, 4294967295, %v13271_v48  ;;  %v10473_v16 = vsel %vm10464_vm1, %v9955_v47, %v1841_v19  ;;  %v8228_v7 = vadd.s32 4294967169, %v2384_v18  ;;  %8997 = vsinq.f32 %v1532_v1  ;;  %v10480_v28 = vpop.eup %8991 }
 0x206   : > { %13273 = vst [vmem:[#allocation61_spill] sm:$0xff] %v13272_v48  ;;  %v2046_v50 = vcvt.s32.f32 %v2039_v33  ;;  %vm8211_vm5 = vcmp.lt.s32.totalorder %v8210_v24, 0  ;;  %v10478_v23 = vshrl.u32 %v2233_v44, 30  ;;  %13275 = vst [vmem:[#allocation63_spill] sm:$0xff] %v10480_v28  ;;  %8999 = vcosq.f32 %v10473_v16 }
 0x207   : > { %v2082_v4 = vand.u32 31, %v2080_v45  ;;  %v10485_v62 = vmul.f32 %v10373_v29, %v497_v22  ;;  %v1916_v63 = vadd.s32 %v10356_v14, %v10361_v55  ;;  %v2075_v38 = vand.u32 8388607, %v13003_v26 }
 0x208   : > { %13274 = vst [vmem:[#allocation62_spill] sm:$0xff] %v10478_v23  ;;  %v10487_v19 = vmul.f32 %v2046_v50, %v2044_v57  ;;  %v2235_v17 = vshll.u32 %v10478_v23, 30  ;;  %v10494_v20 = vsel %vm8211_vm5, 0, %v8210_v24  ;;  %v13013_v5 = vand.u32 2147483647, %v10379_v3 }
 0x209   : > { %13276 = vst [vmem:[#allocation64_spill] sm:$0xff] %v10485_v62  ;;  %v2083_v52 = vsub.s32 32, %v2082_v4  ;;  %v2390_v27 = vadd.s32 1, %v8228_v7  ;;  %v10499_v54 = vshrl.u32 %v2080_v45, 5  ;;  %v2085_v18 = vshll.u32 %v13211_v51, %v2082_v4 }
 0x20a   : > { %v10497_v32 = vsub.s32 %v2232_v15, %v2235_v17  ;;  %v2088_v1 = vshll.u32 %v13206_v21, %v2082_v4  ;;  %v2091_v33 = vshll.u32 %v13207_v37, %v2082_v4  ;;  %v2094_v57 = vshll.u32 %v13213_v31, %v2082_v4 }
 0x20b   : > { %v2086_v14 = vshrl.u32 %v13206_v21, %v2083_v52  ;;  %v2089_v55 = vshrl.u32 %v13207_v37, %v2083_v52  ;;  %v2092_v24 = vshrl.u32 %v13213_v31, %v2083_v52  ;;  %v2095_v15 = vshrl.u32 %v13227_v0, %v2083_v52 }
 0x20c   : > { %v2238_v6 = vsub.s32 0, %v10497_v32  ;;  %v2097_v44 = vshll.u32 %v13227_v0, %v2082_v4  ;;  %v10511_v22 = vpop.eup %8993  ;;  %vm13024_vm12 = vcmp.lt.s32.totalorder %v10013_v56, 0  ;;  %v2098_v17 = vshrl.u32 %v13209_v53, %v2083_v52 }
 0x20d   : > { %13277 = vst [vmem:[#allocation65_spill] sm:$0xff] %v10511_v22  ;;  %v2087_v45 = vor.u32 %v2086_v14, %v2085_v18  ;;  %v2090_v7 = vor.u32 %v2089_v55, %v2088_v1  ;;  %v2093_v50 = vor.u32 %v2092_v24, %v2091_v33  ;;  %v2076_v26 = vor.u32 8388608, %v2075_v38 }
 0x20e   : > { %v8221_v11 = vmin.u32 %v2238_v6, %v10497_v32  ;;  %v2096_v34 = vor.u32 %v2095_v15, %v2094_v57  ;;  %v2387_v23 = vand.u32 8388607, %v13013_v5  ;;  %v10518_v48 = vpop.eup %8995  ;;  %v1932_v4 = vsub.s32 32, %v10494_v20 }
 0x20f   : > { %13278 = vst [vmem:[#allocation66_spill] sm:$0xff] %v10518_v48  ;;  %v1936_v47 = vsub.s32 4294967266, %v10494_v20  ;;  %v2099_v28 = vor.u32 %v2098_v17, %v2097_v44  ;;  %v2279_v18 = vand.u32 2139095040, %v10485_v62  ;;  %v10523_v1 = vpop.eup %8997  ;;  %vm2100_vm13 = vcmp.lt.s32.totalorder %v10499_v54, 1 }
 0x210   : > { %13279 = vst [vmem:[#allocation67_spill] sm:$0xff] %v10523_v1  ;;  %vm2102_vm5 = vcmp.lt.s32.totalorder %v10499_v54, 3  ;;  %vm2103_vm9 = vcmp.lt.s32.totalorder %v10499_v54, 4  ;;  %vm2391_vm8 = vcmp.gt.s32.totalorder %v2390_v27, 0  ;;  %v10528_v38 = vpop.eup %8999  ;;  %v2108_v14 = vsel %vm2100_vm13, %v2087_v45, %v2090_v7 }
 0x211   : > { %13280 = vst [vmem:[#allocation68_spill] sm:$0xff] %v10528_v38  ;;  %v2109_v55 = vsel %vm2103_vm9, %v2096_v34, 920167782  ;;  %v2112_v33 = vsel %vm2100_vm13, %v2090_v7, %v2093_v50  ;;  %v2113_v24 = vsel %vm2103_vm9, %v2099_v28, 1326507024  ;;  %v2240_v6 = vclz %v8221_v11 }
 0x212   : > { %v2110_v57 = vsel %vm2102_vm5, %v2093_v50, %v2109_v55  ;;  %v2116_v15 = vshll.u32 %v2076_v26, 8  ;;  %v2388_v44 = vor.u32 8388608, %v2387_v23  ;;  %vm2101_vm2 = vcmp.lt.s32.totalorder %v10499_v54, 2 }
 0x213   : > { %v2105_v17 = vsel %vm2103_vm9, %v2093_v50, 2102212464  ;;  %v2114_v5 = vsel %vm2102_vm5, %v2096_v34, %v2113_v24  ;;  %v2280_v38 = vshrl.u32 %v2279_v18, 23  ;;  %v2084_v22 = vshrl.u32 %v13211_v51, %v2083_v52 }
 0x214   : > { %v2111_v48 = vsel %vm2101_vm2, %v2108_v14, %v2110_v57  ;;  %v2115_v11 = vsel %vm2101_vm2, %v2112_v33, %v2114_v5  ;;  %v2392_v28 = vsel %vm2391_vm8, %v2390_v27, 0  ;;  %v1934_v55 = vshrl.u32 %v1916_v63, %v1932_v4 }
 0x215   : > { %v1937_v26 = vadd.s32 127, %v1936_v47  ;;  %v10545_v23 = vmul.u32.u64.low %v2116_v15, %v2115_v11  ;;  %v10546_v1 = vmul.u32.u64.high %v2116_v15, %v2115_v11, %v10545_v23  ;;  %v13281_v50 = vxor.u32 2147483648, %v10468_v13 }
 0x216   : > { %v8222_v52 = vadd.s32 4294967294, %v2240_v6  ;;  %v2104_v18 = vsel %vm2100_vm13, %v2084_v22, %v2087_v45  ;;  %v2106_v5 = vsel %vm2102_vm5, %v2090_v7, %v2105_v17  ;;  %v1933_v47 = vshll.u32 %v10412_v35, %v10494_v20 }
 0x217   : > { %v10553_v34 = vsel %vm13024_vm12, %v13281_v50, %v10468_v13  ;;  %v10561_v63 = vmul.u32.u64.low %v2116_v15, %v2111_v48  ;;  %v10562_v27 = vmul.u32.u64.high %v2116_v15, %v2111_v48, %v10561_v63  ;;  %v2394_v4 = vand.u32 31, %v2392_v28 }
 0x218   : > { %v10566_v33 = vshll.u32 %v2388_v44, 8  ;;  %v8224_v24 = vadd.s32 4294967169, %v2280_v38  ;;  %v10569_v6 = vor.u32 %v1934_v55, %v1933_v47  ;;  %v1938_v22 = vshll.u32 %v1937_v26, 23 }
 0x219   : > { %v2107_v45 = vsel %vm2101_vm2, %v2104_v18, %v2106_v5  ;;  %v2395_v7 = vsub.s32 32, %v2394_v4  ;;  %vm8223_vm8 = vcmp.lt.s32.totalorder %v8222_v52, 0  ;;  %vm2125_vm9 = vc.u32 %v10546_v1, %v10561_v63 }
 0x21a   : > { %v2393_v35 = vshrl.u32 %v2392_v28, 5  ;;  %v2397_v48 = vshll.u32 %v13211_v51, %v2394_v4  ;;  %v2126_v20 = vadd.s32 1, %v10562_v27  ;;  %v2400_v38 = vshll.u32 %v13206_v21, %v2394_v4 }
 0x21b   : > { %v2398_v57 = vshrl.u32 %v13206_v21, %v2395_v7  ;;  %v2401_v44 = vshrl.u32 %v13207_v37, %v2395_v7  ;;  %v2123_v17 = vmul.u32 %v2116_v15, %v2107_v45  ;;  %v2403_v54 = vshll.u32 %v13207_v37, %v2394_v4 }
 0x21c   : > { %v2404_v11 = vshrl.u32 %v13213_v31, %v2395_v7  ;;  %v2406_v55 = vshll.u32 %v13213_v31, %v2394_v4  ;;  %v2127_v26 = vsel %vm2125_vm9, %v2126_v20, %v10562_v27  ;;  %v2407_v50 = vshrl.u32 %v13227_v0, %v2395_v7 }
 0x21d   : > { %v2399_v28 = vor.u32 %v2398_v57, %v2397_v48  ;;  %v2402_v23 = vor.u32 %v2401_v44, %v2400_v38  ;;  %v1939_v18 = vor.u32 4788187, %v1938_v22  ;;  %v10586_v5 = vsel %vm8223_vm8, 0, %v8222_v52 }
 0x21e   : > { %v2128_v47 = vadd.s32 %v2127_v26, %v2123_v17  ;;  %v2405_v14 = vor.u32 %v2404_v11, %v2403_v54  ;;  %v2408_v13 = vor.u32 %v2407_v50, %v2406_v55  ;;  %v2409_v15 = vshll.u32 %v13227_v0, %v2394_v4 }
 0x21f   : > { %v2410_v45 = vshrl.u32 %v13209_v53, %v2395_v7  ;;  %vm2412_vm2 = vcmp.lt.s32.totalorder %v2393_v35, 1  ;;  %v2396_v43 = vshrl.u32 %v13211_v51, %v2395_v7  ;;  %vm2414_vm13 = vcmp.lt.s32.totalorder %v2393_v35, 3 }
 0x220   : > { %v2129_v49 = vadd.s32 536870912, %v2128_v47  ;;  %vm2415_vm5 = vcmp.lt.s32.totalorder %v2393_v35, 4  ;;  %v2420_v20 = vsel %vm2412_vm2, %v2399_v28, %v2402_v23  ;;  %v2248_v52 = vsub.s32 4294967266, %v10586_v5 }
 0x221   : > { %v2411_v27 = vor.u32 %v2410_v45, %v2409_v15  ;;  %v2417_v48 = vsel %vm2415_vm5, %v2405_v14, 2102212464  ;;  %v2421_v22 = vsel %vm2415_vm5, %v2408_v13, 920167782  ;;  %vm2413_vm8 = vcmp.lt.s32.totalorder %v2393_v35, 2 }
 0x222   : > { %v10592_v57 = vshrl.u32 %v2129_v49, 30  ;;  %v2422_v38 = vsel %vm2414_vm13, %v2405_v14, %v2421_v22  ;;  %v2416_v4 = vsel %vm2412_vm2, %v2396_v43, %v2399_v28  ;;  %v2424_v17 = vsel %vm2412_vm2, %v2402_v23, %v2405_v14 }
 0x223   : > { %v2423_v44 = vsel %vm2413_vm8, %v2420_v20, %v2422_v38  ;;  %v2425_v54 = vsel %vm2415_vm5, %v2411_v27, 1326507024  ;;  %v2418_v11 = vsel %vm2414_vm13, %v2402_v23, %v2417_v48  ;;  %v2286_v26 = vadd.s32 1, %v8224_v24 }
 0x224   : > { %13282 = vst [vmem:[#allocation69_spill] sm:$0xff] %v10592_v57  ;;  %v2131_v7 = vshll.u32 %v10592_v57, 30  ;;  %v2426_v55 = vsel %vm2414_vm13, %v2408_v13, %v2425_v54  ;;  %v1940_v50 = vand.u32 2147483647, %v1939_v18  ;;  %v13283_v27 = vand.u32 2147483647, %v10485_v62 }
 0x225   : > { %v2427_v15 = vsel %vm2413_vm8, %v2424_v17, %v2426_v55  ;;  %v10601_v49 = vmul.u32.u64.low %v10566_v33, %v2423_v44  ;;  %v10602_v45 = vmul.u32.u64.high %v10566_v33, %v2423_v44, %v10601_v49  ;;  %v1942_v13 = vcvt.s32.f32 %v10569_v6 }
 0x226   : > { %v10605_v43 = vsub.s32 %v2128_v47, %v2131_v7  ;;  %v10608_v14 = vmul.u32.u64.low %v10566_v33, %v2427_v15  ;;  %v10609_v28 = vmul.u32.u64.high %v10566_v33, %v2427_v15, %v10608_v14  ;;  %v2283_v23 = vand.u32 8388607, %v13283_v27 }
 0x227   : > { %v2244_v24 = vsub.s32 32, %v10586_v5  ;;  %v2419_v18 = vsel %vm2413_vm8, %v2416_v4, %v2418_v11  ;;  %vm2287_vm9 = vcmp.gt.s32.totalorder %v2286_v26, 0  ;;  %v2228_v48 = vadd.s32 %v10430_v60, %v10436_v59 }
 0x228   : > { %v2249_v20 = vadd.s32 127, %v2248_v52  ;;  %v2134_v47 = vsub.s32 0, %v10605_v43  ;;  %v2288_v22 = vsel %vm2287_vm9, %v2286_v26, 0  ;;  %v10619_v38 = vmul.f32 %v1942_v13, %v1940_v50 }
 0x229   : > { %v2245_v44 = vshll.u32 %v10497_v32, %v10586_v5  ;;  %v2438_v17 = vadd.s32 1, %v10602_v45  ;;  %v2290_v6 = vand.u32 31, %v2288_v22  ;;  %v2435_v35 = vmul.u32 %v10566_v33, %v2419_v18 }
 0x22a   : > { %v8217_v54 = vmin.u32 %v2134_v47, %v10605_v43  ;;  %vm2437_vm2 = vc.u32 %v10609_v28, %v10601_v49  ;;  %v2284_v60 = vor.u32 8388608, %v2283_v23  ;;  %v2246_v59 = vshrl.u32 %v2228_v48, %v2244_v24  ;;  %v512_v47 = vpop.permute.xlu1 %511 }
 0x22b   : > { %v10630_v52 = vadd.s32 %v10561_v63, %v10546_v1  ;;  %v2439_v4 = vsel %vm2437_vm2, %v2438_v17, %v10602_v45  ;;  %v2291_v7 = vsub.s32 32, %v2290_v6  ;;  %v2250_v32 = vshll.u32 %v2249_v20, 23 }
 0x22c   : > { %v2136_v5 = vclz %v8217_v54  ;;  %v2440_v11 = vadd.s32 %v2439_v4, %v2435_v35  ;;  %v10633_v55 = vshrl.u32 %v2288_v22, 5  ;;  %v2293_v26 = vshll.u32 %v13211_v51, %v2290_v6 }
 0x22d   : > { %v2294_v33 = vshrl.u32 %v13206_v21, %v2291_v7  ;;  %v2297_v50 = vshrl.u32 %v13207_v37, %v2291_v7  ;;  %v2300_v15 = vshrl.u32 %v13213_v31, %v2291_v7  ;;  %v2296_v1 = vshll.u32 %v13206_v21, %v2290_v6 }
 0x22e   : > { %v8218_v14 = vadd.s32 4294967294, %v2136_v5  ;;  %v2441_v27 = vadd.s32 536870912, %v2440_v11  ;;  %v2303_v63 = vshrl.u32 %v13227_v0, %v2291_v7  ;;  %v2299_v45 = vshll.u32 %v13207_v37, %v2290_v6 }
 0x22f   : > { %v2302_v23 = vshll.u32 %v13213_v31, %v2290_v6  ;;  %v2305_v13 = vshll.u32 %v13227_v0, %v2290_v6  ;;  %v2306_v24 = vshrl.u32 %v13209_v53, %v2291_v7  ;;  %v2295_v48 = vor.u32 %v2294_v33, %v2293_v26 }
 0x230   : > { %vm8219_vm13 = vcmp.lt.s32.totalorder %v8218_v14, 0  ;;  %v10645_v18 = vshrl.u32 %v2441_v27, 30  ;;  %v2298_v20 = vor.u32 %v2297_v50, %v2296_v1  ;;  %v2301_v17 = vor.u32 %v2300_v15, %v2299_v45 }
 0x231   : > { %v2139_v22 = vsel %vm8219_vm13, 0, %v8218_v14  ;;  %v2304_v54 = vor.u32 %v2303_v63, %v2302_v23  ;;  %v2307_v35 = vor.u32 %v2306_v24, %v2305_v13  ;;  %v13285_v4 = vand.u32 2147483647, %v10013_v56 }
 0x232   : > { %13284 = vst [vmem:[#allocation70_spill] sm:$0xff] %v10645_v18  ;;  %v13286_v5 = vmov 0  ;;  %v2247_v6 = vor.u32 %v2246_v59, %v2245_v44  ;;  %v2251_v57 = vor.u32 4788187, %v2250_v32  ;;  %v2144_v12 = vsub.s32 4294967266, %v2139_v22 }
 0x233   : > { %vm10649_vm5 = vcmp.le.f32.partialorder %v13285_v4, 0.7853982  ;;  %v2443_v27 = vshll.u32 %v10645_v18, 30  ;;  %v2292_v26 = vshrl.u32 %v13211_v51, %v2291_v7  ;;  %vm2308_vm9 = vcmp.lt.s32.totalorder %v10633_v55, 1 }
 0x234   : > { %v13287_v5 = vsel %vm10649_vm5, 4294967295, %v13286_v5  ;;  %v2324_v33 = vshll.u32 %v2284_v60, 8  ;;  %v10658_v50 = vmul.f32 %v10373_v29, %v512_v47  ;;  %v2145_v15 = vadd.s32 127, %v2144_v12 }
 0x235   : > { %13288 = vst [vmem:[#allocation71_spill] sm:$0xff] %v13287_v5  ;;  %v10660_v14 = vsub.s32 %v2440_v11, %v2443_v27  ;;  %vm2309_vm2 = vcmp.lt.s32.totalorder %v10633_v55, 2  ;;  %vm2311_vm13 = vcmp.lt.s32.totalorder %v10633_v55, 4  ;;  %v2316_v59 = vsel %vm2308_vm9, %v2295_v48, %v2298_v20 }
 0x236   : > { %13289 = vst [vmem:[#allocation72_spill] sm:$0xff] %v10658_v50  ;;  %v2313_v44 = vsel %vm2311_vm13, %v2301_v17, 2102212464  ;;  %v2317_v32 = vsel %vm2311_vm13, %v2304_v54, 920167782  ;;  %v2140_v7 = vsub.s32 32, %v2139_v22  ;;  %v2320_v12 = vsel %vm2308_vm9, %v2298_v20, %v2301_v17 }
 0x237   : > { %v2321_v1 = vsel %vm2311_vm13, %v2307_v35, 1326507024  ;;  %v2446_v63 = vsub.s32 0, %v10660_v14  ;;  %vm2310_vm12 = vcmp.lt.s32.totalorder %v10633_v55, 3  ;;  %v13290_v60 = vand.u32 2147483647, %v10059_v30 }
 0x238   : > { %v13291_v11 = vmov 0  ;;  %v2312_v45 = vsel %vm2308_vm9, %v2292_v26, %v2295_v48  ;;  %v2318_v23 = vsel %vm2310_vm12, %v2301_v17, %v2317_v32  ;;  %v2322_v13 = vsel %vm2310_vm12, %v2304_v54, %v2321_v1 }
 0x239   : > { %vm10672_vm8 = vcmp.le.f32.partialorder %v13290_v60, 0.7853982  ;;  %v2591_v24 = vand.u32 2139095040, %v10658_v50  ;;  %vm13033_vm13 = vcmp.lt.s32.totalorder %v10223_v46, 0  ;;  %v2146_v47 = vshll.u32 %v2145_v15, 23 }
 0x23a   : > { %v13292_v11 = vsel %vm10672_vm8, 4294967295, %v13291_v11  ;;  %v8229_v35 = vmin.u32 %v2446_v63, %v10660_v14  ;;  %v2314_v4 = vsel %vm2310_vm12, %v2298_v20, %v2313_v44  ;;  %v2319_v27 = vsel %vm2309_vm2, %v2316_v59, %v2318_v23  ;;  %v507_v63 = vpop.permute.xlu0 %506 }
 0x23b   : > { %13293 = vst [vmem:[#allocation73_spill] sm:$0xff] %v13292_v11  ;;  %v2323_v60 = vsel %vm2309_vm2, %v2320_v12, %v2322_v13  ;;  %v10685_v18 = vmul.u32.u64.low %v2324_v33, %v2319_v27  ;;  %v10686_v10 = vmul.u32.u64.high %v2324_v33, %v2319_v27, %v10685_v18  ;;  %v2592_v48 = vshrl.u32 %v2591_v24, 23 }
 0x23c   : > { %v2142_v17 = vshrl.u32 %v10630_v52, %v2140_v7  ;;  %v2448_v54 = vclz %v8229_v35  ;;  %v10690_v26 = vmul.u32.u64.low %v2324_v33, %v2323_v60  ;;  %v10691_v32 = vmul.u32.u64.high %v2324_v33, %v2323_v60, %v10690_v26 }
 0x23d   : > { %v1740_v20 = vsel %vm10649_vm5, %v10013_v56, %v10553_v34  ;;  %v13294_v15 = vxor.u32 2147483648, %v10487_v19  ;;  %vm13295_vm12 = vcmp.lt.s32.totalorder %v10059_v30, 0  ;;  %v2252_v59 = vand.u32 2147483647, %v2251_v57 }
 0x23e   : > { %v8236_v1 = vadd.s32 4294967169, %v2592_v48  ;;  %v2141_v52 = vshll.u32 %v10605_v43, %v2139_v22  ;;  %v2147_v7 = vor.u32 4788187, %v2146_v47  ;;  %v8230_v12 = vadd.s32 4294967294, %v2448_v54 }
 0x23f   : > { %v2049_v44 = vsel %vm13295_vm12, %v13294_v15, %v10487_v19  ;;  %v2315_v23 = vsel %vm2309_vm2, %v2312_v45, %v2314_v4  ;;  %v1944_v13 = vxor.u32 2147483648, %v10619_v38  ;;  %v2334_v34 = vadd.s32 1, %v10686_v10 }
 0x240   : > { %v13029_v24 = vand.u32 2147483647, %v10658_v50  ;;  %v2598_v35 = vadd.s32 1, %v8236_v1  ;;  %v2254_v27 = vcvt.s32.f32 %v2247_v6  ;;  %v2143_v60 = vor.u32 %v2142_v17, %v2141_v52 }
 0x241   : > { %vm2333_vm9 = vc.u32 %v10691_v32, %v10685_v18  ;;  %v10711_v19 = vmul.f32 %v10373_v29, %v507_v63  ;;  %vm8231_vm12 = vcmp.lt.s32.totalorder %v8230_v12, 0  ;;  %v2331_v57 = vmul.u32 %v2324_v33, %v2315_v23 }
 0x242   : > { %v2335_v43 = vsel %vm2333_vm9, %v2334_v34, %v10686_v10  ;;  %vm2599_vm2 = vcmp.gt.s32.totalorder %v2598_v35, 0  ;;  %9001 = vsinq.f32 %v10473_v16  ;;  %v10718_v55 = vsel %vm10672_vm8, %v10059_v30, %v2049_v44 }
 0x243   : > { %13296 = vst [vmem:[#allocation74_spill] sm:$0xff] %v10711_v19  ;;  %v10720_v22 = vmul.f32 %v2254_v27, %v2252_v59  ;;  %v2148_v6 = vand.u32 2147483647, %v2147_v7  ;;  %v1945_v45 = vsel %vm13033_vm13, %v1944_v13, %v10619_v38  ;;  %v2336_v47 = vadd.s32 %v2335_v43, %v2331_v57 }
 0x244   : > { %v2595_v33 = vand.u32 8388607, %v13029_v24  ;;  %v2600_v10 = vsel %vm2599_vm2, %v2598_v35, 0  ;;  %9003 = vcosq.f32 %v1740_v20  ;;  %v2150_v4 = vcvt.s32.f32 %v2143_v60 }
 0x245   : > { %v10727_v16 = vsel %vm8231_vm12, 0, %v8230_v12  ;;  %v2487_v48 = vand.u32 2139095040, %v10711_v19  ;;  %9005 = vsinq.f32 %v1740_v20  ;;  %v13297_v17 = vand.u32 2147483647, %v10223_v46 }
 0x246   : > { %v13298_v54 = vmov 0  ;;  %v2337_v26 = vadd.s32 536870912, %v2336_v47  ;;  %v2602_v38 = vand.u32 31, %v2600_v10  ;;  %9007 = vcosq.f32 %v10718_v55 }
 0x247   : > { %vm10732_vm9 = vcmp.le.f32.partialorder %v13297_v17, 0.7853982  ;;  %v10743_v59 = vmul.f32 %v2150_v4, %v2148_v6  ;;  %v2456_v20 = vsub.s32 4294967266, %v10727_v16  ;;  %v2596_v63 = vor.u32 8388608, %v2595_v33 }
 0x248   : > { %v13299_v54 = vsel %vm10732_vm9, 4294967295, %v13298_v54  ;;  %v10740_v15 = vsel %vm10732_vm9, %v10223_v46, %v1945_v45  ;;  %v10746_v1 = vshrl.u32 %v2337_v26, 30  ;;  %v2603_v52 = vsub.s32 32, %v2602_v38 }
 0x249   : > { %13300 = vst [vmem:[#allocation75_spill] sm:$0xff] %v13299_v54  ;;  %v2601_v7 = vshrl.u32 %v2600_v10, 5  ;;  %v2605_v12 = vshll.u32 %v13211_v51, %v2602_v38  ;;  %v2608_v23 = vshll.u32 %v13206_v21, %v2602_v38  ;;  %v2488_v13 = vshrl.u32 %v2487_v48, 23 }
 0x24a   : > { %13301 = vst [vmem:[#allocation76_spill] sm:$0xff] %v10746_v1  ;;  %v2339_v34 = vshll.u32 %v10746_v1, 30  ;;  %v2606_v35 = vshrl.u32 %v13206_v21, %v2603_v52  ;;  %v2609_v27 = vshrl.u32 %v13207_v37, %v2603_v52  ;;  %v2611_v60 = vshll.u32 %v13207_v37, %v2602_v38 }
 0x24b   : > { %v2612_v57 = vshrl.u32 %v13213_v31, %v2603_v52  ;;  %v2614_v43 = vshll.u32 %v13213_v31, %v2602_v38  ;;  %v2615_v6 = vshrl.u32 %v13227_v0, %v2603_v52  ;;  %v2617_v45 = vshll.u32 %v13227_v0, %v2602_v38 }
 0x24c   : > { %v10758_v33 = vsub.s32 %v2336_v47, %v2339_v34  ;;  %v2607_v10 = vor.u32 %v2606_v35, %v2605_v12  ;;  %v2610_v4 = vor.u32 %v2609_v27, %v2608_v23  ;;  %v2618_v48 = vshrl.u32 %v13209_v53, %v2603_v52  ;;  %v10761_v17 = vpop.eup %9001 }
 0x24d   : > { %13302 = vst [vmem:[#allocation77_spill] sm:$0xff] %v10761_v17  ;;  %v2457_v26 = vadd.s32 127, %v2456_v20  ;;  %v2613_v24 = vor.u32 %v2612_v57, %v2611_v60  ;;  %v2616_v44 = vor.u32 %v2615_v6, %v2614_v43  ;;  %vm2620_vm12 = vcmp.lt.s32.totalorder %v2601_v7, 1 }
 0x24e   : > { %v2342_v1 = vsub.s32 0, %v10758_v33  ;;  %v2619_v11 = vor.u32 %v2618_v48, %v2617_v45  ;;  %vm2621_vm2 = vcmp.lt.s32.totalorder %v2601_v7, 2  ;;  %vm2623_vm13 = vcmp.lt.s32.totalorder %v2601_v7, 4  ;;  %v10764_v54 = vpop.eup %9003 }
 0x24f   : > { %13303 = vst [vmem:[#allocation78_spill] sm:$0xff] %v10764_v54  ;;  %v2604_v47 = vshrl.u32 %v13211_v51, %v2603_v52  ;;  %vm2622_vm9 = vcmp.lt.s32.totalorder %v2601_v7, 3  ;;  %v2628_v38 = vsel %vm2620_vm12, %v2607_v10, %v2610_v4  ;;  %v2629_v12 = vsel %vm2623_vm13, %v2616_v44, 920167782  ;;  %v10769_v23 = vpop.eup %9005 }
 0x250   : > { %13304 = vst [vmem:[#allocation79_spill] sm:$0xff] %v10769_v23  ;;  %v8225_v20 = vmin.u32 %v2342_v1, %v10758_v33  ;;  %v2625_v34 = vsel %vm2623_vm13, %v2613_v24, 2102212464  ;;  %v2630_v35 = vsel %vm2622_vm9, %v2613_v24, %v2629_v12  ;;  %v2632_v27 = vsel %vm2620_vm12, %v2610_v4, %v2613_v24  ;;  %v10774_v60 = vpop.eup %9007 }
 0x251   : > { %13305 = vst [vmem:[#allocation80_spill] sm:$0xff] %v10774_v60  ;;  %v2631_v57 = vsel %vm2621_vm2, %v2628_v38, %v2630_v35  ;;  %v2633_v43 = vsel %vm2623_vm13, %v2619_v11, 1326507024  ;;  %v2636_v6 = vshll.u32 %v2596_v63, 8  ;;  %v8232_v52 = vadd.s32 4294967169, %v2488_v13  ;;  %v522_v13 = vpop.permute.xlu1 %521 }
 0x252   : > { %v2452_v45 = vsub.s32 32, %v10727_v16  ;;  %v2344_v48 = vclz %v8225_v20  ;;  %v2624_v30 = vsel %vm2620_vm12, %v2604_v47, %v2607_v10  ;;  %v2634_v46 = vsel %vm2622_vm9, %v2616_v44, %v2633_v43 }
 0x253   : > { %v2626_v1 = vsel %vm2622_vm9, %v2610_v4, %v2625_v34  ;;  %v2635_v12 = vsel %vm2621_vm2, %v2632_v27, %v2634_v46  ;;  %v10782_v17 = vmul.u32.u64.low %v2636_v6, %v2631_v57  ;;  %v10783_v24 = vmul.u32.u64.high %v2636_v6, %v2631_v57, %v10782_v17 }
 0x254   : > { %v2458_v60 = vshll.u32 %v2457_v26, 23  ;;  %v8226_v38 = vadd.s32 4294967294, %v2344_v48  ;;  %v10786_v11 = vmul.u32.u64.low %v2636_v6, %v2635_v12  ;;  %v10787_v63 = vmul.u32.u64.high %v2636_v6, %v2635_v12, %v10786_v11 }
 0x255   : > { %9009 = vsinq.f32 %v10718_v55  ;;  %v13306_v10 = vand.u32 2147483647, %v10296_v41  ;;  %v13307_v44 = vmov 0  ;;  %v13044_v46 = vand.u32 2147483647, %v10711_v19 }
 0x256   : > { %v2494_v4 = vadd.s32 1, %v8232_v52  ;;  %9011 = vcosq.f32 %v10740_v15  ;;  %vm13049_vm9 = vcmp.lt.s32.totalorder %v10376_v25, 0  ;;  %v2436_v26 = vadd.s32 %v10601_v49, %v10609_v28 }
 0x257   : > { %vm10792_vm13 = vcmp.le.f32.partialorder %v13306_v10, 0.7853982  ;;  %v2627_v47 = vsel %vm2621_vm2, %v2624_v30, %v2626_v1  ;;  %vm8227_vm12 = vcmp.lt.s32.totalorder %v8226_v38, 0  ;;  %v2646_v55 = vadd.s32 1, %v10783_v24 }
 0x258   : > { %v13308_v44 = vsel %vm10792_vm13, 4294967295, %v13307_v44  ;;  %vm2495_vm8 = vcmp.gt.s32.totalorder %v2494_v4, 0  ;;  %v10804_v20 = vmul.f32 %v10373_v29, %v522_v13  ;;  %v13311_v34 = vxor.u32 2147483648, %v10720_v22 }
 0x259   : > { %13309 = vst [vmem:[#allocation81_spill] sm:$0xff] %v13308_v44  ;;  %vm13312_vm1 = vcmp.lt.s32.totalorder %v10296_v41, 0  ;;  %v2152_v27 = vxor.u32 2147483648, %v10743_v59  ;;  %v2454_v57 = vshrl.u32 %v2436_v26, %v2452_v45  ;;  %v10812_v43 = vor.u32 4788187, %v2458_v60 }
 0x25a   : > { %13310 = vst [vmem:[#allocation82_spill] sm:$0xff] %v10804_v20  ;;  %v2257_v35 = vsel %vm13312_vm1, %v13311_v34, %v10720_v22  ;;  %v2643_v49 = vmul.u32 %v2636_v6, %v2627_v47  ;;  %vm2645_vm2 = vc.u32 %v10787_v63, %v10782_v17  ;;  %v2491_v30 = vand.u32 8388607, %v13044_v46 }
 0x25b   : > { %v2496_v29 = vsel %vm2495_vm8, %v2494_v4, 0  ;;  %9013 = vsinq.f32 %v10740_v15  ;;  %v2453_v28 = vshll.u32 %v10660_v14, %v10727_v16  ;;  %v10821_v7 = vsel %vm8227_vm12, 0, %v8226_v38 }
 0x25c   : > { %v2647_v22 = vsel %vm2645_vm2, %v2646_v55, %v10783_v24  ;;  %v10827_v60 = vsel %vm10792_vm13, %v10296_v41, %v2257_v35  ;;  %v2498_v52 = vand.u32 31, %v2496_v29  ;;  %v10833_v15 = vsel %vm13049_vm9, %v2152_v27, %v10743_v59 }
 0x25d   : > { %v2648_v6 = vadd.s32 %v2647_v22, %v2643_v49  ;;  %v10835_v48 = vor.u32 %v2454_v57, %v2453_v28  ;;  %v2799_v16 = vand.u32 2139095040, %v10804_v20  ;;  %v2492_v24 = vor.u32 8388608, %v2491_v30 }
 0x25e   : > { %v2499_v38 = vsub.s32 32, %v2498_v52  ;;  %v2352_v11 = vsub.s32 4294967266, %v10821_v7  ;;  %v2497_v13 = vshrl.u32 %v2496_v29, 5  ;;  %v2501_v10 = vshll.u32 %v13211_v51, %v2498_v52 }
 0x25f   : > { %v2649_v12 = vadd.s32 536870912, %v2648_v6  ;;  %v2504_v4 = vshll.u32 %v13206_v21, %v2498_v52  ;;  %v10843_v59 = vpop.eup %9009  ;;  %v2507_v34 = vshll.u32 %v13207_v37, %v2498_v52  ;;  %v2510_v57 = vshll.u32 %v13213_v31, %v2498_v52 }
 0x260   : > { %13313 = vst [vmem:[#allocation83_spill] sm:$0xff] %v10843_v59  ;;  %v2502_v47 = vshrl.u32 %v13206_v21, %v2499_v38  ;;  %v2505_v55 = vshrl.u32 %v13207_v37, %v2499_v38  ;;  %v10850_v35 = vpop.eup %9011  ;;  %v2508_v27 = vshrl.u32 %v13213_v31, %v2499_v38  ;;  %v2511_v49 = vshrl.u32 %v13227_v0, %v2499_v38 }
 0x261   : > { %v10845_v26 = vshrl.u32 %v2649_v12, 30  ;;  %13315 = vst [vmem:[#allocation85_spill] sm:$0xff] %v10850_v35  ;;  %v2513_v30 = vshll.u32 %v13227_v0, %v2498_v52  ;;  %v2514_v12 = vshrl.u32 %v13209_v53, %v2499_v38  ;;  %v13316_v46 = vand.u32 2147483647, %v10376_v25 }
 0x262   : > { %v2503_v28 = vor.u32 %v2502_v47, %v2501_v10  ;;  %v2506_v22 = vor.u32 %v2505_v55, %v2504_v4  ;;  %v13317_v1 = vmov 0  ;;  %v2509_v45 = vor.u32 %v2508_v27, %v2507_v34 }
 0x263   : > { %13314 = vst [vmem:[#allocation84_spill] sm:$0xff] %v10845_v26  ;;  %v2651_v29 = vshll.u32 %v10845_v26, 30  ;;  %vm10860_vm1 = vcmp.le.f32.partialorder %v13316_v46, 0.7853982  ;;  %v2512_v14 = vor.u32 %v2511_v49, %v2510_v57  ;;  %vm2516_vm8 = vcmp.lt.s32.totalorder %v2497_v13, 1 }
 0x264   : > { %v13318_v1 = vsel %vm10860_vm1, 4294967295, %v13317_v1  ;;  %v2800_v44 = vshrl.u32 %v2799_v16, 23  ;;  %v2515_v59 = vor.u32 %v2514_v12, %v2513_v30  ;;  %vm2517_vm12 = vcmp.lt.s32.totalorder %v2497_v13, 2 }
 0x265   : > { %13319 = vst [vmem:[#allocation86_spill] sm:$0xff] %v13318_v1  ;;  %v10864_v41 = vsub.s32 %v2648_v6, %v2651_v29  ;;  %vm2519_vm2 = vcmp.lt.s32.totalorder %v2497_v13, 4  ;;  %v10866_v52 = vpop.eup %9013  ;;  %vm2518_vm9 = vcmp.lt.s32.totalorder %v2497_v13, 3  ;;  %v2524_v4 = vsel %vm2516_vm8, %v2503_v28, %v2506_v22 }
 0x266   : > { %13320 = vst [vmem:[#allocation87_spill] sm:$0xff] %v10866_v52  ;;  %v2521_v10 = vsel %vm2519_vm2, %v2509_v45, 2102212464  ;;  %v2525_v47 = vsel %vm2519_vm2, %v2512_v14, 920167782  ;;  %v2500_v55 = vshrl.u32 %v13211_v51, %v2499_v38  ;;  %v2528_v27 = vsel %vm2516_vm8, %v2506_v22, %v2509_v45 }
 0x267   : > { %v2654_v46 = vsub.s32 0, %v10864_v41  ;;  %v2526_v34 = vsel %vm2518_vm9, %v2509_v45, %v2525_v47  ;;  %v2529_v16 = vsel %vm2519_vm2, %v2515_v59, 1326507024  ;;  %v2532_v57 = vshll.u32 %v2492_v24, 8  ;;  %v517_v47 = vpop.permute.xlu0 %516 }
 0x268   : > { %v2527_v6 = vsel %vm2517_vm12, %v2524_v4, %v2526_v34  ;;  %v8244_v49 = vadd.s32 4294967169, %v2800_v44  ;;  %v2520_v29 = vsel %vm2516_vm8, %v2500_v55, %v2503_v28  ;;  %v2522_v12 = vsel %vm2518_vm9, %v2506_v22, %v2521_v10 }
 0x269   : > { %v8237_v30 = vmin.u32 %v2654_v46, %v10864_v41  ;;  %v2530_v26 = vsel %vm2518_vm9, %v2512_v14, %v2529_v16  ;;  %v2353_v35 = vadd.s32 127, %v2352_v11  ;;  %v2462_v45 = vcvt.s32.f32 %v10835_v48 }
 0x26a   : > { %v2531_v52 = vsel %vm2517_vm12, %v2528_v27, %v2530_v26  ;;  %v10876_v54 = vmul.u32.u64.low %v2532_v57, %v2527_v6  ;;  %v10877_v5 = vmul.u32.u64.high %v2532_v57, %v2527_v6, %v10876_v54  ;;  %9015 = vcosq.f32 %v10827_v60 }
 0x26b   : > { %v2656_v38 = vclz %v8237_v30  ;;  %v10881_v4 = vmul.u32.u64.low %v2532_v57, %v2531_v52  ;;  %v10882_v59 = vmul.u32.u64.high %v2532_v57, %v2531_v52, %v10881_v4  ;;  %v2332_v44 = vadd.s32 %v10685_v18, %v10691_v32 }
 0x26c   : > { %v2523_v14 = vsel %vm2517_vm12, %v2520_v29, %v2522_v12  ;;  %v2806_v24 = vadd.s32 1, %v8244_v49  ;;  %v10892_v11 = vsel %vm10860_vm1, %v10376_v25, %v10833_v15  ;;  %v13321_v48 = vand.u32 2147483647, %v10812_v43 }
 0x26d   : > { %v8238_v28 = vadd.s32 4294967294, %v2656_v38  ;;  %v13322_v22 = vand.u32 2147483647, %v10804_v20  ;;  %v13323_v10 = vsub.s32 32, %v10821_v7  ;;  %v2354_v32 = vshll.u32 %v2353_v35, 23 }
 0x26e   : > { %v10896_v26 = vmul.f32 %v2462_v45, %v13321_v48  ;;  %v2542_v13 = vadd.s32 1, %v10877_v5  ;;  %vm2807_vm9 = vcmp.gt.s32.totalorder %v2806_v24, 0  ;;  %9017 = vsinq.f32 %v10827_v60  ;;  %v10914_v60 = vld [vmem:[%s12908_s2] ss:$0 sm:$0xff] }
 0x26f   : > { %v2803_v52 = vand.u32 8388607, %v13322_v22  ;;  %v2350_v18 = vshrl.u32 %v2332_v44, %v13323_v10  ;;  %v2539_v15 = vmul.u32 %v2532_v57, %v2523_v14  ;;  %vm2541_vm8 = vc.u32 %v10882_v59, %v10876_v54  ;;  %v532_v44 = vpop.permute.xlu1 %531 }
 0x270   : > { %v2808_v43 = vsel %vm2807_vm9, %v2806_v24, 0  ;;  %v2349_v46 = vshll.u32 %v10758_v33, %v10821_v7  ;;  %vm8239_vm12 = vcmp.lt.s32.totalorder %v8238_v28, 0  ;;  %v2543_v55 = vsel %vm2541_vm8, %v2542_v13, %v10877_v5 }
 0x271   : > { %v2810_v34 = vand.u32 31, %v2808_v43  ;;  %9019 = vcosq.f32 %v10892_v11  ;;  %v2544_v27 = vadd.s32 %v2543_v55, %v2539_v15  ;;  %v10917_v6 = vmul.f32 %v10914_v60, %v517_v47 }
 0x272   : > { %v10919_v16 = vor.u32 %v2350_v18, %v2349_v46  ;;  %v10921_v33 = vor.u32 4788187, %v2354_v32  ;;  %v2804_v7 = vor.u32 8388608, %v2803_v52  ;;  %v10923_v57 = vsel %vm8239_vm12, 0, %v8238_v28 }
 0x273   : > { %13324 = vst [vmem:[#allocation88_spill] sm:$0xff] %v10917_v6  ;;  %v2811_v5 = vsub.s32 32, %v2810_v34  ;;  %v2545_v49 = vadd.s32 536870912, %v2544_v27  ;;  %v2813_v30 = vshll.u32 %v13211_v51, %v2810_v34  ;;  %v2816_v29 = vshll.u32 %v13206_v21, %v2810_v34 }
 0x274   : > { %v2819_v38 = vshll.u32 %v13207_v37, %v2810_v34  ;;  %v2809_v24 = vshrl.u32 %v2808_v43, 5  ;;  %v2822_v48 = vshll.u32 %v13213_v31, %v2810_v34  ;;  %v10935_v22 = vpop.eup %9015  ;;  %v10937_v32 = vshll.u32 %v2804_v7, 8 }
 0x275   : > { %v2814_v12 = vshrl.u32 %v13206_v21, %v2811_v5  ;;  %v2817_v45 = vshrl.u32 %v13207_v37, %v2811_v5  ;;  %v2820_v4 = vshrl.u32 %v13213_v31, %v2811_v5  ;;  %v10931_v14 = vshrl.u32 %v2545_v49, 30  ;;  %13326 = vst [vmem:[#allocation90_spill] sm:$0xff] %v10935_v22 }
 0x276   : > { %v2823_v28 = vshrl.u32 %v13227_v0, %v2811_v5  ;;  %v2695_v15 = vand.u32 2139095040, %v10917_v6  ;;  %v10943_v43 = vmul.f32 %v10914_v60, %v532_v44  ;;  %v2660_v46 = vsub.s32 32, %v10923_v57 }
 0x277   : > { %13325 = vst [vmem:[#allocation89_spill] sm:$0xff] %v10931_v14  ;;  %v2815_v52 = vor.u32 %v2814_v12, %v2813_v30  ;;  %v2818_v10 = vor.u32 %v2817_v45, %v2816_v29  ;;  %v2821_v18 = vor.u32 %v2820_v4, %v2819_v38  ;;  %v2547_v13 = vshll.u32 %v10931_v14, 30 }
 0x278   : > { %v2824_v47 = vor.u32 %v2823_v28, %v2822_v48  ;;  %13327 = vst [vmem:[#allocation91_spill] sm:$0xff] %v10943_v43  ;;  %v2664_v55 = vsub.s32 4294967266, %v10923_v57  ;;  %v2825_v49 = vshll.u32 %v13227_v0, %v2810_v34  ;;  %v2826_v30 = vshrl.u32 %v13209_v53, %v2811_v5  ;;  %v10949_v7 = vpop.eup %9017 }
 0x279   : > { %13328 = vst [vmem:[#allocation92_spill] sm:$0xff] %v10949_v7  ;;  %v10951_v29 = vsub.s32 %v2544_v27, %v2547_v13  ;;  %vm2828_vm9 = vcmp.lt.s32.totalorder %v2809_v24, 1  ;;  %vm2830_vm8 = vcmp.lt.s32.totalorder %v2809_v24, 3  ;;  %vm2831_vm12 = vcmp.lt.s32.totalorder %v2809_v24, 4 }
 0x27a   : > { %v13329_v12 = vand.u32 2147483647, %v10379_v3  ;;  %v13330_v45 = vmov 0  ;;  %v2827_v38 = vor.u32 %v2826_v30, %v2825_v49  ;;  %v2833_v4 = vsel %vm2831_vm12, %v2821_v18, 2102212464 }
 0x27b   : > { %v2836_v44 = vsel %vm2828_vm9, %v2815_v52, %v2818_v10  ;;  %v2837_v34 = vsel %vm2831_vm12, %v2824_v47, 920167782  ;;  %v10960_v48 = vpop.eup %9019  ;;  %v2550_v28 = vsub.s32 0, %v10951_v29  ;;  %v2812_v27 = vshrl.u32 %v13211_v51, %v2811_v5 }
 0x27c   : > { %vm10955_vm2 = vcmp.le.f32.partialorder %v13329_v12, 0.7853982  ;;  %13333 = vst [vmem:[#allocation94_spill] sm:$0xff] %v10960_v48  ;;  %vm2829_vm13 = vcmp.lt.s32.totalorder %v2809_v24, 2  ;;  %v2838_v13 = vsel %vm2830_vm8, %v2821_v18, %v2837_v34  ;;  %v2665_v35 = vadd.s32 127, %v2664_v55 }
 0x27d   : > { %v13331_v45 = vsel %vm10955_vm2, 4294967295, %v13330_v45  ;;  %v2839_v12 = vsel %vm2829_vm13, %v2836_v44, %v2838_v13  ;;  %v2840_v14 = vsel %vm2828_vm9, %v2818_v10, %v2821_v18  ;;  %v2841_v22 = vsel %vm2831_vm12, %v2827_v38, 1326507024 }
 0x27e   : > { %13332 = vst [vmem:[#allocation93_spill] sm:$0xff] %v13331_v45  ;;  %vm13073_vm1 = vcmp.lt.s32.totalorder %v9635_v36, 4  ;;  %v8233_v49 = vmin.u32 %v2550_v28, %v10951_v29  ;;  %v2832_v30 = vsel %vm2828_vm9, %v2812_v27, %v2815_v52  ;;  %v2834_v7 = vsel %vm2830_vm8, %v2818_v10, %v2833_v4 }
 0x27f   : > { %v2842_v48 = vsel %vm2830_vm8, %v2824_v47, %v2841_v22  ;;  %v10974_v34 = vmul.u32.u64.low %v10937_v32, %v2839_v12  ;;  %v10975_v55 = vmul.u32.u64.high %v10937_v32, %v2839_v12, %v10974_v34  ;;  %v2696_v44 = vshrl.u32 %v2695_v15, 23 }
 0x280   : > { %v2843_v5 = vsel %vm2829_vm13, %v2840_v14, %v2842_v48  ;;  %v2644_v18 = vadd.s32 %v10782_v17, %v10787_v63  ;;  %v2552_v38 = vclz %v8233_v49  ;;  %v13334_v52 = vxor.u32 2147483648, %v10896_v26 }
 0x281   : > { %v10981_v28 = vmul.u32.u64.low %v10937_v32, %v2843_v5  ;;  %v10982_v13 = vmul.u32.u64.high %v10937_v32, %v2843_v5, %v10981_v28  ;;  %vm13335_vm9 = vcmp.lt.s32.totalorder %v10379_v3, 0  ;;  %v2356_v22 = vand.u32 2147483647, %v10921_v33 }
 0x282   : > { %v2465_v14 = vsel %vm13335_vm9, %v13334_v52, %v10896_v26  ;;  %v2835_v10 = vsel %vm2829_vm13, %v2832_v30, %v2834_v7  ;;  %v8240_v47 = vadd.s32 4294967169, %v2696_v44  ;;  %v2662_v15 = vshrl.u32 %v2644_v18, %v2660_v46 }
 0x283   : > { %v2666_v4 = vshll.u32 %v2665_v35, 23  ;;  %v8234_v48 = vadd.s32 4294967294, %v2552_v38  ;;  %v13063_v17 = vand.u32 2147483647, %v10917_v6  ;;  %v2358_v63 = vcvt.s32.f32 %v10919_v16 }
 0x284   : > { %v2854_v27 = vadd.s32 1, %v10975_v55  ;;  %v2702_v12 = vadd.s32 1, %v8240_v47  ;;  %v3007_v49 = vand.u32 2139095040, %v10943_v43  ;;  %v2468_v26 = vsel %vm10955_vm2, %v10379_v3, %v2465_v14 }
 0x285   : > { %v2661_v33 = vshll.u32 %v10864_v41, %v10923_v57  ;;  %v2851_v24 = vmul.u32 %v10937_v32, %v2835_v10  ;;  %vm2853_vm13 = vc.u32 %v10982_v13, %v10974_v34  ;;  %v11003_v35 = vmul.f32 %v2358_v63, %v2356_v22  ;;  %v527_v41 = vpop.permute.xlu0 %526 }
 0x286   : > { %vm8235_vm8 = vcmp.lt.s32.totalorder %v8234_v48, 0  ;;  %v2855_v16 = vsel %vm2853_vm13, %v2854_v27, %v10975_v55  ;;  %vm2703_vm12 = vcmp.gt.s32.totalorder %v2702_v12, 0  ;;  %v11008_v7 = vor.u32 4788187, %v2666_v4 }
 0x287   : > { %v11006_v46 = vor.u32 %v2662_v15, %v2661_v33  ;;  %v2856_v30 = vadd.s32 %v2855_v16, %v2851_v24  ;;  %v2699_v5 = vand.u32 8388607, %v13063_v17  ;;  %v11015_v57 = vsel %vm13073_vm1, %v10314_v58, 920167782 }
 0x288   : > { %9021 = vsinq.f32 %v10892_v11  ;;  %v2704_v32 = vsel %vm2703_vm12, %v2702_v12, 0  ;;  %v3008_v44 = vshrl.u32 %v3007_v49, 23  ;;  %v13336_v55 = vor.u32 %v10031_v61, %v9864_v40 }
 0x289   : > { %9023 = vcosq.f32 %v2468_v26  ;;  %v11025_v38 = vsel %vm8235_vm8, 0, %v8234_v48  ;;  %v2857_v28 = vadd.s32 536870912, %v2856_v30  ;;  %v2706_v14 = vand.u32 31, %v2704_v32 }
 0x28a   : > { %v11023_v18 = vsel %vm13073_vm1, %v13336_v55, 1326507024  ;;  %9025 = vsinq.f32 %v2468_v26  ;;  %v11029_v22 = vmul.f32 %v10914_v60, %v527_v41  ;;  %v2668_v11 = vand.u32 2147483647, %v11008_v7 }
 0x28b   : > { %v2670_v10 = vcvt.s32.f32 %v11006_v46  ;;  %v11033_v40 = vshrl.u32 %v2857_v28, 30  ;;  %v2700_v61 = vor.u32 8388608, %v2699_v5  ;;  %v2560_v47 = vsub.s32 4294967266, %v11025_v38 }
 0x28c   : > { %13337 = vst [vmem:[#allocation95_spill] sm:$0xff] %v11029_v22  ;;  %v2707_v15 = vsub.s32 32, %v2706_v14  ;;  %v8252_v48 = vadd.s32 4294967169, %v3008_v44  ;;  %v2705_v27 = vshrl.u32 %v2704_v32, 5  ;;  %v2709_v12 = vshll.u32 %v13211_v51, %v2706_v14 }
 0x28d   : > { %13338 = vst [vmem:[#allocation96_spill] sm:$0xff] %v11033_v40  ;;  %v2859_v63 = vshll.u32 %v11033_v40, 30  ;;  %v2712_v49 = vshll.u32 %v13206_v21, %v2706_v14  ;;  %v2715_v24 = vshll.u32 %v13207_v37, %v2706_v14  ;;  %v2718_v7 = vshll.u32 %v13213_v31, %v2706_v14 }
 0x28e   : > { %v2710_v26 = vshrl.u32 %v13206_v21, %v2707_v15  ;;  %v2713_v33 = vshrl.u32 %v13207_v37, %v2707_v15  ;;  %v2716_v16 = vshrl.u32 %v13213_v31, %v2707_v15  ;;  %v2719_v5 = vshrl.u32 %v13227_v0, %v2707_v15 }
 0x28f   : > { %v11044_v46 = vsub.s32 %v2856_v30, %v2859_v63  ;;  %v2721_v41 = vshll.u32 %v13227_v0, %v2706_v14  ;;  %v2722_v28 = vshrl.u32 %v13209_v53, %v2707_v15  ;;  %v2561_v17 = vadd.s32 127, %v2560_v47 }
 0x290   : > { %v2711_v32 = vor.u32 %v2710_v26, %v2709_v12  ;;  %v2714_v44 = vor.u32 %v2713_v33, %v2712_v49  ;;  %v2717_v55 = vor.u32 %v2716_v16, %v2715_v24  ;;  %v2720_v4 = vor.u32 %v2719_v5, %v2718_v7 }
 0x291   : > { %v2862_v52 = vsub.s32 0, %v11044_v46  ;;  %v11051_v40 = vshll.u32 %v2700_v61, 8  ;;  %v2708_v30 = vshrl.u32 %v13211_v51, %v2707_v15  ;;  %v2723_v63 = vor.u32 %v2722_v28, %v2721_v41 }
 0x292   : > { %v11053_v45 = vpop.eup %9021  ;;  %vm2724_vm9 = vcmp.lt.s32.totalorder %v2705_v27, 1  ;;  %v3014_v3 = vadd.s32 1, %v8252_v48  ;;  %vm2726_vm13 = vcmp.lt.s32.totalorder %v2705_v27, 3  ;;  %vm2727_vm8 = vcmp.lt.s32.totalorder %v2705_v27, 4 }
 0x293   : > { %13339 = vst [vmem:[#allocation97_spill] sm:$0xff] %v11053_v45  ;;  %v11056_v1 = vpop.eup %9023  ;;  %v8245_v14 = vmin.u32 %v2862_v52, %v11044_v46  ;;  %v2732_v47 = vsel %vm2724_vm9, %v2711_v32, %v2714_v44  ;;  %v2729_v49 = vsel %vm2727_vm8, %v2717_v55, 2102212464  ;;  %v2733_v61 = vsel %vm2727_vm8, %v2720_v4, 920167782 }
 0x294   : > { %13340 = vst [vmem:[#allocation98_spill] sm:$0xff] %v11056_v1  ;;  %v11060_v12 = vpop.eup %9025  ;;  %v2736_v26 = vsel %vm2724_vm9, %v2714_v44, %v2717_v55  ;;  %v2737_v33 = vsel %vm2727_vm8, %v2723_v63, 1326507024  ;;  %v2556_v15 = vsub.s32 32, %v11025_v38  ;;  %vm2725_vm12 = vcmp.lt.s32.totalorder %v2705_v27, 2 }
 0x295   : > { %13341 = vst [vmem:[#allocation99_spill] sm:$0xff] %v11060_v12  ;;  %v2864_v24 = vclz %v8245_v14  ;;  %v2734_v48 = vsel %vm2726_vm13, %v2717_v55, %v2733_v61  ;;  %v2728_v16 = vsel %vm2724_vm9, %v2708_v30, %v2711_v32  ;;  %v2738_v7 = vsel %vm2726_vm13, %v2720_v4, %v2737_v33 }
 0x296   : > { %v2735_v52 = vsel %vm2725_vm12, %v2732_v47, %v2734_v48  ;;  %v13342_v5 = vand.u32 2147483647, %v10943_v43  ;;  %v2730_v1 = vsel %vm2726_vm13, %v2714_v44, %v2729_v49  ;;  %v2739_v63 = vsel %vm2725_vm12, %v2736_v26, %v2738_v7 }
 0x297   : > { %v8246_v28 = vadd.s32 4294967294, %v2864_v24  ;;  %vm3015_vm8 = vcmp.gt.s32.totalorder %v3014_v3, 0  ;;  %v2562_v12 = vshll.u32 %v2561_v17, 23  ;;  %v2540_v32 = vadd.s32 %v10876_v54, %v10882_v59 }
 0x298   : > { %v3011_v41 = vand.u32 8388607, %v13342_v5  ;;  %v11073_v14 = vmul.u32.u64.low %v11051_v40, %v2739_v63  ;;  %v11074_v45 = vmul.u32.u64.high %v11051_v40, %v2739_v63, %v11073_v14  ;;  %v3016_v55 = vsel %vm3015_vm8, %v3014_v3, 0 }
 0x299   : > { %vm8247_vm9 = vcmp.lt.s32.totalorder %v8246_v28, 0  ;;  %v11079_v4 = vmul.u32.u64.low %v11051_v40, %v2735_v52  ;;  %v11080_v30 = vmul.u32.u64.high %v11051_v40, %v2735_v52, %v11079_v4  ;;  %v11083_v47 = vmul.f32 %v2670_v10, %v2668_v11 }
 0x29a   : > { %v11085_v44 = vsel %vm8247_vm9, 0, %v8246_v28  ;;  %v2731_v17 = vsel %vm2725_vm12, %v2728_v16, %v2730_v1  ;;  %v3018_v49 = vand.u32 31, %v3016_v55  ;;  %v2557_v61 = vshll.u32 %v10951_v29, %v11025_v38 }
 0x29b   : > { %v2558_v3 = vshrl.u32 %v2540_v32, %v2556_v15  ;;  %v2852_v54 = vadd.s32 %v10974_v34, %v10982_v13  ;;  %v2872_v59 = vsub.s32 4294967266, %v11085_v44  ;;  %v11093_v26 = vor.u32 4788187, %v2562_v12 }
 0x29c   : > { %vm2749_vm13 = vc.u32 %v11074_v45, %v11079_v4  ;;  %v3012_v11 = vor.u32 8388608, %v3011_v41  ;;  %v3019_v10 = vsub.s32 32, %v3018_v49  ;;  %v2747_v1 = vmul.u32 %v11051_v40, %v2731_v17 }
 0x29d   : > { %v2873_v33 = vadd.s32 127, %v2872_v59  ;;  %v2750_v27 = vadd.s32 1, %v11080_v30  ;;  %v3017_v24 = vshrl.u32 %v3016_v55, 5  ;;  %v2868_v29 = vsub.s32 32, %v11085_v44 }
 0x29e   : > { %v3021_v38 = vshll.u32 %v13211_v51, %v3018_v49  ;;  %v3022_v34 = vshrl.u32 %v13206_v21, %v3019_v10  ;;  %v3025_v13 = vshrl.u32 %v13207_v37, %v3019_v10  ;;  %v3024_v15 = vshll.u32 %v13206_v21, %v3018_v49 }
 0x29f   : > { %v2751_v12 = vsel %vm2749_vm13, %v2750_v27, %v11080_v30  ;;  %v3027_v48 = vshll.u32 %v13207_v37, %v3018_v49  ;;  %v3028_v16 = vshrl.u32 %v13213_v31, %v3019_v10  ;;  %v2874_v40 = vshll.u32 %v2873_v33, 23 }
 0x2a0   : > { %v2752_v52 = vadd.s32 %v2751_v12, %v2747_v1  ;;  %v3023_v7 = vor.u32 %v3022_v34, %v3021_v38  ;;  %v11108_v5 = vshll.u32 %v3012_v11, 8  ;;  %v3026_v41 = vor.u32 %v3025_v13, %v3024_v15 }
 0x2a1   : > { %v3029_v28 = vor.u32 %v3028_v16, %v3027_v48  ;;  %v3030_v63 = vshll.u32 %v13213_v31, %v3018_v49  ;;  %v3031_v14 = vshrl.u32 %v13227_v0, %v3019_v10  ;;  %v2869_v55 = vshll.u32 %v11044_v46, %v11085_v44 }
 0x2a2   : > { %v2753_v32 = vadd.s32 536870912, %v2752_v52  ;;  %v3033_v30 = vshll.u32 %v13227_v0, %v3018_v49  ;;  %v3034_v17 = vshrl.u32 %v13209_v53, %v3019_v10  ;;  %v2870_v59 = vshrl.u32 %v2852_v54, %v2868_v29 }
 0x2a3   : > { %v3032_v33 = vor.u32 %v3031_v14, %v3030_v63  ;;  %vm3036_vm8 = vcmp.lt.s32.totalorder %v3017_v24, 1  ;;  %vm3039_vm9 = vcmp.lt.s32.totalorder %v3017_v24, 4  ;;  %v13343_v11 = vand.u32 2147483647, %v10485_v62 }
 0x2a4   : > { %v13344_v1 = vmov 0  ;;  %v11122_v27 = vshrl.u32 %v2753_v32, 30  ;;  %v3020_v38 = vshrl.u32 %v13211_v51, %v3019_v10  ;;  %v3035_v46 = vor.u32 %v3034_v17, %v3033_v30 }
 0x2a5   : > { %vm11118_vm13 = vcmp.le.f32.partialorder %v13343_v11, 0.7853982  ;;  %v3041_v44 = vsel %vm3039_vm9, %v3029_v28, 2102212464  ;;  %v2875_v49 = vor.u32 4788187, %v2874_v40  ;;  %v3044_v54 = vsel %vm3036_vm8, %v3023_v7, %v3026_v41 }
 0x2a6   : > { %v13345_v1 = vsel %vm11118_vm13, 4294967295, %v13344_v1  ;;  %13347 = vst [vmem:[#allocation101_spill] sm:$0xff] %v11122_v27  ;;  %vm3038_vm1 = vcmp.lt.s32.totalorder %v3017_v24, 3  ;;  %v3045_v29 = vsel %vm3039_vm9, %v3032_v33, 920167782  ;;  %v2755_v34 = vshll.u32 %v11122_v27, 30 }
 0x2a7   : > { %13346 = vst [vmem:[#allocation100_spill] sm:$0xff] %v13345_v1  ;;  %vm3037_vm2 = vcmp.lt.s32.totalorder %v3017_v24, 2  ;;  %v3046_v13 = vsel %vm3038_vm1, %v3029_v28, %v3045_v29  ;;  %v3048_v12 = vsel %vm3036_vm8, %v3026_v41, %v3029_v28  ;;  %v3040_v15 = vsel %vm3036_vm8, %v3020_v38, %v3023_v7 }
 0x2a8   : > { %v3042_v10 = vsel %vm3038_vm1, %v3026_v41, %v3041_v44  ;;  %v3047_v48 = vsel %vm3037_vm2, %v3044_v54, %v3046_v13  ;;  %v3049_v16 = vsel %vm3039_vm9, %v3035_v46, 1326507024  ;;  %v11134_v40 = vsub.s32 %v2752_v52, %v2755_v34  ;;  %v542_v46 = vpop.permute.xlu1 %541 }
 0x2a9   : > { %v3050_v63 = vsel %vm3038_vm1, %v3032_v33, %v3049_v16  ;;  %v11137_v14 = vmul.u32.u64.low %v11108_v5, %v3047_v48  ;;  %v11138_v32 = vmul.u32.u64.high %v11108_v5, %v3047_v48, %v11137_v14  ;;  %v13348_v30 = vxor.u32 2147483648, %v11003_v35 }
 0x2aa   : > { %vm13349_vm12 = vcmp.lt.s32.totalorder %v10485_v62, 0  ;;  %v2559_v7 = vor.u32 %v2558_v3, %v2557_v61  ;;  %v3051_v41 = vsel %vm3037_vm2, %v3048_v12, %v3050_v63  ;;  %v2903_v17 = vand.u32 2139095040, %v11029_v22 }
 0x2ab   : > { %v2361_v28 = vsel %vm13349_vm12, %v13348_v30, %v11003_v35  ;;  %v2871_v11 = vor.u32 %v2870_v59, %v2869_v55  ;;  %v2758_v52 = vsub.s32 0, %v11134_v40  ;;  %v2672_v44 = vxor.u32 2147483648, %v11083_v47 }
 0x2ac   : > { %v11150_v33 = vmul.u32.u64.low %v11108_v5, %v3051_v41  ;;  %v11151_v38 = vmul.u32.u64.high %v11108_v5, %v3051_v41, %v11150_v33  ;;  %v2564_v54 = vand.u32 2147483647, %v11093_v26  ;;  %v3043_v29 = vsel %vm3037_vm2, %v3040_v15, %v3042_v10 }
 0x2ad   : > { %v2904_v35 = vshrl.u32 %v2903_v17, 23  ;;  %v2876_v61 = vand.u32 2147483647, %v2875_v49  ;;  %v8241_v3 = vmin.u32 %v2758_v52, %v11134_v40  ;;  %v3062_v34 = vadd.s32 1, %v11138_v32  ;;  %v537_v52 = vpop.permute.xlu0 %536 }
 0x2ae   : > { %v13075_v55 = vand.u32 2147483647, %v11029_v22  ;;  %v2364_v59 = vsel %vm11118_vm13, %v10485_v62, %v2361_v28  ;;  %v2566_v13 = vcvt.s32.f32 %v2559_v7  ;;  %v11163_v48 = vmul.f32 %v10914_v60, %v542_v46 }
 0x2af   : > { %v8248_v12 = vadd.s32 4294967169, %v2904_v35  ;;  %v2878_v26 = vcvt.s32.f32 %v2871_v11  ;;  %v2760_v24 = vclz %v8241_v3  ;;  %v3059_v15 = vmul.u32 %v11108_v5, %v3043_v29 }
 0x2b0   : > { %13350 = vst [vmem:[#allocation102_spill] sm:$0xff] %v11163_v48  ;;  %vm3061_vm1 = vc.u32 %v11151_v38, %v11137_v14  ;;  %vm13351_vm2 = vcmp.lt.s32.totalorder %v10658_v50, 0  ;;  %v11171_v10 = vmul.f32 %v2566_v13, %v2564_v54  ;;  %v2907_v41 = vand.u32 8388607, %v13075_v55 }
 0x2b1   : > { %v2673_v49 = vsel %vm13351_vm2, %v2672_v44, %v11083_v47  ;;  %v3063_v16 = vsel %vm3061_vm1, %v3062_v34, %v11138_v32  ;;  %v2910_v63 = vadd.s32 1, %v8248_v12  ;;  %v11174_v30 = vmul.f32 %v2878_v26, %v2876_v61 }
 0x2b2   : > { %v8242_v28 = vadd.s32 4294967294, %v2760_v24  ;;  %v3064_v7 = vadd.s32 %v3063_v16, %v3059_v15  ;;  %9027 = vcosq.f32 %v2364_v59  ;;  %v13352_v5 = vand.u32 2147483647, %v10658_v50 }
 0x2b3   : > { %v13353_v17 = vmov 0  ;;  %vm2911_vm8 = vcmp.gt.s32.totalorder %v2910_v63, 0  ;;  %v3215_v47 = vand.u32 2139095040, %v11163_v48  ;;  %9029 = vsinq.f32 %v2364_v59 }
 0x2b4   : > { %vm11180_vm12 = vcmp.le.f32.partialorder %v13352_v5, 0.7853982  ;;  %vm8243_vm9 = vcmp.lt.s32.totalorder %v8242_v28, 0  ;;  %v3065_v32 = vadd.s32 536870912, %v3064_v7  ;;  %v2912_v11 = vsel %vm2911_vm8, %v2910_v63, 0 }
 0x2b5   : > { %v13354_v17 = vsel %vm11180_vm12, 4294967295, %v13353_v17  ;;  %v11188_v33 = vsel %vm11180_vm12, %v10658_v50, %v2673_v49  ;;  %v11191_v44 = vsel %vm8243_vm9, 0, %v8242_v28  ;;  %v2914_v54 = vand.u32 31, %v2912_v11 }
 0x2b6   : > { %13355 = vst [vmem:[#allocation103_spill] sm:$0xff] %v13354_v17  ;;  %v2748_v35 = vadd.s32 %v11079_v4, %v11074_v45  ;;  %v11196_v61 = vshrl.u32 %v3065_v32, 30  ;;  %v2908_v3 = vor.u32 8388608, %v2907_v41  ;;  %v2764_v34 = vsub.s32 32, %v11191_v44 }
 0x2b7   : > { %v2915_v59 = vsub.s32 32, %v2914_v54  ;;  %v3216_v13 = vshrl.u32 %v3215_v47, 23  ;;  %v11200_v12 = vmul.f32 %v10914_v60, %v537_v52  ;;  %v2768_v26 = vsub.s32 4294967266, %v11191_v44 }
 0x2b8   : > { %13356 = vst [vmem:[#allocation104_spill] sm:$0xff] %v11196_v61  ;;  %v3067_v24 = vshll.u32 %v11196_v61, 30  ;;  %v2917_v15 = vshll.u32 %v13211_v51, %v2914_v54  ;;  %v2920_v49 = vshll.u32 %v13206_v21, %v2914_v54  ;;  %v2923_v16 = vshll.u32 %v13207_v37, %v2914_v54 }
 0x2b9   : > { %13357 = vst [vmem:[#allocation105_spill] sm:$0xff] %v11200_v12  ;;  %v2918_v45 = vshrl.u32 %v13206_v21, %v2915_v59  ;;  %v2921_v4 = vshrl.u32 %v13207_v37, %v2915_v59  ;;  %v2924_v63 = vshrl.u32 %v13213_v31, %v2915_v59  ;;  %v2913_v41 = vshrl.u32 %v2912_v11, 5 }
 0x2ba   : > { %v11210_v28 = vsub.s32 %v3064_v7, %v3067_v24  ;;  %v2926_v5 = vshll.u32 %v13213_v31, %v2914_v54  ;;  %v2927_v47 = vshrl.u32 %v13227_v0, %v2915_v59  ;;  %v11214_v29 = vshll.u32 %v2908_v3, 8 }
 0x2bb   : > { %v2919_v32 = vor.u32 %v2918_v45, %v2917_v15  ;;  %v2922_v52 = vor.u32 %v2921_v4, %v2920_v49  ;;  %v2925_v55 = vor.u32 %v2924_v63, %v2923_v16  ;;  %v8260_v17 = vadd.s32 4294967169, %v3216_v13 }
 0x2bc   : > { %v3070_v46 = vsub.s32 0, %v11210_v28  ;;  %v2928_v61 = vor.u32 %v2927_v47, %v2926_v5  ;;  %v11219_v7 = vpop.eup %9027  ;;  %v2766_v11 = vshrl.u32 %v2748_v35, %v2764_v34  ;;  %v2769_v24 = vadd.s32 127, %v2768_v26 }
 0x2bd   : > { %13358 = vst [vmem:[#allocation106_spill] sm:$0xff] %v11219_v7  ;;  %v2929_v50 = vshll.u32 %v13227_v0, %v2914_v54  ;;  %v2930_v15 = vshrl.u32 %v13209_v53, %v2915_v59  ;;  %v11223_v49 = vpop.eup %9029  ;;  %vm2932_vm2 = vcmp.lt.s32.totalorder %v2913_v41, 1  ;;  %vm2934_vm8 = vcmp.lt.s32.totalorder %v2913_v41, 3 }
 0x2be   : > { %13359 = vst [vmem:[#allocation107_spill] sm:$0xff] %v11223_v49  ;;  %v8253_v3 = vmin.u32 %v3070_v46, %v11210_v28  ;;  %vm2935_vm9 = vcmp.lt.s32.totalorder %v2913_v41, 4  ;;  %v13360_v45 = vand.u32 2147483647, %v10711_v19  ;;  %v13361_v4 = vmov 0 }
 0x2bf   : > { %v2931_v35 = vor.u32 %v2930_v15, %v2929_v50  ;;  %v2937_v34 = vsel %vm2935_vm9, %v2925_v55, 2102212464  ;;  %v2940_v54 = vsel %vm2932_vm2, %v2919_v32, %v2922_v52  ;;  %v2941_v13 = vsel %vm2935_vm9, %v2928_v61, 920167782 }
 0x2c0   : > { %vm11228_vm1 = vcmp.le.f32.partialorder %v13360_v45, 0.7853982  ;;  %v3072_v26 = vclz %v8253_v3  ;;  %v2916_v16 = vshrl.u32 %v13211_v51, %v2915_v59  ;;  %vm2933_vm13 = vcmp.lt.s32.totalorder %v2913_v41, 2 }
 0x2c1   : > { %v13362_v4 = vsel %vm11228_vm1, 4294967295, %v13361_v4  ;;  %v2942_v46 = vsel %vm2934_vm8, %v2925_v55, %v2941_v13  ;;  %v2770_v63 = vshll.u32 %v2769_v24, 23  ;;  %v2944_v47 = vsel %vm2932_vm2, %v2922_v52, %v2925_v55 }
 0x2c2   : > { %13363 = vst [vmem:[#allocation108_spill] sm:$0xff] %v13362_v4  ;;  %v2943_v5 = vsel %vm2933_vm13, %v2940_v54, %v2942_v46  ;;  %v2945_v45 = vsel %vm2935_vm9, %v2931_v35, 1326507024  ;;  %v8254_v27 = vadd.s32 4294967294, %v3072_v26  ;;  %v2936_v7 = vsel %vm2932_vm2, %v2916_v16, %v2919_v32 }
 0x2c3   : > { %v2938_v50 = vsel %vm2934_vm8, %v2922_v52, %v2937_v34  ;;  %v2946_v15 = vsel %vm2934_vm8, %v2928_v61, %v2945_v45  ;;  %v11243_v59 = vmul.u32.u64.low %v11214_v29, %v2943_v5  ;;  %v11244_v49 = vmul.u32.u64.high %v11214_v29, %v2943_v5, %v11243_v59 }
 0x2c4   : > { %v2947_v3 = vsel %vm2933_vm13, %v2944_v47, %v2946_v15  ;;  %v3222_v24 = vadd.s32 1, %v8260_v17  ;;  %v2765_v54 = vshll.u32 %v11134_v40, %v11191_v44  ;;  %vm8255_vm12 = vcmp.lt.s32.totalorder %v8254_v27, 0 }
 0x2c5   : > { %v11250_v55 = vmul.u32.u64.low %v11214_v29, %v2947_v3  ;;  %v11251_v35 = vmul.u32.u64.high %v11214_v29, %v2947_v3, %v11250_v55  ;;  %v13364_v32 = vxor.u32 2147483648, %v11171_v10  ;;  %vm13365_vm2 = vcmp.lt.s32.totalorder %v10711_v19, 0 }
 0x2c6   : > { %v11258_v52 = vsel %vm8255_vm12, 0, %v8254_v27  ;;  %v2939_v34 = vsel %vm2933_vm13, %v2936_v7, %v2938_v50  ;;  %vm3223_vm8 = vcmp.gt.s32.totalorder %v3222_v24, 0  ;;  %9031 = vcosq.f32 %v11188_v33 }
 0x2c7   : > { %v2569_v61 = vsel %vm13365_vm2, %v13364_v32, %v11171_v10  ;;  %v2767_v17 = vor.u32 %v2766_v11, %v2765_v54  ;;  %v2771_v40 = vor.u32 4788187, %v2770_v63  ;;  %v13366_v44 = vand.u32 2147483647, %v11163_v48 }
 0x2c8   : > { %v3080_v26 = vsub.s32 4294967266, %v11258_v52  ;;  %v2958_v16 = vadd.s32 1, %v11244_v49  ;;  %v3224_v46 = vsel %vm3223_vm8, %v3222_v24, 0  ;;  %v3111_v5 = vand.u32 2139095040, %v11200_v12 }
 0x2c9   : > { %v3219_v13 = vand.u32 8388607, %v13366_v44  ;;  %v11270_v27 = vsel %vm11228_vm1, %v10711_v19, %v2569_v61  ;;  %v13367_v10 = vxor.u32 2147483648, %v11174_v30  ;;  %vm13368_vm13 = vcmp.lt.s32.totalorder %v10804_v20, 0 }
 0x2ca   : > { %v2955_v7 = vmul.u32 %v11214_v29, %v2939_v34  ;;  %vm2957_vm12 = vc.u32 %v11251_v35, %v11243_v59  ;;  %v3060_v11 = vadd.s32 %v11137_v14, %v11151_v38  ;;  %v3226_v47 = vand.u32 31, %v3224_v46 }
 0x2cb   : > { %v11277_v41 = vsel %vm13368_vm13, %v13367_v10, %v11174_v30  ;;  %v2959_v63 = vsel %vm2957_vm12, %v2958_v16, %v11244_v49  ;;  %v2772_v50 = vand.u32 2147483647, %v2771_v40  ;;  %v2774_v15 = vcvt.s32.f32 %v2767_v17 }
 0x2cc   : > { %v2960_v3 = vadd.s32 %v2959_v63, %v2955_v7  ;;  %v3220_v24 = vor.u32 8388608, %v3219_v13  ;;  %v3076_v30 = vsub.s32 32, %v11258_v52  ;;  %v3081_v54 = vadd.s32 127, %v3080_v26 }
 0x2cd   : > { %v3227_v55 = vsub.s32 32, %v3226_v47  ;;  %v3112_v29 = vshrl.u32 %v3111_v5, 23  ;;  %v3225_v61 = vshrl.u32 %v3224_v46, 5  ;;  %v3229_v34 = vshll.u32 %v13211_v51, %v3226_v47 }
 0x2ce   : > { %v2961_v32 = vadd.s32 536870912, %v2960_v3  ;;  %v3232_v14 = vshll.u32 %v13206_v21, %v3226_v47  ;;  %v3235_v40 = vshll.u32 %v13207_v37, %v3226_v47  ;;  %v3238_v13 = vshll.u32 %v13213_v31, %v3226_v47 }
 0x2cf   : > { %v3230_v38 = vshrl.u32 %v13206_v21, %v3227_v55  ;;  %v3233_v49 = vshrl.u32 %v13207_v37, %v3227_v55  ;;  %v3236_v17 = vshrl.u32 %v13213_v31, %v3227_v55  ;;  %v3239_v26 = vshrl.u32 %v13227_v0, %v3227_v55 }
 0x2d0   : > { %v11293_v44 = vshrl.u32 %v2961_v32, 30  ;;  %v3241_v16 = vshll.u32 %v13227_v0, %v3226_v47  ;;  %v3242_v7 = vshrl.u32 %v13209_v53, %v3227_v55  ;;  %v11299_v63 = vpop.eup %9031  ;;  %v2775_v45 = vmul.f32 %v2774_v15, %v2772_v50 }
 0x2d1   : > { %v3231_v46 = vor.u32 %v3230_v38, %v3229_v34  ;;  %v3234_v5 = vor.u32 %v3233_v49, %v3232_v14  ;;  %v3237_v10 = vor.u32 %v3236_v17, %v3235_v40  ;;  %13370 = vst [vmem:[#allocation110_spill] sm:$0xff] %v11299_v63  ;;  %v3240_v19 = vor.u32 %v3239_v26, %v3238_v13 }
 0x2d2   : > { %13369 = vst [vmem:[#allocation109_spill] sm:$0xff] %v11293_v44  ;;  %v2963_v4 = vshll.u32 %v11293_v44, 30  ;;  %v3260_v1 = vshll.u32 %v3220_v24, 8  ;;  %v3078_v32 = vshrl.u32 %v3060_v11, %v3076_v30  ;;  %v3082_v62 = vshll.u32 %v3081_v54, 23 }
 0x2d3   : > { %v3243_v25 = vor.u32 %v3242_v7, %v3241_v16  ;;  %v8256_v23 = vadd.s32 4294967169, %v3112_v29  ;;  %v13371_v56 = vand.u32 2147483647, %v10804_v20  ;;  %v13372_v47 = vmov 0 }
 0x2d4   : > { %v11308_v34 = vsub.s32 %v2960_v3, %v2963_v4  ;;  %v3228_v14 = vshrl.u32 %v13211_v51, %v3227_v55  ;;  %vm3244_vm2 = vcmp.lt.s32.totalorder %v3225_v61, 1  ;;  %vm3247_vm8 = vcmp.lt.s32.totalorder %v3225_v61, 4 }
 0x2d5   : > { %vm11304_vm9 = vcmp.le.f32.partialorder %v13371_v56, 0.7853982  ;;  %vm3246_vm13 = vcmp.lt.s32.totalorder %v3225_v61, 3  ;;  %v3249_v50 = vsel %vm3247_vm8, %v3237_v10, 2102212464  ;;  %v3252_v15 = vsel %vm3244_vm2, %v3231_v46, %v3234_v5 }
 0x2d6   : > { %v13373_v47 = vsel %vm11304_vm9, 4294967295, %v13372_v47  ;;  %v3253_v24 = vsel %vm3247_vm8, %v3240_v19, 920167782  ;;  %v2966_v11 = vsub.s32 0, %v11308_v34  ;;  %vm3245_vm12 = vcmp.lt.s32.totalorder %v3225_v61, 2 }
 0x2d7   : > { %13374 = vst [vmem:[#allocation111_spill] sm:$0xff] %v13373_v47  ;;  %v3254_v30 = vsel %vm3246_vm13, %v3237_v10, %v3253_v24  ;;  %v3256_v54 = vsel %vm3244_vm2, %v3234_v5, %v3237_v10  ;;  %v3077_v56 = vshll.u32 %v11210_v28, %v11258_v52  ;;  %v3083_v29 = vor.u32 4788187, %v3082_v62 }
 0x2d8   : > { %v3255_v4 = vsel %vm3245_vm12, %v3252_v15, %v3254_v30  ;;  %v3257_v3 = vsel %vm3247_vm8, %v3243_v25, 1326507024  ;;  %v8249_v55 = vmin.u32 %v2966_v11, %v11308_v34  ;;  %v3248_v38 = vsel %vm3244_vm2, %v3228_v14, %v3231_v46 }
 0x2d9   : > { %v3250_v49 = vsel %vm3246_vm13, %v3234_v5, %v3249_v50  ;;  %v3258_v40 = vsel %vm3246_vm13, %v3240_v19, %v3257_v3  ;;  %v3079_v17 = vor.u32 %v3078_v32, %v3077_v56  ;;  %v3118_v62 = vadd.s32 1, %v8256_v23  ;;  %v552_v50 = vpop.permute.xlu1 %551 }
 0x2da   : > { %v3259_v13 = vsel %vm3245_vm12, %v3256_v54, %v3258_v40  ;;  %v11317_v26 = vmul.u32.u64.low %v3260_v1, %v3255_v4  ;;  %v11318_v16 = vmul.u32.u64.high %v3260_v1, %v3255_v4, %v11317_v26  ;;  %v2968_v10 = vclz %v8249_v55 }
 0x2db   : > { %v11321_v7 = vmul.u32.u64.low %v3260_v1, %v3259_v13  ;;  %v11322_v24 = vmul.u32.u64.high %v3260_v1, %v3259_v13, %v11321_v7  ;;  %9033 = vsinq.f32 %v11188_v33  ;;  %vm13098_vm8 = vcmp.lt.s32.totalorder %v10917_v6, 0 }
 0x2dc   : > { %v2776_v25 = vxor.u32 2147483648, %v2775_v45  ;;  %v3251_v28 = vsel %vm3245_vm12, %v3248_v38, %v3250_v49  ;;  %9035 = vcosq.f32 %v11270_v27  ;;  %v3084_v19 = vand.u32 2147483647, %v3083_v29 }
 0x2dd   : > { %v8250_v52 = vadd.s32 4294967294, %v2968_v10  ;;  %vm3119_vm2 = vcmp.gt.s32.totalorder %v3118_v62, 0  ;;  %v11332_v46 = vsel %vm11304_vm9, %v10804_v20, %v11277_v41  ;;  %v3270_v23 = vadd.s32 1, %v11318_v16 }
 0x2de   : > { %v13375_v33 = vand.u32 2147483647, %v11200_v12  ;;  %v3120_v32 = vsel %vm3119_vm2, %v3118_v62, 0  ;;  %v3086_v14 = vcvt.s32.f32 %v3079_v17  ;;  %v3267_v61 = vmul.u32 %v3260_v1, %v3251_v28 }
 0x2df   : > { %vm8251_vm13 = vcmp.lt.s32.totalorder %v8250_v52, 0  ;;  %vm3269_vm12 = vc.u32 %v11322_v24, %v11317_v26  ;;  %v11341_v15 = vsel %vm13098_vm8, %v2776_v25, %v2775_v45  ;;  %v3122_v30 = vand.u32 31, %v3120_v32 }
 0x2e0   : > { %v3115_v5 = vand.u32 8388607, %v13375_v33  ;;  %v11343_v11 = vsel %vm8251_vm13, 0, %v8250_v52  ;;  %v3271_v41 = vsel %vm3269_vm12, %v3270_v23, %v11318_v16  ;;  %v11346_v54 = vmul.f32 %v3086_v14, %v3084_v19 }
 0x2e1   : > { %v2956_v56 = vadd.s32 %v11243_v59, %v11251_v35  ;;  %v2976_v1 = vsub.s32 4294967266, %v11343_v11  ;;  %v3272_v29 = vadd.s32 %v3271_v41, %v3267_v61  ;;  %v2972_v4 = vsub.s32 32, %v11343_v11 }
 0x2e2   : > { %v3116_v3 = vor.u32 8388608, %v3115_v5  ;;  %v3123_v55 = vsub.s32 32, %v3122_v30  ;;  %v11353_v45 = vmul.f32 %v10914_v60, %v552_v50  ;;  %v3125_v49 = vshll.u32 %v13211_v51, %v3122_v30 }
 0x2e3   : > { %v3273_v38 = vadd.s32 536870912, %v3272_v29  ;;  %v3128_v40 = vshll.u32 %v13206_v21, %v3122_v30  ;;  %v3131_v17 = vshll.u32 %v13207_v37, %v3122_v30  ;;  %v2977_v13 = vadd.s32 127, %v2976_v1 }
 0x2e4   : > { %v3126_v59 = vshrl.u32 %v13206_v21, %v3123_v55  ;;  %v3129_v35 = vshrl.u32 %v13207_v37, %v3123_v55  ;;  %v3132_v16 = vshrl.u32 %v13213_v31, %v3123_v55  ;;  %v3121_v7 = vshrl.u32 %v3120_v32, 5 }
 0x2e5   : > { %v11361_v10 = vshrl.u32 %v3273_v38, 30  ;;  %v3134_v60 = vshll.u32 %v13213_v31, %v3122_v30  ;;  %v3135_v62 = vshrl.u32 %v13227_v0, %v3123_v55  ;;  %v11365_v25 = vpop.eup %9033  ;;  %v11367_v23 = vshll.u32 %v3116_v3, 8 }
 0x2e6   : > { %v3127_v28 = vor.u32 %v3126_v59, %v3125_v49  ;;  %v3130_v19 = vor.u32 %v3129_v35, %v3128_v40  ;;  %v3133_v52 = vor.u32 %v3132_v16, %v3131_v17  ;;  %v11369_v33 = vpop.eup %9035  ;;  %v2973_v5 = vshll.u32 %v11308_v34, %v11343_v11 }
 0x2e7   : > { %13376 = vst [vmem:[#allocation112_spill] sm:$0xff] %v11361_v10  ;;  %v3275_v14 = vshll.u32 %v11361_v10, 30  ;;  %v3136_v61 = vor.u32 %v3135_v62, %v3134_v60  ;;  %v13101_v32 = vand.u32 2147483647, %v11353_v45  ;;  %v2974_v50 = vshrl.u32 %v2956_v56, %v2972_v4 }
 0x2e8   : > { %v2978_v41 = vshll.u32 %v2977_v13, 23  ;;  %v3137_v1 = vshll.u32 %v13227_v0, %v3122_v30  ;;  %v3138_v38 = vshrl.u32 %v13209_v53, %v3123_v55  ;;  %v13377_v49 = vand.u32 2147483647, %v10917_v6 }
 0x2e9   : > { %v13378_v3 = vmov 0  ;;  %v11383_v40 = vsub.s32 %v3272_v29, %v3275_v14  ;;  %vm3140_vm13 = vcmp.lt.s32.totalorder %v3121_v7, 1  ;;  %vm3142_vm12 = vcmp.lt.s32.totalorder %v3121_v7, 3 }
 0x2ea   : > { %vm11379_vm2 = vcmp.le.f32.partialorder %v13377_v49, 0.7853982  ;;  %vm3143_vm8 = vcmp.lt.s32.totalorder %v3121_v7, 4  ;;  %v3139_v34 = vor.u32 %v3138_v38, %v3137_v1  ;;  %v3148_v56 = vsel %vm3140_vm13, %v3127_v28, %v3130_v19 }
 0x2eb   : > { %v13379_v3 = vsel %vm11379_vm2, 4294967295, %v13378_v3  ;;  %v3145_v11 = vsel %vm3143_vm8, %v3133_v52, 2102212464  ;;  %v3149_v4 = vsel %vm3143_vm8, %v3136_v61, 920167782  ;;  %v3278_v30 = vsub.s32 0, %v11383_v40 }
 0x2ec   : > { %13380 = vst [vmem:[#allocation113_spill] sm:$0xff] %v13379_v3  ;;  %v3124_v17 = vshrl.u32 %v13211_v51, %v3123_v55  ;;  %vm3141_vm1 = vcmp.lt.s32.totalorder %v3121_v7, 2  ;;  %v3150_v13 = vsel %vm3142_vm12, %v3133_v52, %v3149_v4  ;;  %v2979_v59 = vor.u32 4788187, %v2978_v41  ;;  %v11427_v7 = vld [vmem:[%s12908_s2] ss:$0 sm:$0xff] }
 0x2ed   : > { %v3151_v29 = vsel %vm3141_vm1, %v3148_v56, %v3150_v13  ;;  %v3152_v35 = vsel %vm3140_vm13, %v3130_v19, %v3133_v52  ;;  %v3153_v16 = vsel %vm3143_vm8, %v3139_v34, 1326507024  ;;  %v8261_v60 = vmin.u32 %v3278_v30, %v11383_v40 }
 0x2ee   : > { %v3144_v62 = vsel %vm3140_vm13, %v3124_v17, %v3127_v28  ;;  %v3146_v14 = vsel %vm3142_vm12, %v3130_v19, %v3145_v11  ;;  %v3154_v1 = vsel %vm3142_vm12, %v3136_v61, %v3153_v16  ;;  %v13381_v38 = vand.u32 2147483647, %v10943_v43  ;;  %v547_v11 = vpop.permute.xlu0 %546 }
 0x2ef   : > { %v13382_v55 = vmov 0  ;;  %v3155_v41 = vsel %vm3141_vm1, %v3152_v35, %v3154_v1  ;;  %v11404_v49 = vmul.u32.u64.low %v11367_v23, %v3151_v29  ;;  %v11405_v52 = vmul.u32.u64.high %v11367_v23, %v3151_v29, %v11404_v49 }
 0x2f0   : > { %vm11398_vm9 = vcmp.le.f32.partialorder %v13381_v38, 0.7853982  ;;  %v3423_v34 = vand.u32 2139095040, %v11353_v45  ;;  %v2975_v28 = vor.u32 %v2974_v50, %v2973_v5  ;;  %v3280_v56 = vclz %v8261_v60 }
 0x2f1   : > { %v13383_v55 = vsel %vm11398_vm9, 4294967295, %v13382_v55  ;;  %v11410_v19 = vmul.u32.u64.low %v11367_v23, %v3155_v41  ;;  %v11411_v61 = vmul.u32.u64.high %v11367_v23, %v3155_v41, %v11410_v19  ;;  %9037 = vsinq.f32 %v11270_v27 }
 0x2f2   : > { %13384 = vst [vmem:[#allocation114_spill] sm:$0xff] %v13383_v55  ;;  %v3088_v4 = vxor.u32 2147483648, %v11346_v54  ;;  %v3147_v30 = vsel %vm3141_vm1, %v3144_v62, %v3146_v14  ;;  %v3424_v17 = vshrl.u32 %v3423_v34, 23  ;;  %9039 = vcosq.f32 %v11332_v46 }
 0x2f3   : > { %v2980_v13 = vand.u32 2147483647, %v2979_v59  ;;  %v8262_v29 = vadd.s32 4294967294, %v3280_v56  ;;  %v3427_v5 = vand.u32 8388607, %v13101_v32  ;;  %v2780_v50 = vsel %vm11379_vm2, %v10917_v6, %v11341_v15 }
 0x2f4   : > { %v3166_v35 = vadd.s32 1, %v11405_v52  ;;  %v8268_v27 = vadd.s32 4294967169, %v3424_v17  ;;  %v11430_v16 = vmul.f32 %v11427_v7, %v547_v11  ;;  %v2982_v59 = vcvt.s32.f32 %v2975_v28  ;;  %v562_v28 = vpop.permute.xlu1 %561 }
 0x2f5   : > { %vm8263_vm1 = vcmp.lt.s32.totalorder %v8262_v29, 0  ;;  %v3163_v60 = vmul.u32 %v11367_v23, %v3147_v30  ;;  %vm3165_vm8 = vc.u32 %v11411_v61, %v11404_v49  ;;  %vm13385_vm13 = vcmp.lt.s32.totalorder %v10943_v43, 0  ;;  %v557_v23 = vpop.permute.xlu0 %556 }
 0x2f6   : > { %v3089_v15 = vsel %vm13385_vm13, %v3088_v4, %v11346_v54  ;;  %v11438_v62 = vsel %vm8263_vm1, 0, %v8262_v29  ;;  %v3167_v14 = vsel %vm3165_vm8, %v3166_v35, %v11405_v52  ;;  %v3430_v1 = vadd.s32 1, %v8268_v27 }
 0x2f7   : > { %9041 = vsinq.f32 %v11332_v46  ;;  %v11442_v38 = vmul.f32 %v2982_v59, %v2980_v13  ;;  %v3168_v41 = vadd.s32 %v3167_v14, %v3163_v60  ;;  %v3428_v34 = vor.u32 8388608, %v3427_v5 }
 0x2f8   : > { %9043 = vcosq.f32 %v2780_v50  ;;  %v3288_v56 = vsub.s32 4294967266, %v11438_v62  ;;  %vm3431_vm12 = vcmp.gt.s32.totalorder %v3430_v1, 0  ;;  %v3319_v19 = vand.u32 2139095040, %v11430_v16 }
 0x2f9   : > { %9045 = vsinq.f32 %v2780_v50  ;;  %v11449_v54 = vsel %vm11398_vm9, %v10943_v43, %v3089_v15  ;;  %v3169_v52 = vadd.s32 536870912, %v3168_v41  ;;  %v3432_v46 = vsel %vm3431_vm12, %v3430_v1, 0 }
 0x2fa   : > { %v3268_v11 = vadd.s32 %v11317_v26, %v11322_v24  ;;  %v3434_v4 = vand.u32 31, %v3432_v46  ;;  %v11454_v30 = vmul.f32 %v11427_v7, %v562_v28  ;;  %v11457_v17 = vmul.f32 %v11427_v7, %v557_v23 }
 0x2fb   : > { %v11460_v29 = vshrl.u32 %v3169_v52, 30  ;;  %v11462_v5 = vshll.u32 %v3428_v34, 8  ;;  %v11465_v35 = vpop.eup %9037  ;;  %v3284_v27 = vsub.s32 32, %v11438_v62  ;;  %v3289_v26 = vadd.s32 127, %v3288_v56 }
 0x2fc   : > { %v3435_v24 = vsub.s32 32, %v3434_v4  ;;  %v3320_v59 = vshrl.u32 %v3319_v19, 23  ;;  %v11468_v60 = vpop.eup %9039  ;;  %v3433_v14 = vshrl.u32 %v3432_v46, 5  ;;  %v3437_v1 = vshll.u32 %v13211_v51, %v3434_v4 }
 0x2fd   : > { %13386 = vst [vmem:[#allocation115_spill] sm:$0xff] %v11460_v29  ;;  %13387 = vst [vmem:[#allocation116_spill] sm:$0xff] %v11468_v60  ;;  %v3171_v15 = vshll.u32 %v11460_v29, 30  ;;  %v3440_v28 = vshll.u32 %v13206_v21, %v3434_v4  ;;  %v3443_v52 = vshll.u32 %v13207_v37, %v3434_v4  ;;  %v3446_v19 = vshll.u32 %v13213_v31, %v3434_v4 }
 0x2fe   : > { %v3438_v34 = vshrl.u32 %v13206_v21, %v3435_v24  ;;  %v3441_v23 = vshrl.u32 %v13207_v37, %v3435_v24  ;;  %v3444_v32 = vshrl.u32 %v13213_v31, %v3435_v24  ;;  %v3447_v13 = vshrl.u32 %v13227_v0, %v3435_v24 }
 0x2ff   : > { %v11477_v56 = vsub.s32 %v3168_v41, %v3171_v15  ;;  %v3449_v46 = vshll.u32 %v13227_v0, %v3434_v4  ;;  %v3450_v29 = vshrl.u32 %v13209_v53, %v3435_v24  ;;  %v3285_v44 = vshll.u32 %v11383_v40, %v11438_v62 }
 0x300   : > { %v3439_v50 = vor.u32 %v3438_v34, %v3437_v1  ;;  %v3442_v10 = vor.u32 %v3441_v23, %v3440_v28  ;;  %v3445_v55 = vor.u32 %v3444_v32, %v3443_v52  ;;  %v3448_v41 = vor.u32 %v3447_v13, %v3446_v19 }
 0x301   : > { %v11483_v43 = vpop.eup %9041  ;;  %v3174_v60 = vsub.s32 0, %v11477_v56  ;;  %v13389_v15 = vand.u32 2147483647, %v11430_v16  ;;  %v3286_v4 = vshrl.u32 %v3268_v11, %v3284_v27  ;;  %v3290_v32 = vshll.u32 %v3289_v26, 23 }
 0x302   : > { %13388 = vst [vmem:[#allocation117_spill] sm:$0xff] %v11483_v43  ;;  %v11492_v3 = vpop.eup %9043  ;;  %v3451_v1 = vor.u32 %v3450_v29, %v3449_v46  ;;  %v8264_v28 = vadd.s32 4294967169, %v3320_v59  ;;  %v3436_v40 = vshrl.u32 %v13211_v51, %v3435_v24  ;;  %vm3452_vm8 = vcmp.lt.s32.totalorder %v3433_v14, 1 }
 0x303   : > { %v11490_v47 = vand.u32 8388607, %v13389_v15  ;;  %13390 = vst [vmem:[#allocation118_spill] sm:$0xff] %v11492_v3  ;;  %v11495_v34 = vpop.eup %9045  ;;  %v8257_v23 = vmin.u32 %v3174_v60, %v11477_v56  ;;  %vm3455_vm13 = vcmp.lt.s32.totalorder %v3433_v14, 4  ;;  %vm3454_vm12 = vcmp.lt.s32.totalorder %v3433_v14, 3 }
 0x304   : > { %13391 = vst [vmem:[#allocation119_spill] sm:$0xff] %v11495_v34  ;;  %v3457_v62 = vsel %vm3455_vm13, %v3445_v55, 2102212464  ;;  %v3460_v13 = vsel %vm3452_vm8, %v3439_v50, %v3442_v10  ;;  %v3461_v52 = vsel %vm3455_vm13, %v3448_v41, 920167782  ;;  %vm3453_vm9 = vcmp.lt.s32.totalorder %v3433_v14, 2 }
 0x305   : > { %v3176_v19 = vclz %v8257_v23  ;;  %v3462_v15 = vsel %vm3454_vm12, %v3445_v55, %v3461_v52  ;;  %v3464_v43 = vsel %vm3452_vm8, %v3442_v10, %v3445_v55  ;;  %v3291_v11 = vor.u32 4788187, %v3290_v32 }
 0x306   : > { %v3456_v27 = vsel %vm3452_vm8, %v3436_v40, %v3439_v50  ;;  %v3463_v29 = vsel %vm3453_vm9, %v3460_v13, %v3462_v15  ;;  %v3465_v26 = vsel %vm3455_vm13, %v3451_v1, 1326507024  ;;  %v3458_v46 = vsel %vm3454_vm12, %v3442_v10, %v3457_v62 }
 0x307   : > { %v8258_v59 = vadd.s32 4294967294, %v3176_v19  ;;  %v3466_v60 = vsel %vm3454_vm12, %v3448_v41, %v3465_v26  ;;  %v3326_v20 = vadd.s32 1, %v8264_v28  ;;  %v3287_v24 = vor.u32 %v3286_v4, %v3285_v44 }
 0x308   : > { %v3467_v6 = vsel %vm3453_vm9, %v3464_v43, %v3466_v60  ;;  %v11502_v3 = vmul.u32.u64.low %v11462_v5, %v3463_v29  ;;  %v11503_v34 = vmul.u32.u64.high %v11462_v5, %v3463_v29, %v11502_v3  ;;  %v3292_v50 = vand.u32 2147483647, %v3291_v11 }
 0x309   : > { %vm8259_vm1 = vcmp.lt.s32.totalorder %v8258_v59, 0  ;;  %v11507_v55 = vmul.u32.u64.low %v11462_v5, %v3467_v6  ;;  %v11508_v32 = vmul.u32.u64.high %v11462_v5, %v3467_v6, %v11507_v55  ;;  %vm3327_vm8 = vcmp.gt.s32.totalorder %v3326_v20, 0 }
 0x30a   : > { %v3179_v1 = vsel %vm8259_vm1, 0, %v8258_v59  ;;  %v3459_v10 = vsel %vm3453_vm9, %v3456_v27, %v3458_v46  ;;  %v3328_v41 = vsel %vm3327_vm8, %v3326_v20, 0  ;;  %v13392_v44 = vxor.u32 2147483648, %v11442_v38 }
 0x30b   : > { %vm13393_vm13 = vcmp.lt.s32.totalorder %v11029_v22, 0  ;;  %v3164_v4 = vadd.s32 %v11404_v49, %v11411_v61  ;;  %v3180_v28 = vsub.s32 32, %v3179_v1  ;;  %v3184_v23 = vsub.s32 4294967266, %v3179_v1 }
 0x30c   : > { %v11516_v43 = vsel %vm13393_vm13, %v13392_v44, %v11442_v38  ;;  %v3294_v6 = vcvt.s32.f32 %v3287_v24  ;;  %v3478_v40 = vadd.s32 1, %v11503_v34  ;;  %v3330_v62 = vand.u32 31, %v3328_v41 }
 0x30d   : > { %v13124_v14 = vand.u32 2147483647, %v11454_v30  ;;  %v3185_v13 = vadd.s32 127, %v3184_v23  ;;  %v3475_v20 = vmul.u32 %v11462_v5, %v3459_v10  ;;  %vm3477_vm9 = vc.u32 %v11508_v32, %v11502_v3 }
 0x30e   : > { %v3324_v38 = vor.u32 8388608, %v11490_v47  ;;  %v11526_v52 = vmul.f32 %v3294_v6, %v3292_v50  ;;  %v3182_v19 = vshrl.u32 %v3164_v4, %v3180_v28  ;;  %v3479_v49 = vsel %vm3477_vm9, %v3478_v40, %v11503_v34 }
 0x30f   : > { %v3331_v61 = vsub.s32 32, %v3330_v62  ;;  %v3186_v15 = vshll.u32 %v3185_v13, 23  ;;  %v3480_v11 = vadd.s32 %v3479_v49, %v3475_v20  ;;  %v3333_v27 = vshll.u32 %v13211_v51, %v3330_v62 }
 0x310   : > { %v3336_v29 = vshll.u32 %v13206_v21, %v3330_v62  ;;  %v3339_v59 = vshll.u32 %v13207_v37, %v3330_v62  ;;  %v3181_v46 = vshll.u32 %v11477_v56, %v3179_v1  ;;  %v3329_v24 = vshrl.u32 %v3328_v41, 5 }
 0x311   : > { %v3334_v26 = vshrl.u32 %v13206_v21, %v3331_v61  ;;  %v3337_v5 = vshrl.u32 %v13207_v37, %v3331_v61  ;;  %v3340_v47 = vshrl.u32 %v13213_v31, %v3331_v61  ;;  %v3481_v60 = vadd.s32 536870912, %v3480_v11 }
 0x312   : > { %v3342_v34 = vshll.u32 %v13213_v31, %v3330_v62  ;;  %v3343_v44 = vshrl.u32 %v13227_v0, %v3331_v61  ;;  %v3345_v28 = vshll.u32 %v13227_v0, %v3330_v62  ;;  %v3346_v23 = vshrl.u32 %v13209_v53, %v3331_v61 }
 0x313   : > { %v3335_v55 = vor.u32 %v3334_v26, %v3333_v27  ;;  %v3338_v50 = vor.u32 %v3337_v5, %v3336_v29  ;;  %v3341_v10 = vor.u32 %v3340_v47, %v3339_v59  ;;  %v11538_v4 = vshrl.u32 %v3481_v60, 30 }
 0x314   : > { %v3364_v6 = vshll.u32 %v3324_v38, 8  ;;  %v13395_v40 = vand.u32 2147483647, %v11029_v22  ;;  %v13396_v56 = vmov 0  ;;  %v3183_v1 = vor.u32 %v3182_v19, %v3181_v46 }
 0x315   : > { %13394 = vst [vmem:[#allocation120_spill] sm:$0xff] %v11538_v4  ;;  %v3187_v41 = vor.u32 4788187, %v3186_v15  ;;  %v3344_v13 = vor.u32 %v3343_v44, %v3342_v34  ;;  %v3631_v20 = vand.u32 2139095040, %v11454_v30  ;;  %v3483_v49 = vshll.u32 %v11538_v4, 30 }
 0x316   : > { %vm11544_vm1 = vcmp.le.f32.partialorder %v13395_v40, 0.7853982  ;;  %v3347_v27 = vor.u32 %v3346_v23, %v3345_v28  ;;  %vm3348_vm12 = vcmp.lt.s32.totalorder %v3329_v24, 1  ;;  %vm3351_vm8 = vcmp.lt.s32.totalorder %v3329_v24, 4 }
 0x317   : > { %v13397_v56 = vsel %vm11544_vm1, 4294967295, %v13396_v56  ;;  %vm3350_vm13 = vcmp.lt.s32.totalorder %v3329_v24, 3  ;;  %v3353_v62 = vsel %vm3351_vm8, %v3341_v10, 2102212464  ;;  %v3356_v38 = vsel %vm3348_vm12, %v3335_v55, %v3338_v50 }
 0x318   : > { %13398 = vst [vmem:[#allocation121_spill] sm:$0xff] %v13397_v56  ;;  %v3357_v29 = vsel %vm3351_vm8, %v3344_v13, 920167782  ;;  %v11551_v26 = vsub.s32 %v3480_v11, %v3483_v49  ;;  %v3332_v5 = vshrl.u32 %v13211_v51, %v3331_v61  ;;  %vm3349_vm9 = vcmp.lt.s32.totalorder %v3329_v24, 2 }
 0x319   : > { %v3358_v19 = vsel %vm3350_vm13, %v3341_v10, %v3357_v29  ;;  %vm13134_vm2 = vcmp.lt.s32.totalorder %v11163_v48, 0  ;;  %v3188_v15 = vand.u32 2147483647, %v3187_v41  ;;  %v3360_v47 = vsel %vm3348_vm12, %v3338_v50, %v3341_v10 }
 0x31a   : > { %v3359_v59 = vsel %vm3349_vm9, %v3356_v38, %v3358_v19  ;;  %v3361_v46 = vsel %vm3351_vm8, %v3347_v27, 1326507024  ;;  %v3486_v60 = vsub.s32 0, %v11551_v26  ;;  %v3352_v34 = vsel %vm3348_vm12, %v3332_v5, %v3335_v55 }
 0x31b   : > { %v3354_v11 = vsel %vm3350_vm13, %v3338_v50, %v3353_v62  ;;  %v3362_v44 = vsel %vm3350_vm13, %v3344_v13, %v3361_v46  ;;  %v3190_v61 = vcvt.s32.f32 %v3183_v1  ;;  %9047 = vcosq.f32 %v11449_v54  ;;  %v572_v13 = vpop.permute.xlu1 %571 }
 0x31c   : > { %v3363_v28 = vsel %vm3349_vm9, %v3360_v47, %v3362_v44  ;;  %v11563_v23 = vmul.u32.u64.low %v3364_v6, %v3359_v59  ;;  %v11564_v40 = vmul.u32.u64.high %v3364_v6, %v3359_v59, %v11563_v23  ;;  %v13399_v10 = vand.u32 2147483647, %v11163_v48 }
 0x31d   : > { %v13400_v41 = vmov 0  ;;  %v8269_v55 = vmin.u32 %v3486_v60, %v11551_v26  ;;  %v11576_v50 = vmul.u32.u64.low %v3364_v6, %v3363_v28  ;;  %v11577_v1 = vmul.u32.u64.high %v3364_v6, %v3363_v28, %v11576_v50 }
 0x31e   : > { %vm11570_vm8 = vcmp.le.f32.partialorder %v13399_v10, 0.7853982  ;;  %9049 = vsinq.f32 %v11449_v54  ;;  %v3191_v49 = vmul.f32 %v3190_v61, %v3188_v15  ;;  %v3355_v27 = vsel %vm3349_vm9, %v3352_v34, %v3354_v11 }
 0x31f   : > { %v13401_v41 = vsel %vm11570_vm8, 4294967295, %v13400_v41  ;;  %v3632_v62 = vshrl.u32 %v3631_v20, 23  ;;  %v2988_v38 = vsel %vm11544_vm1, %v11029_v22, %v11516_v43  ;;  %v3296_v29 = vxor.u32 2147483648, %v11526_v52 }
 0x320   : > { %13402 = vst [vmem:[#allocation122_spill] sm:$0xff] %v13401_v41  ;;  %v3488_v5 = vclz %v8269_v55  ;;  %v3527_v19 = vand.u32 2139095040, %v11457_v17  ;;  %v3374_v59 = vadd.s32 1, %v11564_v40  ;;  %v3635_v54 = vand.u32 8388607, %v13124_v14 }
 0x321   : > { %v8276_v47 = vadd.s32 4294967169, %v3632_v62  ;;  %v11591_v24 = vmul.f32 %v11427_v7, %v572_v13  ;;  %v3371_v15 = vmul.u32 %v3364_v6, %v3355_v27  ;;  %vm3373_vm13 = vc.u32 %v11577_v1, %v11563_v23 }
 0x322   : > { %v8270_v20 = vadd.s32 4294967294, %v3488_v5  ;;  %v3528_v43 = vshrl.u32 %v3527_v19, 23  ;;  %9051 = vcosq.f32 %v2988_v38  ;;  %v3192_v46 = vxor.u32 2147483648, %v3191_v49 }
 0x323   : > { %13403 = vst [vmem:[#allocation123_spill] sm:$0xff] %v11591_v24  ;;  %v3375_v60 = vsel %vm3373_vm13, %v3374_v59, %v11564_v40  ;;  %v3638_v34 = vadd.s32 1, %v8276_v47  ;;  %v3297_v11 = vsel %vm13134_vm2, %v3296_v29, %v11526_v52  ;;  %v3476_v44 = vadd.s32 %v11502_v3, %v11508_v32 }
 0x324   : > { %vm8271_vm9 = vcmp.lt.s32.totalorder %v8270_v20, 0  ;;  %v3376_v61 = vadd.s32 %v3375_v60, %v3371_v15  ;;  %v3636_v6 = vor.u32 8388608, %v3635_v54  ;;  %v13123_v10 = vand.u32 2147483647, %v11457_v17 }
 0x325   : > { %v3491_v28 = vsel %vm8271_vm9, 0, %v8270_v20  ;;  %vm3639_vm12 = vcmp.gt.s32.totalorder %v3638_v34, 0  ;;  %v8272_v27 = vadd.s32 4294967169, %v3528_v43  ;;  %9053 = vsinq.f32 %v2988_v38  ;;  %v11611_v52 = vpop.eup %9047 }
 0x326   : > { %v3492_v55 = vsub.s32 32, %v3491_v28  ;;  %v3496_v50 = vsub.s32 4294967266, %v3491_v28  ;;  %v3377_v13 = vadd.s32 536870912, %v3376_v61  ;;  %v11605_v40 = vsel %vm11570_vm8, %v11163_v48, %v3297_v11  ;;  %13405 = vst [vmem:[#allocation124_spill] sm:$0xff] %v11611_v52 }
 0x327   : > { %vm13404_vm13 = vcmp.lt.s32.totalorder %v11200_v12, 0  ;;  %v3640_v32 = vsel %vm3639_vm12, %v3638_v34, 0  ;;  %v3493_v38 = vshll.u32 %v11551_v26, %v3491_v28  ;;  %v11619_v54 = vshll.u32 %v3636_v6, 8 }
 0x328   : > { %v11609_v3 = vsel %vm13404_vm13, %v3192_v46, %v3191_v49  ;;  %v3494_v62 = vshrl.u32 %v3476_v44, %v3492_v55  ;;  %v3497_v29 = vadd.s32 127, %v3496_v50  ;;  %v11613_v5 = vshrl.u32 %v3377_v13, 30  ;;  %v11616_v59 = vpop.eup %9049 }
 0x329   : > { %13407 = vst [vmem:[#allocation126_spill] sm:$0xff] %v11616_v59  ;;  %v3642_v47 = vand.u32 31, %v3640_v32  ;;  %v11623_v49 = vand.u32 8388607, %v13123_v10  ;;  %v3534_v43 = vadd.s32 1, %v8272_v27  ;;  %v3839_v46 = vand.u32 2139095040, %v11591_v24 }
 0x32a   : > { %13406 = vst [vmem:[#allocation125_spill] sm:$0xff] %v11613_v5  ;;  %v3498_v20 = vshll.u32 %v3497_v29, 23  ;;  %v3379_v15 = vshll.u32 %v11613_v5, 30  ;;  %v3495_v60 = vor.u32 %v3494_v62, %v3493_v38  ;;  %v3641_v34 = vshrl.u32 %v3640_v32, 5 }
 0x32b   : > { %v3643_v11 = vsub.s32 32, %v3642_v47  ;;  %v3645_v44 = vshll.u32 %v13211_v51, %v3642_v47  ;;  %v3648_v28 = vshll.u32 %v13206_v21, %v3642_v47  ;;  %v3651_v6 = vshll.u32 %v13207_v37, %v3642_v47 }
 0x32c   : > { %v3499_v55 = vor.u32 4788187, %v3498_v20  ;;  %v11628_v26 = vsub.s32 %v3376_v61, %v3379_v15  ;;  %v11632_v50 = vpop.eup %9051  ;;  %v3654_v32 = vshll.u32 %v13213_v31, %v3642_v47  ;;  %v3657_v20 = vshll.u32 %v13227_v0, %v3642_v47 }
 0x32d   : > { %13408 = vst [vmem:[#allocation127_spill] sm:$0xff] %v11632_v50  ;;  %v3646_v13 = vshrl.u32 %v13206_v21, %v3643_v11  ;;  %v3649_v27 = vshrl.u32 %v13207_v37, %v3643_v11  ;;  %v3652_v29 = vshrl.u32 %v13213_v31, %v3643_v11  ;;  %v3655_v61 = vshrl.u32 %v13227_v0, %v3643_v11 }
 0x32e   : > { %v3500_v62 = vand.u32 2147483647, %v3499_v55  ;;  %v3382_v38 = vsub.s32 0, %v11628_v26  ;;  %v13409_v15 = vand.u32 2147483647, %v11200_v12  ;;  %v13410_v10 = vmov 0 }
 0x32f   : > { %v3647_v14 = vor.u32 %v3646_v13, %v3645_v44  ;;  %v3650_v19 = vor.u32 %v3649_v27, %v3648_v28  ;;  %v3653_v4 = vor.u32 %v3652_v29, %v3651_v6  ;;  %v3658_v41 = vshrl.u32 %v13209_v53, %v3643_v11  ;;  %v11649_v52 = vpop.eup %9053 }
 0x330   : > { %vm11643_vm12 = vcmp.le.f32.partialorder %v13409_v15, 0.7853982  ;;  %v3502_v5 = vcvt.s32.f32 %v3495_v60  ;;  %v8265_v55 = vmin.u32 %v3382_v38, %v11628_v26  ;;  %v3656_v48 = vor.u32 %v3655_v61, %v3654_v32  ;;  %13413 = vst [vmem:[#allocation129_spill] sm:$0xff] %v11649_v52 }
 0x331   : > { %v13411_v10 = vsel %vm11643_vm12, 4294967295, %v13410_v10  ;;  %v3644_v47 = vshrl.u32 %v13211_v51, %v3643_v11  ;;  %v3659_v59 = vor.u32 %v3658_v41, %v3657_v20  ;;  %vm3660_vm13 = vcmp.lt.s32.totalorder %v3641_v34, 1 }
 0x332   : > { %13412 = vst [vmem:[#allocation128_spill] sm:$0xff] %v13411_v10  ;;  %vm3663_vm2 = vcmp.lt.s32.totalorder %v3641_v34, 4  ;;  %v3503_v15 = vmul.f32 %v3502_v5, %v3500_v62  ;;  %v3384_v44 = vclz %v8265_v55  ;;  %vm3662_vm1 = vcmp.lt.s32.totalorder %v3641_v34, 3 }
 0x333   : > { %v3665_v28 = vsel %vm3663_vm2, %v3653_v4, 2102212464  ;;  %v3668_v6 = vsel %vm3660_vm13, %v3647_v14, %v3650_v19  ;;  %v3669_v60 = vsel %vm3663_vm2, %v3656_v48, 920167782  ;;  %v3672_v13 = vsel %vm3660_vm13, %v3650_v19, %v3653_v4 }
 0x334   : > { %v3673_v27 = vsel %vm3663_vm2, %v3659_v59, 1326507024  ;;  %v8266_v29 = vadd.s32 4294967294, %v3384_v44  ;;  %v3670_v32 = vsel %vm3662_vm1, %v3653_v4, %v3669_v60  ;;  %v3532_v38 = vor.u32 8388608, %v11623_v49 }
 0x335   : > { %v3840_v11 = vshrl.u32 %v3839_v46, 23  ;;  %vm3661_vm9 = vcmp.lt.s32.totalorder %v3641_v34, 2  ;;  %v3664_v41 = vsel %vm3660_vm13, %v3644_v47, %v3647_v14  ;;  %v3666_v61 = vsel %vm3662_vm1, %v3650_v19, %v3665_v28 }
 0x336   : > { %v3674_v20 = vsel %vm3662_vm1, %v3656_v48, %v3673_v27  ;;  %vm8267_vm8 = vcmp.lt.s32.totalorder %v8266_v29, 0  ;;  %v3671_v5 = vsel %vm3661_vm9, %v3668_v6, %v3670_v32  ;;  %vm13414_vm5 = vcmp.gt.s32.totalorder %v3534_v43, 0 }
 0x337   : > { %v3675_v62 = vsel %vm3661_vm9, %v3672_v13, %v3674_v20  ;;  %v3536_v55 = vsel %vm13414_vm5, %v3534_v43, 0  ;;  %v3504_v50 = vxor.u32 2147483648, %v3503_v15  ;;  %v3387_v52 = vsel %vm8267_vm8, 0, %v8266_v29 }
 0x338   : > { %v11659_v56 = vmul.u32.u64.low %v11619_v54, %v3675_v62  ;;  %v11660_v59 = vmul.u32.u64.high %v11619_v54, %v3675_v62, %v11659_v56  ;;  %9055 = vcosq.f32 %v11605_v40  ;;  %v11667_v14 = vsel %vm11643_vm12, %v11200_v12, %v11609_v3 }
 0x339   : > { %v3392_v48 = vsub.s32 4294967266, %v3387_v52  ;;  %v3667_v4 = vsel %vm3661_vm9, %v3664_v41, %v3666_v61  ;;  %v3372_v19 = vadd.s32 %v11563_v23, %v11577_v1  ;;  %v3538_v46 = vand.u32 31, %v3536_v55 }
 0x33a   : > { %v11672_v49 = vmul.u32.u64.low %v11619_v54, %v3671_v5  ;;  %v11673_v43 = vmul.u32.u64.high %v11619_v54, %v3671_v5, %v11672_v49  ;;  %v11676_v34 = vshll.u32 %v3532_v38, 8  ;;  %v8284_v47 = vadd.s32 4294967169, %v3840_v11 }
 0x33b   : > { %v3393_v56 = vadd.s32 127, %v3392_v48  ;;  %v13415_v44 = vand.u32 2147483647, %v11591_v24  ;;  %vm13416_vm5 = vcmp.lt.s32.totalorder %v11353_v45, 0  ;;  %v3388_v6 = vsub.s32 32, %v3387_v52 }
 0x33c   : > { %v11684_v3 = vsel %vm13416_vm5, %v3504_v50, %v3503_v15  ;;  %v3683_v23 = vmul.u32 %v11619_v54, %v3667_v4  ;;  %v3539_v1 = vsub.s32 32, %v3538_v46  ;;  %v3389_v60 = vshll.u32 %v11628_v26, %v3387_v52 }
 0x33d   : > { %v11680_v28 = vand.u32 8388607, %v13415_v44  ;;  %vm3685_vm2 = vc.u32 %v11660_v59, %v11672_v49  ;;  %v3537_v13 = vshrl.u32 %v3536_v55, 5  ;;  %v3541_v27 = vshll.u32 %v13211_v51, %v3538_v46 }
 0x33e   : > { %v3686_v29 = vadd.s32 1, %v11673_v43  ;;  %v3542_v32 = vshrl.u32 %v13206_v21, %v3539_v1  ;;  %v3544_v38 = vshll.u32 %v13206_v21, %v3538_v46  ;;  %v3545_v50 = vshrl.u32 %v13207_v37, %v3539_v1 }
 0x33f   : > { %v3394_v15 = vshll.u32 %v3393_v56, 23  ;;  %v3547_v54 = vshll.u32 %v13207_v37, %v3538_v46  ;;  %v3548_v11 = vshrl.u32 %v13213_v31, %v3539_v1  ;;  %v3550_v52 = vshll.u32 %v13213_v31, %v3538_v46 }
 0x340   : > { %v3687_v26 = vsel %vm3685_vm2, %v3686_v29, %v11673_v43  ;;  %v3543_v41 = vor.u32 %v3542_v32, %v3541_v27  ;;  %v3546_v61 = vor.u32 %v3545_v50, %v3544_v38  ;;  %v3551_v20 = vshrl.u32 %v13227_v0, %v3539_v1 }
 0x341   : > { %v3390_v5 = vshrl.u32 %v3372_v19, %v3388_v6  ;;  %v3688_v62 = vadd.s32 %v3687_v26, %v3683_v23  ;;  %v3549_v55 = vor.u32 %v3548_v11, %v3547_v54  ;;  %vm3556_vm1 = vcmp.lt.s32.totalorder %v3537_v13, 1 }
 0x342   : > { %v3540_v48 = vshrl.u32 %v13211_v51, %v3539_v1  ;;  %v3552_v4 = vor.u32 %v3551_v20, %v3550_v52  ;;  %v3553_v56 = vshll.u32 %v13227_v0, %v3538_v46  ;;  %v3554_v44 = vshrl.u32 %v13209_v53, %v3539_v1  ;;  %v11703_v10 = vpop.eup %9055 }
 0x343   : > { %13417 = vst [vmem:[#allocation130_spill] sm:$0xff] %v11703_v10  ;;  %v3395_v12 = vor.u32 4788187, %v3394_v15  ;;  %v3689_v22 = vadd.s32 536870912, %v3688_v62  ;;  %vm3558_vm8 = vcmp.lt.s32.totalorder %v3537_v13, 3  ;;  %vm3559_vm9 = vcmp.lt.s32.totalorder %v3537_v13, 4 }
 0x344   : > { %v3555_v43 = vor.u32 %v3554_v44, %v3553_v56  ;;  %v3561_v27 = vsel %vm3559_vm9, %v3549_v55, 2102212464  ;;  %v3564_v19 = vsel %vm3556_vm1, %v3543_v41, %v3546_v61  ;;  %v3565_v6 = vsel %vm3559_vm9, %v3552_v4, 920167782  ;;  %v7237_v56 = vld [vmem:[#allocation2 + $0x8] sm:$0xff] }
 0x345   : > { %v3391_v23 = vor.u32 %v3390_v5, %v3389_v60  ;;  %v11706_v29 = vshrl.u32 %v3689_v22, 30  ;;  %vm3557_vm13 = vcmp.lt.s32.totalorder %v3537_v13, 2  ;;  %v3566_v32 = vsel %vm3558_vm8, %v3549_v55, %v3565_v6  ;;  %v567_v60 = vpop.permute.xlu0 %566  ;;  %v7244_v22 = vld [vmem:[#allocation5] sm:$0xff] }
 0x346   : > { %v3560_v46 = vsel %vm3556_vm1, %v3540_v48, %v3543_v41  ;;  %v3567_v1 = vsel %vm3557_vm13, %v3564_v19, %v3566_v32  ;;  %v3568_v38 = vsel %vm3556_vm1, %v3546_v61, %v3549_v55  ;;  %v3569_v50 = vsel %vm3559_vm9, %v3555_v43, 1326507024  ;;  %v7245_v48 = vld [vmem:[#allocation5 + $0x8] sm:$0xff]  ;;  %v7236_v55 = vld [vmem:[#allocation2] sm:$0xff] }
 0x347   : > { %13418 = vst [vmem:[#allocation131_spill] sm:$0xff] %v11706_v29  ;;  %v3691_v15 = vshll.u32 %v11706_v29, 30  ;;  %v3562_v54 = vsel %vm3558_vm8, %v3546_v61, %v3561_v27  ;;  %v3570_v11 = vsel %vm3558_vm8, %v3552_v4, %v3569_v50  ;;  %v3846_v52 = vadd.s32 1, %v8284_v47 }
 0x348   : > { %v3396_v26 = vand.u32 2147483647, %v3395_v12  ;;  %v3571_v20 = vsel %vm3557_vm13, %v3568_v38, %v3570_v11  ;;  %v11717_v5 = vmul.u32.u64.low %v11676_v34, %v3567_v1  ;;  %v11718_v41 = vmul.u32.u64.high %v11676_v34, %v3567_v1, %v11717_v5 }
 0x349   : > { %v11721_v44 = vsub.s32 %v3688_v62, %v3691_v15  ;;  %v11724_v61 = vmul.u32.u64.low %v11676_v34, %v3571_v20  ;;  %v11725_v43 = vmul.u32.u64.high %v11676_v34, %v3571_v20, %v11724_v61  ;;  %v3844_v47 = vor.u32 8388608, %v11680_v28 }
 0x34a   : > { %v3398_v4 = vcvt.s32.f32 %v3391_v23  ;;  %v3563_v12 = vsel %vm3557_vm13, %v3560_v46, %v3562_v54  ;;  %vm3847_vm5 = vcmp.gt.s32.totalorder %v3846_v52, 0  ;;  %v11730_v27 = vmul.f32 %v11427_v7, %v567_v60 }
 0x34b   : > { %v3694_v19 = vsub.s32 0, %v11721_v44  ;;  %v3848_v6 = vsel %vm3847_vm5, %v3846_v52, 0  ;;  %v8699_v32 = vpack.c.bf16 %v7245_v48, %v7244_v22  ;;  %v8715_v1 = vpack.c.bf16 %v7237_v56, %v7236_v55 }
 0x34c   : > { %v11733_v62 = vmul.f32 %v3398_v4, %v3396_v26  ;;  %v3684_v38 = vadd.s32 %v11672_v49, %v11660_v59  ;;  %v3582_v50 = vadd.s32 1, %v11718_v41  ;;  %v3850_v28 = vand.u32 31, %v3848_v6 }
 0x34d   : > { %9057 = vsinq.f32 %v11605_v40  ;;  %v8277_v13 = vmin.u32 %v3694_v19, %v11721_v44  ;;  %v3579_v7 = vmul.u32 %v11676_v34, %v3563_v12  ;;  %vm3581_vm2 = vc.u32 %v11725_v43, %v11717_v5  ;;  %8700 = vmatprep.subr.bf16.mxu1 %v8699_v32  ;;  %8716 = vmatprep.subr.bf16.mxu0 %v8715_v1 }
 0x34e   : > { %v3583_v23 = vsel %vm3581_vm2, %v3582_v50, %v11718_v41  ;;  %v11744_v46 = vshrl.u32 %v3848_v6, 5  ;;  %v3851_v15 = vsub.s32 32, %v3850_v28  ;;  %v11746_v59 = vshll.u32 %v3844_v47, 8  ;;  %8702 = vmatpush3.bf16.msra.mxu1 %v8699_v32  ;;  %8718 = vmatpush3.bf16.msra.mxu0 %v8715_v1 }
 0x34f   : > { %v3696_v49 = vclz %v8277_v13  ;;  %v3584_v40 = vadd.s32 %v3583_v23, %v3579_v7  ;;  %v3853_v54 = vshll.u32 %v13211_v51, %v3850_v28  ;;  %v3856_v52 = vshll.u32 %v13206_v21, %v3850_v28 }
 0x350   : > { %v3854_v11 = vshrl.u32 %v13206_v21, %v3851_v15  ;;  %v3857_v60 = vshrl.u32 %v13207_v37, %v3851_v15  ;;  %v3860_v22 = vshrl.u32 %v13213_v31, %v3851_v15  ;;  %v3859_v41 = vshll.u32 %v13207_v37, %v3850_v28 }
 0x351   : > { %v8278_v26 = vadd.s32 4294967294, %v3696_v49  ;;  %v3585_v20 = vadd.s32 536870912, %v3584_v40  ;;  %v3863_v48 = vshrl.u32 %v13227_v0, %v3851_v15  ;;  %v3862_v56 = vshll.u32 %v13213_v31, %v3850_v28 }
 0x352   : > { %v3855_v55 = vor.u32 %v3854_v11, %v3853_v54  ;;  %v3865_v61 = vshll.u32 %v13227_v0, %v3850_v28  ;;  %v3866_v47 = vshrl.u32 %v13209_v53, %v3851_v15  ;;  %v3852_v12 = vshrl.u32 %v13211_v51, %v3851_v15 }
 0x353   : > { %vm8279_vm1 = vcmp.lt.s32.totalorder %v8278_v26, 0  ;;  %v11759_v4 = vshrl.u32 %v3585_v20, 30  ;;  %v3861_v19 = vor.u32 %v3860_v22, %v3859_v41  ;;  %v3858_v32 = vor.u32 %v3857_v60, %v3856_v52 }
 0x354   : > { %v3699_v6 = vsel %vm8279_vm1, 0, %v8278_v26  ;;  %v3864_v1 = vor.u32 %v3863_v48, %v3862_v56  ;;  %v3867_v50 = vor.u32 %v3866_v47, %v3865_v61  ;;  %vm3868_vm8 = vcmp.lt.s32.totalorder %v11744_v46, 1 }
 0x355   : > { %13419 = vst [vmem:[#allocation132_spill] sm:$0xff] %v11759_v4  ;;  %v3700_v13 = vsub.s32 32, %v3699_v6  ;;  %v3704_v7 = vsub.s32 4294967266, %v3699_v6  ;;  %v3587_v23 = vshll.u32 %v11759_v4, 30  ;;  %v3701_v28 = vshll.u32 %v11721_v44, %v3699_v6 }
 0x356   : > { %vm3870_vm9 = vcmp.lt.s32.totalorder %v11744_v46, 3  ;;  %vm3871_vm13 = vcmp.lt.s32.totalorder %v11744_v46, 4  ;;  %v3872_v15 = vsel %vm3868_vm8, %v3852_v12, %v3855_v55  ;;  %v13421_v22 = vand.u32 2147483647, %v11353_v45 }
 0x357   : > { %v11769_v49 = vpop.eup %9057  ;;  %v3702_v54 = vshrl.u32 %v3684_v38, %v3700_v13  ;;  %v3705_v11 = vadd.s32 127, %v3704_v7  ;;  %v11771_v52 = vsub.s32 %v3584_v40, %v3587_v23  ;;  %v3873_v60 = vsel %vm3871_vm13, %v3861_v19, 2102212464  ;;  %v7247_v13 = vld [vmem:[#allocation5 + $0x18] sm:$0xff] }
 0x358   : > { %13420 = vst [vmem:[#allocation133_spill] sm:$0xff] %v11769_v49  ;;  %vm11775_vm5 = vcmp.le.f32.partialorder %v13421_v22, 0.7853982  ;;  %v13422_v26 = vmov 0  ;;  %v3874_v44 = vsel %vm3870_vm9, %v3858_v32, %v3873_v60  ;;  %v3876_v20 = vsel %vm3868_vm8, %v3855_v55, %v3858_v32  ;;  %v7246_v55 = vld [vmem:[#allocation5 + $0x10] sm:$0xff] }
 0x359   : > { %v13423_v26 = vsel %vm11775_vm5, 4294967295, %v13422_v26  ;;  %v3877_v41 = vsel %vm3871_vm13, %v3864_v1, 920167782  ;;  %v3881_v48 = vsel %vm3871_vm13, %v3867_v50, 1326507024  ;;  %v3706_v56 = vshll.u32 %v3705_v11, 23 }
 0x35a   : > { %v3590_v38 = vsub.s32 0, %v11771_v52  ;;  %vm3869_vm2 = vcmp.lt.s32.totalorder %v11744_v46, 2  ;;  %v3880_v40 = vsel %vm3868_vm8, %v3858_v32, %v3861_v19  ;;  %v3703_v61 = vor.u32 %v3702_v54, %v3701_v28  ;;  %v7238_v28 = vld [vmem:[#allocation2 + $0x10] sm:$0xff]  ;;  %v7248_v54 = vld [vmem:[#allocation5 + $0x20] sm:$0xff] }
 0x35b   : > { %v3878_v47 = vsel %vm3870_vm9, %v3861_v19, %v3877_v41  ;;  %v3882_v12 = vsel %vm3870_vm9, %v3864_v1, %v3881_v48  ;;  %v3735_v6 = vand.u32 2139095040, %v11730_v27  ;;  %vm13153_vm1 = vcmp.lt.s32.totalorder %v11430_v16, 0  ;;  %v7239_v19 = vld [vmem:[#allocation2 + $0x18] sm:$0xff]  ;;  %v7249_v41 = vld [vmem:[#allocation5 + $0x28] sm:$0xff]  ;;  %v7240_v48 = vld [vmem:[#allocation2 + $0x20] sm:$0xff] }
 0x35c   : > { %v3707_v50 = vor.u32 4788187, %v3706_v56  ;;  %v8273_v7 = vmin.u32 %v3590_v38, %v11771_v52  ;;  %v3875_v23 = vsel %vm3869_vm2, %v3872_v15, %v3874_v44  ;;  %v3879_v32 = vsel %vm3869_vm2, %v3876_v20, %v3878_v47  ;;  %v7241_v56 = vld [vmem:[#allocation2 + $0x28] sm:$0xff] }
 0x35d   : > { %v3883_v1 = vsel %vm3869_vm2, %v3880_v40, %v3882_v12  ;;  %v11801_v11 = vmul.u32.u64.low %v11746_v59, %v3879_v32  ;;  %v11802_v60 = vmul.u32.u64.high %v11746_v59, %v3879_v32, %v11801_v11  ;;  %v3736_v22 = vshrl.u32 %v3735_v6, 23 }
 0x35e   : > { %v3708_v38 = vand.u32 2147483647, %v3707_v50  ;;  %v3592_v15 = vclz %v8273_v7  ;;  %v11806_v44 = vmul.u32.u64.low %v11746_v59, %v3883_v1  ;;  %v11807_v20 = vmul.u32.u64.high %v11746_v59, %v3883_v1, %v11806_v44  ;;  %v7250_v1 = vld [vmem:[#allocation5 + $0x30] sm:$0xff] }
 0x35f   : > { %v13424_v47 = vand.u32 2147483647, %v11430_v16  ;;  %v13425_v46 = vmov 0  ;;  %v3710_v40 = vcvt.s32.f32 %v3703_v61  ;;  %v8280_v12 = vadd.s32 4294967169, %v3736_v22  ;;  %v7251_v44 = vld [vmem:[#allocation5 + $0x38] sm:$0xff] }
 0x360   : > { %v8703_v32 = vpack.c.bf16 %v7247_v13, %v7246_v55  ;;  %v8719_v34 = vpack.c.bf16 %v7239_v19, %v7238_v28  ;;  %v8274_v6 = vadd.s32 4294967294, %v3592_v15  ;;  %v13427_v50 = vand.u32 2147483647, %v11730_v27 }
 0x361   : > { %vm11811_vm8 = vcmp.le.f32.partialorder %v13424_v47, 0.7853982  ;;  %v8707_v29 = vpack.c.bf16 %v7249_v41, %v7248_v54  ;;  %v8723_v4 = vpack.c.bf16 %v7241_v56, %v7240_v48  ;;  %v3400_v10 = vxor.u32 2147483648, %v11733_v62 }
 0x362   : > { %v13426_v46 = vsel %vm11811_vm8, 4294967295, %v13425_v46  ;;  %v3739_v7 = vand.u32 8388607, %v13427_v50  ;;  %v3711_v47 = vmul.f32 %v3710_v40, %v3708_v38  ;;  %v3894_v49 = vadd.s32 1, %v11802_v60  ;;  %8704 = vmatprep.subr.bf16.mxu1 %v8703_v32  ;;  %8720 = vmatprep.subr.bf16.mxu0 %v8719_v34 }
 0x363   : > { %v3742_v63 = vadd.s32 1, %v8280_v12  ;;  %v11824_v61 = vsel %vm11775_vm5, %v11353_v45, %v11684_v3  ;;  %vm8275_vm13 = vcmp.lt.s32.totalorder %v8274_v6, 0  ;;  %v3891_v55 = vmul.u32 %v11746_v59, %v3875_v23  ;;  %8706 = vmatpush3.bf16.msra.mxu1 %v8703_v32  ;;  %8722 = vmatpush3.bf16.msra.mxu0 %v8719_v34 }
 0x364   : > { %vm3893_vm2 = vc.u32 %v11807_v20, %v11801_v11  ;;  %v3595_v13 = vsel %vm8275_vm13, 0, %v8274_v6  ;;  %8708 = vmatprep.subr.bf16.mxu1 %v8707_v29  ;;  %8724 = vmatprep.subr.bf16.mxu0 %v8723_v4  ;;  %v8711_v19 = vpack.c.bf16 %v7251_v44, %v7250_v1  ;;  %v3580_v54 = vadd.s32 %v11717_v5, %v11725_v43 }
 0x365   : > { %v3895_v28 = vsel %vm3893_vm2, %v3894_v49, %v11802_v60  ;;  %vm3743_vm9 = vcmp.gt.s32.totalorder %v3742_v63, 0  ;;  %v3596_v3 = vsub.s32 32, %v3595_v13  ;;  %v3600_v22 = vsub.s32 4294967266, %v3595_v13 }
 0x366   : > { %v3740_v41 = vor.u32 8388608, %v3739_v7  ;;  %v3401_v59 = vsel %vm13153_vm1, %v3400_v10, %v11733_v62  ;;  %v3712_v23 = vxor.u32 2147483648, %v3711_v47  ;;  %v3896_v48 = vadd.s32 %v3895_v28, %v3891_v55 }
 0x367   : > { %v3744_v34 = vsel %vm3743_vm9, %v3742_v63, 0  ;;  %9059 = vcosq.f32 %v11667_v14  ;;  %v3598_v49 = vshrl.u32 %v3580_v54, %v3596_v3  ;;  %v3601_v60 = vadd.s32 127, %v3600_v22  ;;  %8710 = vmatpush3.bf16.msra.mxu1 %v8707_v29  ;;  %8726 = vmatpush3.bf16.msra.mxu0 %v8723_v4 }
 0x368   : > { %v11836_v56 = vshrl.u32 %v3744_v34, 5  ;;  %9061 = vsinq.f32 %v11667_v14  ;;  %v3597_v5 = vshll.u32 %v11771_v52, %v3595_v13  ;;  %v3897_v43 = vadd.s32 536870912, %v3896_v48  ;;  %8712 = vmatprep.subr.bf16.mxu1 %v8711_v19 }
 0x369   : > { %v3746_v38 = vand.u32 31, %v3744_v34  ;;  %9063 = vcosq.f32 %v11824_v61  ;;  %v11844_v63 = vsel %vm11811_vm8, %v11430_v16, %v3401_v59  ;;  %v3602_v10 = vshll.u32 %v3601_v60, 23 }
 0x36a   : > { %v11846_v62 = vshll.u32 %v3740_v41, 8  ;;  %vm13428_vm9 = vcmp.lt.s32.totalorder %v11454_v30, 0  ;;  %v3599_v4 = vor.u32 %v3598_v49, %v3597_v5  ;;  %v11850_v14 = vshrl.u32 %v3897_v43, 30 }
 0x36b   : > { %v3713_v29 = vsel %vm13428_vm9, %v3712_v23, %v3711_v47  ;;  %v3747_v52 = vsub.s32 32, %v3746_v38  ;;  %v3603_v15 = vor.u32 4788187, %v3602_v10  ;;  %v3749_v40 = vshll.u32 %v13211_v51, %v3746_v38  ;;  %8714 = vmatpush3.bf16.msra.mxu1 %v8711_v19 }
 0x36c   : > { %13429 = vst [vmem:[#allocation134_spill] sm:$0xff] %v11850_v14  ;;  %v3752_v12 = vshll.u32 %v13206_v21, %v3746_v38  ;;  %v3899_v32 = vshll.u32 %v11850_v14, 30  ;;  %v3755_v7 = vshll.u32 %v13207_v37, %v3746_v38  ;;  %v3758_v44 = vshll.u32 %v13213_v31, %v3746_v38 }
 0x36d   : > { %v3750_v6 = vshrl.u32 %v13206_v21, %v3747_v52  ;;  %v3753_v50 = vshrl.u32 %v13207_v37, %v3747_v52  ;;  %v3756_v1 = vshrl.u32 %v13213_v31, %v3747_v52  ;;  %v3759_v47 = vshrl.u32 %v13227_v0, %v3747_v52 }
 0x36e   : > { %v3761_v55 = vshll.u32 %v13227_v0, %v3746_v38  ;;  %v13430_v13 = vand.u32 2147483647, %v11454_v30  ;;  %v13431_v28 = vmov 0  ;;  %v11869_v19 = vsub.s32 %v3896_v48, %v3899_v32 }
 0x36f   : > { %v3751_v54 = vor.u32 %v3750_v6, %v3749_v40  ;;  %v3754_v3 = vor.u32 %v3753_v50, %v3752_v12  ;;  %v3762_v22 = vshrl.u32 %v13209_v53, %v3747_v52  ;;  %v3604_v41 = vand.u32 2147483647, %v3603_v15 }
 0x370   : > { %vm11865_vm2 = vcmp.le.f32.partialorder %v13430_v13, 0.7853982  ;;  %v3757_v59 = vor.u32 %v3756_v1, %v3755_v7  ;;  %v3760_v23 = vor.u32 %v3759_v47, %v3758_v44  ;;  %v3606_v34 = vcvt.s32.f32 %v3599_v4 }
 0x371   : > { %v13432_v28 = vsel %vm11865_vm2, 4294967295, %v13431_v28  ;;  %v3902_v0 = vsub.s32 0, %v11869_v19  ;;  %v3763_v49 = vor.u32 %v3762_v22, %v3761_v55  ;;  %vm3767_vm1 = vcmp.lt.s32.totalorder %v11836_v56, 4  ;;  %v11875_v60 = vpop.eup %9059 }
 0x372   : > { %vm3766_vm13 = vcmp.lt.s32.totalorder %v11836_v56, 3  ;;  %v3769_v48 = vsel %vm3767_vm1, %v3757_v59, 2102212464  ;;  %vm13433_vm5 = vcmp.lt.s32.totalorder %v11836_v56, 1  ;;  %v3773_v53 = vsel %vm3767_vm1, %v3760_v23, 920167782  ;;  %v11880_v43 = vpop.eup %9061 }
 0x373   : > { %v3772_v5 = vsel %vm13433_vm5, %v3751_v54, %v3754_v3  ;;  %v8285_v38 = vmin.u32 %v3902_v0, %v11869_v19  ;;  %v3748_v10 = vshrl.u32 %v13211_v51, %v3747_v52  ;;  %v3774_v4 = vsel %vm3766_vm13, %v3757_v59, %v3773_v53  ;;  %vm13434_vm9 = vmmov %vm13433_vm5  ;;  %v11888_v40 = vpop.eup %9063 }
 0x374   : > { %v3776_v15 = vsel %vm13434_vm9, %v3754_v3, %v3757_v59  ;;  %v3607_v12 = vmul.f32 %v3606_v34, %v3604_v41  ;;  %vm13435_vm8 = vcmp.lt.s32.totalorder %v11836_v56, 2  ;;  %v3777_v6 = vsel %vm3767_vm1, %v3763_v49, 1326507024 }
 0x375   : > { %v3775_v32 = vsel %vm13435_vm8, %v3772_v5, %v3774_v4  ;;  %v612_v50 = vand.u32 2147483647, %v9555_v8  ;;  %v3904_v7 = vclz %v8285_v38  ;;  %v3768_v1 = vsel %vm13433_vm5, %v3748_v10, %v3751_v54  ;;  %vm13436_vm9 = vmmov %vm13435_vm8 }
 0x376   : > { %v3770_v52 = vsel %vm3766_vm13, %v3754_v3, %v3769_v48  ;;  %v3778_v44 = vsel %vm3766_vm13, %v3760_v23, %v3777_v6  ;;  %9065 = vsinq.f32 %v11824_v61  ;;  %vm13157_vm1 = vcmp.lt.s32.totalorder %v11457_v17, 0 }
 0x377   : > { %v3779_v47 = vsel %vm13436_vm9, %v3776_v15, %v3778_v44  ;;  %v11903_v55 = vmul.u32.u64.low %v11846_v62, %v3775_v32  ;;  %v11904_v13 = vmul.u32.u64.high %v11846_v62, %v3775_v32, %v11903_v55  ;;  %9067 = vcosq.f32 %v11844_v63 }
 0x378   : > { %v8286_v54 = vadd.s32 4294967294, %v3904_v7  ;;  %v11910_v3 = vmul.u32.u64.low %v11846_v62, %v3779_v47  ;;  %v11911_v22 = vmul.u32.u64.high %v11846_v62, %v3779_v47, %v11910_v3  ;;  %v11916_v61 = vsel %vm11865_vm2, %v11454_v30, %v3713_v29 }
 0x379   : > { %v3608_v41 = vxor.u32 2147483648, %v3607_v12  ;;  %v3892_v59 = vadd.s32 %v11801_v11, %v11807_v20  ;;  %v3771_v23 = vsel %vm13435_vm8, %v3768_v1, %v3770_v52  ;;  %v619_v34 = vand.u32 8388607, %v612_v50 }
 0x37a   : > { %vm8287_vm13 = vcmp.lt.s32.totalorder %v8286_v54, 0  ;;  %v630_v0 = vshrl.u32 %v13206_v21, %v9840_v39  ;;  %v633_v49 = vshrl.u32 %v13207_v37, %v9840_v39  ;;  %v3790_v29 = vadd.s32 1, %v11904_v13 }
 0x37b   : > { %v3907_v48 = vsel %vm8287_vm13, 0, %v8286_v54  ;;  %v629_v5 = vshll.u32 %v13211_v51, %v9674_v42  ;;  %v632_v11 = vshll.u32 %v13206_v21, %v9674_v42  ;;  %v3787_v53 = vmul.u32 %v11846_v62, %v3771_v23 }
 0x37c   : > { %v3908_v20 = vsub.s32 32, %v3907_v48  ;;  %v3912_v56 = vsub.s32 4294967266, %v3907_v48  ;;  %v635_v38 = vshll.u32 %v13207_v37, %v9674_v42  ;;  %vm3789_vm5 = vc.u32 %v11911_v22, %v11903_v55 }
 0x37d   : > { %v631_v10 = vor.u32 %v630_v0, %v629_v5  ;;  %v634_v4 = vor.u32 %v633_v49, %v632_v11  ;;  %v636_v15 = vshrl.u32 %v13213_v31, %v9840_v39  ;;  %v3909_v32 = vshll.u32 %v11869_v19, %v3907_v48  ;;  %v7243_v5 = vld [vmem:[#allocation2 + $0x38] sm:$0xff] }
 0x37e   : > { %v3910_v6 = vshrl.u32 %v3892_v59, %v3908_v20  ;;  %v3913_v7 = vadd.s32 127, %v3912_v56  ;;  %v3791_v21 = vsel %vm3789_vm5, %v3790_v29, %v11904_v13  ;;  %v13437_v1 = vand.u32 2147483647, %v11457_v17  ;;  %v7242_v29 = vld [vmem:[#allocation2 + $0x30] sm:$0xff] }
 0x37f   : > { %v3792_v42 = vadd.s32 %v3791_v21, %v3787_v53  ;;  %v620_v37 = vor.u32 8388608, %v619_v34  ;;  %v637_v52 = vor.u32 %v636_v15, %v635_v38  ;;  %vm644_vm8 = vcmp.lt.s32.totalorder %v9635_v36, 1 }
 0x380   : > { %vm11944_vm9 = vcmp.le.f32.partialorder %v13437_v1, 0.7853982  ;;  %v3911_v44 = vor.u32 %v3910_v6, %v3909_v32  ;;  %v3914_v47 = vshll.u32 %v3913_v7, 23  ;;  %vm646_vm13 = vcmp.lt.s32.totalorder %v9635_v36, 3  ;;  %v11952_v19 = vpop.eup %9065 }
 0x381   : > { %v652_v31 = vsel %vm644_vm8, %v631_v10, %v634_v4  ;;  %v3609_v13 = vsel %vm13157_vm1, %v3608_v41, %v3607_v12  ;;  %v3793_v54 = vadd.s32 536870912, %v3792_v42  ;;  %v654_v3 = vsel %vm646_vm13, %v637_v52, %v11015_v57  ;;  %v11961_v23 = vpop.eup %9067 }
 0x382   : > { %v656_v59 = vsel %vm644_vm8, %v634_v4, %v637_v52  ;;  %v3915_v34 = vor.u32 4788187, %v3914_v47  ;;  %v628_v0 = vshrl.u32 %v13211_v51, %v9840_v39  ;;  %vm645_vm5 = vcmp.lt.s32.totalorder %v9635_v36, 2 }
 0x383   : > { %vm13440_vm2 = vcmp.lt.s32.totalorder %v9635_v36, 4  ;;  %v11968_v12 = vshrl.u32 %v3793_v54, 30  ;;  %v655_v41 = vsel %vm645_vm5, %v652_v31, %v654_v3  ;;  %v658_v57 = vsel %vm646_vm13, %v10314_v58, %v11023_v18 }
 0x384   : > { %v649_v49 = vsel %vm13440_vm2, %v637_v52, 2102212464  ;;  %v660_v48 = vshll.u32 %v620_v37, 8  ;;  %v3916_v11 = vand.u32 2147483647, %v3915_v34  ;;  %v3918_v39 = vcvt.s32.f32 %v3911_v44 }
 0x385   : > { %v648_v51 = vsel %vm644_vm8, %v628_v0, %v631_v10  ;;  %v659_v20 = vsel %vm645_vm5, %v656_v59, %v658_v57  ;;  %v3795_v56 = vshll.u32 %v11968_v12, 30  ;;  %v650_v53 = vsel %vm646_vm13, %v634_v4, %v649_v49  ;;  %v13445_v4 = vld [vmem:[#allocation17_spill] sm:$0xff] }
 0x386   : > { %v11983_v38 = vmul.u32.u64.low %v660_v48, %v659_v20  ;;  %v11984_v15 = vmul.u32.u64.high %v660_v48, %v659_v20, %v11983_v38  ;;  %v3919_v58 = vmul.f32 %v3918_v39, %v3916_v11  ;;  %v8727_v6 = vpack.c.bf16 %v7243_v5, %v7242_v29  ;;  %v13451_v5 = vld [vmem:[#allocation11_spill] sm:$0xff]  ;;  %v13453_v20 = vld [vmem:[#allocation36_spill] sm:$0xff] }
 0x387   : > { %v11986_v18 = vmul.u32.u64.low %v660_v48, %v655_v41  ;;  %v11987_v32 = vmul.u32.u64.high %v660_v48, %v655_v41, %v11986_v18  ;;  %9069 = vsinq.f32 %v11844_v63  ;;  %v13441_v10 = vand.u32 2147483647, %v11591_v24  ;;  %v13446_v63 = vld [vmem:[#allocation14_spill] sm:$0xff]  ;;  %v13450_v41 = vld [vmem:[#allocation40_spill] sm:$0xff] }
 0x388   : > { %v13442_v7 = vmov 0  ;;  %v11997_v21 = vsub.s32 %v3792_v42, %v3795_v56  ;;  %v802_v1 = vsub.s32 4, %v13445_v4  ;;  %9071 = vcosq.f32 %v11916_v61  ;;  %8728 = vmatprep.subr.bf16.mxu0 %v8727_v6  ;;  %v13447_v42 = vld [vmem:[#allocation13_spill] sm:$0xff] }
 0x389   : > { %vm11993_vm2 = vcmp.le.f32.partialorder %v13441_v10, 0.7853982  ;;  %v3612_v37 = vsel %vm11944_vm9, %v11457_v17, %v3609_v13  ;;  %v651_v52 = vsel %vm645_vm5, %v648_v51, %v650_v53  ;;  %v906_v44 = vsub.s32 4, %v13446_v63  ;;  %8730 = vmatpush3.bf16.msra.mxu0 %v8727_v6  ;;  %v13488_v53 = vld [vmem:[#allocation21_spill] sm:$0xff] }
 0x38a   : > { %v13443_v7 = vsel %vm11993_vm2, 4294967295, %v13442_v7  ;;  %v3920_v47 = vxor.u32 2147483648, %v3919_v58  ;;  %v3798_v31 = vsub.s32 0, %v11997_v21  ;;  %vm669_vm8 = vc.u32 %v11984_v15, %v11986_v18 }
 0x38b   : > { %13444 = vst [vmem:[#allocation135_spill] sm:$0xff] %v13443_v7  ;;  %vm13448_vm13 = vcmp.lt.s32.totalorder %v13447_v42, 0  ;;  %9073 = vsinq.f32 %v11916_v61  ;;  %vm13158_vm1 = vcmp.lt.s32.totalorder %v11591_v24, 0  ;;  %v670_v36 = vadd.s32 1, %v11987_v32 }
 0x38c   : > { %v803_v54 = vsel %vm13448_vm13, %v802_v1, %v13445_v4  ;;  %9075 = vcosq.f32 %v3612_v37  ;;  %v8281_v59 = vmin.u32 %v3798_v31, %v11997_v21  ;;  %v667_v34 = vmul.u32 %v660_v48, %v651_v52 }
 0x38d   : > { %v805_v3 = vsel %vm9811_vm6, 0, %v803_v54  ;;  %v671_v49 = vsel %vm669_vm8, %v670_v36, %v11987_v32  ;;  %v813_v57 = vxor.u32 2147483648, %v13450_v41  ;;  %vm13452_vm5 = vcmp.lt.s32.totalorder %v13451_v5, 0 }
 0x38e   : > { %v809_v0 = vadd.s32 3, %v805_v3  ;;  %v4136_v29 = vand.u32 3, %v805_v3  ;;  %v907_v61 = vsel %vm13452_vm5, %v906_v44, %v13446_v63  ;;  %v3921_v11 = vsel %vm13158_vm1, %v3920_v47, %v3919_v58  ;;  %v13458_v47 = vld [vmem:[#allocation26_spill] sm:$0xff] }
 0x38f   : > { %v3800_v39 = vclz %v8281_v59  ;;  %v672_v51 = vadd.s32 %v671_v49, %v667_v34  ;;  %v816_v56 = vxor.u32 2147483648, %v13453_v20  ;;  %9077 = vsinq.f32 %v3612_v37 }
 0x390   : > { %v3788_v48 = vadd.s32 %v11903_v55, %v11911_v22  ;;  %vm12031_vm6 = vcmp.le.f32.partialorder %v612_v50, 0.7853982  ;;  %v810_v6 = vand.u32 3, %v809_v0  ;;  %v909_v10 = vsel %vm9717_vm4, 0, %v907_v61  ;;  %v13457_v55 = vld [vmem:[#allocation31_spill] sm:$0xff] }
 0x391   : > { %v8282_v38 = vadd.s32 4294967294, %v3800_v39  ;;  %v673_v32 = vadd.s32 536870912, %v672_v51  ;;  %v3924_v4 = vsel %vm11993_vm2, %v11591_v24, %v3921_v11  ;;  %vm4138_vm13 = vcmp.eq.s32.totalorder %v4136_v29, 0  ;;  %v12042_v50 = vpop.eup %9069 }
 0x392   : > { %vm4141_vm5 = vcmp.eq.s32.totalorder %v4136_v29, 2  ;;  %v4140_v37 = vsel %vm4138_vm13, %v13453_v20, %v813_v57  ;;  %v12046_v63 = vpop.eup %9071  ;;  %vm4137_vm4 = vcmp.lt.s32.totalorder %v4136_v29, 2  ;;  %v920_v31 = vxor.u32 2147483648, %v13458_v47 }
 0x393   : > { %vm8283_vm1 = vcmp.lt.s32.totalorder %v8282_v38, 0  ;;  %v674_v1 = vshrl.u32 %v673_v32, 30  ;;  %v4143_v52 = vsel %vm4141_vm5, %v816_v56, %v13450_v41  ;;  %v4239_v54 = vand.u32 3, %v909_v10 }
 0x394   : > { %v3803_v44 = vsel %vm8283_vm1, 0, %v8282_v38  ;;  %vm808_vm8 = vweird.f32 %v13447_v42  ;;  %vm812_vm2 = vcmp.eq.s32.totalorder %v810_v6, 0  ;;  %v4144_v0 = vsel %vm4137_vm4, %v4140_v37, %v4143_v52 }
 0x395   : > { %v3804_v36 = vsub.s32 32, %v3803_v44  ;;  %v3808_v13 = vsub.s32 4294967266, %v3803_v44  ;;  %v675_v3 = vshll.u32 %v674_v1, 30  ;;  %v12050_v59 = vpop.eup %9073  ;;  %v698_v34 = vsub.s32 4, %v674_v1 }
 0x396   : > { %v814_v49 = vsel %vm812_vm2, %v13453_v20, %v813_v57  ;;  %vm815_vm13 = vcmp.eq.s32.totalorder %v810_v6, 2  ;;  %v12053_v61 = vpop.eup %9075  ;;  %v913_v38 = vadd.s32 3, %v909_v10  ;;  %v3805_v32 = vshll.u32 %v11997_v21, %v3803_v44 }
 0x397   : > { %v3806_v11 = vshrl.u32 %v3788_v48, %v3804_v36  ;;  %v3809_v29 = vadd.s32 127, %v3808_v13  ;;  %v12055_v39 = vsub.s32 %v672_v51, %v675_v3  ;;  %vm13459_vm1 = vcmp.lt.s32.totalorder %v9555_v8, 0 }
 0x398   : > { %v699_v58 = vsel %vm13459_vm1, %v698_v34, %v674_v1  ;;  %v817_v22 = vsel %vm815_vm13, %v816_v56, %v13450_v41  ;;  %vm4241_vm5 = vcmp.eq.s32.totalorder %v4239_v54, 0  ;;  %vm4244_vm2 = vcmp.eq.s32.totalorder %v4239_v54, 2 }
 0x399   : > { %v3810_v7 = vshll.u32 %v3809_v29, 23  ;;  %v678_v37 = vsub.s32 0, %v12055_v39  ;;  %v701_v57 = vsel %vm12031_vm6, 0, %v699_v58  ;;  %v12064_v20 = vpop.eup %9077  ;;  %v3807_v51 = vor.u32 %v3806_v11, %v3805_v32 }
 0x39a   : > { %vm811_vm4 = vcmp.lt.s32.totalorder %v810_v6, 2  ;;  %v13460_v48 = vxor.u32 2147483648, %v13457_v55  ;;  %v4246_v10 = vsel %vm4244_vm2, %v920_v31, %v13457_v55  ;;  %v914_v52 = vand.u32 3, %v913_v38  ;;  %v13463_v38 = vld [vmem:[#allocation12_spill] sm:$0xff] }
 0x39b   : > { %v3811_v1 = vor.u32 4788187, %v3810_v7  ;;  %v8161_v41 = vmin.u32 %v678_v37, %v12055_v39  ;;  %v818_v56 = vsel %vm811_vm4, %v814_v49, %v817_v22  ;;  %v668_v44 = vadd.s32 %v11986_v18, %v11984_v15 }
 0x39c   : > { %v4243_v21 = vsel %vm4241_vm5, %v13458_v47, %v13460_v48  ;;  %v705_v36 = vadd.s32 3, %v701_v57  ;;  %vm13161_vm13 = vweird.f32 %v13451_v5  ;;  %vm4240_vm1 = vcmp.lt.s32.totalorder %v4239_v54, 2  ;;  %v13461_v54 = vld [vmem:[#allocation16_spill] sm:$0xff] }
 0x39d   : > { %9079 = vcosq.f32 %v3924_v4  ;;  %v3812_v6 = vand.u32 2147483647, %v3811_v1  ;;  %v680_v13 = vclz %v8161_v41  ;;  %v4247_v3 = vsel %vm4240_vm1, %v4243_v21, %v4246_v10 }
 0x39e   : > { %9081 = vsinq.f32 %v3924_v4  ;;  %v3814_v34 = vcvt.s32.f32 %v3807_v51  ;;  %v12076_v7 = vsel %vm808_vm8, nan, %v4144_v0  ;;  %v12080_v22 = vsel %vm808_vm8, nan, %v818_v56  ;;  %v13471_v56 = vld [vmem:[#allocation34_spill] sm:$0xff] }
 0x39f   : > { %v8162_v15 = vadd.s32 4294967294, %v680_v13  ;;  %v12083_v18 = vand.u32 3, %v701_v57  ;;  %vm915_vm2 = vcmp.lt.s32.totalorder %v914_v52, 2  ;;  %v1010_v49 = vsub.s32 4, %v13461_v54 }
 0x3a0   : > { %v3815_v11 = vmul.f32 %v3814_v34, %v3812_v6  ;;  %v12086_v29 = vand.u32 3, %v705_v36  ;;  %v12090_v4 = vsel %vm13161_vm13, nan, %v4247_v3  ;;  %vm916_vm4 = vcmp.eq.s32.totalorder %v914_v52, 0  ;;  %v13472_v6 = vld [vmem:[#allocation32_spill] sm:$0xff] }
 0x3a1   : > { %vm8163_vm1 = vcmp.lt.s32.totalorder %v8162_v15, 0  ;;  %v13462_v42 = vmov %v13460_v48  ;;  %vm919_vm8 = vcmp.eq.s32.totalorder %v914_v52, 2  ;;  %vm13464_vm5 = vcmp.lt.s32.totalorder %v13463_v38, 0  ;;  %v13466_v48 = vld [vmem:[#allocation22_spill] sm:$0xff] }
 0x3a2   : > { %v918_v0 = vsel %vm916_vm4, %v13458_v47, %v13462_v42  ;;  %v1011_v32 = vsel %vm13464_vm5, %v1010_v49, %v13461_v54  ;;  %v683_v58 = vsel %vm8163_vm1, 0, %v8162_v15  ;;  %v921_v37 = vsel %vm919_vm8, %v920_v31, %v13457_v55  ;;  %v13473_v31 = vld [vmem:[#allocation18_spill] sm:$0xff] }
 0x3a3   : > { %v1013_v51 = vsel %vm9791_vm0, 0, %v1011_v32  ;;  %v1114_v21 = vsub.s32 4, %v13466_v48  ;;  %v13467_v10 = vand.u32 2147483647, %v11730_v27  ;;  %v13468_v1 = vmov 0 }
 0x3a4   : > { %v684_v47 = vsub.s32 32, %v683_v58  ;;  %v688_v41 = vsub.s32 4294967266, %v683_v58  ;;  %v1021_v36 = vxor.u32 2147483648, %v13471_v56  ;;  %v1024_v13 = vxor.u32 2147483648, %v13472_v6 }
 0x3a5   : > { %vm12104_vm13 = vcmp.le.f32.partialorder %v13467_v10, 0.7853982  ;;  %v3816_v3 = vxor.u32 2147483648, %v3815_v11  ;;  %v4342_v34 = vand.u32 3, %v1013_v51  ;;  %v1017_v55 = vadd.s32 3, %v1013_v51 }
 0x3a6   : > { %v13469_v1 = vsel %vm12104_vm13, 4294967295, %v13468_v1  ;;  %vm13474_vm0 = vcmp.lt.s32.totalorder %v13473_v31, 0  ;;  %v685_v54 = vshll.u32 %v12055_v39, %v683_v58  ;;  %v686_v49 = vshrl.u32 %v668_v44, %v684_v47 }
 0x3a7   : > { %13470 = vst [vmem:[#allocation17_spill] sm:$0xff] %v13469_v1  ;;  %v1115_v15 = vsel %vm13474_vm0, %v1114_v21, %v13466_v48  ;;  %v689_v42 = vadd.s32 127, %v688_v41  ;;  %v922_v32 = vsel %vm915_vm2, %v918_v0, %v921_v37  ;;  %vm1016_vm5 = vweird.f32 %v13463_v38  ;;  %v12118_v24 = vpop.eup %9079 }
 0x3a8   : > { %vm4343_vm4 = vcmp.lt.s32.totalorder %v4342_v34, 2  ;;  %vm4344_vm1 = vcmp.eq.s32.totalorder %v4342_v34, 0  ;;  %vm4347_vm8 = vcmp.eq.s32.totalorder %v4342_v34, 2  ;;  %v1117_v10 = vsel %vm10063_vm7, 0, %v1115_v15  ;;  %13476 = vst [vmem:[#allocation14_spill] sm:$0xff] %v12118_v24  ;;  %v12122_v44 = vpop.eup %9081 }
 0x3a9   : > { %v687_v51 = vor.u32 %v686_v49, %v685_v54  ;;  %v690_v14 = vshll.u32 %v689_v42, 23  ;;  %v4346_v48 = vsel %vm4344_vm1, %v13472_v6, %v1021_v36  ;;  %v4349_v39 = vsel %vm4347_vm8, %v1024_v13, %v13471_v56  ;;  %13477 = vst [vmem:[#allocation13_spill] sm:$0xff] %v12122_v44 }
 0x3aa   : > { %vm13478_vm2 = vcmp.lt.s32.totalorder %v11730_v27, 0  ;;  %vm13479_vm0 = vweird.f32 %v13451_v5  ;;  %v4350_v58 = vsel %vm4343_vm4, %v4346_v48, %v4349_v39  ;;  %v1018_v37 = vand.u32 3, %v1017_v55  ;;  %v13481_v48 = vld [vmem:[#allocation45_spill] sm:$0xff] }
 0x3ab   : > { %v3817_v52 = vsel %vm13478_vm2, %v3816_v3, %v3815_v11  ;;  %v12128_v0 = vsel %vm13479_vm0, nan, %v922_v32  ;;  %v691_v21 = vor.u32 4788187, %v690_v14  ;;  %v694_v47 = vcvt.s32.f32 %v687_v51 }
 0x3ac   : > { %v1125_v41 = vxor.u32 2147483648, %v10216_v2  ;;  %v1128_v34 = vxor.u32 2147483648, %v10213_v9  ;;  %vm1019_vm7 = vcmp.lt.s32.totalorder %v1018_v37, 2  ;;  %vm1020_vm1 = vcmp.eq.s32.totalorder %v1018_v37, 0 }
 0x3ad   : > { %vm1023_vm8 = vcmp.eq.s32.totalorder %v1018_v37, 2  ;;  %v4445_v15 = vand.u32 3, %v1117_v10  ;;  %v692_v54 = vand.u32 2147483647, %v691_v21  ;;  %v1022_v49 = vsel %vm1020_vm1, %v13472_v6, %v1021_v36  ;;  %v13480_v6 = vld [vmem:[#allocation20_spill] sm:$0xff] }
 0x3ae   : > { %v1025_v11 = vsel %vm1023_vm8, %v1024_v13, %v13471_v56  ;;  %v1121_v5 = vadd.s32 3, %v1117_v10  ;;  %v12137_v3 = vsel %vm12104_vm13, %v11730_v27, %v3817_v52  ;;  %vm1120_vm0 = vweird.f32 %v13473_v31  ;;  %v13482_v52 = vld [vmem:[#allocation15_spill] sm:$0xff] }
 0x3af   : > { %v1026_v14 = vsel %vm1019_vm7, %v1022_v49, %v1025_v11  ;;  %vm4447_vm4 = vcmp.eq.s32.totalorder %v4445_v15, 0  ;;  %vm4450_vm2 = vcmp.eq.s32.totalorder %v4445_v15, 2  ;;  %v695_v55 = vmul.f32 %v694_v47, %v692_v54 }
 0x3b0   : > { %v4449_v42 = vsel %vm4447_vm4, %v10213_v9, %v1125_v41  ;;  %v4452_v32 = vsel %vm4450_vm2, %v1128_v34, %v10216_v2  ;;  %v12144_v36 = vsel %vm1016_vm5, nan, %v4350_v58  ;;  %vm4446_vm1 = vcmp.lt.s32.totalorder %v4445_v15, 2  ;;  %v13484_v58 = vld [vmem:[#allocation43_spill] sm:$0xff] }
 0x3b1   : > { %v1122_v56 = vand.u32 3, %v1121_v5  ;;  %v1218_v13 = vsub.s32 4, %v13480_v6  ;;  %v696_v57 = vxor.u32 2147483648, %v695_v55  ;;  %v12149_v10 = vsel %vm1016_vm5, nan, %v1026_v14 }
 0x3b2   : > { %v4453_v51 = vsel %vm4446_vm1, %v4449_v42, %v4452_v32  ;;  %v1229_v39 = vxor.u32 2147483648, %v13481_v48  ;;  %vm13483_vm4 = vcmp.lt.s32.totalorder %v13482_v52, 0  ;;  %v1232_v21 = vxor.u32 2147483648, %v13484_v58  ;;  %v13487_v32 = vld [vmem:[#allocation30_spill] sm:$0xff] }
 0x3b3   : > { %vm1124_vm7 = vcmp.eq.s32.totalorder %v1122_v56, 0  ;;  %vm1127_vm8 = vcmp.eq.s32.totalorder %v1122_v56, 2  ;;  %v1219_v37 = vsel %vm13483_vm4, %v1218_v13, %v13480_v6  ;;  %vm13485_vm2 = vcmp.lt.s32.totalorder %v9555_v8, 0 }
 0x3b4   : > { %v697_v47 = vsel %vm13485_vm2, %v696_v57, %v695_v55  ;;  %v1126_v15 = vsel %vm1124_vm7, %v10213_v9, %v1125_v41  ;;  %v1129_v38 = vsel %vm1127_vm8, %v1128_v34, %v10216_v2  ;;  %v1221_v49 = vsel %vm9972_vm10, 0, %v1219_v37  ;;  %v13498_v57 = vld [vmem:[#allocation39_spill] sm:$0xff] }
 0x3b5   : > { %v700_v11 = vsel %vm12031_vm6, %v9555_v8, %v697_v47  ;;  %vm1123_vm5 = vcmp.lt.s32.totalorder %v1122_v56, 2  ;;  %v4548_v5 = vand.u32 3, %v1221_v49  ;;  %v1225_v14 = vadd.s32 3, %v1221_v49  ;;  %v13491_v47 = vld [vmem:[#allocation56_spill] sm:$0xff] }
 0x3b6   : > { %9083 = vcosq.f32 %v700_v11  ;;  %v1130_v42 = vsel %vm1123_vm5, %v1126_v15, %v1129_v38  ;;  %vm1224_vm1 = vweird.f32 %v13482_v52  ;;  %v1322_v55 = vsub.s32 4, %v13487_v32  ;;  %v13492_v38 = vld [vmem:[#allocation55_spill] sm:$0xff] }
 0x3b7   : > { %9085 = vsinq.f32 %v700_v11  ;;  %vm4549_vm7 = vcmp.lt.s32.totalorder %v4548_v5, 2  ;;  %vm4550_vm4 = vcmp.eq.s32.totalorder %v4548_v5, 0  ;;  %vm4553_vm8 = vcmp.eq.s32.totalorder %v4548_v5, 2 }
 0x3b8   : > { %v4552_v9 = vsel %vm4550_vm4, %v13484_v58, %v1229_v39  ;;  %v4555_v2 = vsel %vm4553_vm8, %v1232_v21, %v13481_v48  ;;  %v1226_v41 = vand.u32 3, %v1225_v14  ;;  %vm13489_vm10 = vcmp.lt.s32.totalorder %v13488_v53, 0  ;;  %v13493_v14 = vld [vmem:[#allocation25_spill] sm:$0xff] }
 0x3b9   : > { %v1323_v34 = vsel %vm13489_vm10, %v1322_v55, %v13487_v32  ;;  %v12174_v56 = vsel %vm1120_vm0, nan, %v4453_v51  ;;  %v12178_v6 = vsel %vm1120_vm0, nan, %v1130_v42  ;;  %v4556_v13 = vsel %vm4549_vm7, %v4552_v9, %v4555_v2  ;;  %v13494_v32 = vld [vmem:[#allocation19_spill] sm:$0xff] }
 0x3ba   : > { %v1325_v37 = vsel %vm10242_vm3, 0, %v1323_v34  ;;  %vm1228_vm5 = vcmp.eq.s32.totalorder %v1226_v41, 0  ;;  %vm1231_vm4 = vcmp.eq.s32.totalorder %v1226_v41, 2  ;;  %v1333_v15 = vxor.u32 2147483648, %v13491_v47  ;;  %v13497_v34 = vld [vmem:[#allocation50_spill] sm:$0xff] }
 0x3bb   : > { %v1336_v54 = vxor.u32 2147483648, %v13492_v38  ;;  %v1230_v31 = vsel %vm1228_vm5, %v13484_v58, %v1229_v39  ;;  %v1233_v51 = vsel %vm1231_vm4, %v1232_v21, %v13481_v48  ;;  %v4651_v49 = vand.u32 3, %v1325_v37 }
 0x3bc   : > { %v1329_v11 = vadd.s32 3, %v1325_v37  ;;  %vm4034_vm3 = vcmp.lt.s32.totalorder %v12083_v18, 2  ;;  %vm707_vm7 = vcmp.lt.s32.totalorder %v12086_v29, 2  ;;  %v12194_v5 = vsel %vm1224_vm1, nan, %v4556_v13 }
 0x3bd   : > { %vm1227_vm2 = vcmp.lt.s32.totalorder %v1226_v41, 2  ;;  %vm13169_vm8 = vweird.f32 %v13488_v53  ;;  %v1426_v42 = vsub.s32 4, %v13493_v14  ;;  %vm704_vm5 = vweird.f32 %v9555_v8  ;;  %v13513_v8 = vld [vmem:[#allocation66_spill] sm:$0xff] }
 0x3be   : > { %v1234_v39 = vsel %vm1227_vm2, %v1230_v31, %v1233_v51  ;;  %vm4652_vm4 = vcmp.lt.s32.totalorder %v4651_v49, 2  ;;  %vm4653_vm10 = vcmp.eq.s32.totalorder %v4651_v49, 0  ;;  %vm4656_vm6 = vcmp.eq.s32.totalorder %v4651_v49, 2  ;;  %v13499_v49 = vld [vmem:[#allocation49_spill] sm:$0xff] }
 0x3bf   : > { %v4655_v48 = vsel %vm4653_vm10, %v13492_v38, %v1333_v15  ;;  %v4658_v58 = vsel %vm4656_vm6, %v1336_v54, %v13491_v47  ;;  %v1330_v21 = vand.u32 3, %v1329_v11  ;;  %vm13495_vm0 = vcmp.lt.s32.totalorder %v13494_v32, 0 }
 0x3c0   : > { %v1427_v55 = vsel %vm13495_vm0, %v1426_v42, %v13493_v14  ;;  %v4659_v9 = vsel %vm4652_vm4, %v4655_v48, %v4658_v58  ;;  %v1437_v13 = vxor.u32 2147483648, %v13497_v34  ;;  %v1530_v37 = vsub.s32 4, %v13498_v57  ;;  %v9084_v31 = vpop.eup %9083 }
 0x3c1   : > { %v1429_v41 = vsel %vm10142_vm11, 0, %v1427_v55  ;;  %v12210_v51 = vsel %vm1224_vm1, nan, %v1234_v39  ;;  %vm1332_vm2 = vcmp.eq.s32.totalorder %v1330_v21, 0  ;;  %vm1335_vm6 = vcmp.eq.s32.totalorder %v1330_v21, 2  ;;  %v9086_v24 = vpop.eup %9085 }
 0x3c2   : > { %v1440_v11 = vxor.u32 2147483648, %v13499_v49  ;;  %v712_v44 = vxor.u32 2147483648, %v9084_v31  ;;  %v1334_v14 = vsel %vm1332_vm2, %v13492_v38, %v1333_v15  ;;  %v1337_v42 = vsel %vm1335_vm6, %v1336_v54, %v13491_v47  ;;  %v13502_v15 = vld [vmem:[#allocation29_spill] sm:$0xff] }
 0x3c3   : > { %v4754_v48 = vand.u32 3, %v1429_v41  ;;  %v709_v58 = vxor.u32 2147483648, %v9086_v24  ;;  %v12218_v55 = vsel %vm13169_vm8, nan, %v4659_v9  ;;  %vm1331_vm1 = vcmp.lt.s32.totalorder %v1330_v21, 2 }
 0x3c4   : > { %v1433_v52 = vadd.s32 3, %v1429_v41  ;;  %vm13500_vm10 = vcmp.eq.s32.totalorder %v12083_v18, 2  ;;  %vm13501_vm0 = vcmp.eq.s32.totalorder %v12086_v29, 2  ;;  %v1338_v1 = vsel %vm1331_vm1, %v1334_v14, %v1337_v42  ;;  %v13510_v42 = vld [vmem:[#allocation67_spill] sm:$0xff] }
 0x3c5   : > { %v4040_v39 = vsel %vm13500_vm10, %v712_v44, %v9086_v24  ;;  %v713_v2 = vsel %vm13501_vm0, %v712_v44, %v9086_v24  ;;  %vm13503_vm4 = vcmp.lt.s32.totalorder %v13502_v15, 0  ;;  %vm13504_vm2 = vcmp.eq.s32.totalorder %v12083_v18, 0 }
 0x3c6   : > { %v1531_v47 = vsel %vm13503_vm4, %v1530_v37, %v13498_v57  ;;  %v4037_v38 = vsel %vm13504_vm2, %v9084_v31, %v709_v58  ;;  %vm13505_vm6 = vcmp.eq.s32.totalorder %v12086_v29, 0  ;;  %vm4756_vm11 = vcmp.eq.s32.totalorder %v4754_v48, 0 }
 0x3c7   : > { %v710_v54 = vsel %vm13505_vm6, %v9084_v31, %v709_v58  ;;  %vm4759_vm8 = vcmp.eq.s32.totalorder %v4754_v48, 2  ;;  %v4041_v21 = vsel %vm4034_vm3, %v4037_v38, %v4040_v39  ;;  %v4758_v24 = vsel %vm4756_vm11, %v13499_v49, %v1437_v13  ;;  %v13530_v31 = vld [vmem:[#allocation38_spill] sm:$0xff] }
 0x3c8   : > { %v714_v9 = vsel %vm707_vm7, %v710_v54, %v713_v2  ;;  %v4761_v44 = vsel %vm4759_vm8, %v1440_v11, %v13497_v34  ;;  %v4042_v41 = vsel %vm704_vm5, nan, %v4041_v21  ;;  %vm4755_vm1 = vcmp.lt.s32.totalorder %v4754_v48, 2  ;;  %v13517_v2 = vld [vmem:[#allocation35_spill] sm:$0xff] }
 0x3c9   : > { %v715_v57 = vsel %vm704_vm5, nan, %v714_v9  ;;  %v1434_v37 = vand.u32 3, %v1433_v52  ;;  %vm13506_vm10 = vcmask 523264   ;;  %vm13508_vm3 = vweird.f32 %v13488_v53  ;;  %v13526_v9 = vld [vmem:[#allocation47_spill] sm:$0xff] }
 0x3ca   : > { %8587 = vmatprep.mubr.msk.f32.mxu1 %vm13506_vm10, %v4042_v41  ;;  %vm13507_vm0 = vmmov %vm13506_vm10  ;;  %v1339_v18 = vsel %vm13508_vm3, nan, %v1338_v1  ;;  %v4762_v29 = vsel %vm4755_vm1, %v4758_v24, %v4761_v44  ;;  %v1533_v14 = vsel %vm10418_vm15, 0, %v1531_v47  ;;  %v1541_v58 = vxor.u32 2147483648, %v13510_v42  ;;  %v13527_v44 = vld [vmem:[#allocation63_spill] sm:$0xff] }
 0x3cb   : > { %8651 = vmatprep.mubr.msk.f32.mxu0 %vm13507_vm0, %v715_v57  ;;  %vm13511_vm8 = vmmov %vm13507_vm0  ;;  %vm1435_vm5 = vcmp.lt.s32.totalorder %v1434_v37, 2  ;;  %vm1436_vm11 = vcmp.eq.s32.totalorder %v1434_v37, 0  ;;  %vm1439_vm4 = vcmp.eq.s32.totalorder %v1434_v37, 2  ;;  %v1544_v48 = vxor.u32 2147483648, %v13513_v8 }
 0x3cc   : > { %8588 = vmatmul.mubr.msk.f32.vlgmr.msra.gmra.mrb[0].mxu1 %vm13511_vm8, %v12076_v7  ;;  %vm13512_vm7 = vmmov %vm13507_vm0  ;;  %v1438_v1 = vsel %vm1436_vm11, %v13499_v49, %v1437_v13  ;;  %v1441_v53 = vsel %vm1439_vm4, %v1440_v11, %v13497_v34  ;;  %v4857_v52 = vand.u32 3, %v1533_v14  ;;  %v1537_v7 = vadd.s32 3, %v1533_v14 }
 0x3cd   : > { %8652 = vmatmul.mubr.msk.f32.vlgmr.msra.gmra.mrb[0].mxu0 %vm13512_vm7, %v12080_v22  ;;  %vm13514_vm2 = vmmov %vm13507_vm0  ;;  %vm13516_vm15 = vweird.f32 %v13494_v32  ;;  %v1442_v39 = vsel %vm1435_vm5, %v1438_v1, %v1441_v53  ;;  %vm1536_vm1 = vweird.f32 %v13502_v15  ;;  %v1634_v47 = vsub.s32 4, %v13517_v2  ;;  %v13532_v1 = vld [vmem:[#allocation79_spill] sm:$0xff] }
 0x3ce   : > { %8590 = vmatprep.mubr.msk.f32.mxu1 %vm13514_vm2, %v12090_v4  ;;  %vm13515_vm6 = vmmov %vm13507_vm0  ;;  %v4763_v22 = vsel %vm13516_vm15, nan, %v4762_v29  ;;  %vm4858_vm10 = vcmp.lt.s32.totalorder %v4857_v52, 2  ;;  %vm4859_vm0 = vcmp.eq.s32.totalorder %v4857_v52, 0  ;;  %vm4862_vm3 = vcmp.eq.s32.totalorder %v4857_v52, 2  ;;  %v13518_v4 = vld [vmem:[#allocation24_spill] sm:$0xff] }
 0x3cf   : > { %8654 = vmatprep.mubr.msk.f32.mxu0 %vm13515_vm6, %v12128_v0  ;;  %vm1640_vm8 = vweird.f32 %v13518_v4  ;;  %v13519_v0 = vld [vmem:[#allocation65_spill] sm:$0xff]  ;;  %vm13520_vm7 = vmmov %vm13514_vm2  ;;  %v4861_v34 = vsel %vm4859_vm0, %v13513_v8, %v1541_v58  ;;  %v4864_v13 = vsel %vm4862_vm3, %v1544_v48, %v13510_v42  ;;  %v1538_v49 = vand.u32 3, %v1537_v7  ;;  %v13537_v7 = vld [vmem:[#allocation78_spill] sm:$0xff] }
 0x3d0   : > { %v1645_v38 = vxor.u32 2147483648, %v13519_v0  ;;  %8591 = vmatmul.mubr.msk.f32.gmra.mrb[2].mxu1 %vm13520_vm7, %v12144_v36  ;;  %vm13521_vm11 = vmmov %vm13514_vm2  ;;  %vm13522_vm5 = vcmp.lt.s32.totalorder %v13518_v4, 0  ;;  %v4865_v54 = vsel %vm4858_vm10, %v4861_v34, %v4864_v13  ;;  %v1738_v24 = vsub.s32 4, %v13526_v9 }
 0x3d1   : > { %8655 = vmatmul.mubr.msk.f32.gmra.mrb[2].mxu0 %vm13521_vm11, %v12149_v10  ;;  %v1635_v11 = vsel %vm13522_vm5, %v1634_v47, %v13517_v2  ;;  %vm13523_vm4 = vmmov %vm13514_vm2  ;;  %vm1540_vm0 = vcmp.eq.s32.totalorder %v1538_v49, 0  ;;  %vm1543_vm3 = vcmp.eq.s32.totalorder %v1538_v49, 2  ;;  %v1648_v41 = vxor.u32 2147483648, %v13527_v44 }
 0x3d2   : > { %8593 = vmatprep.mubr.msk.f32.mxu1 %vm13523_vm4, %v12174_v56  ;;  %8657 = vmatprep.mubr.msk.f32.mxu0 %vm13514_vm2, %v12178_v6  ;;  %vm13524_vm6 = vmmov %vm13516_vm15  ;;  %v1637_v21 = vsel %vm10273_vm14, 0, %v1635_v11  ;;  %vm1539_vm15 = vcmp.lt.s32.totalorder %v1538_v49, 2  ;;  %v1542_v57 = vsel %vm1540_vm0, %v13513_v8, %v1541_v58  ;;  %v1545_v56 = vsel %vm1543_vm3, %v1544_v48, %v13510_v42  ;;  %v13535_v48 = vld [vmem:[#allocation71_spill] sm:$0xff] }
 0x3d3   : > { %v1443_v36 = vsel %vm13524_vm6, nan, %v1442_v39  ;;  %v4960_v37 = vand.u32 3, %v1637_v21  ;;  %v1641_v6 = vadd.s32 3, %v1637_v21  ;;  %vm13528_vm7 = vmmov %vm13514_vm2  ;;  %v4866_v32 = vsel %vm1536_vm1, nan, %v4865_v54  ;;  %v13544_v21 = vld [vmem:[#allocation33_spill] sm:$0xff] }
 0x3d4   : > { %8594 = vmatmul.mubr.msk.f32.gmra.mrb[4].mxu1 %vm13528_vm7, %v12194_v5  ;;  %vm13529_vm10 = vmmov %vm13514_vm2  ;;  %v1546_v29 = vsel %vm1539_vm15, %v1542_v57, %v1545_v56  ;;  %vm13531_vm14 = vcmp.lt.s32.totalorder %v13530_v31, 0  ;;  %v1749_v58 = vxor.u32 2147483648, %v13532_v1  ;;  %vm13536_vm15 = vnez %v13535_v48  ;;  %v13549_v57 = vld [vmem:[#allocation77_spill] sm:$0xff]  ;;  %v13555_v48 = vld [vmem:[#allocation54_spill] sm:$0xff] }
 0x3d5   : > { %8658 = vmatmul.mubr.msk.f32.gmra.mrb[4].mxu0 %vm13529_vm10, %v12210_v51  ;;  %v1739_v14 = vsel %vm13531_vm14, %v1738_v24, %v13526_v9  ;;  %vm13533_vm11 = vmmov %vm13514_vm2  ;;  %v1547_v5 = vsel %vm1536_vm1, nan, %v1546_v29  ;;  %vm4961_vm4 = vcmp.lt.s32.totalorder %v4960_v37, 2  ;;  %vm4965_vm6 = vcmp.eq.s32.totalorder %v4960_v37, 2 }
 0x3d6   : > { %8596 = vmatprep.mubr.msk.f32.mxu1 %vm13533_vm11, %v12218_v55  ;;  %vm13534_vm5 = vmmov %vm13514_vm2  ;;  %vm4962_vm2 = vcmp.eq.s32.totalorder %v4960_v37, 0  ;;  %v4967_v42 = vsel %vm4965_vm6, %v1648_v41, %v13519_v0  ;;  %v1642_v8 = vand.u32 3, %v1641_v6  ;;  %v1741_v53 = vsel %vm13536_vm15, 0, %v1739_v14  ;;  %v13550_v37 = vld [vmem:[#allocation68_spill] sm:$0xff] }
 0x3d7   : > { %8660 = vmatprep.mubr.msk.f32.mxu0 %vm13534_vm5, %v1339_v18  ;;  %v4964_v51 = vsel %vm4962_vm2, %v13527_v44, %v1645_v38  ;;  %v1752_v39 = vxor.u32 2147483648, %v13537_v7  ;;  %v5063_v55 = vand.u32 3, %v1741_v53  ;;  %v1745_v2 = vadd.s32 3, %v1741_v53  ;;  %vm13538_vm0 = vmmov %vm13534_vm5 }
 0x3d8   : > { %v4968_v52 = vsel %vm4961_vm4, %v4964_v51, %v4967_v42  ;;  %8597 = vmatmul.mubr.msk.f32.gmra.mrb[6].mxu1 %vm13538_vm0, %v4763_v22  ;;  %vm13539_vm3 = vmmov %vm13538_vm0  ;;  %vm1644_vm1 = vcmp.eq.s32.totalorder %v1642_v8, 0  ;;  %vm1647_vm7 = vcmp.eq.s32.totalorder %v1642_v8, 2  ;;  %vm1744_vm10 = vweird.f32 %v13530_v31  ;;  %v13554_v42 = vld [vmem:[#allocation85_spill] sm:$0xff]  ;;  %v13556_v31 = vld [vmem:[#allocation48_spill] sm:$0xff] }
 0x3d9   : > { %8661 = vmatmul.mubr.msk.f32.gmra.mrb[6].mxu0 %vm13539_vm3, %v1443_v36  ;;  %v4969_v15 = vsel %vm1640_vm8, nan, %v4968_v52  ;;  %vm13540_vm14 = vmmov %vm13538_vm0  ;;  %vm1643_vm5 = vcmp.lt.s32.totalorder %v1642_v8, 2  ;;  %v1646_v18 = vsel %vm1644_vm1, %v13527_v44, %v1645_v38  ;;  %v1649_v47 = vsel %vm1647_vm7, %v1648_v41, %v13519_v0  ;;  %v13542_v36 = vld [vmem:[#allocation44_spill] sm:$0xff]  ;;  %v13547_v44 = vld [vmem:[#allocation61_spill] sm:$0xff] }
 0x3da   : > { %8599 = vmatprep.mubr.msk.f32.mxu1 %vm13540_vm14, %v4866_v32  ;;  %vm13541_vm11 = vmmov %vm13538_vm0  ;;  %vm5065_vm4 = vcmp.eq.s32.totalorder %v5063_v55, 0  ;;  %v1650_v22 = vsel %vm1643_vm5, %v1646_v18, %v1649_v47  ;;  %vm5068_vm2 = vcmp.eq.s32.totalorder %v5063_v55, 2  ;;  %v1746_v13 = vand.u32 3, %v1745_v2  ;;  %v13558_v2 = vld [vmem:[#allocation41_spill] sm:$0xff] }
 0x3db   : > { %8663 = vmatprep.mubr.msk.f32.mxu0 %vm13541_vm11, %v1547_v5  ;;  %v5067_v34 = vsel %vm5065_vm4, %v13537_v7, %v1749_v58  ;;  %v1651_v49 = vsel %vm1640_vm8, nan, %v1650_v22  ;;  %vm5064_vm6 = vcmp.lt.s32.totalorder %v5063_v55, 2  ;;  %v5070_v11 = vsel %vm5068_vm2, %v1752_v39, %v13532_v1  ;;  %vm13543_vm15 = vmmov %vm13538_vm0  ;;  %v13553_v5 = vld [vmem:[#allocation87_spill] sm:$0xff] }
 0x3dc   : > { %v1842_v54 = vsub.s32 4, %v13542_v36  ;;  %8600 = vmatmul.mubr.msk.f32.gmra.mrb[8].mxu1 %vm13543_vm15, %v4969_v15  ;;  %v5071_v38 = vsel %vm5064_vm6, %v5067_v34, %v5070_v11  ;;  %vm1747_vm3 = vcmp.lt.s32.totalorder %v1746_v13, 2  ;;  %vm1748_vm1 = vcmp.eq.s32.totalorder %v1746_v13, 0  ;;  %vm13546_vm14 = vmmov %vm13538_vm0 }
 0x3dd   : > { %8664 = vmatmul.mubr.msk.f32.gmra.mrb[8].mxu0 %vm13538_vm0, %v1651_v49  ;;  %vm1751_vm7 = vcmp.eq.s32.totalorder %v1746_v13, 2  ;;  %v5072_v0 = vsel %vm1744_vm10, nan, %v5071_v38  ;;  %v1750_v10 = vsel %vm1748_vm1, %v13537_v7, %v1749_v58  ;;  %vm13545_vm8 = vcmp.lt.s32.totalorder %v13544_v21, 0  ;;  %vm13552_vm5 = vmmov %vm13538_vm0  ;;  %v13560_v13 = vld [vmem:[#allocation75_spill] sm:$0xff]  ;;  %v13563_v38 = vld [vmem:[#allocation73_spill] sm:$0xff] }
 0x3de   : > { %v1753_v4 = vsel %vm1751_vm7, %v1752_v39, %v13532_v1  ;;  %v1843_v9 = vsel %vm13545_vm8, %v1842_v54, %v13542_v36  ;;  %8602 = vmatprep.mubr.msk.f32.mxu1 %vm13546_vm14, %v5072_v0  ;;  %vm13548_vm11 = vnez %v13547_v44  ;;  %v1853_v56 = vxor.u32 2147483648, %v13549_v57  ;;  %v13551_v1 = vld [vmem:[#allocation59_spill] sm:$0xff] }
 0x3df   : > { %v1754_v24 = vsel %vm1747_vm3, %v1750_v10, %v1753_v4  ;;  %v1845_v41 = vsel %vm13548_vm11, 0, %v1843_v9  ;;  %v1856_v6 = vxor.u32 2147483648, %v13550_v37  ;;  %v1946_v58 = vsub.s32 4, %v13551_v1  ;;  %vm13562_vm11 = vmmov %vm13552_vm5  ;;  %v13565_v4 = vld [vmem:[#allocation83_spill] sm:$0xff] }
 0x3e0   : > { %v1755_v32 = vsel %vm1744_vm10, nan, %v1754_v24  ;;  %v5166_v29 = vand.u32 3, %v1845_v41  ;;  %v1849_v14 = vadd.s32 3, %v1845_v41  ;;  %vm1848_vm4 = vweird.f32 %v13544_v21  ;;  %v13566_v24 = vld [vmem:[#allocation80_spill] sm:$0xff] }
 0x3e1   : > { %8666 = vmatprep.mubr.msk.f32.mxu0 %vm13552_vm5, %v1755_v32  ;;  %v1957_v51 = vxor.u32 2147483648, %v13553_v5  ;;  %v1960_v8 = vxor.u32 2147483648, %v13554_v42  ;;  %v2050_v53 = vsub.s32 4, %v13555_v48  ;;  %vm1952_vm10 = vweird.f32 %v13556_v31 }
 0x3e2   : > { %vm5167_vm2 = vcmp.lt.s32.totalorder %v5166_v29, 2  ;;  %vm5168_vm6 = vcmp.eq.s32.totalorder %v5166_v29, 0  ;;  %vm5171_vm15 = vcmp.eq.s32.totalorder %v5166_v29, 2  ;;  %v1850_v52 = vand.u32 3, %v1849_v14 }
 0x3e3   : > { %v5170_v7 = vsel %vm5168_vm6, %v13550_v37, %v1853_v56  ;;  %v5173_v39 = vsel %vm5171_vm15, %v1856_v6, %v13549_v57  ;;  %vm13557_vm0 = vcmp.lt.s32.totalorder %v13556_v31, 0  ;;  %vm13559_vm3 = vcmp.lt.s32.totalorder %v13558_v2, 0  ;;  %vm13567_vm6 = vmmov %vm13562_vm11  ;;  %v13570_v31 = vld [vmem:[#allocation57_spill] sm:$0xff] }
 0x3e4   : > { %v1947_v55 = vsel %vm13557_vm0, %v1946_v58, %v13551_v1  ;;  %v2051_v15 = vsel %vm13559_vm3, %v2050_v53, %v13555_v48  ;;  %v5174_v18 = vsel %vm5167_vm2, %v5170_v7, %v5173_v39  ;;  %vm1851_vm1 = vcmp.lt.s32.totalorder %v1850_v52, 2  ;;  %v13569_v7 = vld [vmem:[#allocation69_spill] sm:$0xff] }
 0x3e5   : > { %vm1852_vm7 = vcmp.eq.s32.totalorder %v1850_v52, 0  ;;  %vm1855_vm8 = vcmp.eq.s32.totalorder %v1850_v52, 2  ;;  %v5175_v47 = vsel %vm1848_vm4, nan, %v5174_v18  ;;  %vm13561_vm14 = vnez %v13560_v13  ;;  %v13573_v18 = vld [vmem:[#allocation86_spill] sm:$0xff] }
 0x3e6   : > { %v1854_v22 = vsel %vm1852_vm7, %v13550_v37, %v1853_v56  ;;  %v1857_v34 = vsel %vm1855_vm8, %v1856_v6, %v13549_v57  ;;  %v1949_v49 = vsel %vm13561_vm14, 0, %v1947_v55  ;;  %8603 = vmatmul.mubr.msk.f32.gmra.mrb[10].mxu1 %vm13562_vm11, %v5175_v47  ;;  %vm13564_vm5 = vnez %v13563_v38  ;;  %vm13568_vm14 = vmmov %vm13567_vm6  ;;  %v13578_v38 = vld [vmem:[#allocation62_spill] sm:$0xff] }
 0x3e7   : > { %v1858_v11 = vsel %vm1851_vm1, %v1854_v22, %v1857_v34  ;;  %v5269_v36 = vand.u32 3, %v1949_v49  ;;  %v1953_v54 = vadd.s32 3, %v1949_v49  ;;  %v2053_v0 = vsel %vm13564_vm5, 0, %v2051_v15  ;;  %v13575_v22 = vld [vmem:[#allocation97_spill] sm:$0xff]  ;;  %v13576_v49 = vld [vmem:[#allocation94_spill] sm:$0xff] }
 0x3e8   : > { %v1859_v10 = vsel %vm1848_vm4, nan, %v1858_v11  ;;  %vm2056_vm2 = vweird.f32 %v13558_v2  ;;  %v2061_v9 = vxor.u32 2147483648, %v13565_v4  ;;  %v2064_v44 = vxor.u32 2147483648, %v13566_v24 }
 0x3e9   : > { %8667 = vmatmul.mubr.msk.f32.gmra.mrb[10].mxu0 %vm13567_vm6, %v1859_v10  ;;  %vm5270_vm15 = vcmp.lt.s32.totalorder %v5269_v36, 2  ;;  %vm5271_vm0 = vcmp.eq.s32.totalorder %v5269_v36, 0  ;;  %vm5274_vm3 = vcmp.eq.s32.totalorder %v5269_v36, 2  ;;  %v1954_v41 = vand.u32 3, %v1953_v54  ;;  %v13579_v10 = vld [vmem:[#allocation92_spill] sm:$0xff] }
 0x3ea   : > { %v5273_v57 = vsel %vm5271_vm0, %v13554_v42, %v1957_v51  ;;  %v5276_v56 = vsel %vm5274_vm3, %v1960_v8, %v13553_v5  ;;  %v5372_v37 = vand.u32 3, %v2053_v0  ;;  %v2057_v6 = vadd.s32 3, %v2053_v0 }
 0x3eb   : > { %v5277_v21 = vsel %vm5270_vm15, %v5273_v57, %v5276_v56  ;;  %vm1955_vm4 = vcmp.lt.s32.totalorder %v1954_v41, 2  ;;  %vm1956_vm1 = vcmp.eq.s32.totalorder %v1954_v41, 0  ;;  %vm1959_vm7 = vcmp.eq.s32.totalorder %v1954_v41, 2  ;;  %v13581_v57 = vld [vmem:[#allocation53_spill] sm:$0xff] }
 0x3ec   : > { %v5278_v32 = vsel %vm1952_vm10, nan, %v5277_v21  ;;  %v1958_v29 = vsel %vm1956_vm1, %v13554_v42, %v1957_v51  ;;  %v1961_v14 = vsel %vm1959_vm7, %v1960_v8, %v13553_v5  ;;  %vm5373_vm8 = vcmp.lt.s32.totalorder %v5372_v37, 2 }
 0x3ed   : > { %8605 = vmatprep.mubr.msk.f32.mxu1 %vm13568_vm14, %v5278_v32  ;;  %v1962_v1 = vsel %vm1955_vm4, %v1958_v29, %v1961_v14  ;;  %vm5374_vm11 = vcmp.eq.s32.totalorder %v5372_v37, 0  ;;  %vm5377_vm5 = vcmp.eq.s32.totalorder %v5372_v37, 2  ;;  %v2058_v58 = vand.u32 3, %v2057_v6  ;;  %vm13572_vm4 = vmmov %vm13567_vm6  ;;  %v13583_v37 = vld [vmem:[#allocation76_spill] sm:$0xff] }
 0x3ee   : > { %v1963_v48 = vsel %vm1952_vm10, nan, %v1962_v1  ;;  %v5376_v53 = vsel %vm5374_vm11, %v13566_v24, %v2061_v9  ;;  %v5379_v52 = vsel %vm5377_vm5, %v2064_v44, %v13565_v4  ;;  %v2154_v39 = vsub.s32 4, %v13569_v7  ;;  %vm13577_vm7 = vmmov %vm13572_vm4  ;;  %v13584_v1 = vld [vmem:[#allocation81_spill] sm:$0xff] }
 0x3ef   : > { %8669 = vmatprep.mubr.msk.f32.mxu0 %vm13567_vm6, %v1963_v48  ;;  %v5380_v51 = vsel %vm5373_vm8, %v5376_v53, %v5379_v52  ;;  %vm2059_vm15 = vcmp.lt.s32.totalorder %v2058_v58, 2  ;;  %vm2060_vm0 = vcmp.eq.s32.totalorder %v2058_v58, 0  ;;  %vm2063_vm3 = vcmp.eq.s32.totalorder %v2058_v58, 2 }
 0x3f0   : > { %v5381_v5 = vsel %vm2056_vm2, nan, %v5380_v51  ;;  %v2062_v42 = vsel %vm2060_vm0, %v13566_v24, %v2061_v9  ;;  %v2065_v8 = vsel %vm2063_vm3, %v2064_v44, %v13565_v4  ;;  %vm13571_vm10 = vcmp.lt.s32.totalorder %v13570_v31, 0  ;;  %v13580_v9 = vld [vmem:[#allocation90_spill] sm:$0xff] }
 0x3f1   : > { %v2155_v55 = vsel %vm13571_vm10, %v2154_v39, %v13569_v7  ;;  %9087 = vcosq.f32 %v12137_v3  ;;  %8606 = vmatmul.mubr.msk.f32.gmra.mrb[12].mxu1 %vm13572_vm4, %v5381_v5  ;;  %v2066_v15 = vsel %vm2059_vm15, %v2062_v42, %v2065_v8  ;;  %vm13574_vm1 = vnez %v13573_v18  ;;  %vm13586_vm10 = vmmov %vm13572_vm4  ;;  %v13587_v7 = vld [vmem:[#allocation64_spill] sm:$0xff]  ;;  %v13591_v8 = vld [vmem:[#allocation107_spill] sm:$0xff] }
 0x3f2   : > { %v2157_v47 = vsel %vm13574_vm1, 0, %v2155_v55  ;;  %v2165_v34 = vxor.u32 2147483648, %v13575_v22  ;;  %v2067_v13 = vsel %vm2056_vm2, nan, %v2066_v15  ;;  %v2168_v11 = vxor.u32 2147483648, %v13576_v49  ;;  %v13589_v5 = vld [vmem:[#allocation100_spill] sm:$0xff] }
 0x3f3   : > { %v5475_v36 = vand.u32 3, %v2157_v47  ;;  %v2161_v54 = vadd.s32 3, %v2157_v47  ;;  %8670 = vmatmul.mubr.msk.f32.gmra.mrb[12].mxu0 %vm13577_vm7, %v2067_v13  ;;  %vm2160_vm8 = vweird.f32 %v13570_v31  ;;  %v2258_v0 = vsub.s32 4, %v13578_v38 }
 0x3f4   : > { %v2269_v4 = vxor.u32 2147483648, %v13579_v10  ;;  %v2272_v24 = vxor.u32 2147483648, %v13580_v9  ;;  %vm13582_vm2 = vcmp.lt.s32.totalorder %v13581_v57, 0  ;;  %v2362_v6 = vsub.s32 4, %v13583_v37 }
 0x3f5   : > { %vm5476_vm14 = vcmp.lt.s32.totalorder %v5475_v36, 2  ;;  %vm5477_vm11 = vcmp.eq.s32.totalorder %v5475_v36, 0  ;;  %vm5480_vm5 = vcmp.eq.s32.totalorder %v5475_v36, 2  ;;  %v2162_v44 = vand.u32 3, %v2161_v54 }
 0x3f6   : > { %v5479_v2 = vsel %vm5477_vm11, %v13576_v49, %v2165_v34  ;;  %v5482_v41 = vsel %vm5480_vm5, %v2168_v11, %v13575_v22  ;;  %v2259_v56 = vsel %vm13582_vm2, %v2258_v0, %v13578_v38  ;;  %vm13585_vm3 = vnez %v13584_v1 }
 0x3f7   : > { %v5483_v21 = vsel %vm5476_vm14, %v5479_v2, %v5482_v41  ;;  %vm2163_vm6 = vcmp.lt.s32.totalorder %v2162_v44, 2  ;;  %vm2164_vm15 = vcmp.eq.s32.totalorder %v2162_v44, 0  ;;  %vm2167_vm0 = vcmp.eq.s32.totalorder %v2162_v44, 2  ;;  %vm13592_vm14 = vmmov %vm13586_vm10 }
 0x3f8   : > { %v5484_v32 = vsel %vm2160_vm8, nan, %v5483_v21  ;;  %v2166_v29 = vsel %vm2164_vm15, %v13576_v49, %v2165_v34  ;;  %v2169_v14 = vsel %vm2167_vm0, %v2168_v11, %v13575_v22  ;;  %v2261_v58 = vsel %vm13585_vm3, 0, %v2259_v56  ;;  %v13593_v22 = vld [vmem:[#allocation106_spill] sm:$0xff]  ;;  %vm13594_vm3 = vmmov %vm13586_vm10 }
 0x3f9   : > { %8608 = vmatprep.mubr.msk.f32.mxu1 %vm13586_vm10, %v5484_v32  ;;  %v2170_v48 = vsel %vm2163_vm6, %v2166_v29, %v2169_v14  ;;  %v5578_v53 = vand.u32 3, %v2261_v58  ;;  %v2265_v52 = vadd.s32 3, %v2261_v58  ;;  %vm13588_vm4 = vcmp.lt.s32.totalorder %v13587_v7, 0  ;;  %v13595_v56 = vld [vmem:[#allocation70_spill] sm:$0xff]  ;;  %v13601_v14 = vld [vmem:[#allocation89_spill] sm:$0xff] }
 0x3fa   : > { %v2363_v39 = vsel %vm13588_vm4, %v2362_v6, %v13583_v37  ;;  %v2171_v51 = vsel %vm2160_vm8, nan, %v2170_v48  ;;  %vm2264_vm1 = vweird.f32 %v13581_v57  ;;  %vm13590_vm7 = vnez %v13589_v5  ;;  %v13598_v57 = vld [vmem:[#allocation58_spill] sm:$0xff]  ;;  %v13603_v58 = vld [vmem:[#allocation93_spill] sm:$0xff] }
 0x3fb   : > { %v2365_v42 = vsel %vm13590_vm7, 0, %v2363_v39  ;;  %v2373_v55 = vxor.u32 2147483648, %v13591_v8  ;;  %8672 = vmatprep.mubr.msk.f32.mxu0 %vm13592_vm14, %v2171_v51  ;;  %vm5579_vm11 = vcmp.lt.s32.totalorder %v5578_v53, 2  ;;  %vm5580_vm5 = vcmp.eq.s32.totalorder %v5578_v53, 0  ;;  %v12422_v18 = vpop.eup %9087  ;;  %vm13596_vm7 = vmmov %vm13594_vm3  ;;  %v13600_v32 = vld [vmem:[#allocation98_spill] sm:$0xff] }
 0x3fc   : > { %vm5583_vm2 = vcmp.eq.s32.totalorder %v5578_v53, 2  ;;  %v2266_v15 = vand.u32 3, %v2265_v52  ;;  %v5582_v47 = vsel %vm5580_vm5, %v13580_v9, %v2269_v4  ;;  %v2376_v34 = vxor.u32 2147483648, %v13593_v22 }
 0x3fd   : > { %v5585_v31 = vsel %vm5583_vm2, %v2272_v24, %v13579_v10  ;;  %v5681_v13 = vand.u32 3, %v2365_v42  ;;  %v2369_v0 = vadd.s32 3, %v2365_v42  ;;  %v2466_v37 = vsub.s32 4, %v13595_v56  ;;  %v13605_v42 = vld [vmem:[#allocation74_spill] sm:$0xff] }
 0x3fe   : > { %v5586_v49 = vsel %vm5579_vm11, %v5582_v47, %v5585_v31  ;;  %vm2267_vm8 = vcmp.lt.s32.totalorder %v2266_v15, 2  ;;  %vm2268_vm6 = vcmp.eq.s32.totalorder %v2266_v15, 0  ;;  %vm2271_vm15 = vcmp.eq.s32.totalorder %v2266_v15, 2  ;;  %vm13602_vm11 = vmmov %vm13594_vm3 }
 0x3ff   : > { %v5587_v11 = vsel %vm2264_vm1, nan, %v5586_v49  ;;  %v2270_v36 = vsel %vm2268_vm6, %v13580_v9, %v2269_v4  ;;  %v2273_v54 = vsel %vm2271_vm15, %v2272_v24, %v13579_v10  ;;  %vm5682_vm0 = vcmp.lt.s32.totalorder %v5681_v13, 2  ;;  %v13597_v9 = vld [vmem:[#allocation99_spill] sm:$0xff] }
 0x400   : > { %8609 = vmatmul.mubr.msk.f32.gmra.mrb[14].mxu1 %vm13594_vm3, %v5587_v11  ;;  %v2274_v38 = vsel %vm2267_vm8, %v2270_v36, %v2273_v54  ;;  %vm5683_vm10 = vcmp.eq.s32.totalorder %v5681_v13, 0  ;;  %vm5686_vm4 = vcmp.eq.s32.totalorder %v5681_v13, 2  ;;  %vm2368_vm14 = vweird.f32 %v13587_v7 }
 0x401   : > { %v2275_v44 = vsel %vm2264_vm1, nan, %v2274_v38  ;;  %v5685_v2 = vsel %vm5683_vm10, %v13593_v22, %v2373_v55  ;;  %v5688_v41 = vsel %vm5686_vm4, %v2376_v34, %v13591_v8  ;;  %v2370_v4 = vand.u32 3, %v2369_v0 }
 0x402   : > { %8673 = vmatmul.mubr.msk.f32.gmra.mrb[14].mxu0 %vm13596_vm7, %v2275_v44  ;;  %v5689_v10 = vsel %vm5682_vm0, %v5685_v2, %v5688_v41  ;;  %v2477_v24 = vxor.u32 2147483648, %v13597_v9  ;;  %vm13599_vm1 = vcmp.lt.s32.totalorder %v13598_v57, 0  ;;  %v2480_v29 = vxor.u32 2147483648, %v13600_v32 }
 0x403   : > { %v5690_v6 = vsel %vm2368_vm14, nan, %v5689_v10  ;;  %v2467_v21 = vsel %vm13599_vm1, %v2466_v37, %v13595_v56  ;;  %v2570_v1 = vsub.s32 4, %v13601_v14  ;;  %vm2371_vm5 = vcmp.lt.s32.totalorder %v2370_v4, 2  ;;  %v13610_v10 = vld [vmem:[#allocation84_spill] sm:$0xff] }
 0x404   : > { %8611 = vmatprep.mubr.msk.f32.mxu1 %vm13602_vm11, %v5690_v6  ;;  %vm2372_vm2 = vcmp.eq.s32.totalorder %v2370_v4, 0  ;;  %vm2375_vm8 = vcmp.eq.s32.totalorder %v2370_v4, 2  ;;  %vm13604_vm6 = vnez %v13603_v58  ;;  %vm2472_vm15 = vweird.f32 %v13598_v57  ;;  %v13612_v57 = vld [vmem:[#allocation72_spill] sm:$0xff] }
 0x405   : > { %v2469_v48 = vsel %vm13604_vm6, 0, %v2467_v21  ;;  %v2374_v53 = vsel %vm2372_vm2, %v13593_v22, %v2373_v55  ;;  %v2377_v52 = vsel %vm2375_vm8, %v2376_v34, %v13591_v8  ;;  %vm13606_vm0 = vcmp.lt.s32.totalorder %v13605_v42, 0  ;;  %v13607_v34 = vld [vmem:[#allocation108_spill] sm:$0xff]  ;;  %vm13609_vm2 = vmmov %vm13596_vm7 }
 0x406   : > { %v5784_v39 = vand.u32 3, %v2469_v48  ;;  %v2473_v51 = vadd.s32 3, %v2469_v48  ;;  %v2378_v5 = vsel %vm2371_vm5, %v2374_v53, %v2377_v52  ;;  %v2571_v15 = vsel %vm13606_vm0, %v2570_v1, %v13601_v14  ;;  %v13615_v14 = vld [vmem:[#allocation103_spill] sm:$0xff]  ;;  %v13617_v48 = vld [vmem:[#allocation110_spill] sm:$0xff] }
 0x407   : > { %v2581_v47 = vxor.u32 2147483648, %v11465_v35  ;;  %v2379_v31 = vsel %vm2368_vm14, nan, %v2378_v5  ;;  %vm13608_vm1 = vnez %v13607_v34  ;;  %v2584_v11 = vxor.u32 2147483648, %v11369_v33  ;;  %v13619_v5 = vld [vmem:[#allocation119_spill] sm:$0xff] }
 0x408   : > { %vm5785_vm3 = vcmp.lt.s32.totalorder %v5784_v39, 2  ;;  %vm5786_vm10 = vcmp.eq.s32.totalorder %v5784_v39, 0  ;;  %vm5789_vm4 = vcmp.eq.s32.totalorder %v5784_v39, 2  ;;  %8675 = vmatprep.mubr.msk.f32.mxu0 %vm13596_vm7, %v2379_v31  ;;  %v2474_v22 = vand.u32 3, %v2473_v51 }
 0x409   : > { %v5788_v8 = vsel %vm5786_vm10, %v13600_v32, %v2477_v24  ;;  %v5791_v55 = vsel %vm5789_vm4, %v2480_v29, %v13597_v9  ;;  %v2573_v13 = vsel %vm13608_vm1, 0, %v2571_v15  ;;  %vm2576_vm5 = vweird.f32 %v13605_v42  ;;  %vm13611_vm10 = vmmov %vm13609_vm2  ;;  %v13622_v42 = vld [vmem:[#allocation88_spill] sm:$0xff] }
 0x40a   : > { %v5792_v49 = vsel %vm5785_vm3, %v5788_v8, %v5791_v55  ;;  %v5887_v36 = vand.u32 3, %v2573_v13  ;;  %v2577_v54 = vadd.s32 3, %v2573_v13  ;;  %vm2476_vm14 = vcmp.eq.s32.totalorder %v2474_v22, 0  ;;  %v13621_v8 = vld [vmem:[#allocation96_spill] sm:$0xff] }
 0x40b   : > { %v5793_v7 = vsel %vm2472_vm15, nan, %v5792_v49  ;;  %vm2479_vm11 = vcmp.eq.s32.totalorder %v2474_v22, 2  ;;  %vm2475_vm8 = vcmp.lt.s32.totalorder %v2474_v22, 2  ;;  %v2478_v38 = vsel %vm2476_vm14, %v13600_v32, %v2477_v24  ;;  %vm13614_vm14 = vmmov %vm13609_vm2 }
 0x40c   : > { %8612 = vmatmul.mubr.msk.f32.gmra.mrb[16].mxu1 %vm13609_vm2, %v5793_v7  ;;  %v2481_v0 = vsel %vm2479_vm11, %v2480_v29, %v13597_v9  ;;  %vm5889_vm6 = vcmp.eq.s32.totalorder %v5887_v36, 0  ;;  %vm5892_vm0 = vcmp.eq.s32.totalorder %v5887_v36, 2  ;;  %v2578_v41 = vand.u32 3, %v2577_v54 }
 0x40d   : > { %v2482_v44 = vsel %vm2475_vm8, %v2478_v38, %v2481_v0  ;;  %v5891_v2 = vsel %vm5889_vm6, %v11369_v33, %v2581_v47  ;;  %vm5888_vm3 = vcmp.lt.s32.totalorder %v5887_v36, 2  ;;  %v5894_v37 = vsel %vm5892_vm0, %v2584_v11, %v11465_v35 }
 0x40e   : > { %v2483_v56 = vsel %vm2472_vm15, nan, %v2482_v44  ;;  %v2674_v4 = vsub.s32 4, %v13610_v10  ;;  %v5895_v6 = vsel %vm5888_vm3, %v5891_v2, %v5894_v37  ;;  %vm2579_vm4 = vcmp.lt.s32.totalorder %v2578_v41, 2  ;;  %v13626_v44 = vld [vmem:[#allocation113_spill] sm:$0xff] }
 0x40f   : > { %8676 = vmatmul.mubr.msk.f32.gmra.mrb[16].mxu0 %vm13611_vm10, %v2483_v56  ;;  %vm2580_vm7 = vcmp.eq.s32.totalorder %v2578_v41, 0  ;;  %vm2583_vm1 = vcmp.eq.s32.totalorder %v2578_v41, 2  ;;  %v5896_v9 = vsel %vm2576_vm5, nan, %v5895_v6  ;;  %vm13613_vm15 = vcmp.lt.s32.totalorder %v13612_v57, 0 }
 0x410   : > { %v2582_v24 = vsel %vm2580_vm7, %v11369_v33, %v2581_v47  ;;  %v2585_v21 = vsel %vm2583_vm1, %v2584_v11, %v11465_v35  ;;  %v2675_v32 = vsel %vm13613_vm15, %v2674_v4, %v13610_v10  ;;  %8614 = vmatprep.mubr.msk.f32.mxu1 %vm13614_vm14, %v5896_v9  ;;  %vm13616_vm11 = vnez %v13615_v14  ;;  %v13618_v35 = vld [vmem:[#allocation101_spill] sm:$0xff]  ;;  %v13620_v47 = vld [vmem:[#allocation118_spill] sm:$0xff]  ;;  %v13629_v10 = vld [vmem:[#allocation111_spill] sm:$0xff] }
 0x411   : > { %v2586_v29 = vsel %vm2579_vm4, %v2582_v24, %v2585_v21  ;;  %v2677_v1 = vsel %vm13616_vm11, 0, %v2675_v32  ;;  %v2685_v58 = vxor.u32 2147483648, %v11365_v25  ;;  %v2688_v53 = vxor.u32 2147483648, %v13617_v48  ;;  %v13624_v11 = vld [vmem:[#allocation82_spill] sm:$0xff]  ;;  %vm13628_vm11 = vmmov %vm13609_vm2  ;;  %v13631_v9 = vld [vmem:[#allocation117_spill] sm:$0xff] }
 0x412   : > { %v2587_v52 = vsel %vm2576_vm5, nan, %v2586_v29  ;;  %v5990_v33 = vand.u32 3, %v2677_v1  ;;  %v2681_v39 = vadd.s32 3, %v2677_v1  ;;  %v2778_v51 = vsub.s32 4, %v13618_v35  ;;  %v13632_v21 = vld [vmem:[#allocation116_spill] sm:$0xff] }
 0x413   : > { %8678 = vmatprep.mubr.msk.f32.mxu0 %vm13609_vm2, %v2587_v52  ;;  %vm2680_vm8 = vweird.f32 %v13612_v57  ;;  %v2789_v15 = vxor.u32 2147483648, %v13619_v5  ;;  %v2792_v31 = vxor.u32 2147483648, %v13620_v47  ;;  %v2882_v55 = vsub.s32 4, %v13621_v8 }
 0x414   : > { %vm5991_vm6 = vcmp.lt.s32.totalorder %v5990_v33, 2  ;;  %vm5992_vm0 = vcmp.eq.s32.totalorder %v5990_v33, 0  ;;  %vm5995_vm3 = vcmp.eq.s32.totalorder %v5990_v33, 2  ;;  %v2682_v22 = vand.u32 3, %v2681_v39 }
 0x415   : > { %vm2784_vm5 = vweird.f32 %v13622_v42  ;;  %v5994_v34 = vsel %vm5992_vm0, %v13617_v48, %v2685_v58  ;;  %v5997_v13 = vsel %vm5995_vm3, %v2688_v53, %v11365_v25  ;;  %vm13623_vm10 = vcmp.lt.s32.totalorder %v13622_v42, 0  ;;  %vm13633_vm0 = vmmov %vm13628_vm11  ;;  %v13636_v42 = vld [vmem:[#allocation95_spill] sm:$0xff] }
 0x416   : > { %v2779_v49 = vsel %vm13623_vm10, %v2778_v51, %v13618_v35  ;;  %vm13625_vm4 = vcmp.lt.s32.totalorder %v13624_v11, 0  ;;  %v5998_v54 = vsel %vm5991_vm6, %v5994_v34, %v5997_v13  ;;  %vm2683_vm7 = vcmp.lt.s32.totalorder %v2682_v22, 2 }
 0x417   : > { %v2883_v36 = vsel %vm13625_vm4, %v2882_v55, %v13621_v8  ;;  %vm2684_vm1 = vcmp.eq.s32.totalorder %v2682_v22, 0  ;;  %vm2687_vm15 = vcmp.eq.s32.totalorder %v2682_v22, 2  ;;  %v5999_v7 = vsel %vm2680_vm8, nan, %v5998_v54  ;;  %v13635_v55 = vld [vmem:[#allocation109_spill] sm:$0xff] }
 0x418   : > { %v2686_v38 = vsel %vm2684_vm1, %v13617_v48, %v2685_v58  ;;  %v2689_v0 = vsel %vm2687_vm15, %v2688_v53, %v11365_v25  ;;  %vm13627_vm14 = vnez %v13626_v44  ;;  %8615 = vmatmul.mubr.msk.f32.gmra.mrb[18].mxu1 %vm13628_vm11, %v5999_v7  ;;  %vm13630_vm2 = vnez %v13629_v10  ;;  %v13641_v54 = vld [vmem:[#allocation129_spill] sm:$0xff] }
 0x419   : > { %v2781_v2 = vsel %vm13627_vm14, 0, %v2779_v49  ;;  %v2690_v41 = vsel %vm2683_vm7, %v2686_v38, %v2689_v0  ;;  %v2885_v4 = vsel %vm13630_vm2, 0, %v2883_v36  ;;  %vm2888_vm6 = vweird.f32 %v13624_v11  ;;  %vm13634_vm14 = vmmov %vm13633_vm0  ;;  %v13639_v49 = vld [vmem:[#allocation121_spill] sm:$0xff]  ;;  %v13642_v0 = vld [vmem:[#allocation127_spill] sm:$0xff] }
 0x41a   : > { %v6093_v56 = vand.u32 3, %v2781_v2  ;;  %v2785_v37 = vadd.s32 3, %v2781_v2  ;;  %v2691_v6 = vsel %vm2680_vm8, nan, %v2690_v41  ;;  %v2893_v24 = vxor.u32 2147483648, %v13631_v9 }
 0x41b   : > { %v2896_v25 = vxor.u32 2147483648, %v13632_v21  ;;  %8679 = vmatmul.mubr.msk.f32.gmra.mrb[18].mxu0 %vm13633_vm0, %v2691_v6  ;;  %v6196_v1 = vand.u32 3, %v2885_v4  ;;  %v2889_v58 = vadd.s32 3, %v2885_v4  ;;  %v2986_v22 = vsub.s32 4, %v13635_v55  ;;  %v13646_v4 = vld [vmem:[#allocation124_spill] sm:$0xff] }
 0x41c   : > { %vm6094_vm3 = vcmp.lt.s32.totalorder %v6093_v56, 2  ;;  %vm6095_vm10 = vcmp.eq.s32.totalorder %v6093_v56, 0  ;;  %vm6098_vm4 = vcmp.eq.s32.totalorder %v6093_v56, 2  ;;  %v2786_v32 = vand.u32 3, %v2785_v37  ;;  %v13645_v37 = vld [vmem:[#allocation126_spill] sm:$0xff] }
 0x41d   : > { %v6097_v29 = vsel %vm6095_vm10, %v13620_v47, %v2789_v15  ;;  %v6100_v14 = vsel %vm6098_vm4, %v2792_v31, %v13619_v5  ;;  %vm6197_vm15 = vcmp.lt.s32.totalorder %v6196_v1, 2  ;;  %vm6198_vm11 = vcmp.eq.s32.totalorder %v6196_v1, 0 }
 0x41e   : > { %v6101_v57 = vsel %vm6094_vm3, %v6097_v29, %v6100_v14  ;;  %vm2787_vm8 = vcmp.lt.s32.totalorder %v2786_v32, 2  ;;  %vm2788_vm7 = vcmp.eq.s32.totalorder %v2786_v32, 0  ;;  %vm2791_vm1 = vcmp.eq.s32.totalorder %v2786_v32, 2  ;;  %v13649_v32 = vld [vmem:[#allocation115_spill] sm:$0xff] }
 0x41f   : > { %v6102_v48 = vsel %vm2784_vm5, nan, %v6101_v57  ;;  %v2790_v53 = vsel %vm2788_vm7, %v13620_v47, %v2789_v15  ;;  %v2793_v52 = vsel %vm2791_vm1, %v2792_v31, %v13619_v5  ;;  %vm6201_vm2 = vcmp.eq.s32.totalorder %v6196_v1, 2  ;;  %vm13643_vm1 = vmmov %vm13633_vm0 }
 0x420   : > { %8617 = vmatprep.mubr.msk.f32.mxu1 %vm13634_vm14, %v6102_v48  ;;  %v2794_v33 = vsel %vm2787_vm8, %v2790_v53, %v2793_v52  ;;  %v2890_v39 = vand.u32 3, %v2889_v58  ;;  %v6200_v51 = vsel %vm6198_vm11, %v13632_v21, %v2893_v24  ;;  %v6203_v8 = vsel %vm6201_vm2, %v2896_v25, %v13631_v9  ;;  %vm13638_vm8 = vmmov %vm13633_vm0  ;;  %v13650_v48 = vld [vmem:[#allocation114_spill] sm:$0xff] }
 0x421   : > { %v2795_v35 = vsel %vm2784_vm5, nan, %v2794_v33  ;;  %v6204_v15 = vsel %vm6197_vm15, %v6200_v51, %v6203_v8  ;;  %vm13637_vm5 = vcmp.lt.s32.totalorder %v13636_v42, 0  ;;  %9089 = vsinq.f32 %v12137_v3  ;;  %v13644_v3 = vld [vmem:[#allocation104_spill] sm:$0xff] }
 0x422   : > { %8681 = vmatprep.mubr.msk.f32.mxu0 %vm13633_vm0, %v2795_v35  ;;  %vm2891_vm3 = vcmp.lt.s32.totalorder %v2890_v39, 2  ;;  %vm2892_vm10 = vcmp.eq.s32.totalorder %v2890_v39, 0  ;;  %vm2895_vm4 = vcmp.eq.s32.totalorder %v2890_v39, 2  ;;  %v6205_v5 = vsel %vm2888_vm6, nan, %v6204_v15  ;;  %v13653_v35 = vld [vmem:[#allocation105_spill] sm:$0xff] }
 0x423   : > { %v2894_v47 = vsel %vm2892_vm10, %v13632_v21, %v2893_v24  ;;  %v2897_v31 = vsel %vm2895_vm4, %v2896_v25, %v13631_v9  ;;  %v2987_v34 = vsel %vm13637_vm5, %v2986_v22, %v13635_v55  ;;  %8618 = vmatmul.mubr.msk.f32.gmra.mrb[20].mxu1 %vm13638_vm8, %v6205_v5  ;;  %vm13640_vm7 = vnez %v13639_v49  ;;  %v13647_v21 = vld [vmem:[#allocation91_spill] sm:$0xff]  ;;  %vm13652_vm5 = vmmov %vm13643_vm1 }
 0x424   : > { %v2898_v13 = vsel %vm2891_vm3, %v2894_v47, %v2897_v31  ;;  %v2989_v36 = vsel %vm13640_vm7, 0, %v2987_v34  ;;  %v2997_v7 = vxor.u32 2147483648, %v13641_v54  ;;  %v3000_v44 = vxor.u32 2147483648, %v13642_v0 }
 0x425   : > { %v2899_v38 = vsel %vm2888_vm6, nan, %v2898_v13  ;;  %v6299_v2 = vand.u32 3, %v2989_v36  ;;  %v2993_v41 = vadd.s32 3, %v2989_v36  ;;  %vm2992_vm15 = vweird.f32 %v13636_v42 }
 0x426   : > { %8682 = vmatmul.mubr.msk.f32.gmra.mrb[20].mxu0 %vm13643_vm1, %v2899_v38  ;;  %v3090_v56 = vsub.s32 4, %v13644_v3  ;;  %v3101_v10 = vxor.u32 2147483648, %v13645_v37  ;;  %v3104_v6 = vxor.u32 2147483648, %v13646_v4  ;;  %vm13648_vm6 = vcmp.lt.s32.totalorder %v13647_v21, 0 }
 0x427   : > { %vm6300_vm14 = vcmp.lt.s32.totalorder %v6299_v2, 2  ;;  %vm6301_vm11 = vcmp.eq.s32.totalorder %v6299_v2, 0  ;;  %vm6304_vm2 = vcmp.eq.s32.totalorder %v6299_v2, 2  ;;  %v2994_v9 = vand.u32 3, %v2993_v41 }
 0x428   : > { %v6303_v11 = vsel %vm6301_vm11, %v13642_v0, %v2997_v7  ;;  %v6306_v24 = vsel %vm6304_vm2, %v3000_v44, %v13641_v54  ;;  %v3091_v25 = vsel %vm13648_vm6, %v3090_v56, %v13644_v3  ;;  %v3194_v29 = vsub.s32 4, %v13649_v32  ;;  %v13657_v3 = vld [vmem:[#allocation112_spill] sm:$0xff] }
 0x429   : > { %v6307_v14 = vsel %vm6300_vm14, %v6303_v11, %v6306_v24  ;;  %vm2995_vm0 = vcmp.lt.s32.totalorder %v2994_v9, 2  ;;  %vm2996_vm3 = vcmp.eq.s32.totalorder %v2994_v9, 0  ;;  %vm2999_vm10 = vcmp.eq.s32.totalorder %v2994_v9, 2  ;;  %v13660_v11 = vld [vmem:[#allocation102_spill] sm:$0xff] }
 0x42a   : > { %v6308_v1 = vsel %vm2992_vm15, nan, %v6307_v14  ;;  %v2998_v58 = vsel %vm2996_vm3, %v13642_v0, %v2997_v7  ;;  %v3001_v57 = vsel %vm2999_vm10, %v3000_v44, %v13641_v54  ;;  %vm13651_vm4 = vnez %v13650_v48  ;;  %vm13656_vm3 = vmmov %vm13643_vm1  ;;  %v13664_v14 = vld [vmem:[#allocation122_spill] sm:$0xff] }
 0x42b   : > { %v3093_v53 = vsel %vm13651_vm4, 0, %v3091_v25  ;;  %8620 = vmatprep.mubr.msk.f32.mxu1 %vm13652_vm5, %v6308_v1  ;;  %v3002_v52 = vsel %vm2995_vm0, %v2998_v58, %v3001_v57  ;;  %vm13654_vm8 = vcmp.lt.s32.totalorder %v13653_v35, 0  ;;  %vm3096_vm7 = vweird.f32 %v13647_v21  ;;  %v12578_v47 = vpop.eup %9089  ;;  %vm13658_vm5 = vmmov %vm13643_vm1  ;;  %v13662_v21 = vld [vmem:[#allocation130_spill] sm:$0xff] }
 0x42c   : > { %v6402_v33 = vand.u32 3, %v3093_v53  ;;  %v3097_v39 = vadd.s32 3, %v3093_v53  ;;  %v3195_v51 = vsel %vm13654_vm8, %v3194_v29, %v13649_v32  ;;  %v3003_v8 = vsel %vm2992_vm15, nan, %v3002_v52  ;;  %v13663_v32 = vld [vmem:[#allocation125_spill] sm:$0xff] }
 0x42d   : > { %v3197_v22 = vsel %vm11643_vm12, 0, %v3195_v51  ;;  %v3205_v15 = vxor.u32 2147483648, %v11880_v43  ;;  %8684 = vmatprep.mubr.msk.f32.mxu0 %vm13643_vm1, %v3003_v8  ;;  %v3208_v34 = vxor.u32 2147483648, %v11875_v60  ;;  %v3298_v56 = vsub.s32 4, %v13657_v3 }
 0x42e   : > { %vm6403_vm14 = vcmp.lt.s32.totalorder %v6402_v33, 2  ;;  %vm6404_vm11 = vcmp.eq.s32.totalorder %v6402_v33, 0  ;;  %vm6407_vm2 = vcmp.eq.s32.totalorder %v6402_v33, 2  ;;  %v3098_v5 = vand.u32 3, %v3097_v39 }
 0x42f   : > { %v6406_v31 = vsel %vm6404_vm11, %v13646_v4, %v3101_v10  ;;  %v6409_v42 = vsel %vm6407_vm2, %v3104_v6, %v13645_v37  ;;  %v6505_v13 = vand.u32 3, %v3197_v22  ;;  %v3201_v0 = vadd.s32 3, %v3197_v22 }
 0x430   : > { %v6410_v49 = vsel %vm6403_vm14, %v6406_v31, %v6409_v42  ;;  %vm3099_vm12 = vcmp.lt.s32.totalorder %v3098_v5, 2  ;;  %vm3100_vm15 = vcmp.eq.s32.totalorder %v3098_v5, 0  ;;  %vm3103_vm6 = vcmp.eq.s32.totalorder %v3098_v5, 2 }
 0x431   : > { %v6411_v36 = vsel %vm3096_vm7, nan, %v6410_v49  ;;  %v3102_v54 = vsel %vm3100_vm15, %v13646_v4, %v3101_v10  ;;  %v3105_v7 = vsel %vm3103_vm6, %v3104_v6, %v13645_v37  ;;  %vm6506_vm0 = vcmp.lt.s32.totalorder %v6505_v13, 2  ;;  %v13659_v4 = vld [vmem:[#allocation133_spill] sm:$0xff] }
 0x432   : > { %8621 = vmatmul.mubr.msk.f32.gmra.mrb[22].mxu1 %vm13656_vm3, %v6411_v36  ;;  %v3106_v38 = vsel %vm3099_vm12, %v3102_v54, %v3105_v7  ;;  %vm6507_vm10 = vcmp.eq.s32.totalorder %v6505_v13, 0  ;;  %vm6510_vm4 = vcmp.eq.s32.totalorder %v6505_v13, 2  ;;  %vm3200_vm8 = vweird.f32 %v13653_v35  ;;  %v13670_v7 = vld [vmem:[#allocation120_spill] sm:$0xff] }
 0x433   : > { %v3107_v44 = vsel %vm3096_vm7, nan, %v3106_v38  ;;  %v6509_v2 = vsel %vm6507_vm10, %v11875_v60, %v3205_v15  ;;  %v6512_v41 = vsel %vm6510_vm4, %v3208_v34, %v11880_v43  ;;  %v3202_v10 = vand.u32 3, %v3201_v0  ;;  %vm13667_vm4 = vmmov %vm13643_vm1 }
 0x434   : > { %8685 = vmatmul.mubr.msk.f32.gmra.mrb[22].mxu0 %vm13658_vm5, %v3107_v44  ;;  %v6513_v37 = vsel %vm6506_vm0, %v6509_v2, %v6512_v41  ;;  %v3309_v6 = vxor.u32 2147483648, %v13659_v4  ;;  %vm13661_vm7 = vcmp.lt.s32.totalorder %v13660_v11, 0  ;;  %v3312_v25 = vxor.u32 2147483648, %v13662_v21 }
 0x435   : > { %v6514_v9 = vsel %vm3200_vm8, nan, %v6513_v37  ;;  %v3299_v24 = vsel %vm13661_vm7, %v3298_v56, %v13657_v3  ;;  %v3402_v29 = vsub.s32 4, %v13663_v32  ;;  %vm3203_vm14 = vcmp.lt.s32.totalorder %v3202_v10, 2 }
 0x436   : > { %8623 = vmatprep.mubr.msk.f32.mxu1 %vm13643_vm1, %v6514_v9  ;;  %vm3204_vm11 = vcmp.eq.s32.totalorder %v3202_v10, 0  ;;  %vm3207_vm2 = vcmp.eq.s32.totalorder %v3202_v10, 2  ;;  %vm13665_vm12 = vnez %v13664_v14  ;;  %vm3304_vm15 = vweird.f32 %v13660_v11 }
 0x437   : > { %v3301_v1 = vsel %vm13665_vm12, 0, %v3299_v24  ;;  %v3206_v58 = vsel %vm3204_vm11, %v11875_v60, %v3205_v15  ;;  %v3209_v57 = vsel %vm3207_vm2, %v3208_v34, %v11880_v43  ;;  %vm13666_vm6 = vcmp.lt.s32.totalorder %v11430_v16, 0 }
 0x438   : > { %v6608_v48 = vand.u32 3, %v3301_v1  ;;  %v3305_v53 = vadd.s32 3, %v3301_v1  ;;  %v3210_v52 = vsel %vm3203_vm14, %v3206_v58, %v3209_v57  ;;  %v3403_v33 = vsel %vm13666_vm6, %v3402_v29, %v13663_v32  ;;  %vm13669_vm14 = vmmov %vm13667_vm4 }
 0x439   : > { %v3413_v39 = vxor.u32 2147483648, %v12042_v50  ;;  %v3211_v51 = vsel %vm3200_vm8, nan, %v3210_v52  ;;  %vm13668_vm5 = vnez %v13426_v46  ;;  %v3416_v15 = vxor.u32 2147483648, %v11961_v23 }
 0x43a   : > { %vm6609_vm0 = vcmp.lt.s32.totalorder %v6608_v48, 2  ;;  %vm6610_vm3 = vcmp.eq.s32.totalorder %v6608_v48, 0  ;;  %vm6613_vm10 = vcmp.eq.s32.totalorder %v6608_v48, 2  ;;  %8687 = vmatprep.mubr.msk.f32.mxu0 %vm13667_vm4, %v3211_v51  ;;  %v3306_v8 = vand.u32 3, %v3305_v53 }
 0x43b   : > { %v6612_v60 = vsel %vm6610_vm3, %v13662_v21, %v3309_v6  ;;  %v6615_v43 = vsel %vm6613_vm10, %v3312_v25, %v13659_v4  ;;  %v3405_v55 = vsel %vm13668_vm5, 0, %v3403_v33  ;;  %vm3408_vm1 = vweird.f32 %v11430_v16 }
 0x43c   : > { %v6616_v22 = vsel %vm6609_vm0, %v6612_v60, %v6615_v43  ;;  %v6711_v5 = vand.u32 3, %v3405_v55  ;;  %v3409_v31 = vadd.s32 3, %v3405_v55  ;;  %vm3308_vm8 = vcmp.eq.s32.totalorder %v3306_v8, 0  ;;  %vm13671_vm0 = vmmov %vm13667_vm4 }
 0x43d   : > { %v6617_v35 = vsel %vm3304_vm15, nan, %v6616_v22  ;;  %vm3311_vm7 = vcmp.eq.s32.totalorder %v3306_v8, 2  ;;  %vm3307_vm11 = vcmp.lt.s32.totalorder %v3306_v8, 2  ;;  %v3310_v42 = vsel %vm3308_vm8, %v13662_v21, %v3309_v6  ;;  %vm13673_vm5 = vmmov %vm13671_vm0  ;;  %v13677_v21 = vld [vmem:[#allocation131_spill] sm:$0xff] }
 0x43e   : > { %8624 = vmatmul.mubr.msk.f32.gmra.mrb[24].mxu1 %vm13669_vm14, %v6617_v35  ;;  %v3313_v46 = vsel %vm3311_vm7, %v3312_v25, %v13659_v4  ;;  %vm6713_vm2 = vcmp.eq.s32.totalorder %v6711_v5, 0  ;;  %vm6716_vm12 = vcmp.eq.s32.totalorder %v6711_v5, 2  ;;  %v3410_v49 = vand.u32 3, %v3409_v31  ;;  %vm13676_vm7 = vmmov %vm13671_vm0 }
 0x43f   : > { %v3314_v34 = vsel %vm3307_vm11, %v3310_v42, %v3313_v46  ;;  %v6715_v13 = vsel %vm6713_vm2, %v11961_v23, %v3413_v39  ;;  %vm6712_vm6 = vcmp.lt.s32.totalorder %v6711_v5, 2  ;;  %v6718_v54 = vsel %vm6716_vm12, %v3416_v15, %v12042_v50 }
 0x440   : > { %v3315_v36 = vsel %vm3304_vm15, nan, %v3314_v34  ;;  %v3506_v38 = vsub.s32 4, %v13670_v7  ;;  %v6719_v0 = vsel %vm6712_vm6, %v6715_v13, %v6718_v54  ;;  %vm3411_vm3 = vcmp.lt.s32.totalorder %v3410_v49, 2 }
 0x441   : > { %8688 = vmatmul.mubr.msk.f32.gmra.mrb[24].mxu0 %vm13671_vm0, %v3315_v36  ;;  %vm3412_vm10 = vcmp.eq.s32.totalorder %v3410_v49, 0  ;;  %vm3415_vm4 = vcmp.eq.s32.totalorder %v3410_v49, 2  ;;  %v6720_v44 = vsel %vm3408_vm1, nan, %v6719_v0  ;;  %vm13672_vm15 = vcmp.lt.s32.totalorder %v11353_v45, 0 }
 0x442   : > { %v3414_v2 = vsel %vm3412_vm10, %v11961_v23, %v3413_v39  ;;  %v3417_v41 = vsel %vm3415_vm4, %v3416_v15, %v12042_v50  ;;  %v3507_v3 = vsel %vm13672_vm15, %v3506_v38, %v13670_v7  ;;  %8626 = vmatprep.mubr.msk.f32.mxu1 %vm13673_vm5, %v6720_v44  ;;  %vm13674_vm8 = vnez %v13423_v26  ;;  %v13675_v50 = vld [vmem:[#allocation132_spill] sm:$0xff]  ;;  %vm13680_vm15 = vmmov %vm13673_vm5 }
 0x443   : > { %v3418_v56 = vsel %vm3411_vm3, %v3414_v2, %v3417_v41  ;;  %v3509_v37 = vsel %vm13674_vm8, 0, %v3507_v3  ;;  %v3517_v10 = vxor.u32 2147483648, %v11952_v19  ;;  %v3520_v4 = vxor.u32 2147483648, %v11888_v40 }
 0x444   : > { %v3419_v6 = vsel %vm3408_vm1, nan, %v3418_v56  ;;  %v6814_v23 = vand.u32 3, %v3509_v37  ;;  %v3513_v9 = vadd.s32 3, %v3509_v37  ;;  %v3610_v11 = vsub.s32 4, %v13675_v50  ;;  %v13689_v56 = vld [vmem:[#allocation13_spill] sm:$0xff] }
 0x445   : > { %8690 = vmatprep.mubr.msk.f32.mxu0 %vm13676_vm7, %v3419_v6  ;;  %vm3512_vm14 = vweird.f32 %v11353_v45  ;;  %v3621_v24 = vxor.u32 2147483648, %v12064_v20  ;;  %v3624_v26 = vxor.u32 2147483648, %v12053_v61  ;;  %v3714_v25 = vsub.s32 4, %v13677_v21 }
 0x446   : > { %vm6815_vm11 = vcmp.lt.s32.totalorder %v6814_v23, 2  ;;  %vm6816_vm2 = vcmp.eq.s32.totalorder %v6814_v23, 0  ;;  %vm6819_vm12 = vcmp.eq.s32.totalorder %v6814_v23, 2  ;;  %v3514_v32 = vand.u32 3, %v3513_v9  ;;  %v13691_v9 = vld [vmem:[#allocation123_spill] sm:$0xff] }
 0x447   : > { %vm3616_vm1 = vweird.f32 %v11457_v17  ;;  %v6818_v16 = vsel %vm6816_vm2, %v11888_v40, %v3517_v10  ;;  %v6821_v29 = vsel %vm6819_vm12, %v3520_v4, %v11952_v19  ;;  %vm13678_vm6 = vcmp.lt.s32.totalorder %v11457_v17, 0 }
 0x448   : > { %v3611_v14 = vsel %vm13678_vm6, %v3610_v11, %v13675_v50  ;;  %vm13679_vm0 = vcmp.lt.s32.totalorder %v11454_v30, 0  ;;  %v6822_v58 = vsel %vm6815_vm11, %v6818_v16, %v6821_v29  ;;  %vm3515_vm3 = vcmp.lt.s32.totalorder %v3514_v32, 2 }
 0x449   : > { %v3715_v1 = vsel %vm13679_vm0, %v3714_v25, %v13677_v21  ;;  %vm3516_vm10 = vcmp.eq.s32.totalorder %v3514_v32, 0  ;;  %vm3519_vm4 = vcmp.eq.s32.totalorder %v3514_v32, 2  ;;  %v6823_v57 = vsel %vm3512_vm14, nan, %v6822_v58  ;;  %v13693_v25 = vld [vmem:[#allocation135_spill] sm:$0xff] }
 0x44a   : > { %v3518_v48 = vsel %vm3516_vm10, %v11888_v40, %v3517_v10  ;;  %v3521_v53 = vsel %vm3519_vm4, %v3520_v4, %v11952_v19  ;;  %v3613_v52 = vsel %vm11944_vm9, 0, %v3611_v14  ;;  %8627 = vmatmul.mubr.msk.f32.gmra.mrb[26].mxu1 %vm13680_vm15, %v6823_v57  ;;  %vm13681_vm5 = vnez %v13432_v28  ;;  %v13690_v4 = vld [vmem:[#allocation14_spill] sm:$0xff] }
 0x44b   : > { %v3522_v33 = vsel %vm3515_vm3, %v3518_v48, %v3521_v53  ;;  %v6917_v39 = vand.u32 3, %v3613_v52  ;;  %v3617_v51 = vadd.s32 3, %v3613_v52  ;;  %v3717_v60 = vsel %vm13681_vm5, 0, %v3715_v1  ;;  %vm13682_vm3 = vmmov %vm13676_vm7 }
 0x44c   : > { %v3523_v43 = vsel %vm3512_vm14, nan, %v3522_v33  ;;  %vm3720_vm8 = vweird.f32 %v11454_v30  ;;  %v3725_v40 = vxor.u32 2147483648, %v12050_v59  ;;  %v3728_v19 = vxor.u32 2147483648, %v12046_v63  ;;  %vm13683_vm15 = vmmov %vm13682_vm3 }
 0x44d   : > { %8691 = vmatmul.mubr.msk.f32.gmra.mrb[26].mxu0 %vm13676_vm7, %v3523_v43  ;;  %vm6918_vm9 = vcmp.lt.s32.totalorder %v6917_v39, 2  ;;  %vm6919_vm11 = vcmp.eq.s32.totalorder %v6917_v39, 0  ;;  %vm6922_vm2 = vcmp.eq.s32.totalorder %v6917_v39, 2  ;;  %v3618_v62 = vand.u32 3, %v3617_v51 }
 0x44e   : > { %v6921_v8 = vsel %vm6919_vm11, %v12053_v61, %v3621_v24  ;;  %v6924_v28 = vsel %vm6922_vm2, %v3624_v26, %v12064_v20  ;;  %v7020_v55 = vand.u32 3, %v3717_v60  ;;  %v3721_v22 = vadd.s32 3, %v3717_v60  ;;  %vm13685_vm11 = vmmov %vm13682_vm3  ;;  %v7896_v60 = vld [vmem:[%s12736_s18 + $0x8] sm:$0xff] }
 0x44f   : > { %v6925_v45 = vsel %vm6918_vm9, %v6921_v8, %v6924_v28  ;;  %vm3619_vm14 = vcmp.lt.s32.totalorder %v3618_v62, 2  ;;  %vm3620_vm12 = vcmp.eq.s32.totalorder %v3618_v62, 0  ;;  %vm3623_vm6 = vcmp.eq.s32.totalorder %v3618_v62, 2  ;;  %vm13687_vm2 = vmmov %vm13682_vm3  ;;  %v7895_v62 = vld [vmem:[%s12736_s18] sm:$0xff] }
 0x450   : > { %v6926_v15 = vsel %vm3616_vm1, nan, %v6925_v45  ;;  %v3622_v5 = vsel %vm3620_vm12, %v12053_v61, %v3621_v24  ;;  %v3625_v31 = vsel %vm3623_vm6, %v3624_v26, %v12064_v20  ;;  %vm7021_vm0 = vcmp.lt.s32.totalorder %v7020_v55, 2  ;;  %v12745_v8 = vld [vmem:[%s12911_s5] ss:$0 sm:$0xff] }
 0x451   : > { %8629 = vmatprep.mubr.msk.f32.mxu1 %vm13682_vm3, %v6926_v15  ;;  %v3626_v35 = vsel %vm3619_vm14, %v3622_v5, %v3625_v31  ;;  %vm7022_vm10 = vcmp.eq.s32.totalorder %v7020_v55, 0  ;;  %vm7025_vm4 = vcmp.eq.s32.totalorder %v7020_v55, 2  ;;  %v3722_v42 = vand.u32 3, %v3721_v22  ;;  %v7898_v5 = vld [vmem:[%s12736_s18 + $0x18] sm:$0xff] }
 0x452   : > { %v3627_v46 = vsel %vm3616_vm1, nan, %v3626_v35  ;;  %v7024_v34 = vsel %vm7022_vm10, %v12046_v63, %v3725_v40  ;;  %v7027_v13 = vsel %vm7025_vm4, %v3728_v19, %v12050_v59  ;;  %v3818_v49 = vsub.s32 4, %v11968_v12 }
 0x453   : > { %8693 = vmatprep.mubr.msk.f32.mxu0 %vm13683_vm15, %v3627_v46  ;;  %v7028_v61 = vsel %vm7021_vm0, %v7024_v34, %v7027_v13  ;;  %vm3723_vm5 = vcmp.lt.s32.totalorder %v3722_v42, 2  ;;  %vm3724_vm7 = vcmp.eq.s32.totalorder %v3722_v42, 0  ;;  %vm3727_vm9 = vcmp.eq.s32.totalorder %v3722_v42, 2  ;;  %vm13695_vm15 = vmmov %vm13687_vm2  ;;  %v7897_v34 = vld [vmem:[%s12736_s18 + $0x10] sm:$0xff] }
 0x454   : > { %v7029_v20 = vsel %vm3720_vm8, nan, %v7028_v61  ;;  %v3726_v36 = vsel %vm3724_vm7, %v12046_v63, %v3725_v40  ;;  %v3729_v17 = vsel %vm3727_vm9, %v3728_v19, %v12050_v59  ;;  %vm13684_vm1 = vcmp.lt.s32.totalorder %v11730_v27, 0 }
 0x455   : > { %v3819_v54 = vsel %vm13684_vm1, %v3818_v49, %v11968_v12  ;;  %8630 = vmatmul.mubr.msk.f32.gmra.mrb[28].mxu1 %vm13685_vm11, %v7029_v20  ;;  %v3730_v7 = vsel %vm3723_vm5, %v3726_v36, %v3729_v17  ;;  %v3829_v44 = vxor.u32 2147483648, %v12578_v47  ;;  %v3832_v41 = vxor.u32 2147483648, %v12422_v18  ;;  %v13688_v12 = vld [vmem:[#allocation134_spill] sm:$0xff]  ;;  %vm13696_vm5 = vmmov %vm13687_vm2 }
 0x456   : > { %v3821_v0 = vsel %vm12104_vm13, 0, %v3819_v54  ;;  %v3731_v2 = vsel %vm3720_vm8, nan, %v3730_v7  ;;  %vm3824_vm14 = vweird.f32 %v11730_v27  ;;  %v3922_v59 = vsub.s32 4, %v13688_v12  ;;  %v7900_v54 = vld [vmem:[%s12736_s18 + $0x28] sm:$0xff] }
 0x457   : > { %v7123_v63 = vand.u32 3, %v3821_v0  ;;  %v3825_v3 = vadd.s32 3, %v3821_v0  ;;  %8694 = vmatmul.mubr.msk.f32.gmra.mrb[28].mxu0 %vm13687_vm2, %v3731_v2  ;;  %v3933_v37 = vxor.u32 2147483648, %v13689_v56  ;;  %v3936_v6 = vxor.u32 2147483648, %v13690_v4  ;;  %v7899_v2 = vld [vmem:[%s12736_s18 + $0x20] sm:$0xff] }
 0x458   : > { %vm13692_vm8 = vcmp.lt.s32.totalorder %v13691_v9, 0  ;;  %vm13694_vm4 = vnez %v13693_v25  ;;  %vm3928_vm11 = vweird.f32 %v13691_v9  ;;  %v7904_v25 = vld [vmem:[%s12736_s18 + $0x48] sm:$0xff] }
 0x459   : > { %vm7125_vm12 = vcmp.eq.s32.totalorder %v7123_v63, 0  ;;  %vm7128_vm6 = vcmp.eq.s32.totalorder %v7123_v63, 2  ;;  %v3826_v10 = vand.u32 3, %v3825_v3  ;;  %vm7124_vm13 = vcmp.lt.s32.totalorder %v7123_v63, 2 }
 0x45a   : > { %v7127_v30 = vsel %vm7125_vm12, %v12422_v18, %v3829_v44  ;;  %v7130_v23 = vsel %vm7128_vm6, %v3832_v41, %v12578_v47  ;;  %v3923_v50 = vsel %vm13692_vm8, %v3922_v59, %v13688_v12 }
 0x45b   : > { %v7131_v11 = vsel %vm7124_vm13, %v7127_v30, %v7130_v23  ;;  %vm3827_vm0 = vcmp.lt.s32.totalorder %v3826_v10, 2  ;;  %vm3828_vm3 = vcmp.eq.s32.totalorder %v3826_v10, 0  ;;  %vm3831_vm10 = vcmp.eq.s32.totalorder %v3826_v10, 2  ;;  %vm13698_vm13 = vmmov %vm13696_vm5  ;;  %v7901_v23 = vld [vmem:[%s12736_s18 + $0x30] sm:$0xff] }
 0x45c   : > { %v7132_v24 = vsel %vm3824_vm14, nan, %v7131_v11  ;;  %v3830_v26 = vsel %vm3828_vm3, %v12422_v18, %v3829_v44  ;;  %v3833_v21 = vsel %vm3831_vm10, %v3832_v41, %v12578_v47  ;;  %v3925_v32 = vsel %vm13694_vm4, 0, %v3923_v50 }
 0x45d   : > { %8632 = vmatprep.mubr.msk.f32.mxu1 %vm13695_vm15, %v7132_v24  ;;  %v3834_v16 = vsel %vm3827_vm0, %v3830_v26, %v3833_v21  ;;  %v7226_v29 = vand.u32 3, %v3925_v32  ;;  %v3929_v14 = vadd.s32 3, %v3925_v32 }
 0x45e   : > { %v3835_v1 = vsel %vm3824_vm14, nan, %v3834_v16  ;;  %vm13697_vm14 = vmmov %vm13696_vm5 }
 0x45f   : > { %8696 = vmatprep.mubr.msk.f32.mxu0 %vm13696_vm5, %v3835_v1  ;;  %vm7228_vm7 = vcmp.eq.s32.totalorder %v7226_v29, 0  ;;  %vm7231_vm9 = vcmp.eq.s32.totalorder %v7226_v29, 2  ;;  %v3930_v58 = vand.u32 3, %v3929_v14  ;;  %vm7227_vm1 = vcmp.lt.s32.totalorder %v7226_v29, 2  ;;  %v7903_v1 = vld [vmem:[%s12736_s18 + $0x40] sm:$0xff] }
 0x460   : > { %v7230_v18 = vsel %vm7228_vm7, %v13690_v4, %v3933_v37  ;;  %v7233_v47 = vsel %vm7231_vm9, %v3936_v6, %v13689_v56 }
 0x461   : > { %v7234_v57 = vsel %vm7227_vm1, %v7230_v18, %v7233_v47  ;;  %vm3932_vm2 = vcmp.eq.s32.totalorder %v3930_v58, 0  ;;  %vm3935_vm12 = vcmp.eq.s32.totalorder %v3930_v58, 2  ;;  %vm3931_vm6 = vcmp.lt.s32.totalorder %v3930_v58, 2 }
 0x462   : > { %v7235_v48 = vsel %vm3928_vm11, nan, %v7234_v57  ;;  %v3934_v27 = vsel %vm3932_vm2, %v13690_v4, %v3933_v37  ;;  %v3937_v53 = vsel %vm3935_vm12, %v3936_v6, %v13689_v56  ;;  %v7902_v37 = vld [vmem:[%s12736_s18 + $0x38] sm:$0xff] }
 0x463   : > { %8633 = vmatmul.mubr.msk.f32.gmra.mrb[30].mxu1 %vm13697_vm14, %v7235_v48  ;;  %v3938_v52 = vsel %vm3931_vm6, %v3934_v27, %v3937_v53 }
 0x464   : > { %v3939_v33 = vsel %vm3928_vm11, nan, %v3938_v52 }
 0x465   : > { %8697 = vmatmul.mubr.msk.f32.gmra.mrb[30].mxu0 %vm13698_vm13, %v3939_v33 }
 0x49f   : > { %v8589_v39 = vpop.f32.mrb[0].mxu1 }
 0x4a0   : > { %v8653_v51 = vpop.f32.mrb[0].mxu0  ;;  %v7415_v40 = vpop.f32.mrb[1].mxu1 }
 0x4a1   : > { %v7742_v43 = vadd.f32 %v8653_v51, %v8589_v39  ;;  %v7736_v19 = vpop.f32.mrb[1].mxu0  ;;  %v7906_v39 = vld [vmem:[%s12736_s18 + $0x58] sm:$0xff] }
 0x4a2   : > { %v7737_v28 = vadd.f32 %v7736_v19, %v7415_v40 }
 0x4a3   : > { %v7928_v55 = vadd.f32 %v7896_v60, %v7742_v43  ;;  %v8592_v45 = vpop.f32.mrb[2].mxu1  ;;  %v7905_v43 = vld [vmem:[%s12736_s18 + $0x50] sm:$0xff] }
 0x4a4   : > { %v7927_v22 = vadd.f32 %v7895_v62, %v7737_v28  ;;  %v8656_v15 = vpop.f32.mrb[2].mxu0  ;;  %v7425_v42 = vpop.f32.mrb[3].mxu1 }
 0x4a5   : > { %v7967_v31 = vadd.f32 %v12745_v8, %v7928_v55  ;;  %v7752_v35 = vadd.f32 %v8656_v15, %v8592_v45  ;;  %v7746_v46 = vpop.f32.mrb[3].mxu0 }
 0x4a6   : > { %v7966_v13 = vadd.f32 %v12745_v8, %v7927_v22  ;;  %v7747_v49 = vadd.f32 %v7746_v46, %v7425_v42  ;;  %v7907_v42 = vld [vmem:[%s12736_s18 + $0x60] sm:$0xff] }
 0x4a7   : > { %7999 = vst [vmem:[%s12751_s14 + $0x8] sm:$0xff] %v7967_v31  ;;  %v7930_v61 = vadd.f32 %v7898_v5, %v7752_v35  ;;  %v8595_v36 = vpop.f32.mrb[4].mxu1  ;;  %v7908_v5 = vld [vmem:[%s12736_s18 + $0x68] sm:$0xff] }
 0x4a8   : > { %7998 = vst [vmem:[%s12751_s14] sm:$0xff] %v7966_v13  ;;  %v7929_v20 = vadd.f32 %v7897_v34, %v7747_v49  ;;  %v8659_v17 = vpop.f32.mrb[4].mxu0  ;;  %v7435_v0 = vpop.f32.mrb[5].mxu1 }
 0x4a9   : > { %v7969_v7 = vadd.f32 %v12745_v8, %v7930_v61  ;;  %v7762_v38 = vadd.f32 %v8659_v17, %v8595_v36  ;;  %v7756_v44 = vpop.f32.mrb[5].mxu0 }
 0x4aa   : > { %v7968_v41 = vadd.f32 %v12745_v8, %v7929_v20  ;;  %v7757_v63 = vadd.f32 %v7756_v44, %v7435_v0  ;;  %v7909_v0 = vld [vmem:[%s12736_s18 + $0x70] sm:$0xff] }
 0x4ab   : > { %8001 = vst [vmem:[%s12751_s14 + $0x18] sm:$0xff] %v7969_v7  ;;  %v7932_v3 = vadd.f32 %v7900_v54, %v7762_v38  ;;  %v8598_v59 = vpop.f32.mrb[6].mxu1  ;;  %v7910_v54 = vld [vmem:[%s12736_s18 + $0x78] sm:$0xff] }
 0x4ac   : > { %8000 = vst [vmem:[%s12751_s14 + $0x10] sm:$0xff] %v7968_v41  ;;  %v7931_v12 = vadd.f32 %v7899_v2, %v7757_v63  ;;  %v8662_v56 = vpop.f32.mrb[6].mxu0  ;;  %v7445_v6 = vpop.f32.mrb[7].mxu1 }
 0x4ad   : > { %v7971_v10 = vadd.f32 %v12745_v8, %v7932_v3  ;;  %v7772_v4 = vadd.f32 %v8662_v56, %v8598_v59  ;;  %v7766_v30 = vpop.f32.mrb[7].mxu0 }
 0x4ae   : > { %v7970_v9 = vadd.f32 %v12745_v8, %v7931_v12  ;;  %v7767_v50 = vadd.f32 %v7766_v30, %v7445_v6  ;;  %v7911_v6 = vld [vmem:[%s12736_s18 + $0x80] sm:$0xff] }
 0x4af   : > { %8003 = vst [vmem:[%s12751_s14 + $0x28] sm:$0xff] %v7971_v10  ;;  %v7934_v11 = vadd.f32 %v7902_v37, %v7772_v4  ;;  %v8601_v26 = vpop.f32.mrb[8].mxu1  ;;  %v7912_v37 = vld [vmem:[%s12736_s18 + $0x88] sm:$0xff] }
 0x4b0   : > { %8002 = vst [vmem:[%s12751_s14 + $0x20] sm:$0xff] %v7970_v9  ;;  %v7933_v24 = vadd.f32 %v7901_v23, %v7767_v50  ;;  %v8665_v21 = vpop.f32.mrb[8].mxu0  ;;  %v7455_v29 = vpop.f32.mrb[9].mxu1 }
 0x4b1   : > { %v7973_v32 = vadd.f32 %v12745_v8, %v7934_v11  ;;  %v7782_v16 = vadd.f32 %v8665_v21, %v8601_v26  ;;  %v7776_v14 = vpop.f32.mrb[9].mxu0 }
 0x4b2   : > { %v7972_v58 = vadd.f32 %v12745_v8, %v7933_v24  ;;  %v7777_v18 = vadd.f32 %v7776_v14, %v7455_v29  ;;  %v7913_v29 = vld [vmem:[%s12736_s18 + $0x90] sm:$0xff] }
 0x4b3   : > { %8005 = vst [vmem:[%s12751_s14 + $0x38] sm:$0xff] %v7973_v32  ;;  %v7936_v47 = vadd.f32 %v7904_v25, %v7782_v16  ;;  %v7914_v25 = vld [vmem:[%s12736_s18 + $0x98] sm:$0xff] }
 0x4b4   : > { %8004 = vst [vmem:[%s12751_s14 + $0x30] sm:$0xff] %v7972_v58  ;;  %v7935_v57 = vadd.f32 %v7903_v1, %v7777_v18 }
 0x4b5   : > { %v7975_v48 = vadd.f32 %v12745_v8, %v7936_v47 }
 0x4b6   : > { %v7974_v27 = vadd.f32 %v12745_v8, %v7935_v57 }
 0x4b7   : > { %8007 = vst [vmem:[%s12751_s14 + $0x48] sm:$0xff] %v7975_v48 }
 0x4b8   : > { %8006 = vst [vmem:[%s12751_s14 + $0x40] sm:$0xff] %v7974_v27 }
 0x4b9   : > { %v8604_v53 = vpop.f32.mrb[10].mxu1 }
 0x4ba   : > { %v7465_v52 = vpop.f32.mrb[11].mxu1 }
 0x4bc   : > { %v8668_v33 = vpop.f32.mrb[10].mxu0 }
 0x4bd   : > { %v7792_v51 = vadd.f32 %v8668_v33, %v8604_v53  ;;  %v7786_v60 = vpop.f32.mrb[11].mxu0  ;;  %v7916_v53 = vld [vmem:[%s12736_s18 + $0xa8] sm:$0xff] }
 0x4be   : > { %v7787_v40 = vadd.f32 %v7786_v60, %v7465_v52 }
 0x4bf   : > { %v7938_v19 = vadd.f32 %v7906_v39, %v7792_v51  ;;  %v7915_v39 = vld [vmem:[%s12736_s18 + $0xa0] sm:$0xff] }
 0x4c0   : > { %v7937_v62 = vadd.f32 %v7905_v43, %v7787_v40 }
 0x4c1   : > { %v7977_v28 = vadd.f32 %v12745_v8, %v7938_v19 }
 0x4c2   : > { %v7976_v55 = vadd.f32 %v12745_v8, %v7937_v62 }
 0x4c3   : > { %8009 = vst [vmem:[%s12751_s14 + $0x58] sm:$0xff] %v7977_v28 }
 0x4c4   : > { %8008 = vst [vmem:[%s12751_s14 + $0x50] sm:$0xff] %v7976_v55  ;;  %v8607_v22 = vpop.f32.mrb[12].mxu1 }
 0x4c5   : > { %v7475_v45 = vpop.f32.mrb[13].mxu1 }
 0x4c6   : > { %v8671_v15 = vpop.f32.mrb[12].mxu0 }
 0x4c7   : > { %v7802_v31 = vadd.f32 %v8671_v15, %v8607_v22  ;;  %v7796_v35 = vpop.f32.mrb[13].mxu0  ;;  %v7918_v22 = vld [vmem:[%s12736_s18 + $0xb8] sm:$0xff] }
 0x4c8   : > { %v7797_v46 = vadd.f32 %v7796_v35, %v7475_v45 }
 0x4c9   : > { %v7940_v34 = vadd.f32 %v7908_v5, %v7802_v31  ;;  %v7917_v5 = vld [vmem:[%s12736_s18 + $0xb0] sm:$0xff] }
 0x4ca   : > { %v7939_v13 = vadd.f32 %v7907_v42, %v7797_v46 }
 0x4cb   : > { %v7979_v49 = vadd.f32 %v12745_v8, %v7940_v34 }
 0x4cc   : > { %v7978_v61 = vadd.f32 %v12745_v8, %v7939_v13 }
 0x4cd   : > { %8011 = vst [vmem:[%s12751_s14 + $0x68] sm:$0xff] %v7979_v49 }
 0x4ce   : > { %8010 = vst [vmem:[%s12751_s14 + $0x60] sm:$0xff] %v7978_v61 }
 0x4d3   : > { %v8610_v20 = vpop.f32.mrb[14].mxu1 }
 0x4d4   : > { %v7485_v36 = vpop.f32.mrb[15].mxu1 }
 0x4d5   : > { %v8674_v17 = vpop.f32.mrb[14].mxu0 }
 0x4d6   : > { %v7812_v7 = vadd.f32 %v8674_v17, %v8610_v20  ;;  %v7806_v38 = vpop.f32.mrb[15].mxu0  ;;  %v7920_v20 = vld [vmem:[%s12736_s18 + $0xc8] sm:$0xff] }
 0x4d7   : > { %v7807_v44 = vadd.f32 %v7806_v38, %v7485_v36 }
 0x4d8   : > { %v7942_v2 = vadd.f32 %v7910_v54, %v7812_v7  ;;  %v7919_v54 = vld [vmem:[%s12736_s18 + $0xc0] sm:$0xff] }
 0x4d9   : > { %v7941_v41 = vadd.f32 %v7909_v0, %v7807_v44 }
 0x4da   : > { %v7981_v63 = vadd.f32 %v12745_v8, %v7942_v2 }
 0x4db   : > { %v7980_v3 = vadd.f32 %v12745_v8, %v7941_v41 }
 0x4dc   : > { %8013 = vst [vmem:[%s12751_s14 + $0x78] sm:$0xff] %v7981_v63 }
 0x4dd   : > { %8012 = vst [vmem:[%s12751_s14 + $0x70] sm:$0xff] %v7980_v3 }
 0x4df   : > { %v8613_v12 = vpop.f32.mrb[16].mxu1 }
 0x4e0   : > { %v7495_v59 = vpop.f32.mrb[17].mxu1 }
 0x4e2   : > { %v8677_v56 = vpop.f32.mrb[16].mxu0 }
 0x4e3   : > { %v7822_v10 = vadd.f32 %v8677_v56, %v8613_v12  ;;  %v7816_v4 = vpop.f32.mrb[17].mxu0  ;;  %v7922_v12 = vld [vmem:[%s12736_s18 + $0xd8] sm:$0xff] }
 0x4e4   : > { %v7817_v30 = vadd.f32 %v7816_v4, %v7495_v59 }
 0x4e5   : > { %v7944_v23 = vadd.f32 %v7912_v37, %v7822_v10  ;;  %v7921_v37 = vld [vmem:[%s12736_s18 + $0xd0] sm:$0xff] }
 0x4e6   : > { %v7943_v9 = vadd.f32 %v7911_v6, %v7817_v30 }
 0x4e7   : > { %v7983_v50 = vadd.f32 %v12745_v8, %v7944_v23 }
 0x4e8   : > { %v7982_v11 = vadd.f32 %v12745_v8, %v7943_v9 }
 0x4e9   : > { %8015 = vst [vmem:[%s12751_s14 + $0x88] sm:$0xff] %v7983_v50 }
 0x4ea   : > { %8014 = vst [vmem:[%s12751_s14 + $0x80] sm:$0xff] %v7982_v11 }
 0x4eb   : > { %v8616_v24 = vpop.f32.mrb[18].mxu1 }
 0x4ec   : > { %v7505_v26 = vpop.f32.mrb[19].mxu1 }
 0x4ee   : > { %v8680_v21 = vpop.f32.mrb[18].mxu0 }
 0x4ef   : > { %v7832_v32 = vadd.f32 %v8680_v21, %v8616_v24  ;;  %v7826_v16 = vpop.f32.mrb[19].mxu0  ;;  %v7924_v24 = vld [vmem:[%s12736_s18 + $0xe8] sm:$0xff] }
 0x4f0   : > { %v7827_v14 = vadd.f32 %v7826_v16, %v7505_v26 }
 0x4f1   : > { %v7946_v1 = vadd.f32 %v7914_v25, %v7832_v32  ;;  %v7923_v25 = vld [vmem:[%s12736_s18 + $0xe0] sm:$0xff] }
 0x4f2   : > { %v7945_v58 = vadd.f32 %v7913_v29, %v7827_v14 }
 0x4f3   : > { %v7985_v18 = vadd.f32 %v12745_v8, %v7946_v1 }
 0x4f4   : > { %v7984_v47 = vadd.f32 %v12745_v8, %v7945_v58 }
 0x4f5   : > { %8017 = vst [vmem:[%s12751_s14 + $0x98] sm:$0xff] %v7985_v18 }
 0x4f6   : > { %8016 = vst [vmem:[%s12751_s14 + $0x90] sm:$0xff] %v7984_v47  ;;  %v8619_v57 = vpop.f32.mrb[20].mxu1 }
 0x4f7   : > { %v7515_v48 = vpop.f32.mrb[21].mxu1 }
 0x4f9   : > { %v8683_v27 = vpop.f32.mrb[20].mxu0 }
 0x4fa   : > { %v7842_v52 = vadd.f32 %v8683_v27, %v8619_v57  ;;  %v7836_v33 = vpop.f32.mrb[21].mxu0  ;;  %v7926_v57 = vld [vmem:[%s12736_s18 + $0xf8] sm:$0xff] }
 0x4fb   : > { %v7837_v51 = vadd.f32 %v7836_v33, %v7515_v48 }
 0x4fc   : > { %v7948_v60 = vadd.f32 %v7916_v53, %v7842_v52  ;;  %v7925_v53 = vld [vmem:[%s12736_s18 + $0xf0] sm:$0xff] }
 0x4fd   : > { %v7947_v43 = vadd.f32 %v7915_v39, %v7837_v51 }
 0x4fe   : > { %v7987_v40 = vadd.f32 %v12745_v8, %v7948_v60 }
 0x4ff   : > { %v7986_v19 = vadd.f32 %v12745_v8, %v7947_v43 }
 0x500   : > { %8019 = vst [vmem:[%s12751_s14 + $0xa8] sm:$0xff] %v7987_v40 }
 0x501   : > { %8018 = vst [vmem:[%s12751_s14 + $0xa0] sm:$0xff] %v7986_v19 }
 0x505   : > { %v8622_v62 = vpop.f32.mrb[22].mxu1 }
 0x506   : > { %v7525_v28 = vpop.f32.mrb[23].mxu1 }
 0x507   : > { %v8686_v55 = vpop.f32.mrb[22].mxu0 }
 0x508   : > { %v7852_v45 = vadd.f32 %v8686_v55, %v8622_v62  ;;  %v7846_v15 = vpop.f32.mrb[23].mxu0 }
 0x509   : > { %v7847_v31 = vadd.f32 %v7846_v15, %v7525_v28 }
 0x50a   : > { %v7950_v35 = vadd.f32 %v7918_v22, %v7852_v45 }
 0x50b   : > { %v7949_v42 = vadd.f32 %v7917_v5, %v7847_v31 }
 0x50c   : > { %v7989_v46 = vadd.f32 %v12745_v8, %v7950_v35 }
 0x50d   : > { %v7988_v34 = vadd.f32 %v12745_v8, %v7949_v42 }
 0x50e   : > { %8021 = vst [vmem:[%s12751_s14 + $0xb8] sm:$0xff] %v7989_v46 }
 0x50f   : > { %8020 = vst [vmem:[%s12751_s14 + $0xb0] sm:$0xff] %v7988_v34 }
 0x511   : > { %v8625_v13 = vpop.f32.mrb[24].mxu1 }
 0x512   : > { %v7535_v49 = vpop.f32.mrb[25].mxu1 }
 0x514   : > { %v8689_v61 = vpop.f32.mrb[24].mxu0 }
 0x515   : > { %v7862_v36 = vadd.f32 %v8689_v61, %v8625_v13  ;;  %v7856_v17 = vpop.f32.mrb[25].mxu0 }
 0x516   : > { %v7857_v7 = vadd.f32 %v7856_v17, %v7535_v49 }
 0x517   : > { %v7952_v38 = vadd.f32 %v7920_v20, %v7862_v36 }
 0x518   : > { %v7951_v0 = vadd.f32 %v7919_v54, %v7857_v7 }
 0x519   : > { %v7991_v44 = vadd.f32 %v12745_v8, %v7952_v38 }
 0x51a   : > { %v7990_v2 = vadd.f32 %v12745_v8, %v7951_v0 }
 0x51b   : > { %8023 = vst [vmem:[%s12751_s14 + $0xc8] sm:$0xff] %v7991_v44 }
 0x51c   : > { %8022 = vst [vmem:[%s12751_s14 + $0xc0] sm:$0xff] %v7990_v2 }
 0x51d   : > { %v8628_v41 = vpop.f32.mrb[26].mxu1 }
 0x51e   : > { %v7545_v63 = vpop.f32.mrb[27].mxu1 }
 0x520   : > { %v8692_v3 = vpop.f32.mrb[26].mxu0 }
 0x521   : > { %v7872_v59 = vadd.f32 %v8692_v3, %v8628_v41  ;;  %v7866_v56 = vpop.f32.mrb[27].mxu0 }
 0x522   : > { %v7867_v10 = vadd.f32 %v7866_v56, %v7545_v63 }
 0x523   : > { %v7954_v4 = vadd.f32 %v7922_v12, %v7872_v59 }
 0x524   : > { %v7953_v6 = vadd.f32 %v7921_v37, %v7867_v10 }
 0x525   : > { %v7993_v30 = vadd.f32 %v12745_v8, %v7954_v4 }
 0x526   : > { %v7992_v23 = vadd.f32 %v12745_v8, %v7953_v6 }
 0x527   : > { %8025 = vst [vmem:[%s12751_s14 + $0xd8] sm:$0xff] %v7993_v30 }
 0x528   : > { %8024 = vst [vmem:[%s12751_s14 + $0xd0] sm:$0xff] %v7992_v23  ;;  %v8631_v9 = vpop.f32.mrb[28].mxu1 }
 0x529   : > { %v7555_v50 = vpop.f32.mrb[29].mxu1 }
 0x52a   : > { %v8695_v11 = vpop.f32.mrb[28].mxu0 }
 0x52b   : > { %v7882_v26 = vadd.f32 %v8695_v11, %v8631_v9  ;;  %v7876_v21 = vpop.f32.mrb[29].mxu0 }
 0x52c   : > { %v7877_v32 = vadd.f32 %v7876_v21, %v7555_v50 }
 0x52d   : > { %v7956_v16 = vadd.f32 %v7924_v24, %v7882_v26 }
 0x52e   : > { %v7955_v29 = vadd.f32 %v7923_v25, %v7877_v32 }
 0x52f   : > { %v7995_v14 = vadd.f32 %v12745_v8, %v7956_v16 }
 0x530   : > { %v7994_v1 = vadd.f32 %v12745_v8, %v7955_v29 }
 0x531   : > { %8027 = vst [vmem:[%s12751_s14 + $0xe8] sm:$0xff] %v7995_v14 }
 0x532   : > { %8026 = vst [vmem:[%s12751_s14 + $0xe0] sm:$0xff] %v7994_v1 }
 0x536   : > { %v8634_v58 = vpop.f32.mrb[30].mxu1 }
 0x537   : > { %v7565_v18 = vpop.f32.mrb[31].mxu1 }
 0x538   : > { %v8698_v47 = vpop.f32.mrb[30].mxu0 }
 0x539   : > { %v7892_v48 = vadd.f32 %v8698_v47, %v8634_v58  ;;  %v7886_v27 = vpop.f32.mrb[31].mxu0 }
 0x53a   : > { %v7887_v52 = vadd.f32 %v7886_v27, %v7565_v18  ;;  %8037 = sbr.rel (!%p13699_p10) target bundleno = 1373 (0x55d), region = 56 }
 0x53b   : > { %v7958_v33 = vadd.f32 %v7926_v57, %v7892_v48 }
 0x53c   : > { %v7957_v39 = vadd.f32 %v7925_v53, %v7887_v52 }
 0x53d   : > { %v7997_v51 = vadd.f32 %v12745_v8, %v7958_v33 }
 0x53e   : > { %v7996_v60 = vadd.f32 %v12745_v8, %v7957_v39 }
 0x53f   : > { %8029 = vst [vmem:[%s12751_s14 + $0xf8] sm:$0xff] %v7997_v51 }
 0x540   : > { %8028 = vst [vmem:[%s12751_s14 + $0xf0] sm:$0xff] %v7996_v60 }
 0x541   : > { %s13706_s28 = smov (!%p8040_p1, %s8039_s28), 32 }
 0x542   : > { %s12850_s11 = sshll.u32 %s13706_s28, 7 }
 0x543   : > { %s8044_s13 = ssub.s32 4096, %s12850_s11 }
 0x544   : > { %8045 = vsyncadd %s12845_s26, %s8044_s13  ;;  %p8484_p2 = scmp.ne.s32.totalorder %s12850_s11, 0  ;;  %s8490_s15 = sshll.u32 %s9293_s25, 12 }
 0x545   : > { %s12859_s10 = scalar_lea.hbm %s12912_s6, %s8490_s15  ;;  %s8050_s12 = sshll.u32 %s12751_s14, 4  ;;  %s12862_s12 = int_to_ptr.vmem [resolvable:$true] %s8050_s12 }
 0x546   : > { %s9151_s16 = scalar_lea.vmem %s12862_s12, %s12850_s11  ;;  %s9234_s17 = smov [#allocation7]  }
 0x547   : > { %p9152_p3 = scmp.ne.s32.totalorder %s12862_s12, %s9151_s16  ;;  %s9155_s18 = sshll.u32 %s9234_s17, 4  ;;  %s9156_s18 = int_to_ptr.vmem [resolvable:$false] %s9155_s18 }
 0x548   : > { %s9157_s25 = scalar_lea.vmem %s9156_s18, 8192  ;;  %p9158_p8 = scmp.lt.s32.totalorder %s12862_s12, %s9156_s18 }
 0x549   : > { %p9153_p4 = pnand %p9152_p3, %p8484_p2  ;;  %p9159_p11 = scmp.lt.s32.totalorder %s9157_s25, %s9151_s16 }
 0x54b   : > { %p9154_p7 = pneg %p9153_p4  ;;  %p9160_p13 = por %p9159_p11, %p9158_p8 }
 0x54d   : > { %p9161_p5 = pnand %p9160_p13, %p9154_p7 }
 0x54f   : > { %9164 = shalt.err (!%p9161_p5)
}
 0x550   : > { %s9165_s19 = scalar_lea.hbm %s12859_s10, %s12850_s11  ;;  %s9169_s14 = scalar_lea.hbm %s12912_s6, 12544 }
 0x551   : > { %p9166_p0 = scmp.ne.s32.totalorder %s12859_s10, %s9165_s19  ;;  %p9170_p12 = scmp.lt.u32.totalorder %s12859_s10, %s12912_s6 }
 0x552   : > { %p9171_p10 = scmp.lt.u32.totalorder %s9169_s14, %s9165_s19  ;;  %p9173_p3 = scmp.lt.u32.totalorder %s9165_s19, %s12859_s10 }
 0x553   : > { %p9167_p6 = pnand %p9166_p0, %p8484_p2 }
 0x554   : > { %p9172_p1 = por %p9171_p10, %p9170_p12 }
 0x555   : > { %p9168_p9 = pneg %p9167_p6 }
 0x556   : > { %p9174_p4 = por %p9173_p3, %p9172_p1 }
 0x558   : > { %p9175_p7 = pnand %p9174_p4, %p9168_p9 }
 0x55a   : > { %9178 = shalt.err (!%p9175_p7)
}
 0x55b   : > { %s9235_s15 = smov 128   ;;  %s9236_s29 = smov 8  }
 0x55c   : > { %8056 = dma.vmem_to_hbm [thread:$0]  (%p8484_p2), %s12862_s12, %s12850_s11, %s12859_s10, %s12845_s26, %s9235_s15, %s9235_s15, %s9236_s29  }
 0x55d PF: > { %p8915_p8 = scmp.ge.s32.totalorder %s9221_s24, 2  ;;  %s8065_s7 = sand.u32 1, %s9209_s21  }
 0x55e   : > { %p13700_p11 = scmp.ne.s32.totalorder %s13171_s8, 0  ;;  %s8066_s16 = scalar_lea.sflag [#allocation4], %s8065_s7 }
 0x560   : > { %p8908_p13 = pnand %p8915_p8, %p13700_p11 }
 0x562   : > { %9204 = dma.done.wait (!%p8908_p13), %s8066_s16, 4096  }
 0x563   : > { %9206 = vsyncadd (!%p8908_p13), %s8066_s16, 4294963200  ;;  %p18_p5 = scmp.ge.s32.totalorder %s9297_s27, 6   ;;  %s13701_s21 = smov %s9213_s22 }
 0x564   : > { %s13702_s22 = smov %s9217_s23  ;;  %s13703_s23 = smov %s9308_s30 }
 0x565   : > { %s13704_s24 = smov %s9297_s27  ;;  %20 = sbr.rel (!%p18_p5) target bundleno = 5 (0x5), region = 91 }
 0x56c   :  { %8071 = vsyncpa [#allocation3], 1 }
 0x56d   :  { %8073 = vsyncpa [#allocation3 + $0x1], 1 }
 0x56e   :  { %8074 = vsyncpa [#allocation6], 1 }
 0x56f   :  { %8075 = vsyncpa [#allocation4], 1 }
 0x570   :  { %8077 = vsyncpa [#allocation4 + $0x1], 1 }

</bundles_post_ra>
